<compile_context>
chip_gen: v5e
topology: v5e:2x2
jax: 0.10.0
libtpu: 0.0.40
codegen_flags: <defaults>
</compile_context>

<pallas_src>
import jax
import jax.numpy as jnp
from jax import lax
from jax.experimental import pallas as pl
from jax.experimental.pallas import tpu as pltpu

NEG_SLOPE = 0.01   # nn.LeakyReLU(negative_slope=1e-2)
EPS = 1e-5         # nn.BatchNorm2d(eps=1e-5)


def _shift2d(x, oy, ox):
    """tap[n, h, w, :] = x[n, h+oy, w+ox, :], zero-filled outside the image."""
    N, H, W, C = x.shape
    t = x
    if oy != 0:
        zrow = jnp.zeros((N, 1, W, C), x.dtype)
        t = (jnp.concatenate([t[:, 1:, :, :], zrow], axis=1) if oy > 0
             else jnp.concatenate([zrow, t[:, :H - 1, :, :]], axis=1))
    if ox != 0:
        zcol = jnp.zeros((N, H, 1, C), x.dtype)
        t = (jnp.concatenate([t[:, :, 1:, :], zcol], axis=2) if ox > 0
             else jnp.concatenate([zcol, t[:, :, :W - 1, :]], axis=2))
    return t


def _pack_minor(x3):
    """(A, B, C) -> (A, B*C): lane-dense pack via minor-axis concatenation."""
    B = x3.shape[1]
    return jnp.concatenate([x3[:, i, :] for i in range(B)], axis=-1)


def conv_bn_lrelu_kernel(x_ref, w_ref, b_ref, g_ref, be_ref, o_ref):
    """Fused conv3x3 -> (dropout p=0) -> BatchNorm(train) -> LeakyReLU.

    x_ref  : (N, H, W, Cin)   unpadded NHWC input
    w_ref  : (9*Cin, Cout)    im2col weight, rows ordered (ky, kx, ci)
    b_ref  : (1, Cout)        conv bias
    g_ref  : (1, Cout)        BN gamma
    be_ref : (1, Cout)        BN beta
    o_ref  : (N, H*W*Cout)    lane-dense output (row-major NHWC per image)
    """
    N, H, W, Cin = x_ref.shape
    Cout = w_ref.shape[1]
    M = N * H * W

    xv = x_ref[...]

    # ---- im2col: 9 zero-filled shifted taps -> (M, 9*Cin), ONE MXU matmul ----
    taps = [_shift2d(xv, oy, ox) for oy in (-1, 0, 1) for ox in (-1, 0, 1)]
    cols = jnp.concatenate(taps, axis=-1).reshape(M, 9 * Cin)

    y = jnp.dot(cols, w_ref[...], preferred_element_type=jnp.float32)
    y = y + b_ref[...]                                   # (M, Cout)

    # Dropout2d: p=0 in the nnU-Net config -> identity.
    # TODO(synk): a p>0 Dropout2d would need pltpu.prng_seed/prng_random_bits.

    # ---- BatchNorm2d, training-mode forward, single statistics pass ----
    inv_m = 1.0 / M
    s1 = jnp.sum(y, axis=0, keepdims=True)               # (1, Cout)
    s2 = jnp.sum(y * y, axis=0, keepdims=True)           # (1, Cout)
    mean = s1 * inv_m
    var = s2 * inv_m - mean * mean                       # biased batch variance
    scale = g_ref[...] * lax.rsqrt(var + EPS)
    shift = be_ref[...] - mean * scale

    z = y * scale + shift
    z = jnp.where(z >= 0.0, z, NEG_SLOPE * z)             # LeakyReLU(0.01)

    # ---- lane-dense store: (M, Cout) -> (N, H*W*Cout) ----
    z = _pack_minor(z.reshape(N * H, W, Cout))            # (N*H, W*Cout)
    o_ref[...] = _pack_minor(z.reshape(N, H, W * Cout))   # (N, H*W*Cout)


@jax.jit
def conv_dropout_norm_nonlin(x_nchw, w_oihw, bias, gamma, beta):
    """x_nchw: (N, Cin, H, W); w_oihw: (Cout, Cin, 3, 3) PyTorch layout."""
    N, Cin, H, W = x_nchw.shape
    Cout = w_oihw.shape[0]

    x = jnp.transpose(x_nchw, (0, 2, 3, 1))                          # NHWC
    w9 = jnp.transpose(w_oihw, (2, 3, 1, 0)).reshape(9 * Cin, Cout)  # (ky,kx,ci)-major

    full = lambda n: (lambda i: (0,) * n)

    out_flat = pl.pallas_call(
        conv_bn_lrelu_kernel,
        grid=(1,),
        in_specs=[
            pl.BlockSpec((N, H, W, Cin), full(4)),      # x (unpadded)
            pl.BlockSpec((9 * Cin, Cout), full(2)),     # im2col weight
            pl.BlockSpec((1, Cout), full(2)),           # conv bias
            pl.BlockSpec((1, Cout), full(2)),           # BN gamma
            pl.BlockSpec((1, Cout), full(2)),           # BN beta
        ],
        out_specs=pl.BlockSpec((N, H * W * Cout), full(2)),
        out_shape=jax.ShapeDtypeStruct((N, H * W * Cout), jnp.float32),
        compiler_params=pltpu.CompilerParams(
            dimension_semantics=("arbitrary",),
            vmem_limit_bytes=32 * 1024 * 1024),
    )(x, w9, bias.reshape(1, Cout), gamma.reshape(1, Cout),
      beta.reshape(1, Cout))

    out = out_flat.reshape(N, H, W, Cout)
    return jnp.transpose(out, (0, 3, 1, 2))              # back to NCHW


# ---------------- pure-JAX reference (correctness check) ----------------
def reference_block(x_nchw, w_oihw, bias, gamma, beta):
    N, Cin, H, W = x_nchw.shape
    Cout = w_oihw.shape[0]
    x = jnp.transpose(x_nchw, (0, 2, 3, 1))
    w_hwio = jnp.transpose(w_oihw, (2, 3, 1, 0))
    y = lax.conv_general_dilated(
        x, w_hwio, (1, 1), "SAME",
        dimension_numbers=("NHWC", "HWIO", "NHWC"),
        precision=lax.Precision.HIGHEST) + bias.reshape(1, 1, 1, Cout)
    m = jnp.mean(y, axis=(0, 1, 2), keepdims=True)
    v = jnp.mean((y - m) ** 2, axis=(0, 1, 2), keepdims=True)
    y = (y - m) * lax.rsqrt(v + EPS) * gamma.reshape(1, 1, 1, Cout) \
        + beta.reshape(1, 1, 1, Cout)
    y = jnp.where(y >= 0.0, y, NEG_SLOPE * y)
    return jnp.transpose(y, (0, 3, 1, 2))


if __name__ == "__main__":
    # ConvDropoutNormNonlin(4, 4,
    #   conv_kwargs={'kernel_size':3,'stride':1,'padding':1,'bias':True},
    #   norm_op_kwargs={'eps':1e-5,'affine':True},
    #   dropout_op_kwargs={'p':0},
    #   nonlin_kwargs={'negative_slope':1e-2,'inplace':True})
    N, Cin, Cout, H, W = 2, 4, 4, 16, 16

    key = jax.random.PRNGKey(0)
    k = jax.random.split(key, 5)
    x = jax.random.normal(k[0], (N, Cin, H, W), jnp.float32)
    w = 0.2 * jax.random.normal(k[1], (Cout, Cin, 3, 3), jnp.float32)  # OIHW
    b = 0.1 * jax.random.normal(k[2], (Cout,), jnp.float32)
    gamma = 1.0 + 0.1 * jax.random.normal(k[3], (Cout,), jnp.float32)
    beta = 0.1 * jax.random.normal(k[4], (Cout,), jnp.float32)

    out = jax.block_until_ready(conv_dropout_norm_nonlin(x, w, b, gamma, beta))
    ref = jax.block_until_ready(reference_block(x, w, b, gamma, beta))

    assert out.shape == (N, Cout, H, W)
    max_err = float(jnp.max(jnp.abs(out - ref)))
    assert jnp.allclose(out, ref, atol=2e-3, rtol=2e-3), max_err

    print("KERNEL_OK")
</pallas_src>

<mosaic_0001>
module attributes {stable_mosaic.version = 11 : i64} {
  func.func @conv_bn_lrelu_kernel(%arg0: i32, %arg1: memref<2x16x16x4xf32, #tpu.memory_space<vmem>>, %arg2: memref<36x4xf32, #tpu.memory_space<vmem>>, %arg3: memref<1x4xf32, #tpu.memory_space<vmem>>, %arg4: memref<1x4xf32, #tpu.memory_space<vmem>>, %arg5: memref<1x4xf32, #tpu.memory_space<vmem>>, %arg6: memref<2x1024xf32, #tpu.memory_space<vmem>>) attributes {dimension_semantics = [#tpu.dimension_semantics<arbitrary>], iteration_bounds = array<i64: 1>, scalar_prefetch = 0 : i64, scratch_operands = 0 : i64, tpu.core_type = #tpu.core_type<tc>, window_params = [{pipeline_mode = #tpu.pipeline_mode<synchronous>, transform_indices = @transform_0, window_bounds = array<i64: 2, 16, 16, 4>}, {pipeline_mode = #tpu.pipeline_mode<synchronous>, transform_indices = @transform_1, window_bounds = array<i64: 36, 4>}, {pipeline_mode = #tpu.pipeline_mode<synchronous>, transform_indices = @transform_2, window_bounds = array<i64: 1, 4>}, {pipeline_mode = #tpu.pipeline_mode<synchronous>, transform_indices = @transform_3, window_bounds = array<i64: 1, 4>}, {pipeline_mode = #tpu.pipeline_mode<synchronous>, transform_indices = @transform_4, window_bounds = array<i64: 1, 4>}, {pipeline_mode = #tpu.pipeline_mode<synchronous>, transform_indices = @transform_5, window_bounds = array<i64: 2, 1024>}]} {
    %c0 = arith.constant 0 : index
    %c0_0 = arith.constant 0 : index
    %c0_1 = arith.constant 0 : index
    %c0_2 = arith.constant 0 : index
    %0 = vector.load %arg1[%c0, %c0_0, %c0_1, %c0_2] : memref<2x16x16x4xf32, #tpu.memory_space<vmem>>, vector<2x16x16x4xf32>
    %cst = arith.constant 0.000000e+00 : f32
    %1 = vector.broadcast %cst : f32 to vector<2x1x16x4xf32>
    %2 = vector.extract_strided_slice %0 {offsets = [0, 0, 0, 0], sizes = [2, 15, 16, 4], strides = [1, 1, 1, 1]} : vector<2x16x16x4xf32> to vector<2x15x16x4xf32>
    %3 = tpu.concatenate %1, %2 in 1 : vector<2x1x16x4xf32>, vector<2x15x16x4xf32> -> vector<2x16x16x4xf32>
    %cst_3 = arith.constant 0.000000e+00 : f32
    %4 = vector.broadcast %cst_3 : f32 to vector<2x16x1x4xf32>
    %5 = vector.extract_strided_slice %3 {offsets = [0, 0, 0, 0], sizes = [2, 16, 15, 4], strides = [1, 1, 1, 1]} : vector<2x16x16x4xf32> to vector<2x16x15x4xf32>
    %6 = tpu.concatenate %4, %5 in 2 : vector<2x16x1x4xf32>, vector<2x16x15x4xf32> -> vector<2x16x16x4xf32>
    %cst_4 = arith.constant 0.000000e+00 : f32
    %7 = vector.broadcast %cst_4 : f32 to vector<2x1x16x4xf32>
    %8 = vector.extract_strided_slice %0 {offsets = [0, 0, 0, 0], sizes = [2, 15, 16, 4], strides = [1, 1, 1, 1]} : vector<2x16x16x4xf32> to vector<2x15x16x4xf32>
    %9 = tpu.concatenate %7, %8 in 1 : vector<2x1x16x4xf32>, vector<2x15x16x4xf32> -> vector<2x16x16x4xf32>
    %cst_5 = arith.constant 0.000000e+00 : f32
    %10 = vector.broadcast %cst_5 : f32 to vector<2x1x16x4xf32>
    %11 = vector.extract_strided_slice %0 {offsets = [0, 0, 0, 0], sizes = [2, 15, 16, 4], strides = [1, 1, 1, 1]} : vector<2x16x16x4xf32> to vector<2x15x16x4xf32>
    %12 = tpu.concatenate %10, %11 in 1 : vector<2x1x16x4xf32>, vector<2x15x16x4xf32> -> vector<2x16x16x4xf32>
    %cst_6 = arith.constant 0.000000e+00 : f32
    %13 = vector.broadcast %cst_6 : f32 to vector<2x16x1x4xf32>
    %14 = vector.extract_strided_slice %12 {offsets = [0, 0, 1, 0], sizes = [2, 16, 15, 4], strides = [1, 1, 1, 1]} : vector<2x16x16x4xf32> to vector<2x16x15x4xf32>
    %15 = tpu.concatenate %14, %13 in 2 : vector<2x16x15x4xf32>, vector<2x16x1x4xf32> -> vector<2x16x16x4xf32>
    %cst_7 = arith.constant 0.000000e+00 : f32
    %16 = vector.broadcast %cst_7 : f32 to vector<2x16x1x4xf32>
    %17 = vector.extract_strided_slice %0 {offsets = [0, 0, 0, 0], sizes = [2, 16, 15, 4], strides = [1, 1, 1, 1]} : vector<2x16x16x4xf32> to vector<2x16x15x4xf32>
    %18 = tpu.concatenate %16, %17 in 2 : vector<2x16x1x4xf32>, vector<2x16x15x4xf32> -> vector<2x16x16x4xf32>
    %cst_8 = arith.constant 0.000000e+00 : f32
    %19 = vector.broadcast %cst_8 : f32 to vector<2x16x1x4xf32>
    %20 = vector.extract_strided_slice %0 {offsets = [0, 0, 1, 0], sizes = [2, 16, 15, 4], strides = [1, 1, 1, 1]} : vector<2x16x16x4xf32> to vector<2x16x15x4xf32>
    %21 = tpu.concatenate %20, %19 in 2 : vector<2x16x15x4xf32>, vector<2x16x1x4xf32> -> vector<2x16x16x4xf32>
    %cst_9 = arith.constant 0.000000e+00 : f32
    %22 = vector.broadcast %cst_9 : f32 to vector<2x1x16x4xf32>
    %23 = vector.extract_strided_slice %0 {offsets = [0, 1, 0, 0], sizes = [2, 15, 16, 4], strides = [1, 1, 1, 1]} : vector<2x16x16x4xf32> to vector<2x15x16x4xf32>
    %24 = tpu.concatenate %23, %22 in 1 : vector<2x15x16x4xf32>, vector<2x1x16x4xf32> -> vector<2x16x16x4xf32>
    %cst_10 = arith.constant 0.000000e+00 : f32
    %25 = vector.broadcast %cst_10 : f32 to vector<2x16x1x4xf32>
    %26 = vector.extract_strided_slice %24 {offsets = [0, 0, 0, 0], sizes = [2, 16, 15, 4], strides = [1, 1, 1, 1]} : vector<2x16x16x4xf32> to vector<2x16x15x4xf32>
    %27 = tpu.concatenate %25, %26 in 2 : vector<2x16x1x4xf32>, vector<2x16x15x4xf32> -> vector<2x16x16x4xf32>
    %cst_11 = arith.constant 0.000000e+00 : f32
    %28 = vector.broadcast %cst_11 : f32 to vector<2x1x16x4xf32>
    %29 = vector.extract_strided_slice %0 {offsets = [0, 1, 0, 0], sizes = [2, 15, 16, 4], strides = [1, 1, 1, 1]} : vector<2x16x16x4xf32> to vector<2x15x16x4xf32>
    %30 = tpu.concatenate %29, %28 in 1 : vector<2x15x16x4xf32>, vector<2x1x16x4xf32> -> vector<2x16x16x4xf32>
    %cst_12 = arith.constant 0.000000e+00 : f32
    %31 = vector.broadcast %cst_12 : f32 to vector<2x1x16x4xf32>
    %32 = vector.extract_strided_slice %0 {offsets = [0, 1, 0, 0], sizes = [2, 15, 16, 4], strides = [1, 1, 1, 1]} : vector<2x16x16x4xf32> to vector<2x15x16x4xf32>
    %33 = tpu.concatenate %32, %31 in 1 : vector<2x15x16x4xf32>, vector<2x1x16x4xf32> -> vector<2x16x16x4xf32>
    %cst_13 = arith.constant 0.000000e+00 : f32
    %34 = vector.broadcast %cst_13 : f32 to vector<2x16x1x4xf32>
    %35 = vector.extract_strided_slice %33 {offsets = [0, 0, 1, 0], sizes = [2, 16, 15, 4], strides = [1, 1, 1, 1]} : vector<2x16x16x4xf32> to vector<2x16x15x4xf32>
    %36 = tpu.concatenate %35, %34 in 2 : vector<2x16x15x4xf32>, vector<2x16x1x4xf32> -> vector<2x16x16x4xf32>
    %37 = tpu.concatenate %6, %9, %15, %18, %0, %21, %27, %30, %36 in 3 : vector<2x16x16x4xf32>, vector<2x16x16x4xf32>, vector<2x16x16x4xf32>, vector<2x16x16x4xf32>, vector<2x16x16x4xf32>, vector<2x16x16x4xf32>, vector<2x16x16x4xf32>, vector<2x16x16x4xf32>, vector<2x16x16x4xf32> -> vector<2x16x16x36xf32>
    %38 = vector.shape_cast %37 : vector<2x16x16x36xf32> to vector<512x36xf32>
    %c0_14 = arith.constant 0 : index
    %c0_15 = arith.constant 0 : index
    %39 = vector.load %arg2[%c0_14, %c0_15] : memref<36x4xf32, #tpu.memory_space<vmem>>, vector<36x4xf32>
    %cst_16 = arith.constant dense<0.000000e+00> : vector<512x4xf32>
    %40 = tpu.matmul %38, %39, %cst_16 {dimension_numbers = #tpu.dot_dimension_numbers<[1], [0], [0], [1], [0, 0, 1, 1], [], []>} : vector<512x36xf32>, vector<36x4xf32>, vector<512x4xf32> -> vector<512x4xf32>
    %c0_17 = arith.constant 0 : index
    %c0_18 = arith.constant 0 : index
    %41 = vector.load %arg3[%c0_17, %c0_18] : memref<1x4xf32, #tpu.memory_space<vmem>>, vector<1x4xf32>
    %42 = vector.broadcast %41 : vector<1x4xf32> to vector<512x4xf32>
    %43 = arith.addf %40, %42 : vector<512x4xf32>
    %cst_19 = arith.constant dense<0.000000e+00> : vector<4xf32>
    %44 = vector.multi_reduction <add>, %43, %cst_19 [0] : vector<512x4xf32> to vector<4xf32>
    %45 = vector.shape_cast %44 : vector<4xf32> to vector<1x4xf32>
    %46 = arith.mulf %43, %43 : vector<512x4xf32>
    %cst_20 = arith.constant dense<0.000000e+00> : vector<4xf32>
    %47 = vector.multi_reduction <add>, %46, %cst_20 [0] : vector<512x4xf32> to vector<4xf32>
    %48 = vector.shape_cast %47 : vector<4xf32> to vector<1x4xf32>
    %cst_21 = arith.constant 0.001953125 : f32
    %49 = vector.broadcast %cst_21 : f32 to vector<1x4xf32>
    %50 = arith.mulf %45, %49 : vector<1x4xf32>
    %cst_22 = arith.constant 0.001953125 : f32
    %51 = vector.broadcast %cst_22 : f32 to vector<1x4xf32>
    %52 = arith.mulf %48, %51 : vector<1x4xf32>
    %53 = arith.mulf %50, %50 : vector<1x4xf32>
    %54 = arith.subf %52, %53 : vector<1x4xf32>
    %c0_23 = arith.constant 0 : index
    %c0_24 = arith.constant 0 : index
    %55 = vector.load %arg4[%c0_23, %c0_24] : memref<1x4xf32, #tpu.memory_space<vmem>>, vector<1x4xf32>
    %cst_25 = arith.constant 9.99999974E-6 : f32
    %56 = vector.broadcast %cst_25 : f32 to vector<1x4xf32>
    %57 = arith.addf %54, %56 : vector<1x4xf32>
    %58 = math.rsqrt %57 : vector<1x4xf32>
    %59 = arith.mulf %55, %58 : vector<1x4xf32>
    %c0_26 = arith.constant 0 : index
    %c0_27 = arith.constant 0 : index
    %60 = vector.load %arg5[%c0_26, %c0_27] : memref<1x4xf32, #tpu.memory_space<vmem>>, vector<1x4xf32>
    %61 = arith.mulf %50, %59 : vector<1x4xf32>
    %62 = arith.subf %60, %61 : vector<1x4xf32>
    %63 = vector.broadcast %59 : vector<1x4xf32> to vector<512x4xf32>
    %64 = arith.mulf %43, %63 : vector<512x4xf32>
    %65 = vector.broadcast %62 : vector<1x4xf32> to vector<512x4xf32>
    %66 = arith.addf %64, %65 : vector<512x4xf32>
    %cst_28 = arith.constant 0.000000e+00 : f32
    %67 = vector.broadcast %cst_28 : f32 to vector<512x4xf32>
    %68 = arith.cmpf oge, %66, %67 : vector<512x4xf32>
    %cst_29 = arith.constant 0.00999999977 : f32
    %69 = vector.broadcast %cst_29 : f32 to vector<512x4xf32>
    %70 = arith.mulf %69, %66 : vector<512x4xf32>
    %71 = arith.select %68, %66, %70 : vector<512x4xi1>, vector<512x4xf32>
    %72 = vector.shape_cast %71 : vector<512x4xf32> to vector<32x16x4xf32>
    %73 = vector.extract_strided_slice %72 {offsets = [0, 0, 0], sizes = [32, 1, 4], strides = [1, 1, 1]} : vector<32x16x4xf32> to vector<32x1x4xf32>
    %74 = vector.shape_cast %73 : vector<32x1x4xf32> to vector<32x4xf32>
    %75 = vector.extract_strided_slice %72 {offsets = [0, 1, 0], sizes = [32, 1, 4], strides = [1, 1, 1]} : vector<32x16x4xf32> to vector<32x1x4xf32>
    %76 = vector.shape_cast %75 : vector<32x1x4xf32> to vector<32x4xf32>
    %77 = vector.extract_strided_slice %72 {offsets = [0, 2, 0], sizes = [32, 1, 4], strides = [1, 1, 1]} : vector<32x16x4xf32> to vector<32x1x4xf32>
    %78 = vector.shape_cast %77 : vector<32x1x4xf32> to vector<32x4xf32>
    %79 = vector.extract_strided_slice %72 {offsets = [0, 3, 0], sizes = [32, 1, 4], strides = [1, 1, 1]} : vector<32x16x4xf32> to vector<32x1x4xf32>
    %80 = vector.shape_cast %79 : vector<32x1x4xf32> to vector<32x4xf32>
    %81 = vector.extract_strided_slice %72 {offsets = [0, 4, 0], sizes = [32, 1, 4], strides = [1, 1, 1]} : vector<32x16x4xf32> to vector<32x1x4xf32>
    %82 = vector.shape_cast %81 : vector<32x1x4xf32> to vector<32x4xf32>
    %83 = vector.extract_strided_slice %72 {offsets = [0, 5, 0], sizes = [32, 1, 4], strides = [1, 1, 1]} : vector<32x16x4xf32> to vector<32x1x4xf32>
    %84 = vector.shape_cast %83 : vector<32x1x4xf32> to vector<32x4xf32>
    %85 = vector.extract_strided_slice %72 {offsets = [0, 6, 0], sizes = [32, 1, 4], strides = [1, 1, 1]} : vector<32x16x4xf32> to vector<32x1x4xf32>
    %86 = vector.shape_cast %85 : vector<32x1x4xf32> to vector<32x4xf32>
    %87 = vector.extract_strided_slice %72 {offsets = [0, 7, 0], sizes = [32, 1, 4], strides = [1, 1, 1]} : vector<32x16x4xf32> to vector<32x1x4xf32>
    %88 = vector.shape_cast %87 : vector<32x1x4xf32> to vector<32x4xf32>
    %89 = vector.extract_strided_slice %72 {offsets = [0, 8, 0], sizes = [32, 1, 4], strides = [1, 1, 1]} : vector<32x16x4xf32> to vector<32x1x4xf32>
    %90 = vector.shape_cast %89 : vector<32x1x4xf32> to vector<32x4xf32>
    %91 = vector.extract_strided_slice %72 {offsets = [0, 9, 0], sizes = [32, 1, 4], strides = [1, 1, 1]} : vector<32x16x4xf32> to vector<32x1x4xf32>
    %92 = vector.shape_cast %91 : vector<32x1x4xf32> to vector<32x4xf32>
    %93 = vector.extract_strided_slice %72 {offsets = [0, 10, 0], sizes = [32, 1, 4], strides = [1, 1, 1]} : vector<32x16x4xf32> to vector<32x1x4xf32>
    %94 = vector.shape_cast %93 : vector<32x1x4xf32> to vector<32x4xf32>
    %95 = vector.extract_strided_slice %72 {offsets = [0, 11, 0], sizes = [32, 1, 4], strides = [1, 1, 1]} : vector<32x16x4xf32> to vector<32x1x4xf32>
    %96 = vector.shape_cast %95 : vector<32x1x4xf32> to vector<32x4xf32>
    %97 = vector.extract_strided_slice %72 {offsets = [0, 12, 0], sizes = [32, 1, 4], strides = [1, 1, 1]} : vector<32x16x4xf32> to vector<32x1x4xf32>
    %98 = vector.shape_cast %97 : vector<32x1x4xf32> to vector<32x4xf32>
    %99 = vector.extract_strided_slice %72 {offsets = [0, 13, 0], sizes = [32, 1, 4], strides = [1, 1, 1]} : vector<32x16x4xf32> to vector<32x1x4xf32>
    %100 = vector.shape_cast %99 : vector<32x1x4xf32> to vector<32x4xf32>
    %101 = vector.extract_strided_slice %72 {offsets = [0, 14, 0], sizes = [32, 1, 4], strides = [1, 1, 1]} : vector<32x16x4xf32> to vector<32x1x4xf32>
    %102 = vector.shape_cast %101 : vector<32x1x4xf32> to vector<32x4xf32>
    %103 = vector.extract_strided_slice %72 {offsets = [0, 15, 0], sizes = [32, 1, 4], strides = [1, 1, 1]} : vector<32x16x4xf32> to vector<32x1x4xf32>
    %104 = vector.shape_cast %103 : vector<32x1x4xf32> to vector<32x4xf32>
    %105 = tpu.concatenate %74, %76, %78, %80, %82, %84, %86, %88, %90, %92, %94, %96, %98, %100, %102, %104 in 1 : vector<32x4xf32>, vector<32x4xf32>, vector<32x4xf32>, vector<32x4xf32>, vector<32x4xf32>, vector<32x4xf32>, vector<32x4xf32>, vector<32x4xf32>, vector<32x4xf32>, vector<32x4xf32>, vector<32x4xf32>, vector<32x4xf32>, vector<32x4xf32>, vector<32x4xf32>, vector<32x4xf32>, vector<32x4xf32> -> vector<32x64xf32>
    %106 = vector.shape_cast %105 : vector<32x64xf32> to vector<2x16x64xf32>
    %107 = vector.extract_strided_slice %106 {offsets = [0, 0, 0], sizes = [2, 1, 64], strides = [1, 1, 1]} : vector<2x16x64xf32> to vector<2x1x64xf32>
    %108 = vector.shape_cast %107 : vector<2x1x64xf32> to vector<2x64xf32>
    %109 = vector.extract_strided_slice %106 {offsets = [0, 1, 0], sizes = [2, 1, 64], strides = [1, 1, 1]} : vector<2x16x64xf32> to vector<2x1x64xf32>
    %110 = vector.shape_cast %109 : vector<2x1x64xf32> to vector<2x64xf32>
    %111 = vector.extract_strided_slice %106 {offsets = [0, 2, 0], sizes = [2, 1, 64], strides = [1, 1, 1]} : vector<2x16x64xf32> to vector<2x1x64xf32>
    %112 = vector.shape_cast %111 : vector<2x1x64xf32> to vector<2x64xf32>
    %113 = vector.extract_strided_slice %106 {offsets = [0, 3, 0], sizes = [2, 1, 64], strides = [1, 1, 1]} : vector<2x16x64xf32> to vector<2x1x64xf32>
    %114 = vector.shape_cast %113 : vector<2x1x64xf32> to vector<2x64xf32>
    %115 = vector.extract_strided_slice %106 {offsets = [0, 4, 0], sizes = [2, 1, 64], strides = [1, 1, 1]} : vector<2x16x64xf32> to vector<2x1x64xf32>
    %116 = vector.shape_cast %115 : vector<2x1x64xf32> to vector<2x64xf32>
    %117 = vector.extract_strided_slice %106 {offsets = [0, 5, 0], sizes = [2, 1, 64], strides = [1, 1, 1]} : vector<2x16x64xf32> to vector<2x1x64xf32>
    %118 = vector.shape_cast %117 : vector<2x1x64xf32> to vector<2x64xf32>
    %119 = vector.extract_strided_slice %106 {offsets = [0, 6, 0], sizes = [2, 1, 64], strides = [1, 1, 1]} : vector<2x16x64xf32> to vector<2x1x64xf32>
    %120 = vector.shape_cast %119 : vector<2x1x64xf32> to vector<2x64xf32>
    %121 = vector.extract_strided_slice %106 {offsets = [0, 7, 0], sizes = [2, 1, 64], strides = [1, 1, 1]} : vector<2x16x64xf32> to vector<2x1x64xf32>
    %122 = vector.shape_cast %121 : vector<2x1x64xf32> to vector<2x64xf32>
    %123 = vector.extract_strided_slice %106 {offsets = [0, 8, 0], sizes = [2, 1, 64], strides = [1, 1, 1]} : vector<2x16x64xf32> to vector<2x1x64xf32>
    %124 = vector.shape_cast %123 : vector<2x1x64xf32> to vector<2x64xf32>
    %125 = vector.extract_strided_slice %106 {offsets = [0, 9, 0], sizes = [2, 1, 64], strides = [1, 1, 1]} : vector<2x16x64xf32> to vector<2x1x64xf32>
    %126 = vector.shape_cast %125 : vector<2x1x64xf32> to vector<2x64xf32>
    %127 = vector.extract_strided_slice %106 {offsets = [0, 10, 0], sizes = [2, 1, 64], strides = [1, 1, 1]} : vector<2x16x64xf32> to vector<2x1x64xf32>
    %128 = vector.shape_cast %127 : vector<2x1x64xf32> to vector<2x64xf32>
    %129 = vector.extract_strided_slice %106 {offsets = [0, 11, 0], sizes = [2, 1, 64], strides = [1, 1, 1]} : vector<2x16x64xf32> to vector<2x1x64xf32>
    %130 = vector.shape_cast %129 : vector<2x1x64xf32> to vector<2x64xf32>
    %131 = vector.extract_strided_slice %106 {offsets = [0, 12, 0], sizes = [2, 1, 64], strides = [1, 1, 1]} : vector<2x16x64xf32> to vector<2x1x64xf32>
    %132 = vector.shape_cast %131 : vector<2x1x64xf32> to vector<2x64xf32>
    %133 = vector.extract_strided_slice %106 {offsets = [0, 13, 0], sizes = [2, 1, 64], strides = [1, 1, 1]} : vector<2x16x64xf32> to vector<2x1x64xf32>
    %134 = vector.shape_cast %133 : vector<2x1x64xf32> to vector<2x64xf32>
    %135 = vector.extract_strided_slice %106 {offsets = [0, 14, 0], sizes = [2, 1, 64], strides = [1, 1, 1]} : vector<2x16x64xf32> to vector<2x1x64xf32>
    %136 = vector.shape_cast %135 : vector<2x1x64xf32> to vector<2x64xf32>
    %137 = vector.extract_strided_slice %106 {offsets = [0, 15, 0], sizes = [2, 1, 64], strides = [1, 1, 1]} : vector<2x16x64xf32> to vector<2x1x64xf32>
    %138 = vector.shape_cast %137 : vector<2x1x64xf32> to vector<2x64xf32>
    %139 = tpu.concatenate %108, %110, %112, %114, %116, %118, %120, %122, %124, %126, %128, %130, %132, %134, %136, %138 in 1 : vector<2x64xf32>, vector<2x64xf32>, vector<2x64xf32>, vector<2x64xf32>, vector<2x64xf32>, vector<2x64xf32>, vector<2x64xf32>, vector<2x64xf32>, vector<2x64xf32>, vector<2x64xf32>, vector<2x64xf32>, vector<2x64xf32>, vector<2x64xf32>, vector<2x64xf32>, vector<2x64xf32>, vector<2x64xf32> -> vector<2x1024xf32>
    %c0_30 = arith.constant 0 : index
    %c0_31 = arith.constant 0 : index
    %140 = vector.load %arg6[%c0_30, %c0_31] : memref<2x1024xf32, #tpu.memory_space<vmem>>, vector<2x1024xf32>
    tpu.vector_store %arg6[%c0_30, %c0_31], %139 {strides = array<i32>} : memref<2x1024xf32, #tpu.memory_space<vmem>>, vector<2x1024xf32>,
    return
  }
  func.func @transform_0(%arg0: i32) -> (i32, i32, i32, i32) {
    %c0_i32 = arith.constant 0 : i32
    %c0_i32_0 = arith.constant 0 : i32
    %c0_i32_1 = arith.constant 0 : i32
    %c0_i32_2 = arith.constant 0 : i32
    %c0_i32_3 = arith.constant 0 : i32
    return %c0_i32, %c0_i32_0, %c0_i32_1, %c0_i32_2 : i32, i32, i32, i32
  }
  func.func @transform_1(%arg0: i32) -> (i32, i32) {
    %c0_i32 = arith.constant 0 : i32
    %c0_i32_0 = arith.constant 0 : i32
    %c0_i32_1 = arith.constant 0 : i32
    return %c0_i32, %c0_i32_0 : i32, i32
  }
  func.func @transform_2(%arg0: i32) -> (i32, i32) {
    %c0_i32 = arith.constant 0 : i32
    %c0_i32_0 = arith.constant 0 : i32
    %c0_i32_1 = arith.constant 0 : i32
    return %c0_i32, %c0_i32_0 : i32, i32
  }
  func.func @transform_3(%arg0: i32) -> (i32, i32) {
    %c0_i32 = arith.constant 0 : i32
    %c0_i32_0 = arith.constant 0 : i32
    %c0_i32_1 = arith.constant 0 : i32
    return %c0_i32, %c0_i32_0 : i32, i32
  }
  func.func @transform_4(%arg0: i32) -> (i32, i32) {
    %c0_i32 = arith.constant 0 : i32
    %c0_i32_0 = arith.constant 0 : i32
    %c0_i32_1 = arith.constant 0 : i32
    return %c0_i32, %c0_i32_0 : i32, i32
  }
  func.func @transform_5(%arg0: i32) -> (i32, i32) {
    %c0_i32 = arith.constant 0 : i32
    %c0_i32_0 = arith.constant 0 : i32
    %c0_i32_1 = arith.constant 0 : i32
    return %c0_i32, %c0_i32_0 : i32, i32
  }
}

</mosaic_0001>

<bundles_post_ra>
// kernel: conv_dropout_norm_nonlin.1
= control target key start
LH: loop header
LB: loop body
LE: loop exit
PB: predicated region body
PF: predicated region fallthrough
CT: control target
= control target key end

     0   :  { %v12014_v0 = vmov 0.0   ;;  %s5223_s18 = smov 4   ;;  %vm331_vm0 = vcmask 1046528   ;;  %s5224_s19 = smov 8   ;;  %vm145_vm1 = vcmask 1040384   ;;  %vm12264_vm2 = vcmask 1043456   ;;  %s12008_s0 = inlined_call_operand.vmem [shape: f32[2,16,16,4], index: 0, kind: input, shape index: {}]   ;;  %s12009_s1 = inlined_call_operand.vmem [shape: f32[36,4], index: 1, kind: input, shape index: {}]   ;;  %s12010_s2 = inlined_call_operand.vmem [shape: f32[1,4], index: 2, kind: input, shape index: {}]   ;;  %s12011_s3 = inlined_call_operand.vmem [shape: f32[1,4], index: 3, kind: input, shape index: {}]   ;;  %s12012_s4 = inlined_call_operand.vmem [shape: f32[1,4], index: 4, kind: input, shape index: {}]   ;;  %s12013_s5 = inlined_call_operand.vmem [shape: f32[2,1024], index: 5, kind: output, shape index: {}]  }
   0x1   :  { %510 = vrot.lane.b32.xlu0 %v12014_v0, %s5223_s18  ;;  %v5274_v1 = vld [vmem:[%s12008_s0 + $0x18] sm:$0xff]  ;;  %v5279_v2 = vld [vmem:[%s12008_s0 + $0x8] sm:$0xff]  ;;  %v5288_v3 = vld [vmem:[%s12008_s0] sm:$0xff]  ;;  %v332_v55 = vrot.slane %v12014_v0, 1  ;;  %s5225_s20 = smov 12   ;;  %s5226_s6 = smov 16  }
   0x2   :  { %12375 = vst [vmem:[#allocation2_spill] sm:$0xff] %v5279_v2  ;;  %518 = vrot.lane.b32.xlu2 %v5274_v1, %s5223_s18  ;;  %514 = vrot.lane.b32.xlu1 %v5279_v2, %s5223_s18  ;;  %v5293_v4 = vld [vmem:[%s12008_s0 + $0x20] sm:$0xff]  ;;  %v5298_v5 = vld [vmem:[%s12008_s0 + $0x10] sm:$0xff]  ;;  %s5227_s23 = smov 20   ;;  %s5228_s24 = smov 24   ;;  %vm12298_vm3 = vcmask 31744  }
   0x3   :  { %12376 = vst [vmem:[#allocation3_spill] sm:$0xff] %v5288_v3  ;;  %v5309_v6 = vld [vmem:[%s12008_s0 + $0x28] sm:$0xff]  ;;  %v5314_v7 = vld [vmem:[%s12008_s0 + $0x38] sm:$0xff]  ;;  %v5319_v8 = vld [vmem:[%s12008_s0 + $0x30] sm:$0xff]  ;;  %v455_v61 = vsel %vm331_vm0, %v332_v55, 0.0  ;;  %s5229_s25 = smov 28  }
   0x4   :  { %v5330_v9 = vld [vmem:[%s12008_s0 + $0x40] sm:$0xff]  ;;  %v5335_v10 = vld [vmem:[%s12008_s0 + $0x50] sm:$0xff]  ;;  %v5340_v11 = vld [vmem:[%s12008_s0 + $0x48] sm:$0xff]  ;;  %v5637_v62 = vpack.i.bf16 %v455_v61, %v332_v55  ;;  %s5230_s26 = smov 32   ;;  %vm12271_vm4 = vcmask 97280   ;;  %vm12273_vm5 = vcmask 64512  }
   0x5   :  { %v5351_v12 = vld [vmem:[%s12008_s0 + $0x58] sm:$0xff]  ;;  %v5356_v13 = vld [vmem:[%s12008_s0 + $0x68] sm:$0xff]  ;;  %v5361_v14 = vld [vmem:[%s12008_s0 + $0x60] sm:$0xff]  ;;  %vm12270_vm6 = vcmask 130048   ;;  %vm12268_vm7 = vcmask 195584   ;;  %vm12269_vm8 = vcmask 162816  }
   0x6   :  { %v5372_v15 = vld [vmem:[%s12008_s0 + $0x70] sm:$0xff]  ;;  %v5377_v16 = vld [vmem:[%s12008_s0 + $0x80] sm:$0xff]  ;;  %v5382_v17 = vld [vmem:[%s12008_s0 + $0x78] sm:$0xff]  ;;  %12386 = vst [vmem:[#allocation13_spill] sm:$0xff] %v5637_v62  ;;  %vm12267_vm9 = vcmask 228352   ;;  %vm12265_vm10 = vcmask 293888  }
   0x7   :  { %v5393_v18 = vld [vmem:[%s12008_s0 + $0x88] sm:$0xff]  ;;  %v5398_v19 = vld [vmem:[%s12008_s0 + $0x98] sm:$0xff]  ;;  %v5403_v20 = vld [vmem:[%s12008_s0 + $0x90] sm:$0xff]  ;;  %vm12266_vm11 = vcmask 261120   ;;  %vm12339_vm15 = vcmask 1041409  }
   0x8   :  { %v5414_v21 = vld [vmem:[%s12008_s0 + $0xa0] sm:$0xff]  ;;  %v5419_v22 = vld [vmem:[%s12008_s0 + $0xb0] sm:$0xff]  ;;  %v5424_v23 = vld [vmem:[%s12008_s0 + $0xa8] sm:$0xff] }
   0x9   :  { %512 = vrot.lane.b32.xlu0 %v5288_v3, %s5223_s18  ;;  %v5435_v24 = vld [vmem:[%s12008_s0 + $0xb8] sm:$0xff]  ;;  %v5440_v25 = vld [vmem:[%s12008_s0 + $0xc8] sm:$0xff]  ;;  %v5445_v26 = vld [vmem:[%s12008_s0 + $0xc0] sm:$0xff] }
   0xa   :  { %520 = vrot.lane.b32.xlu2 %v5293_v4, %s5223_s18  ;;  %516 = vrot.lane.b32.xlu1 %v5298_v5, %s5223_s18  ;;  %v5456_v27 = vld [vmem:[%s12008_s0 + $0xd0] sm:$0xff]  ;;  %v5461_v28 = vld [vmem:[%s12008_s0 + $0xe0] sm:$0xff] }
   0xb   :  { %v5466_v29 = vld [vmem:[%s12008_s0 + $0xd8] sm:$0xff]  ;;  %v5477_v30 = vld [vmem:[%s12008_s0 + $0xe8] sm:$0xff]  ;;  %v5487_v32 = vld [vmem:[%s12008_s0 + $0x100] sm:$0xff] }
   0xc   :  { %v5482_v31 = vld [vmem:[%s12008_s0 + $0x108] sm:$0xff]  ;;  %v5498_v33 = vld [vmem:[%s12008_s0 + $0x110] sm:$0xff]  ;;  %v5503_v34 = vld [vmem:[%s12008_s0 + $0x120] sm:$0xff] }
   0xd   :  { %v5508_v35 = vld [vmem:[%s12008_s0 + $0x118] sm:$0xff]  ;;  %v5521_v37 = vld [vmem:[%s12008_s0 + $0x128] sm:$0xff]  ;;  %v5531_v39 = vld [vmem:[%s12008_s0 + $0x130] sm:$0xff] }
   0xe   :  { %v5526_v38 = vld [vmem:[%s12008_s0 + $0x138] sm:$0xff]  ;;  %v5544_v41 = vld [vmem:[%s12008_s0 + $0x140] sm:$0xff]  ;;  %v5549_v42 = vld [vmem:[%s12008_s0 + $0x150] sm:$0xff] }
   0xf   :  { %v5554_v43 = vld [vmem:[%s12008_s0 + $0x148] sm:$0xff]  ;;  %v5567_v45 = vld [vmem:[%s12008_s0 + $0x158] sm:$0xff]  ;;  %v5577_v47 = vld [vmem:[%s12008_s0 + $0x160] sm:$0xff] }
  0x10   :  { %v5572_v46 = vld [vmem:[%s12008_s0 + $0x168] sm:$0xff]  ;;  %v5594_v51 = vld [vmem:[%s12008_s0 + $0x170] sm:$0xff]  ;;  %v5599_v52 = vld [vmem:[%s12008_s0 + $0x180] sm:$0xff] }
  0x11   :  { %522 = vrot.lane.b32.xlu0 %v5309_v6, %s5223_s18  ;;  %v5604_v53 = vld [vmem:[%s12008_s0 + $0x178] sm:$0xff]  ;;  %v5622_v58 = vld [vmem:[%s12008_s0 + $0x188] sm:$0xff]  ;;  %v5632_v60 = vld [vmem:[%s12008_s0 + $0x190] sm:$0xff] }
  0x12   :  { %526 = vrot.lane.b32.xlu2 %v5314_v7, %s5223_s18  ;;  %524 = vrot.lane.b32.xlu1 %v5319_v8, %s5223_s18  ;;  %v5627_v59 = vld [vmem:[%s12008_s0 + $0x198] sm:$0xff]  ;;  %v5657_v55 = vld [vmem:[%s12008_s0 + $0x1b0] sm:$0xff] }
  0x13   :  { %v5662_v61 = vld [vmem:[%s12008_s0 + $0x1a8] sm:$0xff] }
  0x14   :  { %12390 = vst [vmem:[#allocation17_spill] sm:$0xff] %v5662_v61 }
  0x19   :  { %528 = vrot.lane.b32.xlu0 %v5330_v9, %s5223_s18 }
  0x1a   :  { %532 = vrot.lane.b32.xlu2 %v5335_v10, %s5223_s18  ;;  %530 = vrot.lane.b32.xlu1 %v5340_v11, %s5223_s18 }
  0x21   :  { %534 = vrot.lane.b32.xlu0 %v5351_v12, %s5223_s18 }
  0x22   :  { %538 = vrot.lane.b32.xlu2 %v5356_v13, %s5223_s18  ;;  %536 = vrot.lane.b32.xlu1 %v5361_v14, %s5223_s18 }
  0x29   :  { %540 = vrot.lane.b32.xlu0 %v5372_v15, %s5223_s18 }
  0x2a   :  { %544 = vrot.lane.b32.xlu2 %v5377_v16, %s5223_s18  ;;  %542 = vrot.lane.b32.xlu1 %v5382_v17, %s5223_s18 }
  0x31   :  { %546 = vrot.lane.b32.xlu0 %v5393_v18, %s5223_s18 }
  0x32   :  { %550 = vrot.lane.b32.xlu2 %v5398_v19, %s5223_s18  ;;  %548 = vrot.lane.b32.xlu1 %v5403_v20, %s5223_s18 }
  0x39   :  { %552 = vrot.lane.b32.xlu0 %v5414_v21, %s5223_s18 }
  0x3a   :  { %556 = vrot.lane.b32.xlu2 %v5419_v22, %s5223_s18  ;;  %554 = vrot.lane.b32.xlu1 %v5424_v23, %s5223_s18 }
  0x41   :  { %558 = vrot.lane.b32.xlu0 %v5435_v24, %s5223_s18 }
  0x42   :  { %562 = vrot.lane.b32.xlu2 %v5440_v25, %s5223_s18  ;;  %560 = vrot.lane.b32.xlu1 %v5445_v26, %s5223_s18 }
  0x49   :  { %564 = vrot.lane.b32.xlu0 %v5456_v27, %s5223_s18 }
  0x4a   :  { %568 = vrot.lane.b32.xlu2 %v5461_v28, %s5223_s18  ;;  %566 = vrot.lane.b32.xlu1 %v5466_v29, %s5223_s18 }
  0x51   :  { %570 = vrot.lane.b32.xlu0 %v5477_v30, %s5223_s18 }
  0x52   :  { %574 = vrot.lane.b32.xlu2 %v5482_v31, %s5223_s18  ;;  %572 = vrot.lane.b32.xlu1 %v5487_v32, %s5223_s18 }
  0x59   :  { %576 = vrot.lane.b32.xlu0 %v5498_v33, %s5223_s18 }
  0x5a   :  { %580 = vrot.lane.b32.xlu2 %v5503_v34, %s5223_s18  ;;  %578 = vrot.lane.b32.xlu1 %v5508_v35, %s5223_s18 }
  0x5c   :  { %v5516_v36 = vpop.permute.xlu2 %518 }
  0x5d   :  { %12377 = vst [vmem:[#allocation4_spill] sm:$0xff] %v5516_v36  ;;  %v5689_v36 = vld [vmem:[%s12008_s0 + $0x1c0] sm:$0xff] }
  0x61   :  { %582 = vrot.lane.b32.xlu0 %v5521_v37, %s5223_s18 }
  0x62   :  { %586 = vrot.lane.b32.xlu2 %v5526_v38, %s5223_s18  ;;  %584 = vrot.lane.b32.xlu1 %v5531_v39, %s5223_s18 }
  0x64   :  { %v5539_v40 = vpop.permute.xlu2 %520 }
  0x65   :  { %12378 = vst [vmem:[#allocation5_spill] sm:$0xff] %v5539_v40  ;;  %v5684_v40 = vld [vmem:[%s12008_s0 + $0x1c8] sm:$0xff] }
  0x66   :  { %12394 = vst [vmem:[#allocation21_spill] sm:$0xff] %v5684_v40 }
  0x69   :  { %588 = vrot.lane.b32.xlu0 %v5544_v41, %s5223_s18 }
  0x6a   :  { %592 = vrot.lane.b32.xlu2 %v5549_v42, %s5223_s18  ;;  %590 = vrot.lane.b32.xlu1 %v5554_v43, %s5223_s18 }
  0x6c   :  { %v5562_v44 = vpop.permute.xlu2 %526 }
  0x6d   :  { %12379 = vst [vmem:[#allocation6_spill] sm:$0xff] %v5562_v44 }
  0x71   :  { %594 = vrot.lane.b32.xlu0 %v5567_v45, %s5223_s18 }
  0x72   :  { %598 = vrot.lane.b32.xlu2 %v5572_v46, %s5223_s18  ;;  %596 = vrot.lane.b32.xlu1 %v5577_v47, %s5223_s18 }
  0x73   :  { %v5585_v48 = vpop.permute.xlu0 %510 }
  0x74   :  { %12380 = vst [vmem:[#allocation7_spill] sm:$0xff] %v5585_v48  ;;  %v5587_v49 = vpop.permute.xlu2 %532  ;;  %v5589_v50 = vpop.permute.xlu1 %514 }
  0x75   :  { %12381 = vst [vmem:[#allocation8_spill] sm:$0xff] %v5587_v49  ;;  %v5652_v49 = vld [vmem:[%s12008_s0 + $0x1a0] sm:$0xff] }
  0x76   :  { %12382 = vst [vmem:[#allocation9_spill] sm:$0xff] %v5589_v50  ;;  %v5711_v50 = vld [vmem:[%s12008_s0 + $0x1e0] sm:$0xff] }
  0x77   :  { %12399 = vst [vmem:[#allocation26_spill] sm:$0xff] %v5711_v50 }
  0x79   :  { %600 = vrot.lane.b32.xlu0 %v5594_v51, %s5223_s18 }
  0x7a   :  { %604 = vrot.lane.b32.xlu2 %v5599_v52, %s5223_s18  ;;  %602 = vrot.lane.b32.xlu1 %v5604_v53, %s5223_s18 }
  0x7b   :  { %v5612_v54 = vpop.permute.xlu0 %512 }
  0x7c   :  { %12383 = vst [vmem:[#allocation10_spill] sm:$0xff] %v5612_v54  ;;  %v5615_v56 = vpop.permute.xlu2 %538  ;;  %v5617_v57 = vpop.permute.xlu1 %516  ;;  %v5716_v54 = vld [vmem:[%s12008_s0 + $0x1d8] sm:$0xff] }
  0x7d   :  { %12384 = vst [vmem:[#allocation11_spill] sm:$0xff] %v5615_v56 }
  0x7e   :  { %12385 = vst [vmem:[#allocation12_spill] sm:$0xff] %v5617_v57  ;;  %v5706_v57 = vld [vmem:[%s12008_s0 + $0x1d0] sm:$0xff] }
  0x7f   :  { %12398 = vst [vmem:[#allocation25_spill] sm:$0xff] %v5706_v57 }
  0x80   :  { %12400 = vst [vmem:[#allocation27_spill] sm:$0xff] %v5716_v54 }
  0x81   :  { %606 = vrot.lane.b32.xlu0 %v5622_v58, %s5223_s18 }
  0x82   :  { %610 = vrot.lane.b32.xlu2 %v5627_v59, %s5223_s18  ;;  %608 = vrot.lane.b32.xlu1 %v5632_v60, %s5223_s18 }
  0x83   :  { %v5643_v63 = vpop.permute.xlu0 %522 }
  0x84   :  { %12387 = vst [vmem:[#allocation14_spill] sm:$0xff] %v5643_v63  ;;  %v5645_v0 = vpop.permute.xlu2 %544  ;;  %v5647_v56 = vpop.permute.xlu1 %524 }
  0x85   :  { %12388 = vst [vmem:[#allocation15_spill] sm:$0xff] %v5645_v0  ;;  %v5679_v0 = vld [vmem:[%s12008_s0 + $0x1b8] sm:$0xff] }
  0x86   :  { %12389 = vst [vmem:[#allocation16_spill] sm:$0xff] %v5647_v56 }
  0x89   :  { %612 = vrot.lane.b32.xlu0 %v5652_v49, %s5223_s18 }
  0x8a   :  { %616 = vrot.lane.b32.xlu2 %v5657_v55, %s5223_s18  ;;  %614 = vrot.lane.b32.xlu1 %v5662_v61, %s5223_s18 }
  0x8b   :  { %v5670_v44 = vpop.permute.xlu0 %528 }
  0x8c   :  { %12391 = vst [vmem:[#allocation18_spill] sm:$0xff] %v5670_v44  ;;  %v5672_v56 = vpop.permute.xlu2 %550  ;;  %v5674_v63 = vpop.permute.xlu1 %530 }
  0x8d   :  { %12392 = vst [vmem:[#allocation19_spill] sm:$0xff] %v5672_v56 }
  0x8e   :  { %12393 = vst [vmem:[#allocation20_spill] sm:$0xff] %v5674_v63 }
  0x91   :  { %618 = vrot.lane.b32.xlu0 %v5679_v0, %s5223_s18 }
  0x92   :  { %622 = vrot.lane.b32.xlu2 %v5684_v40, %s5223_s18  ;;  %620 = vrot.lane.b32.xlu1 %v5689_v36, %s5223_s18 }
  0x93   :  { %v5697_v63 = vpop.permute.xlu0 %534 }
  0x94   :  { %12395 = vst [vmem:[#allocation22_spill] sm:$0xff] %v5697_v63  ;;  %v5699_v44 = vpop.permute.xlu2 %556  ;;  %v5701_v56 = vpop.permute.xlu1 %536  ;;  %v334_v63 = vrot.slane %v5288_v3, 1 }
  0x95   :  { %12396 = vst [vmem:[#allocation23_spill] sm:$0xff] %v5699_v44  ;;  %v335_v44 = vrot.slane %v5279_v2, 1 }
  0x96   :  { %12397 = vst [vmem:[#allocation24_spill] sm:$0xff] %v5701_v56 }
  0x97   :  { %v5755_v3 = vsel %vm331_vm0, %v335_v44, 0.0 }
  0x98   :  { %12409 = vst [vmem:[#allocation36_spill] sm:$0xff] %v5755_v3 }
  0x99   :  { %624 = vrot.lane.b32.xlu0 %v5706_v57, %s5223_s18  ;;  %v5735_v57 = vld [vmem:[%s12008_s0 + $0x1e8] sm:$0xff] }
  0x9a   :  { %628 = vrot.lane.b32.xlu2 %v5711_v50, %s5223_s18  ;;  %626 = vrot.lane.b32.xlu1 %v5716_v54, %s5223_s18  ;;  %12404 = vst [vmem:[#allocation31_spill] sm:$0xff] %v5735_v57  ;;  %v5738_v50 = vsel %vm331_vm0, %v334_v63, %v335_v44  ;;  %v341_v44 = vrot.slane %v5309_v6, 1 }
  0x9b   :  { %v5724_v56 = vpop.permute.xlu0 %540  ;;  %12405 = vst [vmem:[#allocation32_spill] sm:$0xff] %v5738_v50 }
  0x9c   :  { %12401 = vst [vmem:[#allocation28_spill] sm:$0xff] %v5724_v56  ;;  %v5728_v48 = vpop.permute.xlu2 %562  ;;  %v5730_v40 = vpop.permute.xlu1 %542  ;;  %v338_v56 = vrot.slane %v5274_v1, 1 }
  0x9d   :  { %12402 = vst [vmem:[#allocation29_spill] sm:$0xff] %v5728_v48 }
  0x9e   :  { %12403 = vst [vmem:[#allocation30_spill] sm:$0xff] %v5730_v40  ;;  %v337_v40 = vrot.slane %v5298_v5, 1 }
  0xa1   :  { %630 = vrot.lane.b32.xlu0 %v5735_v57, %s5223_s18  ;;  %v5758_v57 = vsel %vm331_vm0, %v337_v40, %v338_v56  ;;  %v343_v40 = vrot.slane %v5319_v8, 1 }
  0xa2   :  { %5117 = vrot.lane.b32.xlu1 %v5637_v62, %s5224_s19  ;;  %728 = vrot.lane.b32.xlu2 %v5738_v50, %s5224_s19  ;;  %12410 = vst [vmem:[#allocation37_spill] sm:$0xff] %v5758_v57  ;;  %v5761_v62 = vsel %vm331_vm0, %v338_v56, 0.0  ;;  %v344_v56 = vrot.slane %v5314_v7, 1 }
  0xa3   :  { %v5746_v48 = vpop.permute.xlu0 %546  ;;  %12411 = vst [vmem:[#allocation38_spill] sm:$0xff] %v5761_v62 }
  0xa4   :  { %12406 = vst [vmem:[#allocation33_spill] sm:$0xff] %v5746_v48  ;;  %v5750_v2 = vpop.permute.xlu2 %568  ;;  %v5752_v63 = vpop.permute.xlu1 %548 }
  0xa5   :  { %12407 = vst [vmem:[#allocation34_spill] sm:$0xff] %v5750_v2  ;;  %v340_v2 = vrot.slane %v5293_v4, 1 }
  0xa6   :  { %12408 = vst [vmem:[#allocation35_spill] sm:$0xff] %v5752_v63 }
  0xa9   :  { %730 = vrot.lane.b32.xlu0 %v5755_v3, %s5224_s19  ;;  %v5780_v3 = vsel %vm331_vm0, %v340_v2, %v341_v44  ;;  %v346_v2 = vrot.slane %v5330_v9, 1 }
  0xaa   :  { %732 = vrot.lane.b32.xlu1 %v5758_v57, %s5224_s19  ;;  %734 = vrot.lane.b32.xlu2 %v5761_v62, %s5224_s19  ;;  %12415 = vst [vmem:[#allocation42_spill] sm:$0xff] %v5780_v3  ;;  %v5783_v57 = vsel %vm331_vm0, %v341_v44, 0.0  ;;  %v5786_v62 = vsel %vm331_vm0, %v343_v40, %v344_v56  ;;  %v5803_v40 = vsel %vm331_vm0, %v344_v56, 0.0  ;;  %v350_v56 = vrot.slane %v5351_v12, 1 }
  0xab   :  { %v5771_v63 = vpop.permute.xlu0 %552  ;;  %12416 = vst [vmem:[#allocation43_spill] sm:$0xff] %v5783_v57 }
  0xac   :  { %12412 = vst [vmem:[#allocation39_spill] sm:$0xff] %v5771_v63  ;;  %v5775_v48 = vpop.permute.xlu2 %574  ;;  %v5777_v50 = vpop.permute.xlu1 %554 }
  0xad   :  { %12413 = vst [vmem:[#allocation40_spill] sm:$0xff] %v5775_v48 }
  0xae   :  { %12414 = vst [vmem:[#allocation41_spill] sm:$0xff] %v5777_v50  ;;  %v347_v50 = vrot.slane %v5340_v11, 1 }
  0xaf   :  { %12417 = vst [vmem:[#allocation44_spill] sm:$0xff] %v5786_v62 }
  0xb0   :  { %12421 = vst [vmem:[#allocation48_spill] sm:$0xff] %v5803_v40 }
  0xb1   :  { %736 = vrot.lane.b32.xlu0 %v5780_v3, %s5224_s19  ;;  %v5806_v3 = vsel %vm331_vm0, %v346_v2, %v347_v50  ;;  %v352_v2 = vrot.slane %v5361_v14, 1 }
  0xb2   :  { %738 = vrot.lane.b32.xlu1 %v5783_v57, %s5224_s19  ;;  %740 = vrot.lane.b32.xlu2 %v5786_v62, %s5224_s19  ;;  %12422 = vst [vmem:[#allocation49_spill] sm:$0xff] %v5806_v3  ;;  %v5809_v57 = vsel %vm331_vm0, %v347_v50, 0.0  ;;  %v353_v50 = vrot.slane %v5356_v13, 1 }
  0xb3   :  { %v5794_v48 = vpop.permute.xlu0 %558  ;;  %12423 = vst [vmem:[#allocation50_spill] sm:$0xff] %v5809_v57 }
  0xb4   :  { %12418 = vst [vmem:[#allocation45_spill] sm:$0xff] %v5794_v48  ;;  %v5798_v44 = vpop.permute.xlu2 %580  ;;  %v5800_v63 = vpop.permute.xlu1 %560 }
  0xb5   :  { %12419 = vst [vmem:[#allocation46_spill] sm:$0xff] %v5798_v44 }
  0xb6   :  { %12420 = vst [vmem:[#allocation47_spill] sm:$0xff] %v5800_v63  ;;  %v349_v63 = vrot.slane %v5335_v10, 1 }
  0xb9   :  { %742 = vrot.lane.b32.xlu0 %v5803_v40, %s5224_s19  ;;  %v5828_v40 = vsel %vm331_vm0, %v349_v63, %v350_v56  ;;  %v355_v63 = vrot.slane %v5372_v15, 1 }
  0xba   :  { %744 = vrot.lane.b32.xlu1 %v5806_v3, %s5224_s19  ;;  %746 = vrot.lane.b32.xlu2 %v5809_v57, %s5224_s19  ;;  %12427 = vst [vmem:[#allocation54_spill] sm:$0xff] %v5828_v40  ;;  %v5831_v3 = vsel %vm331_vm0, %v350_v56, 0.0  ;;  %v5834_v57 = vsel %vm331_vm0, %v352_v2, %v353_v50  ;;  %v5851_v2 = vsel %vm331_vm0, %v353_v50, 0.0  ;;  %v359_v50 = vrot.slane %v5393_v18, 1 }
  0xbb   :  { %v5819_v44 = vpop.permute.xlu0 %564  ;;  %12428 = vst [vmem:[#allocation55_spill] sm:$0xff] %v5831_v3 }
  0xbc   :  { %12424 = vst [vmem:[#allocation51_spill] sm:$0xff] %v5819_v44  ;;  %v5823_v48 = vpop.permute.xlu2 %586  ;;  %v5825_v62 = vpop.permute.xlu1 %566 }
  0xbd   :  { %12425 = vst [vmem:[#allocation52_spill] sm:$0xff] %v5823_v48 }
  0xbe   :  { %12426 = vst [vmem:[#allocation53_spill] sm:$0xff] %v5825_v62  ;;  %v356_v62 = vrot.slane %v5382_v17, 1 }
  0xbf   :  { %12429 = vst [vmem:[#allocation56_spill] sm:$0xff] %v5834_v57 }
  0xc0   :  { %12433 = vst [vmem:[#allocation60_spill] sm:$0xff] %v5851_v2 }
  0xc1   :  { %748 = vrot.lane.b32.xlu0 %v5828_v40, %s5224_s19  ;;  %v5854_v40 = vsel %vm331_vm0, %v355_v63, %v356_v62  ;;  %v361_v63 = vrot.slane %v5403_v20, 1 }
  0xc2   :  { %750 = vrot.lane.b32.xlu1 %v5831_v3, %s5224_s19  ;;  %752 = vrot.lane.b32.xlu2 %v5834_v57, %s5224_s19  ;;  %12434 = vst [vmem:[#allocation61_spill] sm:$0xff] %v5854_v40  ;;  %v5857_v3 = vsel %vm331_vm0, %v356_v62, 0.0  ;;  %v362_v62 = vrot.slane %v5398_v19, 1 }
  0xc3   :  { %v5842_v48 = vpop.permute.xlu0 %570  ;;  %12435 = vst [vmem:[#allocation62_spill] sm:$0xff] %v5857_v3 }
  0xc4   :  { %12430 = vst [vmem:[#allocation57_spill] sm:$0xff] %v5842_v48  ;;  %v5846_v56 = vpop.permute.xlu2 %592  ;;  %v5848_v44 = vpop.permute.xlu1 %572 }
  0xc5   :  { %12431 = vst [vmem:[#allocation58_spill] sm:$0xff] %v5846_v56  ;;  %v358_v56 = vrot.slane %v5377_v16, 1 }
  0xc6   :  { %12432 = vst [vmem:[#allocation59_spill] sm:$0xff] %v5848_v44 }
  0xc9   :  { %754 = vrot.lane.b32.xlu0 %v5851_v2, %s5224_s19  ;;  %v5876_v2 = vsel %vm331_vm0, %v358_v56, %v359_v50  ;;  %v364_v56 = vrot.slane %v5414_v21, 1 }
  0xca   :  { %756 = vrot.lane.b32.xlu1 %v5854_v40, %s5224_s19  ;;  %758 = vrot.lane.b32.xlu2 %v5857_v3, %s5224_s19  ;;  %12439 = vst [vmem:[#allocation66_spill] sm:$0xff] %v5876_v2  ;;  %v5879_v40 = vsel %vm331_vm0, %v359_v50, 0.0  ;;  %v5882_v3 = vsel %vm331_vm0, %v361_v63, %v362_v62  ;;  %v5899_v63 = vsel %vm331_vm0, %v362_v62, 0.0  ;;  %v368_v62 = vrot.slane %v5435_v24, 1 }
  0xcb   :  { %v5867_v48 = vpop.permute.xlu0 %576  ;;  %12440 = vst [vmem:[#allocation67_spill] sm:$0xff] %v5879_v40 }
  0xcc   :  { %12436 = vst [vmem:[#allocation63_spill] sm:$0xff] %v5867_v48  ;;  %v5871_v44 = vpop.permute.xlu2 %598  ;;  %v5873_v57 = vpop.permute.xlu1 %578 }
  0xcd   :  { %12437 = vst [vmem:[#allocation64_spill] sm:$0xff] %v5871_v44 }
  0xce   :  { %12438 = vst [vmem:[#allocation65_spill] sm:$0xff] %v5873_v57  ;;  %v365_v57 = vrot.slane %v5424_v23, 1 }
  0xcf   :  { %12441 = vst [vmem:[#allocation68_spill] sm:$0xff] %v5882_v3 }
  0xd0   :  { %12445 = vst [vmem:[#allocation72_spill] sm:$0xff] %v5899_v63 }
  0xd1   :  { %760 = vrot.lane.b32.xlu0 %v5876_v2, %s5224_s19  ;;  %v5902_v2 = vsel %vm331_vm0, %v364_v56, %v365_v57  ;;  %v370_v56 = vrot.slane %v5445_v26, 1 }
  0xd2   :  { %762 = vrot.lane.b32.xlu1 %v5879_v40, %s5224_s19  ;;  %764 = vrot.lane.b32.xlu2 %v5882_v3, %s5224_s19  ;;  %12446 = vst [vmem:[#allocation73_spill] sm:$0xff] %v5902_v2  ;;  %v5905_v40 = vsel %vm331_vm0, %v365_v57, 0.0  ;;  %v371_v57 = vrot.slane %v5440_v25, 1 }
  0xd3   :  { %v5890_v44 = vpop.permute.xlu0 %582  ;;  %12447 = vst [vmem:[#allocation74_spill] sm:$0xff] %v5905_v40 }
  0xd4   :  { %12442 = vst [vmem:[#allocation69_spill] sm:$0xff] %v5890_v44  ;;  %v5894_v50 = vpop.permute.xlu2 %604  ;;  %v5896_v48 = vpop.permute.xlu1 %584 }
  0xd5   :  { %12443 = vst [vmem:[#allocation70_spill] sm:$0xff] %v5894_v50 }
  0xd6   :  { %12444 = vst [vmem:[#allocation71_spill] sm:$0xff] %v5896_v48  ;;  %v367_v48 = vrot.slane %v5419_v22, 1 }
  0xd9   :  { %766 = vrot.lane.b32.xlu0 %v5899_v63, %s5224_s19  ;;  %v5924_v63 = vsel %vm331_vm0, %v367_v48, %v368_v62  ;;  %v373_v48 = vrot.slane %v5456_v27, 1 }
  0xda   :  { %768 = vrot.lane.b32.xlu1 %v5902_v2, %s5224_s19  ;;  %770 = vrot.lane.b32.xlu2 %v5905_v40, %s5224_s19  ;;  %12451 = vst [vmem:[#allocation78_spill] sm:$0xff] %v5924_v63  ;;  %v5927_v2 = vsel %vm331_vm0, %v368_v62, 0.0  ;;  %v5930_v40 = vsel %vm331_vm0, %v370_v56, %v371_v57  ;;  %v5947_v56 = vsel %vm331_vm0, %v371_v57, 0.0  ;;  %v377_v57 = vrot.slane %v5477_v30, 1 }
  0xdb   :  { %v5915_v44 = vpop.permute.xlu0 %588  ;;  %12452 = vst [vmem:[#allocation79_spill] sm:$0xff] %v5927_v2 }
  0xdc   :  { %12448 = vst [vmem:[#allocation75_spill] sm:$0xff] %v5915_v44  ;;  %v5919_v50 = vpop.permute.xlu2 %610  ;;  %v5921_v3 = vpop.permute.xlu1 %590 }
  0xdd   :  { %12449 = vst [vmem:[#allocation76_spill] sm:$0xff] %v5919_v50 }
  0xde   :  { %12450 = vst [vmem:[#allocation77_spill] sm:$0xff] %v5921_v3  ;;  %v374_v3 = vrot.slane %v5466_v29, 1 }
  0xdf   :  { %12453 = vst [vmem:[#allocation80_spill] sm:$0xff] %v5930_v40 }
  0xe0   :  { %12457 = vst [vmem:[#allocation84_spill] sm:$0xff] %v5947_v56 }
  0xe1   :  { %772 = vrot.lane.b32.xlu0 %v5924_v63, %s5224_s19  ;;  %v5950_v63 = vsel %vm331_vm0, %v373_v48, %v374_v3  ;;  %v379_v48 = vrot.slane %v5487_v32, 1 }
  0xe2   :  { %774 = vrot.lane.b32.xlu1 %v5927_v2, %s5224_s19  ;;  %776 = vrot.lane.b32.xlu2 %v5930_v40, %s5224_s19  ;;  %12458 = vst [vmem:[#allocation85_spill] sm:$0xff] %v5950_v63  ;;  %v5953_v2 = vsel %vm331_vm0, %v374_v3, 0.0  ;;  %v380_v3 = vrot.slane %v5482_v31, 1 }
  0xe3   :  { %v5938_v44 = vpop.permute.xlu0 %594  ;;  %12459 = vst [vmem:[#allocation86_spill] sm:$0xff] %v5953_v2 }
  0xe4   :  { %12454 = vst [vmem:[#allocation81_spill] sm:$0xff] %v5938_v44  ;;  %v5942_v62 = vpop.permute.xlu2 %616  ;;  %v5944_v50 = vpop.permute.xlu1 %596 }
  0xe5   :  { %12455 = vst [vmem:[#allocation82_spill] sm:$0xff] %v5942_v62 }
  0xe6   :  { %12456 = vst [vmem:[#allocation83_spill] sm:$0xff] %v5944_v50  ;;  %v376_v50 = vrot.slane %v5461_v28, 1 }
  0xe9   :  { %778 = vrot.lane.b32.xlu0 %v5947_v56, %s5224_s19  ;;  %v5972_v56 = vsel %vm331_vm0, %v376_v50, %v377_v57  ;;  %v382_v50 = vrot.slane %v5498_v33, 1 }
  0xea   :  { %780 = vrot.lane.b32.xlu1 %v5950_v63, %s5224_s19  ;;  %782 = vrot.lane.b32.xlu2 %v5953_v2, %s5224_s19  ;;  %12463 = vst [vmem:[#allocation90_spill] sm:$0xff] %v5972_v56  ;;  %v5975_v63 = vsel %vm331_vm0, %v377_v57, 0.0  ;;  %v5978_v2 = vsel %vm331_vm0, %v379_v48, %v380_v3  ;;  %v5995_v48 = vsel %vm331_vm0, %v380_v3, 0.0  ;;  %v386_v3 = vrot.slane %v5521_v37, 1 }
  0xeb   :  { %v5963_v44 = vpop.permute.xlu0 %600  ;;  %12464 = vst [vmem:[#allocation91_spill] sm:$0xff] %v5975_v63 }
  0xec   :  { %12460 = vst [vmem:[#allocation87_spill] sm:$0xff] %v5963_v44  ;;  %v5967_v62 = vpop.permute.xlu2 %622  ;;  %v5969_v40 = vpop.permute.xlu1 %602 }
  0xed   :  { %12461 = vst [vmem:[#allocation88_spill] sm:$0xff] %v5967_v62 }
  0xee   :  { %12462 = vst [vmem:[#allocation89_spill] sm:$0xff] %v5969_v40  ;;  %v383_v40 = vrot.slane %v5508_v35, 1 }
  0xef   :  { %12465 = vst [vmem:[#allocation92_spill] sm:$0xff] %v5978_v2 }
  0xf0   :  { %12469 = vst [vmem:[#allocation96_spill] sm:$0xff] %v5995_v48 }
  0xf1   :  { %784 = vrot.lane.b32.xlu0 %v5972_v56, %s5224_s19  ;;  %v5998_v56 = vsel %vm331_vm0, %v382_v50, %v383_v40  ;;  %v388_v50 = vrot.slane %v5531_v39, 1 }
  0xf2   :  { %786 = vrot.lane.b32.xlu1 %v5975_v63, %s5224_s19  ;;  %788 = vrot.lane.b32.xlu2 %v5978_v2, %s5224_s19  ;;  %12470 = vst [vmem:[#allocation97_spill] sm:$0xff] %v5998_v56  ;;  %v6001_v63 = vsel %vm331_vm0, %v383_v40, 0.0  ;;  %v389_v40 = vrot.slane %v5526_v38, 1 }
  0xf3   :  { %v5986_v62 = vpop.permute.xlu0 %606  ;;  %12471 = vst [vmem:[#allocation98_spill] sm:$0xff] %v6001_v63 }
  0xf4   :  { %12466 = vst [vmem:[#allocation93_spill] sm:$0xff] %v5986_v62  ;;  %v5990_v57 = vpop.permute.xlu2 %628  ;;  %v5992_v44 = vpop.permute.xlu1 %608 }
  0xf5   :  { %12467 = vst [vmem:[#allocation94_spill] sm:$0xff] %v5990_v57  ;;  %v385_v57 = vrot.slane %v5503_v34, 1 }
  0xf6   :  { %12468 = vst [vmem:[#allocation95_spill] sm:$0xff] %v5992_v44 }
  0xf9   :  { %790 = vrot.lane.b32.xlu0 %v5995_v48, %s5224_s19  ;;  %v6020_v48 = vsel %vm331_vm0, %v385_v57, %v386_v3  ;;  %v391_v57 = vrot.slane %v5544_v41, 1 }
  0xfa   :  { %792 = vrot.lane.b32.xlu1 %v5998_v56, %s5224_s19  ;;  %794 = vrot.lane.b32.xlu2 %v6001_v63, %s5224_s19  ;;  %12475 = vst [vmem:[#allocation102_spill] sm:$0xff] %v6020_v48  ;;  %v6023_v56 = vsel %vm331_vm0, %v386_v3, 0.0  ;;  %v6026_v63 = vsel %vm331_vm0, %v388_v50, %v389_v40  ;;  %v6043_v50 = vsel %vm331_vm0, %v389_v40, 0.0  ;;  %v395_v40 = vrot.slane %v5567_v45, 1 }
  0xfb   :  { %v6011_v44 = vpop.permute.xlu0 %612  ;;  %12476 = vst [vmem:[#allocation103_spill] sm:$0xff] %v6023_v56 }
  0xfc   :  { %12472 = vst [vmem:[#allocation99_spill] sm:$0xff] %v6011_v44  ;;  %v6015_v62 = vpop.permute.xlu1 %614  ;;  %v6017_v2 = vpop.permute.xlu2 %728  ;;  %v392_v44 = vrot.slane %v5554_v43, 1 }
  0xfd   :  { %12473 = vst [vmem:[#allocation100_spill] sm:$0xff] %v6015_v62 }
  0xfe   :  { %12474 = vst [vmem:[#allocation101_spill] sm:$0xff] %v6017_v2 }
  0xff   :  { %12477 = vst [vmem:[#allocation104_spill] sm:$0xff] %v6026_v63 }
 0x100   :  { %12481 = vst [vmem:[#allocation108_spill] sm:$0xff] %v6043_v50 }
 0x101   :  { %796 = vrot.lane.b32.xlu0 %v6020_v48, %s5224_s19  ;;  %v6046_v48 = vsel %vm331_vm0, %v391_v57, %v392_v44  ;;  %v397_v57 = vrot.slane %v5577_v47, 1 }
 0x102   :  { %798 = vrot.lane.b32.xlu1 %v6023_v56, %s5224_s19  ;;  %800 = vrot.lane.b32.xlu2 %v6026_v63, %s5224_s19  ;;  %12482 = vst [vmem:[#allocation109_spill] sm:$0xff] %v6046_v48  ;;  %v6049_v56 = vsel %vm331_vm0, %v392_v44, 0.0  ;;  %v398_v44 = vrot.slane %v5572_v46, 1 }
 0x103   :  { %v6034_v62 = vpop.permute.xlu0 %618  ;;  %12483 = vst [vmem:[#allocation110_spill] sm:$0xff] %v6049_v56 }
 0x104   :  { %12478 = vst [vmem:[#allocation105_spill] sm:$0xff] %v6034_v62  ;;  %v6038_v3 = vpop.permute.xlu1 %620  ;;  %v6040_v2 = vpop.permute.xlu2 %734 }
 0x105   :  { %12479 = vst [vmem:[#allocation106_spill] sm:$0xff] %v6038_v3  ;;  %v394_v3 = vrot.slane %v5549_v42, 1 }
 0x106   :  { %12480 = vst [vmem:[#allocation107_spill] sm:$0xff] %v6040_v2 }
 0x109   :  { %802 = vrot.lane.b32.xlu0 %v6043_v50, %s5224_s19  ;;  %v6068_v50 = vsel %vm331_vm0, %v394_v3, %v395_v40  ;;  %v400_v3 = vrot.slane %v5594_v51, 1 }
 0x10a   :  { %804 = vrot.lane.b32.xlu1 %v6046_v48, %s5224_s19  ;;  %806 = vrot.lane.b32.xlu2 %v6049_v56, %s5224_s19  ;;  %12487 = vst [vmem:[#allocation114_spill] sm:$0xff] %v6068_v50  ;;  %v6071_v48 = vsel %vm331_vm0, %v395_v40, 0.0  ;;  %v6074_v56 = vsel %vm331_vm0, %v397_v57, %v398_v44  ;;  %v6091_v57 = vsel %vm331_vm0, %v398_v44, 0.0  ;;  %v404_v44 = vrot.slane %v5622_v58, 1 }
 0x10b   :  { %v6059_v62 = vpop.permute.xlu0 %624  ;;  %12488 = vst [vmem:[#allocation115_spill] sm:$0xff] %v6071_v48 }
 0x10c   :  { %12484 = vst [vmem:[#allocation111_spill] sm:$0xff] %v6059_v62  ;;  %v6063_v2 = vpop.permute.xlu1 %626  ;;  %v6065_v63 = vpop.permute.xlu2 %740  ;;  %v401_v62 = vrot.slane %v5604_v53, 1 }
 0x10d   :  { %12485 = vst [vmem:[#allocation112_spill] sm:$0xff] %v6063_v2 }
 0x10e   :  { %12486 = vst [vmem:[#allocation113_spill] sm:$0xff] %v6065_v63 }
 0x10f   :  { %12489 = vst [vmem:[#allocation116_spill] sm:$0xff] %v6074_v56 }
 0x110   :  { %12493 = vst [vmem:[#allocation120_spill] sm:$0xff] %v6091_v57 }
 0x111   :  { %808 = vrot.lane.b32.xlu0 %v6068_v50, %s5224_s19  ;;  %v6094_v50 = vsel %vm331_vm0, %v400_v3, %v401_v62  ;;  %v406_v3 = vrot.slane %v5632_v60, 1 }
 0x112   :  { %810 = vrot.lane.b32.xlu1 %v6071_v48, %s5224_s19  ;;  %812 = vrot.lane.b32.xlu2 %v6074_v56, %s5224_s19  ;;  %12494 = vst [vmem:[#allocation121_spill] sm:$0xff] %v6094_v50  ;;  %v6097_v48 = vsel %vm331_vm0, %v401_v62, 0.0  ;;  %v407_v62 = vrot.slane %v5627_v59, 1 }
 0x113   :  { %v6082_v2 = vpop.permute.xlu0 %630  ;;  %12495 = vst [vmem:[#allocation122_spill] sm:$0xff] %v6097_v48 }
 0x114   :  { %12490 = vst [vmem:[#allocation117_spill] sm:$0xff] %v6082_v2  ;;  %v6086_v40 = vpop.permute.xlu1 %5117  ;;  %v6088_v63 = vpop.permute.xlu2 %746  ;;  %v403_v2 = vrot.slane %v5599_v52, 1 }
 0x115   :  { %12491 = vst [vmem:[#allocation118_spill] sm:$0xff] %v6086_v40 }
 0x116   :  { %12492 = vst [vmem:[#allocation119_spill] sm:$0xff] %v6088_v63 }
 0x119   :  { %814 = vrot.lane.b32.xlu0 %v6091_v57, %s5224_s19  ;;  %v6116_v57 = vsel %vm331_vm0, %v403_v2, %v404_v44  ;;  %v409_v2 = vrot.slane %v5652_v49, 1 }
 0x11a   :  { %816 = vrot.lane.b32.xlu1 %v6094_v50, %s5224_s19  ;;  %818 = vrot.lane.b32.xlu2 %v6097_v48, %s5224_s19  ;;  %12499 = vst [vmem:[#allocation126_spill] sm:$0xff] %v6116_v57  ;;  %v6119_v50 = vsel %vm331_vm0, %v404_v44, 0.0  ;;  %v6122_v48 = vsel %vm331_vm0, %v406_v3, %v407_v62  ;;  %v6139_v3 = vsel %vm331_vm0, %v407_v62, 0.0  ;;  %v413_v62 = vrot.slane %v5679_v0, 1 }
 0x11b   :  { %v6107_v63 = vpop.permute.xlu0 %730  ;;  %12500 = vst [vmem:[#allocation127_spill] sm:$0xff] %v6119_v50 }
 0x11c   :  { %12496 = vst [vmem:[#allocation123_spill] sm:$0xff] %v6107_v63  ;;  %v6111_v40 = vpop.permute.xlu1 %732  ;;  %v6113_v56 = vpop.permute.xlu2 %752 }
 0x11d   :  { %12497 = vst [vmem:[#allocation124_spill] sm:$0xff] %v6111_v40 }
 0x11e   :  { %12498 = vst [vmem:[#allocation125_spill] sm:$0xff] %v6113_v56  ;;  %v410_v56 = vrot.slane %v5662_v61, 1 }
 0x11f   :  { %12501 = vst [vmem:[#allocation128_spill] sm:$0xff] %v6122_v48 }
 0x120   :  { %12505 = vst [vmem:[#allocation132_spill] sm:$0xff] %v6139_v3 }
 0x121   :  { %820 = vrot.lane.b32.xlu0 %v6116_v57, %s5224_s19  ;;  %v6142_v57 = vsel %vm331_vm0, %v409_v2, %v410_v56  ;;  %v415_v2 = vrot.slane %v5689_v36, 1 }
 0x122   :  { %822 = vrot.lane.b32.xlu1 %v6119_v50, %s5224_s19  ;;  %824 = vrot.lane.b32.xlu2 %v6122_v48, %s5224_s19  ;;  %12506 = vst [vmem:[#allocation133_spill] sm:$0xff] %v6142_v57  ;;  %v6145_v50 = vsel %vm331_vm0, %v410_v56, 0.0 }
 0x123   :  { %v6130_v40 = vpop.permute.xlu0 %736  ;;  %12507 = vst [vmem:[#allocation134_spill] sm:$0xff] %v6145_v50 }
 0x124   :  { %12502 = vst [vmem:[#allocation129_spill] sm:$0xff] %v6130_v40  ;;  %v6134_v44 = vpop.permute.xlu1 %738  ;;  %v6136_v63 = vpop.permute.xlu2 %758 }
 0x125   :  { %12503 = vst [vmem:[#allocation130_spill] sm:$0xff] %v6134_v44  ;;  %v412_v44 = vrot.slane %v5657_v55, 1 }
 0x126   :  { %12504 = vst [vmem:[#allocation131_spill] sm:$0xff] %v6136_v63  ;;  %v12509_v63 = vld [vmem:[#allocation21_spill] sm:$0xff] }
 0x127   :  { %v416_v56 = vrot.slane %v12509_v63, 1 }
 0x129   :  { %826 = vrot.lane.b32.xlu0 %v6139_v3, %s5224_s19  ;;  %v6164_v3 = vsel %vm331_vm0, %v412_v44, %v413_v62 }
 0x12a   :  { %828 = vrot.lane.b32.xlu1 %v6142_v57, %s5224_s19  ;;  %830 = vrot.lane.b32.xlu2 %v6145_v50, %s5224_s19  ;;  %12512 = vst [vmem:[#allocation138_spill] sm:$0xff] %v6164_v3  ;;  %v6167_v57 = vsel %vm331_vm0, %v413_v62, 0.0  ;;  %v6170_v50 = vsel %vm331_vm0, %v415_v2, %v416_v56  ;;  %v6187_v2 = vsel %vm331_vm0, %v416_v56, 0.0 }
 0x12b   :  { %v6155_v40 = vpop.permute.xlu0 %742  ;;  %12513 = vst [vmem:[#allocation139_spill] sm:$0xff] %v6167_v57 }
 0x12c   :  { %12508 = vst [vmem:[#allocation135_spill] sm:$0xff] %v6155_v40  ;;  %v6159_v48 = vpop.permute.xlu1 %744  ;;  %v6161_v61 = vpop.permute.xlu2 %764  ;;  %v12516_v40 = vld [vmem:[#allocation25_spill] sm:$0xff] }
 0x12d   :  { %12510 = vst [vmem:[#allocation136_spill] sm:$0xff] %v6159_v48  ;;  %v418_v44 = vrot.slane %v12516_v40, 1 }
 0x12e   :  { %12511 = vst [vmem:[#allocation137_spill] sm:$0xff] %v6161_v61  ;;  %v419_v61 = vrot.slane %v5716_v54, 1 }
 0x12f   :  { %12514 = vst [vmem:[#allocation140_spill] sm:$0xff] %v6170_v50 }
 0x130   :  { %12519 = vst [vmem:[#allocation144_spill] sm:$0xff] %v6187_v2 }
 0x131   :  { %832 = vrot.lane.b32.xlu0 %v6164_v3, %s5224_s19  ;;  %v6190_v3 = vsel %vm331_vm0, %v418_v44, %v419_v61 }
 0x132   :  { %834 = vrot.lane.b32.xlu1 %v6167_v57, %s5224_s19  ;;  %836 = vrot.lane.b32.xlu2 %v6170_v50, %s5224_s19  ;;  %12520 = vst [vmem:[#allocation145_spill] sm:$0xff] %v6190_v3  ;;  %v6193_v57 = vsel %vm331_vm0, %v419_v61, 0.0  ;;  %v12527_v61 = vld [vmem:[#allocation3_spill] sm:$0xff] }
 0x133   :  { %v6178_v48 = vpop.permute.xlu0 %748  ;;  %12521 = vst [vmem:[#allocation146_spill] sm:$0xff] %v6193_v57  ;;  %v148_v40 = vrot.slane %v12527_v61, 7 }
 0x134   :  { %12515 = vst [vmem:[#allocation141_spill] sm:$0xff] %v6178_v48  ;;  %v6182_v62 = vpop.permute.xlu1 %750  ;;  %v6184_v63 = vpop.permute.xlu2 %770 }
 0x135   :  { %12517 = vst [vmem:[#allocation142_spill] sm:$0xff] %v6182_v62  ;;  %v12522_v62 = vld [vmem:[#allocation26_spill] sm:$0xff] }
 0x136   :  { %12518 = vst [vmem:[#allocation143_spill] sm:$0xff] %v6184_v63  ;;  %v421_v48 = vrot.slane %v12522_v62, 1  ;;  %v12523_v63 = vld [vmem:[#allocation31_spill] sm:$0xff] }
 0x137   :  { %v422_v56 = vrot.slane %v12523_v63, 1  ;;  %v152_v63 = vrot.slane %v5274_v1, 7  ;;  %v154_v1 = vrot.slane %v5293_v4, 7 }
 0x139   :  { %838 = vrot.lane.b32.xlu0 %v6187_v2, %s5224_s19  ;;  %v6211_v2 = vsel %vm331_vm0, %v421_v48, %v422_v56  ;;  %v12532_v48 = vld [vmem:[#allocation2_spill] sm:$0xff] }
 0x13a   :  { %840 = vrot.lane.b32.xlu1 %v6190_v3, %s5224_s19  ;;  %842 = vrot.lane.b32.xlu2 %v6193_v57, %s5224_s19  ;;  %12528 = vst [vmem:[#allocation3_spill] sm:$0xff] %v6211_v2  ;;  %v6214_v3 = vsel %vm331_vm0, %v422_v56, 0.0  ;;  %v6217_v57 = vsel %vm145_vm1, 0.0, %v148_v40 }
 0x13b   :  { %v6203_v50 = vpop.permute.xlu0 %754  ;;  %12529 = vst [vmem:[#allocation149_spill] sm:$0xff] %v6214_v3 }
 0x13c   :  { %12524 = vst [vmem:[#allocation26_spill] sm:$0xff] %v6203_v50  ;;  %v6205_v44 = vpop.permute.xlu1 %756  ;;  %v6207_v54 = vpop.permute.xlu2 %776  ;;  %v149_v50 = vrot.slane %v12532_v48, 7  ;;  %v6259_v48 = vsel %vm145_vm1, 0.0, %v154_v1 }
 0x13d   :  { %12525 = vst [vmem:[#allocation147_spill] sm:$0xff] %v6205_v44  ;;  %v151_v44 = vrot.slane %v5298_v5, 7 }
 0x13e   :  { %12526 = vst [vmem:[#allocation148_spill] sm:$0xff] %v6207_v54 }
 0x13f   :  { %12530 = vst [vmem:[#allocation150_spill] sm:$0xff] %v6217_v57 }
 0x141   :  { %844 = vrot.lane.b32.xlu0 %v6211_v2, %s5224_s19  ;;  %v6235_v2 = vsel %vm145_vm1, %v148_v40, %v149_v50  ;;  %v157_v40 = vrot.slane %v5319_v8, 7 }
 0x142   :  { %846 = vrot.lane.b32.xlu1 %v6214_v3, %s5224_s19  ;;  %942 = vrot.lane.b32.xlu2 %v6217_v57, %s5225_s20  ;;  %12535 = vst [vmem:[#allocation153_spill] sm:$0xff] %v6235_v2  ;;  %v6238_v3 = vsel %vm145_vm1, %v151_v44, %v152_v63  ;;  %v6241_v57 = vsel %vm145_vm1, 0.0, %v151_v44  ;;  %v155_v44 = vrot.slane %v5309_v6, 7  ;;  %v158_v6 = vrot.slane %v5314_v7, 7 }
 0x143   :  { %v6225_v61 = vpop.permute.xlu0 %760 }
 0x144   :  { %12531 = vst [vmem:[#allocation151_spill] sm:$0xff] %v6225_v61  ;;  %v6228_v56 = vpop.permute.xlu1 %762  ;;  %v6230_v54 = vpop.permute.xlu2 %782 }
 0x145   :  { %12533 = vst [vmem:[#allocation2_spill] sm:$0xff] %v6228_v56  ;;  %v6265_v56 = vsel %vm145_vm1, 0.0, %v157_v40 }
 0x146   :  { %12534 = vst [vmem:[#allocation152_spill] sm:$0xff] %v6230_v54  ;;  %v6262_v54 = vsel %vm145_vm1, %v154_v1, %v155_v44  ;;  %v160_v44 = vrot.slane %v5330_v9, 7  ;;  %v163_v9 = vrot.slane %v5335_v10, 7 }
 0x149   :  { %944 = vrot.lane.b32.xlu0 %v6235_v2, %s5225_s20 }
 0x14a   :  { %946 = vrot.lane.b32.xlu1 %v6241_v57, %s5225_s20  ;;  %948 = vrot.lane.b32.xlu2 %v6238_v3, %s5225_s20 }
 0x14b   :  { %v6249_v5 = vpop.permute.xlu0 %766 }
 0x14c   :  { %12536 = vst [vmem:[#allocation154_spill] sm:$0xff] %v6249_v5  ;;  %v6252_v50 = vpop.permute.xlu1 %768  ;;  %v6254_v63 = vpop.permute.xlu2 %788  ;;  %v6286_v5 = vsel %vm145_vm1, 0.0, %v160_v44 }
 0x14d   :  { %12537 = vst [vmem:[#allocation155_spill] sm:$0xff] %v6252_v50  ;;  %v161_v50 = vrot.slane %v5340_v11, 7 }
 0x14e   :  { %12538 = vst [vmem:[#allocation156_spill] sm:$0xff] %v6254_v63  ;;  %v6283_v63 = vsel %vm145_vm1, %v157_v40, %v158_v6  ;;  %v164_v6 = vrot.slane %v5351_v12, 7  ;;  %v167_v12 = vrot.slane %v5356_v13, 7 }
 0x14f   :  { %v6289_v61 = vsel %vm145_vm1, %v160_v44, %v161_v50  ;;  %v166_v50 = vrot.slane %v5361_v14, 7  ;;  %v6307_v44 = vsel %vm145_vm1, 0.0, %v163_v9 }
 0x150   :  { %12542 = vst [vmem:[#allocation160_spill] sm:$0xff] %v6289_v61 }
 0x151   :  { %950 = vrot.lane.b32.xlu0 %v6259_v48, %s5225_s20  ;;  %12546 = vst [vmem:[#allocation164_spill] sm:$0xff] %v6307_v44 }
 0x152   :  { %952 = vrot.lane.b32.xlu1 %v6262_v54, %s5225_s20  ;;  %954 = vrot.lane.b32.xlu2 %v6265_v56, %s5225_s20 }
 0x153   :  { %v6273_v4 = vpop.permute.xlu0 %772 }
 0x154   :  { %12539 = vst [vmem:[#allocation157_spill] sm:$0xff] %v6273_v4  ;;  %v6276_v8 = vpop.permute.xlu1 %774  ;;  %v6278_v1 = vpop.permute.xlu2 %794 }
 0x155   :  { %12540 = vst [vmem:[#allocation158_spill] sm:$0xff] %v6276_v8  ;;  %v6310_v8 = vsel %vm145_vm1, %v163_v9, %v164_v6  ;;  %v169_v6 = vrot.slane %v5372_v15, 7  ;;  %v172_v15 = vrot.slane %v5377_v16, 7 }
 0x156   :  { %12541 = vst [vmem:[#allocation159_spill] sm:$0xff] %v6278_v1  ;;  %v6313_v1 = vsel %vm145_vm1, 0.0, %v166_v50 }
 0x157   :  { %12547 = vst [vmem:[#allocation165_spill] sm:$0xff] %v6310_v8 }
 0x158   :  { %12548 = vst [vmem:[#allocation166_spill] sm:$0xff] %v6313_v1 }
 0x159   :  { %956 = vrot.lane.b32.xlu0 %v6283_v63, %s5225_s20 }
 0x15a   :  { %958 = vrot.lane.b32.xlu1 %v6286_v5, %s5225_s20  ;;  %960 = vrot.lane.b32.xlu2 %v6289_v61, %s5225_s20 }
 0x15b   :  { %v6297_v7 = vpop.permute.xlu0 %778 }
 0x15c   :  { %12543 = vst [vmem:[#allocation161_spill] sm:$0xff] %v6297_v7  ;;  %v6300_v11 = vpop.permute.xlu1 %780  ;;  %v6302_v40 = vpop.permute.xlu2 %800  ;;  %v6334_v7 = vsel %vm145_vm1, 0.0, %v169_v6 }
 0x15d   :  { %12544 = vst [vmem:[#allocation162_spill] sm:$0xff] %v6300_v11  ;;  %v170_v11 = vrot.slane %v5382_v17, 7 }
 0x15e   :  { %12545 = vst [vmem:[#allocation163_spill] sm:$0xff] %v6302_v40  ;;  %v6331_v40 = vsel %vm145_vm1, %v166_v50, %v167_v12  ;;  %v173_v12 = vrot.slane %v5393_v18, 7  ;;  %v176_v18 = vrot.slane %v5398_v19, 7 }
 0x15f   :  { %12552 = vst [vmem:[#allocation170_spill] sm:$0xff] %v6331_v40  ;;  %v6337_v4 = vsel %vm145_vm1, %v169_v6, %v170_v11  ;;  %v175_v11 = vrot.slane %v5403_v20, 7  ;;  %v6355_v6 = vsel %vm145_vm1, 0.0, %v172_v15 }
 0x161   :  { %962 = vrot.lane.b32.xlu0 %v6307_v44, %s5225_s20 }
 0x162   :  { %964 = vrot.lane.b32.xlu1 %v6310_v8, %s5225_s20  ;;  %966 = vrot.lane.b32.xlu2 %v6313_v1, %s5225_s20 }
 0x163   :  { %v6321_v10 = vpop.permute.xlu0 %784 }
 0x164   :  { %12549 = vst [vmem:[#allocation167_spill] sm:$0xff] %v6321_v10  ;;  %v6324_v14 = vpop.permute.xlu1 %786  ;;  %v6326_v9 = vpop.permute.xlu2 %806  ;;  %v6379_v10 = vsel %vm145_vm1, %v175_v11, %v176_v18  ;;  %v182_v18 = vrot.slane %v5435_v24, 7  ;;  %v185_v24 = vrot.slane %v5440_v25, 7 }
 0x165   :  { %12550 = vst [vmem:[#allocation168_spill] sm:$0xff] %v6324_v14  ;;  %v6358_v14 = vsel %vm145_vm1, %v172_v15, %v173_v12  ;;  %v178_v12 = vrot.slane %v5414_v21, 7  ;;  %v181_v21 = vrot.slane %v5419_v22, 7 }
 0x166   :  { %12551 = vst [vmem:[#allocation169_spill] sm:$0xff] %v6326_v9  ;;  %v6361_v9 = vsel %vm145_vm1, 0.0, %v175_v11 }
 0x169   :  { %968 = vrot.lane.b32.xlu0 %v6331_v40, %s5225_s20 }
 0x16a   :  { %970 = vrot.lane.b32.xlu1 %v6334_v7, %s5225_s20  ;;  %972 = vrot.lane.b32.xlu2 %v6337_v4, %s5225_s20 }
 0x16b   :  { %v6345_v13 = vpop.permute.xlu0 %790 }
 0x16c   :  { %12553 = vst [vmem:[#allocation171_spill] sm:$0xff] %v6345_v13  ;;  %v6348_v17 = vpop.permute.xlu1 %792  ;;  %v6350_v50 = vpop.permute.xlu2 %812 }
 0x16d   :  { %12554 = vst [vmem:[#allocation172_spill] sm:$0xff] %v6348_v17  ;;  %v6382_v17 = vsel %vm145_vm1, 0.0, %v178_v12 }
 0x16e   :  { %12555 = vst [vmem:[#allocation173_spill] sm:$0xff] %v6350_v50  ;;  %v179_v50 = vrot.slane %v5424_v23, 7 }
 0x16f   :  { %12559 = vst [vmem:[#allocation177_spill] sm:$0xff] %v6382_v17 }
 0x170   :  { %v6385_v13 = vsel %vm145_vm1, %v178_v12, %v179_v50  ;;  %v184_v50 = vrot.slane %v5445_v26, 7  ;;  %v6403_v12 = vsel %vm145_vm1, 0.0, %v181_v21 }
 0x171   :  { %974 = vrot.lane.b32.xlu0 %v6355_v6, %s5225_s20  ;;  %12560 = vst [vmem:[#allocation178_spill] sm:$0xff] %v6385_v13 }
 0x172   :  { %976 = vrot.lane.b32.xlu1 %v6358_v14, %s5225_s20  ;;  %978 = vrot.lane.b32.xlu2 %v6361_v9, %s5225_s20  ;;  %12564 = vst [vmem:[#allocation182_spill] sm:$0xff] %v6403_v12 }
 0x173   :  { %v6369_v16 = vpop.permute.xlu0 %796 }
 0x174   :  { %12556 = vst [vmem:[#allocation174_spill] sm:$0xff] %v6369_v16  ;;  %v6372_v20 = vpop.permute.xlu1 %798  ;;  %v6374_v15 = vpop.permute.xlu2 %818  ;;  %v6409_v16 = vsel %vm145_vm1, 0.0, %v184_v50 }
 0x175   :  { %12557 = vst [vmem:[#allocation175_spill] sm:$0xff] %v6372_v20  ;;  %v6406_v20 = vsel %vm145_vm1, %v181_v21, %v182_v18  ;;  %v187_v18 = vrot.slane %v5456_v27, 7 }
 0x176   :  { %12558 = vst [vmem:[#allocation176_spill] sm:$0xff] %v6374_v15 }
 0x177   :  { %12565 = vst [vmem:[#allocation183_spill] sm:$0xff] %v6406_v20 }
 0x178   :  { %12566 = vst [vmem:[#allocation184_spill] sm:$0xff] %v6409_v16 }
 0x179   :  { %980 = vrot.lane.b32.xlu0 %v6379_v10, %s5225_s20 }
 0x17a   :  { %982 = vrot.lane.b32.xlu1 %v6382_v17, %s5225_s20  ;;  %984 = vrot.lane.b32.xlu2 %v6385_v13, %s5225_s20 }
 0x17b   :  { %v6393_v19 = vpop.permute.xlu0 %802 }
 0x17c   :  { %12561 = vst [vmem:[#allocation179_spill] sm:$0xff] %v6393_v19  ;;  %v6396_v23 = vpop.permute.xlu1 %804  ;;  %v6398_v11 = vpop.permute.xlu2 %824  ;;  %v6427_v19 = vsel %vm145_vm1, %v184_v50, %v185_v24  ;;  %v190_v50 = vrot.slane %v5461_v28, 7 }
 0x17d   :  { %12562 = vst [vmem:[#allocation180_spill] sm:$0xff] %v6396_v23  ;;  %v188_v23 = vrot.slane %v5466_v29, 7 }
 0x17e   :  { %12563 = vst [vmem:[#allocation181_spill] sm:$0xff] %v6398_v11  ;;  %v6432_v11 = vld [vmem:[%s12008_s0 + $0xf0] sm:$0xff] }
 0x17f   :  { %12570 = vst [vmem:[#allocation188_spill] sm:$0xff] %v6427_v19  ;;  %v6438_v25 = vsel %vm145_vm1, %v187_v18, %v188_v23  ;;  %v490_v29 = vrot.slane %v6432_v11, 7  ;;  %v191_v23 = vrot.slane %v5477_v30, 7 }
 0x180   :  { %12572 = vst [vmem:[#allocation190_spill] sm:$0xff] %v6438_v25 }
 0x181   :  { %986 = vrot.lane.b32.xlu0 %v6403_v12, %s5225_s20  ;;  %v6467_v15 = vsel %vm145_vm1, %v190_v50, %v191_v23  ;;  %v193_v23 = vrot.slane %v5487_v32, 7  ;;  %v196_v32 = vrot.slane %v5498_v33, 7 }
 0x182   :  { %988 = vrot.lane.b32.xlu1 %v6406_v20, %s5225_s20  ;;  %990 = vrot.lane.b32.xlu2 %v6409_v16, %s5225_s20  ;;  %12578 = vst [vmem:[#allocation196_spill] sm:$0xff] %v6467_v15 }
 0x183   :  { %v6417_v22 = vpop.permute.xlu0 %808 }
 0x184   :  { %12567 = vst [vmem:[#allocation185_spill] sm:$0xff] %v6417_v22  ;;  %v6420_v26 = vpop.permute.xlu1 %810  ;;  %v6422_v21 = vpop.permute.xlu2 %830  ;;  %v6435_v22 = vsel %vm145_vm1, 0.0, %v187_v18  ;;  %v6456_v18 = vsel %vm145_vm1, 0.0, %v490_v29 }
 0x185   :  { %12568 = vst [vmem:[#allocation186_spill] sm:$0xff] %v6420_v26 }
 0x186   :  { %12569 = vst [vmem:[#allocation187_spill] sm:$0xff] %v6422_v21  ;;  %v6461_v21 = vld [vmem:[%s12008_s0 + $0xf8] sm:$0xff] }
 0x187   :  { %12571 = vst [vmem:[#allocation189_spill] sm:$0xff] %v6435_v22  ;;  %v491_v28 = vrot.slane %v6461_v21, 7 }
 0x188   :  { %12576 = vst [vmem:[#allocation194_spill] sm:$0xff] %v6456_v18 }
 0x189   :  { %992 = vrot.lane.b32.xlu0 %v6427_v19, %s5225_s20  ;;  %v6485_v2 = vsel %vm145_vm1, %v490_v29, %v491_v28 }
 0x18a   :  { %994 = vrot.lane.b32.xlu1 %v6435_v22, %s5225_s20  ;;  %996 = vrot.lane.b32.xlu2 %v6438_v25, %s5225_s20 }
 0x18b   :  { %v6446_v27 = vpop.permute.xlu0 %814 }
 0x18c   :  { %12573 = vst [vmem:[#allocation191_spill] sm:$0xff] %v6446_v27  ;;  %v6450_v24 = vpop.permute.xlu1 %816  ;;  %v6452_v26 = vpop.permute.xlu2 %836  ;;  %v6464_v27 = vsel %vm145_vm1, 0.0, %v190_v50  ;;  %v194_v50 = vrot.slane %v5482_v31, 7 }
 0x18d   :  { %12574 = vst [vmem:[#allocation192_spill] sm:$0xff] %v6450_v24 }
 0x18e   :  { %12575 = vst [vmem:[#allocation193_spill] sm:$0xff] %v6452_v26 }
 0x18f   :  { %12577 = vst [vmem:[#allocation195_spill] sm:$0xff] %v6464_v27 }
 0x191   :  { %998 = vrot.lane.b32.xlu0 %v6464_v27, %s5225_s20 }
 0x192   :  { %1000 = vrot.lane.b32.xlu1 %v6467_v15, %s5225_s20  ;;  %1002 = vrot.lane.b32.xlu2 %v6456_v18, %s5225_s20  ;;  %v6488_v15 = vsel %vm145_vm1, %v193_v23, %v194_v50  ;;  %v6491_v18 = vsel %vm145_vm1, 0.0, %v193_v23  ;;  %v199_v50 = vrot.slane %v5503_v34, 7  ;;  %v197_v23 = vrot.slane %v5508_v35, 7 }
 0x193   :  { %v6476_v30 = vpop.permute.xlu0 %820  ;;  %12582 = vst [vmem:[#allocation200_spill] sm:$0xff] %v6488_v15  ;;  %v200_v34 = vrot.slane %v5521_v37, 7 }
 0x194   :  { %12579 = vst [vmem:[#allocation197_spill] sm:$0xff] %v6476_v30  ;;  %v6478_v26 = vpop.permute.xlu1 %822  ;;  %v6480_v24 = vpop.permute.xlu2 %842  ;;  %v6515_v30 = vsel %vm145_vm1, %v196_v32, %v197_v23  ;;  %v203_v23 = vrot.slane %v5526_v38, 7  ;;  %v205_v38 = vrot.slane %v5544_v41, 7 }
 0x195   :  { %12580 = vst [vmem:[#allocation198_spill] sm:$0xff] %v6478_v26  ;;  %v6512_v26 = vsel %vm145_vm1, 0.0, %v199_v50 }
 0x196   :  { %12581 = vst [vmem:[#allocation199_spill] sm:$0xff] %v6480_v24  ;;  %v6509_v24 = vsel %vm145_vm1, 0.0, %v196_v32  ;;  %v202_v32 = vrot.slane %v5531_v39, 7 }
 0x197   :  { %12583 = vst [vmem:[#allocation201_spill] sm:$0xff] %v6491_v18 }
 0x198   :  { %12587 = vst [vmem:[#allocation205_spill] sm:$0xff] %v6509_v24 }
 0x199   :  { %1004 = vrot.lane.b32.xlu0 %v6485_v2, %s5225_s20  ;;  %12588 = vst [vmem:[#allocation206_spill] sm:$0xff] %v6512_v26 }
 0x19a   :  { %1006 = vrot.lane.b32.xlu1 %v6491_v18, %s5225_s20  ;;  %1008 = vrot.lane.b32.xlu2 %v6488_v15, %s5225_s20  ;;  %12589 = vst [vmem:[#allocation207_spill] sm:$0xff] %v6515_v30  ;;  %v6536_v15 = vsel %vm145_vm1, %v202_v32, %v203_v23  ;;  %v6539_v18 = vsel %vm145_vm1, 0.0, %v202_v32  ;;  %v206_v32 = vrot.slane %v5554_v43, 7  ;;  %v6557_v23 = vsel %vm145_vm1, 0.0, %v205_v38 }
 0x19b   :  { %v6499_v31 = vpop.permute.xlu0 %826  ;;  %12594 = vst [vmem:[#allocation212_spill] sm:$0xff] %v6536_v15 }
 0x19c   :  { %12584 = vst [vmem:[#allocation202_spill] sm:$0xff] %v6499_v31  ;;  %v6502_v29 = vpop.permute.xlu1 %828  ;;  %v6504_v28 = vpop.permute.xlu2 %942  ;;  %v6533_v31 = vsel %vm145_vm1, %v199_v50, %v200_v34  ;;  %v208_v34 = vrot.slane %v5549_v42, 7  ;;  %v209_v42 = vrot.slane %v5567_v45, 7 }
 0x19d   :  { %12585 = vst [vmem:[#allocation203_spill] sm:$0xff] %v6502_v29 }
 0x19e   :  { %12586 = vst [vmem:[#allocation204_spill] sm:$0xff] %v6504_v28 }
 0x19f   :  { %12593 = vst [vmem:[#allocation211_spill] sm:$0xff] %v6533_v31 }
 0x1a0   :  { %12595 = vst [vmem:[#allocation213_spill] sm:$0xff] %v6539_v18 }
 0x1a1   :  { %1010 = vrot.lane.b32.xlu0 %v6509_v24, %s5225_s20  ;;  %12599 = vst [vmem:[#allocation217_spill] sm:$0xff] %v6557_v23 }
 0x1a2   :  { %1012 = vrot.lane.b32.xlu1 %v6515_v30, %s5225_s20  ;;  %1014 = vrot.lane.b32.xlu2 %v6512_v26, %s5225_s20 }
 0x1a3   :  { %v6523_v33 = vpop.permute.xlu0 %832 }
 0x1a4   :  { %12590 = vst [vmem:[#allocation208_spill] sm:$0xff] %v6523_v33  ;;  %v6526_v35 = vpop.permute.xlu1 %834  ;;  %v6528_v29 = vpop.permute.xlu2 %948  ;;  %v6563_v33 = vsel %vm145_vm1, %v205_v38, %v206_v32  ;;  %v211_v38 = vrot.slane %v5577_v47, 7  ;;  %v212_v32 = vrot.slane %v5572_v46, 7  ;;  %v214_v46 = vrot.slane %v5594_v51, 7 }
 0x1a5   :  { %12591 = vst [vmem:[#allocation209_spill] sm:$0xff] %v6526_v35  ;;  %v6560_v35 = vsel %vm145_vm1, 0.0, %v208_v34 }
 0x1a6   :  { %12592 = vst [vmem:[#allocation210_spill] sm:$0xff] %v6528_v29  ;;  %v6587_v29 = vsel %vm145_vm1, 0.0, %v211_v38 }
 0x1a7   :  { %12600 = vst [vmem:[#allocation218_spill] sm:$0xff] %v6560_v35 }
 0x1a8   :  { %12601 = vst [vmem:[#allocation219_spill] sm:$0xff] %v6563_v33 }
 0x1a9   :  { %1016 = vrot.lane.b32.xlu0 %v6533_v31, %s5225_s20  ;;  %12607 = vst [vmem:[#allocation225_spill] sm:$0xff] %v6587_v29 }
 0x1aa   :  { %1018 = vrot.lane.b32.xlu1 %v6539_v18, %s5225_s20  ;;  %1020 = vrot.lane.b32.xlu2 %v6536_v15, %s5225_s20 }
 0x1ab   :  { %v6547_v37 = vpop.permute.xlu0 %838 }
 0x1ac   :  { %12596 = vst [vmem:[#allocation214_spill] sm:$0xff] %v6547_v37  ;;  %v6550_v39 = vpop.permute.xlu1 %840  ;;  %v6552_v50 = vpop.permute.xlu2 %954  ;;  %v6581_v37 = vsel %vm145_vm1, %v208_v34, %v209_v42  ;;  %v217_v42 = vrot.slane %v5599_v52, 7  ;;  %v218_v52 = vrot.slane %v5622_v58, 7 }
 0x1ad   :  { %12597 = vst [vmem:[#allocation215_spill] sm:$0xff] %v6550_v39 }
 0x1ae   :  { %12598 = vst [vmem:[#allocation216_spill] sm:$0xff] %v6552_v50  ;;  %v6584_v50 = vsel %vm145_vm1, %v211_v38, %v212_v32  ;;  %v215_v38 = vrot.slane %v5604_v53, 7  ;;  %v6605_v32 = vsel %vm145_vm1, 0.0, %v214_v46 }
 0x1af   :  { %12605 = vst [vmem:[#allocation223_spill] sm:$0xff] %v6581_v37 }
 0x1b0   :  { %12606 = vst [vmem:[#allocation224_spill] sm:$0xff] %v6584_v50 }
 0x1b1   :  { %1022 = vrot.lane.b32.xlu0 %v6557_v23, %s5225_s20  ;;  %12611 = vst [vmem:[#allocation229_spill] sm:$0xff] %v6605_v32 }
 0x1b2   :  { %1024 = vrot.lane.b32.xlu1 %v6563_v33, %s5225_s20  ;;  %1026 = vrot.lane.b32.xlu2 %v6560_v35, %s5225_s20 }
 0x1b3   :  { %v6571_v41 = vpop.permute.xlu0 %844 }
 0x1b4   :  { %12602 = vst [vmem:[#allocation220_spill] sm:$0xff] %v6571_v41  ;;  %v6574_v43 = vpop.permute.xlu1 %846  ;;  %v6576_v39 = vpop.permute.xlu2 %960  ;;  %v6611_v41 = vsel %vm145_vm1, %v214_v46, %v215_v38  ;;  %v220_v46 = vrot.slane %v5632_v60, 7  ;;  %v221_v38 = vrot.slane %v5627_v59, 7  ;;  %v223_v59 = vrot.slane %v5652_v49, 7 }
 0x1b5   :  { %12603 = vst [vmem:[#allocation221_spill] sm:$0xff] %v6574_v43  ;;  %v6608_v43 = vsel %vm145_vm1, 0.0, %v217_v42 }
 0x1b6   :  { %12604 = vst [vmem:[#allocation222_spill] sm:$0xff] %v6576_v39  ;;  %v6629_v39 = vsel %vm145_vm1, %v217_v42, %v218_v52  ;;  %v226_v52 = vrot.slane %v5657_v55, 7  ;;  %v227_v55 = vrot.slane %v5679_v0, 7 }
 0x1b7   :  { %12612 = vst [vmem:[#allocation230_spill] sm:$0xff] %v6608_v43 }
 0x1b8   :  { %12613 = vst [vmem:[#allocation231_spill] sm:$0xff] %v6611_v41 }
 0x1b9   :  { %1028 = vrot.lane.b32.xlu0 %v6581_v37, %s5225_s20  ;;  %12617 = vst [vmem:[#allocation235_spill] sm:$0xff] %v6629_v39 }
 0x1ba   :  { %1030 = vrot.lane.b32.xlu1 %v6587_v29, %s5225_s20  ;;  %1032 = vrot.lane.b32.xlu2 %v6584_v50, %s5225_s20 }
 0x1bb   :  { %v6595_v45 = vpop.permute.xlu0 %944 }
 0x1bc   :  { %12608 = vst [vmem:[#allocation226_spill] sm:$0xff] %v6595_v45  ;;  %v6598_v47 = vpop.permute.xlu1 %946  ;;  %v6600_v34 = vpop.permute.xlu2 %966  ;;  %v6635_v45 = vsel %vm145_vm1, 0.0, %v220_v46 }
 0x1bd   :  { %12609 = vst [vmem:[#allocation227_spill] sm:$0xff] %v6598_v47  ;;  %v6632_v47 = vsel %vm145_vm1, %v220_v46, %v221_v38  ;;  %v12623_v46 = vld [vmem:[#allocation17_spill] sm:$0xff] }
 0x1be   :  { %12610 = vst [vmem:[#allocation228_spill] sm:$0xff] %v6600_v34  ;;  %v224_v38 = vrot.slane %v12623_v46, 7 }
 0x1bf   :  { %12618 = vst [vmem:[#allocation236_spill] sm:$0xff] %v6632_v47 }
 0x1c0   :  { %12619 = vst [vmem:[#allocation237_spill] sm:$0xff] %v6635_v45 }
 0x1c1   :  { %1034 = vrot.lane.b32.xlu0 %v6605_v32, %s5225_s20 }
 0x1c2   :  { %1036 = vrot.lane.b32.xlu1 %v6611_v41, %s5225_s20  ;;  %1038 = vrot.lane.b32.xlu2 %v6608_v43, %s5225_s20 }
 0x1c3   :  { %v6619_v51 = vpop.permute.xlu0 %950 }
 0x1c4   :  { %12614 = vst [vmem:[#allocation232_spill] sm:$0xff] %v6619_v51  ;;  %v6622_v53 = vpop.permute.xlu1 %952  ;;  %v6624_v34 = vpop.permute.xlu2 %972  ;;  %v6659_v51 = vsel %vm145_vm1, %v223_v59, %v224_v38  ;;  %v12630_v38 = vld [vmem:[#allocation21_spill] sm:$0xff] }
 0x1c5   :  { %12615 = vst [vmem:[#allocation233_spill] sm:$0xff] %v6622_v53  ;;  %v6656_v53 = vsel %vm145_vm1, 0.0, %v226_v52 }
 0x1c6   :  { %12616 = vst [vmem:[#allocation234_spill] sm:$0xff] %v6624_v34  ;;  %v6653_v34 = vsel %vm145_vm1, 0.0, %v223_v59  ;;  %v229_v59 = vrot.slane %v5689_v36, 7  ;;  %v12635_v36 = vld [vmem:[#allocation25_spill] sm:$0xff] }
 0x1c7   :  { %12624 = vst [vmem:[#allocation17_spill] sm:$0xff] %v6653_v34 }
 0x1c8   :  { %12625 = vst [vmem:[#allocation241_spill] sm:$0xff] %v6656_v53 }
 0x1c9   :  { %1040 = vrot.lane.b32.xlu0 %v6629_v39, %s5225_s20  ;;  %12626 = vst [vmem:[#allocation242_spill] sm:$0xff] %v6659_v51 }
 0x1ca   :  { %1042 = vrot.lane.b32.xlu1 %v6635_v45, %s5225_s20  ;;  %1044 = vrot.lane.b32.xlu2 %v6632_v47, %s5225_s20 }
 0x1cb   :  { %v6643_v58 = vpop.permute.xlu0 %956 }
 0x1cc   :  { %12620 = vst [vmem:[#allocation238_spill] sm:$0xff] %v6643_v58  ;;  %v6646_v60 = vpop.permute.xlu1 %958  ;;  %v6648_v42 = vpop.permute.xlu2 %978  ;;  %v230_v58 = vrot.slane %v12630_v38, 7  ;;  %v12638_v38 = vld [vmem:[#allocation27_spill] sm:$0xff] }
 0x1cd   :  { %12621 = vst [vmem:[#allocation239_spill] sm:$0xff] %v6646_v60 }
 0x1ce   :  { %12622 = vst [vmem:[#allocation240_spill] sm:$0xff] %v6648_v42  ;;  %v6677_v42 = vsel %vm145_vm1, %v226_v52, %v227_v55  ;;  %v6680_v28 = vsel %vm145_vm1, %v229_v59, %v230_v58  ;;  %v232_v52 = vrot.slane %v12635_v36, 7  ;;  %v6711_v36 = vld [vmem:[%s12008_s0 + $0x1f8] sm:$0xff] }
 0x1cf   :  { %12631 = vst [vmem:[#allocation21_spill] sm:$0xff] %v6677_v42 }
 0x1d0   :  { %12632 = vst [vmem:[#allocation246_spill] sm:$0xff] %v6680_v28 }
 0x1d1   :  { %1046 = vrot.lane.b32.xlu0 %v6653_v34, %s5225_s20 }
 0x1d2   :  { %1048 = vrot.lane.b32.xlu1 %v6659_v51, %s5225_s20  ;;  %1050 = vrot.lane.b32.xlu2 %v6656_v53, %s5225_s20  ;;  %v6683_v53 = vsel %vm145_vm1, 0.0, %v229_v59  ;;  %v235_v59 = vrot.slane %v12522_v62, 7 }
 0x1d3   :  { %v6667_v49 = vpop.permute.xlu0 %962  ;;  %12633 = vst [vmem:[#allocation247_spill] sm:$0xff] %v6683_v53 }
 0x1d4   :  { %12627 = vst [vmem:[#allocation243_spill] sm:$0xff] %v6667_v49  ;;  %v6670_v46 = vpop.permute.xlu1 %964  ;;  %v6672_v60 = vpop.permute.xlu2 %984  ;;  %v6701_v49 = vsel %vm145_vm1, 0.0, %v232_v52 }
 0x1d5   :  { %12628 = vst [vmem:[#allocation244_spill] sm:$0xff] %v6670_v46  ;;  %v233_v46 = vrot.slane %v12638_v38, 7 }
 0x1d6   :  { %12629 = vst [vmem:[#allocation245_spill] sm:$0xff] %v6672_v60  ;;  %v6706_v60 = vld [vmem:[%s12008_s0 + $0x1f0] sm:$0xff] }
 0x1d7   :  { %12639 = vst [vmem:[#allocation27_spill] sm:$0xff] %v6701_v49  ;;  %v6717_v62 = vsel %vm145_vm1, %v232_v52, %v233_v46 }
 0x1d8   :  { %12641 = vst [vmem:[#allocation251_spill] sm:$0xff] %v6717_v62 }
 0x1d9   :  { %1052 = vrot.lane.b32.xlu0 %v6677_v42, %s5225_s20 }
 0x1da   :  { %1054 = vrot.lane.b32.xlu1 %v6683_v53, %s5225_s20  ;;  %1056 = vrot.lane.b32.xlu2 %v6680_v28, %s5225_s20  ;;  %v12643_v28 = vld [vmem:[#allocation31_spill] sm:$0xff] }
 0x1db   :  { %v6691_v0 = vpop.permute.xlu0 %968  ;;  %v236_v53 = vrot.slane %v12643_v28, 7 }
 0x1dc   :  { %12634 = vst [vmem:[#allocation248_spill] sm:$0xff] %v6691_v0  ;;  %v6694_v55 = vpop.permute.xlu1 %970  ;;  %v6696_v58 = vpop.permute.xlu2 %990  ;;  %v493_v0 = vrot.slane %v6706_v60, 7 }
 0x1dd   :  { %12636 = vst [vmem:[#allocation25_spill] sm:$0xff] %v6694_v55  ;;  %v6714_v55 = vsel %vm145_vm1, 0.0, %v235_v59 }
 0x1de   :  { %12637 = vst [vmem:[#allocation249_spill] sm:$0xff] %v6696_v58  ;;  %v494_v58 = vrot.slane %v6711_v36, 7  ;;  %v6735_v52 = vsel %vm145_vm1, 0.0, %v493_v0 }
 0x1df   :  { %12640 = vst [vmem:[#allocation250_spill] sm:$0xff] %v6714_v55 }
 0x1e1   :  { %1058 = vrot.lane.b32.xlu0 %v6701_v49, %s5225_s20 }
 0x1e2   :  { %1060 = vrot.lane.b32.xlu1 %v6717_v62, %s5225_s20  ;;  %1062 = vrot.lane.b32.xlu2 %v6714_v55, %s5225_s20  ;;  %v6738_v62 = vsel %vm145_vm1, %v493_v0, %v494_v58  ;;  %v6741_v55 = vsel %vm145_vm1, %v235_v59, %v236_v53  ;;  %v5134_v53 = vld [vmem:[%s12008_s0] sm:$0xff]  ;;  %v5135_v0 = vld [vmem:[%s12008_s0 + $0x8] sm:$0xff] }
 0x1e3   :  { %v6725_v38 = vpop.permute.xlu0 %974  ;;  %12646 = vst [vmem:[#allocation254_spill] sm:$0xff] %v6738_v62  ;;  %v6766_v58 = vld [vmem:[%s12008_s0 + $0x10] sm:$0xff] }
 0x1e4   :  { %12642 = vst [vmem:[#allocation252_spill] sm:$0xff] %v6725_v38  ;;  %v6730_v42 = vpop.permute.xlu1 %976  ;;  %v6732_v46 = vpop.permute.xlu2 %996  ;;  %v6806_v38 = vld [vmem:[%s12008_s0 + $0x30] sm:$0xff] }
 0x1e5   :  { %12644 = vst [vmem:[#allocation31_spill] sm:$0xff] %v6730_v42 }
 0x1e6   :  { %12645 = vst [vmem:[#allocation253_spill] sm:$0xff] %v6732_v46 }
 0x1e7   :  { %12647 = vst [vmem:[#allocation255_spill] sm:$0xff] %v6741_v55 }
 0x1e8   :  { %12651 = vst [vmem:[#allocation259_spill] sm:$0xff] %v6766_v58 }
 0x1e9   :  { %1064 = vrot.lane.b32.xlu0 %v6741_v55, %s5225_s20  ;;  %12661 = vst [vmem:[#allocation269_spill] sm:$0xff] %v6806_v38 }
 0x1ea   :  { %1066 = vrot.lane.b32.xlu1 %v6735_v52, %s5225_s20  ;;  %1068 = vrot.lane.b32.xlu2 %v6738_v62, %s5225_s20 }
 0x1eb   :  { %v6749_v28 = vpop.permute.xlu0 %980 }
 0x1ec   :  { %12648 = vst [vmem:[#allocation256_spill] sm:$0xff] %v6749_v28  ;;  %v6751_v46 = vpop.permute.xlu1 %982  ;;  %v6753_v42 = vpop.permute.xlu2 %1002 }
 0x1ed   :  { %12649 = vst [vmem:[#allocation257_spill] sm:$0xff] %v6751_v46 }
 0x1ee   :  { %12650 = vst [vmem:[#allocation258_spill] sm:$0xff] %v6753_v42 }
 0x1f1   :  { %1134 = vrot.lane.b32.xlu0 %v5134_v53, %s5226_s6  ;;  %v6779_v53 = vld [vmem:[%s12008_s0 + $0x18] sm:$0xff] }
 0x1f2   :  { %1136 = vrot.lane.b32.xlu1 %v5135_v0, %s5226_s6  ;;  %1138 = vrot.lane.b32.xlu2 %v6766_v58, %s5226_s6  ;;  %12655 = vst [vmem:[#allocation263_spill] sm:$0xff] %v6779_v53  ;;  %v6786_v0 = vld [vmem:[%s12008_s0 + $0x20] sm:$0xff] }
 0x1f3   :  { %v6770_v59 = vpop.permute.xlu0 %986  ;;  %12656 = vst [vmem:[#allocation264_spill] sm:$0xff] %v6786_v0 }
 0x1f4   :  { %12652 = vst [vmem:[#allocation260_spill] sm:$0xff] %v6770_v59  ;;  %v6772_v42 = vpop.permute.xlu1 %988  ;;  %v6774_v46 = vpop.permute.xlu2 %1008 }
 0x1f5   :  { %12653 = vst [vmem:[#allocation261_spill] sm:$0xff] %v6772_v42  ;;  %v6793_v42 = vld [vmem:[%s12008_s0 + $0x28] sm:$0xff] }
 0x1f6   :  { %12654 = vst [vmem:[#allocation262_spill] sm:$0xff] %v6774_v46 }
 0x1f7   :  { %12657 = vst [vmem:[#allocation265_spill] sm:$0xff] %v6793_v42 }
 0x1f9   :  { %1140 = vrot.lane.b32.xlu0 %v6779_v53, %s5226_s6 }
 0x1fa   :  { %1142 = vrot.lane.b32.xlu1 %v6786_v0, %s5226_s6  ;;  %1144 = vrot.lane.b32.xlu2 %v6793_v42, %s5226_s6  ;;  %v6813_v0 = vld [vmem:[%s12008_s0 + $0x38] sm:$0xff]  ;;  %v6833_v42 = vld [vmem:[%s12008_s0 + $0x48] sm:$0xff] }
 0x1fb   :  { %v6797_v59 = vpop.permute.xlu0 %992  ;;  %12662 = vst [vmem:[#allocation270_spill] sm:$0xff] %v6813_v0 }
 0x1fc   :  { %12658 = vst [vmem:[#allocation266_spill] sm:$0xff] %v6797_v59  ;;  %v6799_v46 = vpop.permute.xlu1 %994  ;;  %v6801_v28 = vpop.permute.xlu2 %1014 }
 0x1fd   :  { %12659 = vst [vmem:[#allocation267_spill] sm:$0xff] %v6799_v46  ;;  %v6820_v46 = vld [vmem:[%s12008_s0 + $0x40] sm:$0xff] }
 0x1fe   :  { %12660 = vst [vmem:[#allocation268_spill] sm:$0xff] %v6801_v28 }
 0x1ff   :  { %12663 = vst [vmem:[#allocation271_spill] sm:$0xff] %v6820_v46 }
 0x200   :  { %12667 = vst [vmem:[#allocation275_spill] sm:$0xff] %v6833_v42 }
 0x201   :  { %1146 = vrot.lane.b32.xlu0 %v6806_v38, %s5226_s6 }
 0x202   :  { %1148 = vrot.lane.b32.xlu1 %v6813_v0, %s5226_s6  ;;  %1150 = vrot.lane.b32.xlu2 %v6820_v46, %s5226_s6  ;;  %v6840_v0 = vld [vmem:[%s12008_s0 + $0x50] sm:$0xff]  ;;  %v6860_v46 = vld [vmem:[%s12008_s0 + $0x60] sm:$0xff] }
 0x203   :  { %v6824_v59 = vpop.permute.xlu0 %998  ;;  %12668 = vst [vmem:[#allocation276_spill] sm:$0xff] %v6840_v0 }
 0x204   :  { %12664 = vst [vmem:[#allocation272_spill] sm:$0xff] %v6824_v59  ;;  %v6826_v28 = vpop.permute.xlu1 %1000  ;;  %v6828_v38 = vpop.permute.xlu2 %1020 }
 0x205   :  { %12665 = vst [vmem:[#allocation273_spill] sm:$0xff] %v6826_v28  ;;  %v6847_v28 = vld [vmem:[%s12008_s0 + $0x58] sm:$0xff] }
 0x206   :  { %12666 = vst [vmem:[#allocation274_spill] sm:$0xff] %v6828_v38 }
 0x207   :  { %12669 = vst [vmem:[#allocation277_spill] sm:$0xff] %v6847_v28 }
 0x208   :  { %12673 = vst [vmem:[#allocation281_spill] sm:$0xff] %v6860_v46 }
 0x209   :  { %1152 = vrot.lane.b32.xlu0 %v6833_v42, %s5226_s6 }
 0x20a   :  { %1154 = vrot.lane.b32.xlu1 %v6840_v0, %s5226_s6  ;;  %1156 = vrot.lane.b32.xlu2 %v6847_v28, %s5226_s6  ;;  %v6867_v0 = vld [vmem:[%s12008_s0 + $0x68] sm:$0xff]  ;;  %v6887_v28 = vld [vmem:[%s12008_s0 + $0x78] sm:$0xff] }
 0x20b   :  { %v6851_v59 = vpop.permute.xlu0 %1004  ;;  %12674 = vst [vmem:[#allocation282_spill] sm:$0xff] %v6867_v0 }
 0x20c   :  { %12670 = vst [vmem:[#allocation278_spill] sm:$0xff] %v6851_v59  ;;  %v6853_v38 = vpop.permute.xlu1 %1006  ;;  %v6855_v42 = vpop.permute.xlu2 %1026  ;;  %v6874_v59 = vld [vmem:[%s12008_s0 + $0x70] sm:$0xff] }
 0x20d   :  { %12671 = vst [vmem:[#allocation279_spill] sm:$0xff] %v6853_v38 }
 0x20e   :  { %12672 = vst [vmem:[#allocation280_spill] sm:$0xff] %v6855_v42 }
 0x20f   :  { %12675 = vst [vmem:[#allocation283_spill] sm:$0xff] %v6874_v59 }
 0x210   :  { %12679 = vst [vmem:[#allocation287_spill] sm:$0xff] %v6887_v28 }
 0x211   :  { %1158 = vrot.lane.b32.xlu0 %v6860_v46, %s5226_s6 }
 0x212   :  { %1160 = vrot.lane.b32.xlu1 %v6867_v0, %s5226_s6  ;;  %1162 = vrot.lane.b32.xlu2 %v6874_v59, %s5226_s6  ;;  %v6894_v0 = vld [vmem:[%s12008_s0 + $0x80] sm:$0xff] }
 0x213   :  { %v6878_v42 = vpop.permute.xlu0 %1010  ;;  %12680 = vst [vmem:[#allocation288_spill] sm:$0xff] %v6894_v0 }
 0x214   :  { %12676 = vst [vmem:[#allocation284_spill] sm:$0xff] %v6878_v42  ;;  %v6880_v38 = vpop.permute.xlu1 %1012  ;;  %v6882_v46 = vpop.permute.xlu2 %1032 }
 0x215   :  { %12677 = vst [vmem:[#allocation285_spill] sm:$0xff] %v6880_v38 }
 0x216   :  { %12678 = vst [vmem:[#allocation286_spill] sm:$0xff] %v6882_v46  ;;  %v5151_v46 = vld [vmem:[%s12008_s0 + $0x88] sm:$0xff] }
 0x219   :  { %1164 = vrot.lane.b32.xlu0 %v6887_v28, %s5226_s6  ;;  %v6911_v28 = vld [vmem:[%s12008_s0 + $0x90] sm:$0xff] }
 0x21a   :  { %1166 = vrot.lane.b32.xlu1 %v6894_v0, %s5226_s6  ;;  %1168 = vrot.lane.b32.xlu2 %v5151_v46, %s5226_s6  ;;  %12684 = vst [vmem:[#allocation292_spill] sm:$0xff] %v6911_v28  ;;  %v6918_v0 = vld [vmem:[%s12008_s0 + $0x98] sm:$0xff]  ;;  %v6925_v46 = vld [vmem:[%s12008_s0 + $0xa0] sm:$0xff] }
 0x21b   :  { %v6902_v38 = vpop.permute.xlu0 %1016  ;;  %12685 = vst [vmem:[#allocation293_spill] sm:$0xff] %v6918_v0 }
 0x21c   :  { %12681 = vst [vmem:[#allocation289_spill] sm:$0xff] %v6902_v38  ;;  %v6904_v42 = vpop.permute.xlu1 %1018  ;;  %v6906_v59 = vpop.permute.xlu2 %1038 }
 0x21d   :  { %12682 = vst [vmem:[#allocation290_spill] sm:$0xff] %v6904_v42 }
 0x21e   :  { %12683 = vst [vmem:[#allocation291_spill] sm:$0xff] %v6906_v59 }
 0x21f   :  { %12686 = vst [vmem:[#allocation294_spill] sm:$0xff] %v6925_v46 }
 0x221   :  { %1170 = vrot.lane.b32.xlu0 %v6911_v28, %s5226_s6  ;;  %v6938_v28 = vld [vmem:[%s12008_s0 + $0xa8] sm:$0xff] }
 0x222   :  { %1172 = vrot.lane.b32.xlu1 %v6918_v0, %s5226_s6  ;;  %1174 = vrot.lane.b32.xlu2 %v6925_v46, %s5226_s6  ;;  %12690 = vst [vmem:[#allocation298_spill] sm:$0xff] %v6938_v28  ;;  %v6945_v0 = vld [vmem:[%s12008_s0 + $0xb0] sm:$0xff]  ;;  %v6965_v46 = vld [vmem:[%s12008_s0 + $0xc0] sm:$0xff] }
 0x223   :  { %v6929_v42 = vpop.permute.xlu0 %1022  ;;  %12691 = vst [vmem:[#allocation299_spill] sm:$0xff] %v6945_v0 }
 0x224   :  { %12687 = vst [vmem:[#allocation295_spill] sm:$0xff] %v6929_v42  ;;  %v6931_v38 = vpop.permute.xlu1 %1024  ;;  %v6933_v59 = vpop.permute.xlu2 %1044 }
 0x225   :  { %12688 = vst [vmem:[#allocation296_spill] sm:$0xff] %v6931_v38  ;;  %v6952_v38 = vld [vmem:[%s12008_s0 + $0xb8] sm:$0xff] }
 0x226   :  { %12689 = vst [vmem:[#allocation297_spill] sm:$0xff] %v6933_v59 }
 0x227   :  { %12692 = vst [vmem:[#allocation300_spill] sm:$0xff] %v6952_v38 }
 0x228   :  { %12696 = vst [vmem:[#allocation304_spill] sm:$0xff] %v6965_v46 }
 0x229   :  { %1176 = vrot.lane.b32.xlu0 %v6938_v28, %s5226_s6 }
 0x22a   :  { %1178 = vrot.lane.b32.xlu1 %v6945_v0, %s5226_s6  ;;  %1180 = vrot.lane.b32.xlu2 %v6952_v38, %s5226_s6  ;;  %v6972_v0 = vld [vmem:[%s12008_s0 + $0xc8] sm:$0xff]  ;;  %v5161_v38 = vld [vmem:[%s12008_s0 + $0xd8] sm:$0xff] }
 0x22b   :  { %v6956_v42 = vpop.permute.xlu0 %1028  ;;  %12697 = vst [vmem:[#allocation305_spill] sm:$0xff] %v6972_v0 }
 0x22c   :  { %12693 = vst [vmem:[#allocation301_spill] sm:$0xff] %v6956_v42  ;;  %v6958_v59 = vpop.permute.xlu1 %1030  ;;  %v6960_v28 = vpop.permute.xlu2 %1050 }
 0x22d   :  { %12694 = vst [vmem:[#allocation302_spill] sm:$0xff] %v6958_v59  ;;  %v6979_v59 = vld [vmem:[%s12008_s0 + $0xd0] sm:$0xff] }
 0x22e   :  { %12695 = vst [vmem:[#allocation303_spill] sm:$0xff] %v6960_v28 }
 0x22f   :  { %12698 = vst [vmem:[#allocation306_spill] sm:$0xff] %v6979_v59 }
 0x231   :  { %1182 = vrot.lane.b32.xlu0 %v6965_v46, %s5226_s6 }
 0x232   :  { %1184 = vrot.lane.b32.xlu1 %v6972_v0, %s5226_s6  ;;  %1186 = vrot.lane.b32.xlu2 %v6979_v59, %s5226_s6  ;;  %v5162_v0 = vld [vmem:[%s12008_s0 + $0xe0] sm:$0xff] }
 0x233   :  { %v6983_v42 = vpop.permute.xlu0 %1034 }
 0x234   :  { %12699 = vst [vmem:[#allocation307_spill] sm:$0xff] %v6983_v42  ;;  %v6985_v28 = vpop.permute.xlu1 %1036  ;;  %v6987_v46 = vpop.permute.xlu2 %1056  ;;  %v5163_v42 = vld [vmem:[%s12008_s0 + $0xe8] sm:$0xff] }
 0x235   :  { %12700 = vst [vmem:[#allocation308_spill] sm:$0xff] %v6985_v28 }
 0x236   :  { %12701 = vst [vmem:[#allocation309_spill] sm:$0xff] %v6987_v46 }
 0x239   :  { %1188 = vrot.lane.b32.xlu0 %v5161_v38, %s5226_s6  ;;  %v5164_v38 = vld [vmem:[%s12008_s0 + $0x100] sm:$0xff] }
 0x23a   :  { %1190 = vrot.lane.b32.xlu1 %v5162_v0, %s5226_s6  ;;  %1192 = vrot.lane.b32.xlu2 %v5163_v42, %s5226_s6 }
 0x23b   :  { %v7001_v28 = vpop.permute.xlu0 %1040 }
 0x23c   :  { %12702 = vst [vmem:[#allocation310_spill] sm:$0xff] %v7001_v28  ;;  %v7003_v46 = vpop.permute.xlu1 %1042  ;;  %v7005_v59 = vpop.permute.xlu2 %1062 }
 0x23d   :  { %12703 = vst [vmem:[#allocation311_spill] sm:$0xff] %v7003_v46  ;;  %v7028_v46 = vld [vmem:[%s12008_s0 + $0x110] sm:$0xff] }
 0x23e   :  { %12704 = vst [vmem:[#allocation312_spill] sm:$0xff] %v7005_v59  ;;  %v5165_v59 = vld [vmem:[%s12008_s0 + $0x108] sm:$0xff] }
 0x23f   :  { %12708 = vst [vmem:[#allocation316_spill] sm:$0xff] %v7028_v46 }
 0x241   :  { %1194 = vrot.lane.b32.xlu0 %v6432_v11, %s5226_s6 }
 0x242   :  { %1196 = vrot.lane.b32.xlu1 %v6461_v21, %s5226_s6  ;;  %1198 = vrot.lane.b32.xlu2 %v5164_v38, %s5226_s6  ;;  %v7035_v38 = vld [vmem:[%s12008_s0 + $0x118] sm:$0xff] }
 0x243   :  { %v7015_v0 = vpop.permute.xlu0 %1046  ;;  %12709 = vst [vmem:[#allocation317_spill] sm:$0xff] %v7035_v38 }
 0x244   :  { %12705 = vst [vmem:[#allocation313_spill] sm:$0xff] %v7015_v0  ;;  %v7017_v42 = vpop.permute.xlu1 %1048  ;;  %v7019_v28 = vpop.permute.xlu2 %1068  ;;  %v7048_v0 = vld [vmem:[%s12008_s0 + $0x120] sm:$0xff] }
 0x245   :  { %12706 = vst [vmem:[#allocation314_spill] sm:$0xff] %v7017_v42 }
 0x246   :  { %12707 = vst [vmem:[#allocation315_spill] sm:$0xff] %v7019_v28 }
 0x247   :  { %12713 = vst [vmem:[#allocation321_spill] sm:$0xff] %v7048_v0 }
 0x249   :  { %1200 = vrot.lane.b32.xlu0 %v5165_v59, %s5226_s6 }
 0x24a   :  { %1202 = vrot.lane.b32.xlu1 %v7028_v46, %s5226_s6  ;;  %1204 = vrot.lane.b32.xlu2 %v7035_v38, %s5226_s6  ;;  %v7055_v46 = vld [vmem:[%s12008_s0 + $0x128] sm:$0xff]  ;;  %v7075_v38 = vld [vmem:[%s12008_s0 + $0x138] sm:$0xff] }
 0x24b   :  { %v7039_v28 = vpop.permute.xlu0 %1052  ;;  %12714 = vst [vmem:[#allocation322_spill] sm:$0xff] %v7055_v46 }
 0x24c   :  { %12710 = vst [vmem:[#allocation318_spill] sm:$0xff] %v7039_v28  ;;  %v7041_v42 = vpop.permute.xlu1 %1054  ;;  %v7043_v59 = vpop.permute.xlu2 %1138 }
 0x24d   :  { %12711 = vst [vmem:[#allocation319_spill] sm:$0xff] %v7041_v42  ;;  %v7062_v42 = vld [vmem:[%s12008_s0 + $0x130] sm:$0xff] }
 0x24e   :  { %12712 = vst [vmem:[#allocation320_spill] sm:$0xff] %v7043_v59 }
 0x24f   :  { %12715 = vst [vmem:[#allocation323_spill] sm:$0xff] %v7062_v42 }
 0x250   :  { %12719 = vst [vmem:[#allocation327_spill] sm:$0xff] %v7075_v38 }
 0x251   :  { %1206 = vrot.lane.b32.xlu0 %v7048_v0, %s5226_s6 }
 0x252   :  { %1208 = vrot.lane.b32.xlu1 %v7055_v46, %s5226_s6  ;;  %1210 = vrot.lane.b32.xlu2 %v7062_v42, %s5226_s6  ;;  %v5172_v46 = vld [vmem:[%s12008_s0 + $0x140] sm:$0xff] }
 0x253   :  { %v7066_v28 = vpop.permute.xlu0 %1058 }
 0x254   :  { %12716 = vst [vmem:[#allocation324_spill] sm:$0xff] %v7066_v28  ;;  %v7068_v59 = vpop.permute.xlu1 %1060  ;;  %v7070_v0 = vpop.permute.xlu2 %1144 }
 0x255   :  { %12717 = vst [vmem:[#allocation325_spill] sm:$0xff] %v7068_v59  ;;  %v5173_v59 = vld [vmem:[%s12008_s0 + $0x148] sm:$0xff] }
 0x256   :  { %12718 = vst [vmem:[#allocation326_spill] sm:$0xff] %v7070_v0 }
 0x259   :  { %1212 = vrot.lane.b32.xlu0 %v7075_v38, %s5226_s6  ;;  %v5174_v38 = vld [vmem:[%s12008_s0 + $0x150] sm:$0xff] }
 0x25a   :  { %1214 = vrot.lane.b32.xlu1 %v5172_v46, %s5226_s6  ;;  %1216 = vrot.lane.b32.xlu2 %v5173_v59, %s5226_s6  ;;  %v5175_v46 = vld [vmem:[%s12008_s0 + $0x158] sm:$0xff]  ;;  %v5176_v59 = vld [vmem:[%s12008_s0 + $0x160] sm:$0xff] }
 0x25b   :  { %v7087_v28 = vpop.permute.xlu0 %1064 }
 0x25c   :  { %12720 = vst [vmem:[#allocation328_spill] sm:$0xff] %v7087_v28  ;;  %v7089_v0 = vpop.permute.xlu1 %1066  ;;  %v7091_v42 = vpop.permute.xlu2 %1150 }
 0x25d   :  { %12721 = vst [vmem:[#allocation329_spill] sm:$0xff] %v7089_v0 }
 0x25e   :  { %12722 = vst [vmem:[#allocation330_spill] sm:$0xff] %v7091_v42 }
 0x261   :  { %1218 = vrot.lane.b32.xlu0 %v5174_v38, %s5226_s6  ;;  %v5177_v38 = vld [vmem:[%s12008_s0 + $0x168] sm:$0xff] }
 0x262   :  { %1220 = vrot.lane.b32.xlu1 %v5175_v46, %s5226_s6  ;;  %1222 = vrot.lane.b32.xlu2 %v5176_v59, %s5226_s6  ;;  %v5178_v46 = vld [vmem:[%s12008_s0 + $0x170] sm:$0xff]  ;;  %v5179_v59 = vld [vmem:[%s12008_s0 + $0x178] sm:$0xff] }
 0x263   :  { %v7105_v28 = vpop.permute.xlu0 %1134 }
 0x264   :  { %12723 = vst [vmem:[#allocation331_spill] sm:$0xff] %v7105_v28  ;;  %v7107_v0 = vpop.permute.xlu1 %1136  ;;  %v7109_v42 = vpop.permute.xlu2 %1156 }
 0x265   :  { %12724 = vst [vmem:[#allocation332_spill] sm:$0xff] %v7107_v0 }
 0x266   :  { %12725 = vst [vmem:[#allocation333_spill] sm:$0xff] %v7109_v42 }
 0x269   :  { %1224 = vrot.lane.b32.xlu0 %v5177_v38, %s5226_s6  ;;  %v5180_v38 = vld [vmem:[%s12008_s0 + $0x180] sm:$0xff] }
 0x26a   :  { %1226 = vrot.lane.b32.xlu1 %v5178_v46, %s5226_s6  ;;  %1228 = vrot.lane.b32.xlu2 %v5179_v59, %s5226_s6  ;;  %v5181_v46 = vld [vmem:[%s12008_s0 + $0x188] sm:$0xff]  ;;  %v7140_v59 = vld [vmem:[%s12008_s0 + $0x190] sm:$0xff] }
 0x26b   :  { %v7123_v0 = vpop.permute.xlu0 %1140  ;;  %12729 = vst [vmem:[#allocation337_spill] sm:$0xff] %v7140_v59 }
 0x26c   :  { %12726 = vst [vmem:[#allocation334_spill] sm:$0xff] %v7123_v0  ;;  %v7125_v42 = vpop.permute.xlu1 %1142  ;;  %v7127_v28 = vpop.permute.xlu2 %1162 }
 0x26d   :  { %12727 = vst [vmem:[#allocation335_spill] sm:$0xff] %v7125_v42 }
 0x26e   :  { %12728 = vst [vmem:[#allocation336_spill] sm:$0xff] %v7127_v28 }
 0x271   :  { %1230 = vrot.lane.b32.xlu0 %v5180_v38, %s5226_s6  ;;  %v7153_v38 = vld [vmem:[%s12008_s0 + $0x198] sm:$0xff] }
 0x272   :  { %1232 = vrot.lane.b32.xlu1 %v5181_v46, %s5226_s6  ;;  %1234 = vrot.lane.b32.xlu2 %v7140_v59, %s5226_s6  ;;  %12733 = vst [vmem:[#allocation341_spill] sm:$0xff] %v7153_v38  ;;  %v5184_v46 = vld [vmem:[%s12008_s0 + $0x1a0] sm:$0xff] }
 0x273   :  { %v7144_v28 = vpop.permute.xlu0 %1146 }
 0x274   :  { %12730 = vst [vmem:[#allocation338_spill] sm:$0xff] %v7144_v28  ;;  %v7146_v42 = vpop.permute.xlu1 %1148  ;;  %v7148_v0 = vpop.permute.xlu2 %1168 }
 0x275   :  { %12731 = vst [vmem:[#allocation339_spill] sm:$0xff] %v7146_v42  ;;  %v5185_v42 = vld [vmem:[%s12008_s0 + $0x1a8] sm:$0xff] }
 0x276   :  { %12732 = vst [vmem:[#allocation340_spill] sm:$0xff] %v7148_v0 }
 0x279   :  { %1236 = vrot.lane.b32.xlu0 %v7153_v38, %s5226_s6  ;;  %v5186_v38 = vld [vmem:[%s12008_s0 + $0x1b0] sm:$0xff] }
 0x27a   :  { %1238 = vrot.lane.b32.xlu1 %v5184_v46, %s5226_s6  ;;  %1240 = vrot.lane.b32.xlu2 %v5185_v42, %s5226_s6  ;;  %v5187_v46 = vld [vmem:[%s12008_s0 + $0x1b8] sm:$0xff]  ;;  %v5188_v42 = vld [vmem:[%s12008_s0 + $0x1c0] sm:$0xff] }
 0x27b   :  { %v7165_v28 = vpop.permute.xlu0 %1152 }
 0x27c   :  { %12734 = vst [vmem:[#allocation342_spill] sm:$0xff] %v7165_v28  ;;  %v7167_v0 = vpop.permute.xlu1 %1154  ;;  %v7169_v59 = vpop.permute.xlu2 %1174 }
 0x27d   :  { %12735 = vst [vmem:[#allocation343_spill] sm:$0xff] %v7167_v0 }
 0x27e   :  { %12736 = vst [vmem:[#allocation344_spill] sm:$0xff] %v7169_v59 }
 0x281   :  { %1242 = vrot.lane.b32.xlu0 %v5186_v38, %s5226_s6  ;;  %v5189_v38 = vld [vmem:[%s12008_s0 + $0x1c8] sm:$0xff] }
 0x282   :  { %1244 = vrot.lane.b32.xlu1 %v5187_v46, %s5226_s6  ;;  %1246 = vrot.lane.b32.xlu2 %v5188_v42, %s5226_s6  ;;  %v5190_v46 = vld [vmem:[%s12008_s0 + $0x1d0] sm:$0xff]  ;;  %v5191_v42 = vld [vmem:[%s12008_s0 + $0x1d8] sm:$0xff] }
 0x283   :  { %v7183_v0 = vpop.permute.xlu0 %1158 }
 0x284   :  { %12737 = vst [vmem:[#allocation345_spill] sm:$0xff] %v7183_v0  ;;  %v7185_v28 = vpop.permute.xlu1 %1160  ;;  %v7187_v59 = vpop.permute.xlu2 %1180 }
 0x285   :  { %12738 = vst [vmem:[#allocation346_spill] sm:$0xff] %v7185_v28 }
 0x286   :  { %12739 = vst [vmem:[#allocation347_spill] sm:$0xff] %v7187_v59 }
 0x289   :  { %1248 = vrot.lane.b32.xlu0 %v5189_v38, %s5226_s6  ;;  %v5192_v38 = vld [vmem:[%s12008_s0 + $0x1e0] sm:$0xff] }
 0x28a   :  { %1250 = vrot.lane.b32.xlu1 %v5190_v46, %s5226_s6  ;;  %1252 = vrot.lane.b32.xlu2 %v5191_v42, %s5226_s6  ;;  %v5193_v46 = vld [vmem:[%s12008_s0 + $0x1e8] sm:$0xff] }
 0x28b   :  { %v7201_v28 = vpop.permute.xlu0 %1164 }
 0x28c   :  { %12740 = vst [vmem:[#allocation348_spill] sm:$0xff] %v7201_v28  ;;  %v7203_v0 = vpop.permute.xlu1 %1166  ;;  %v7205_v59 = vpop.permute.xlu2 %1186 }
 0x28d   :  { %12741 = vst [vmem:[#allocation349_spill] sm:$0xff] %v7203_v0  ;;  %v12747_v0 = vld [vmem:[#allocation36_spill] sm:$0xff] }
 0x28e   :  { %12742 = vst [vmem:[#allocation350_spill] sm:$0xff] %v7205_v59 }
 0x291   :  { %1254 = vrot.lane.b32.xlu0 %v5192_v38, %s5226_s6  ;;  %v12746_v38 = vld [vmem:[#allocation32_spill] sm:$0xff] }
 0x292   :  { %1256 = vrot.lane.b32.xlu1 %v5193_v46, %s5226_s6  ;;  %1258 = vrot.lane.b32.xlu2 %v6706_v60, %s5226_s6 }
 0x293   :  { %v7217_v42 = vpop.permute.xlu0 %1170 }
 0x294   :  { %12743 = vst [vmem:[#allocation351_spill] sm:$0xff] %v7217_v42  ;;  %v7219_v28 = vpop.permute.xlu1 %1172  ;;  %v7221_v59 = vpop.permute.xlu2 %1192  ;;  %v12753_v42 = vld [vmem:[#allocation42_spill] sm:$0xff] }
 0x295   :  { %12744 = vst [vmem:[#allocation352_spill] sm:$0xff] %v7219_v28  ;;  %v12751_v28 = vld [vmem:[#allocation37_spill] sm:$0xff] }
 0x296   :  { %12745 = vst [vmem:[#allocation353_spill] sm:$0xff] %v7221_v59  ;;  %v12752_v59 = vld [vmem:[#allocation38_spill] sm:$0xff] }
 0x299   :  { %1260 = vrot.lane.b32.xlu0 %v6711_v36, %s5226_s6 }
 0x29a   :  { %1328 = vrot.lane.b32.xlu1 %v12746_v38, %s5227_s23  ;;  %1330 = vrot.lane.b32.xlu2 %v12747_v0, %s5227_s23 }
 0x29b   :  { %v7229_v46 = vpop.permute.xlu0 %1176 }
 0x29c   :  { %12748 = vst [vmem:[#allocation32_spill] sm:$0xff] %v7229_v46  ;;  %v7231_v53 = vpop.permute.xlu1 %1178  ;;  %v7233_v58 = vpop.permute.xlu2 %1198  ;;  %v12757_v46 = vld [vmem:[#allocation43_spill] sm:$0xff] }
 0x29d   :  { %12749 = vst [vmem:[#allocation36_spill] sm:$0xff] %v7231_v53  ;;  %v12758_v53 = vld [vmem:[#allocation44_spill] sm:$0xff] }
 0x29e   :  { %12750 = vst [vmem:[#allocation354_spill] sm:$0xff] %v7233_v58  ;;  %v12759_v58 = vld [vmem:[#allocation48_spill] sm:$0xff] }
 0x2a1   :  { %1332 = vrot.lane.b32.xlu0 %v12751_v28, %s5227_s23 }
 0x2a2   :  { %1334 = vrot.lane.b32.xlu1 %v12752_v59, %s5227_s23  ;;  %1336 = vrot.lane.b32.xlu2 %v12753_v42, %s5227_s23 }
 0x2a3   :  { %v7241_v62 = vpop.permute.xlu0 %1182 }
 0x2a4   :  { %12754 = vst [vmem:[#allocation355_spill] sm:$0xff] %v7241_v62  ;;  %v7243_v38 = vpop.permute.xlu1 %1184  ;;  %v7245_v0 = vpop.permute.xlu2 %1204  ;;  %v12763_v62 = vld [vmem:[#allocation49_spill] sm:$0xff] }
 0x2a5   :  { %12755 = vst [vmem:[#allocation356_spill] sm:$0xff] %v7243_v38  ;;  %v12764_v38 = vld [vmem:[#allocation50_spill] sm:$0xff] }
 0x2a6   :  { %12756 = vst [vmem:[#allocation357_spill] sm:$0xff] %v7245_v0  ;;  %v12765_v0 = vld [vmem:[#allocation54_spill] sm:$0xff] }
 0x2a9   :  { %1338 = vrot.lane.b32.xlu0 %v12757_v46, %s5227_s23 }
 0x2aa   :  { %1340 = vrot.lane.b32.xlu1 %v12758_v53, %s5227_s23  ;;  %1342 = vrot.lane.b32.xlu2 %v12759_v58, %s5227_s23 }
 0x2ab   :  { %v7253_v28 = vpop.permute.xlu0 %1188 }
 0x2ac   :  { %12760 = vst [vmem:[#allocation358_spill] sm:$0xff] %v7253_v28  ;;  %v7255_v59 = vpop.permute.xlu1 %1190  ;;  %v7257_v42 = vpop.permute.xlu2 %1210  ;;  %v12769_v28 = vld [vmem:[#allocation55_spill] sm:$0xff] }
 0x2ad   :  { %12761 = vst [vmem:[#allocation359_spill] sm:$0xff] %v7255_v59  ;;  %v12770_v59 = vld [vmem:[#allocation56_spill] sm:$0xff] }
 0x2ae   :  { %12762 = vst [vmem:[#allocation360_spill] sm:$0xff] %v7257_v42  ;;  %v12771_v42 = vld [vmem:[#allocation60_spill] sm:$0xff] }
 0x2b1   :  { %1344 = vrot.lane.b32.xlu0 %v12763_v62, %s5227_s23 }
 0x2b2   :  { %1346 = vrot.lane.b32.xlu1 %v12764_v38, %s5227_s23  ;;  %1348 = vrot.lane.b32.xlu2 %v12765_v0, %s5227_s23 }
 0x2b3   :  { %v7265_v46 = vpop.permute.xlu0 %1194 }
 0x2b4   :  { %12766 = vst [vmem:[#allocation361_spill] sm:$0xff] %v7265_v46  ;;  %v7267_v53 = vpop.permute.xlu1 %1196  ;;  %v7269_v58 = vpop.permute.xlu2 %1216  ;;  %v12775_v46 = vld [vmem:[#allocation61_spill] sm:$0xff] }
 0x2b5   :  { %12767 = vst [vmem:[#allocation362_spill] sm:$0xff] %v7267_v53  ;;  %v12776_v53 = vld [vmem:[#allocation62_spill] sm:$0xff] }
 0x2b6   :  { %12768 = vst [vmem:[#allocation363_spill] sm:$0xff] %v7269_v58  ;;  %v12777_v58 = vld [vmem:[#allocation66_spill] sm:$0xff] }
 0x2b9   :  { %1350 = vrot.lane.b32.xlu0 %v12769_v28, %s5227_s23 }
 0x2ba   :  { %1352 = vrot.lane.b32.xlu1 %v12770_v59, %s5227_s23  ;;  %1354 = vrot.lane.b32.xlu2 %v12771_v42, %s5227_s23 }
 0x2bb   :  { %v7277_v62 = vpop.permute.xlu0 %1200 }
 0x2bc   :  { %12772 = vst [vmem:[#allocation364_spill] sm:$0xff] %v7277_v62  ;;  %v7279_v38 = vpop.permute.xlu1 %1202  ;;  %v7281_v0 = vpop.permute.xlu2 %1222  ;;  %v12781_v62 = vld [vmem:[#allocation67_spill] sm:$0xff] }
 0x2bd   :  { %12773 = vst [vmem:[#allocation365_spill] sm:$0xff] %v7279_v38  ;;  %v12783_v38 = vld [vmem:[#allocation72_spill] sm:$0xff] }
 0x2be   :  { %12774 = vst [vmem:[#allocation366_spill] sm:$0xff] %v7281_v0  ;;  %v12782_v0 = vld [vmem:[#allocation68_spill] sm:$0xff] }
 0x2c1   :  { %1356 = vrot.lane.b32.xlu0 %v12775_v46, %s5227_s23 }
 0x2c2   :  { %1358 = vrot.lane.b32.xlu1 %v12776_v53, %s5227_s23  ;;  %1360 = vrot.lane.b32.xlu2 %v12777_v58, %s5227_s23 }
 0x2c3   :  { %v7289_v28 = vpop.permute.xlu0 %1206 }
 0x2c4   :  { %12778 = vst [vmem:[#allocation367_spill] sm:$0xff] %v7289_v28  ;;  %v7291_v59 = vpop.permute.xlu1 %1208  ;;  %v7293_v42 = vpop.permute.xlu2 %1228  ;;  %v12787_v28 = vld [vmem:[#allocation73_spill] sm:$0xff] }
 0x2c5   :  { %12779 = vst [vmem:[#allocation368_spill] sm:$0xff] %v7291_v59  ;;  %v12789_v59 = vld [vmem:[#allocation78_spill] sm:$0xff] }
 0x2c6   :  { %12780 = vst [vmem:[#allocation369_spill] sm:$0xff] %v7293_v42  ;;  %v12788_v42 = vld [vmem:[#allocation74_spill] sm:$0xff] }
 0x2c9   :  { %1362 = vrot.lane.b32.xlu0 %v12781_v62, %s5227_s23 }
 0x2ca   :  { %1364 = vrot.lane.b32.xlu1 %v12782_v0, %s5227_s23  ;;  %1366 = vrot.lane.b32.xlu2 %v12783_v38, %s5227_s23 }
 0x2cb   :  { %v7301_v46 = vpop.permute.xlu0 %1212 }
 0x2cc   :  { %12784 = vst [vmem:[#allocation370_spill] sm:$0xff] %v7301_v46  ;;  %v7303_v53 = vpop.permute.xlu1 %1214  ;;  %v7305_v58 = vpop.permute.xlu2 %1234  ;;  %v12793_v46 = vld [vmem:[#allocation79_spill] sm:$0xff] }
 0x2cd   :  { %12785 = vst [vmem:[#allocation371_spill] sm:$0xff] %v7303_v53  ;;  %v12794_v53 = vld [vmem:[#allocation80_spill] sm:$0xff] }
 0x2ce   :  { %12786 = vst [vmem:[#allocation372_spill] sm:$0xff] %v7305_v58  ;;  %v12795_v58 = vld [vmem:[#allocation84_spill] sm:$0xff] }
 0x2d1   :  { %1368 = vrot.lane.b32.xlu0 %v12787_v28, %s5227_s23 }
 0x2d2   :  { %1370 = vrot.lane.b32.xlu1 %v12788_v42, %s5227_s23  ;;  %1372 = vrot.lane.b32.xlu2 %v12789_v59, %s5227_s23 }
 0x2d3   :  { %v7313_v62 = vpop.permute.xlu0 %1218 }
 0x2d4   :  { %12790 = vst [vmem:[#allocation373_spill] sm:$0xff] %v7313_v62  ;;  %v7315_v0 = vpop.permute.xlu1 %1220  ;;  %v7317_v38 = vpop.permute.xlu2 %1240  ;;  %v12799_v62 = vld [vmem:[#allocation85_spill] sm:$0xff] }
 0x2d5   :  { %12791 = vst [vmem:[#allocation374_spill] sm:$0xff] %v7315_v0  ;;  %v12800_v0 = vld [vmem:[#allocation86_spill] sm:$0xff] }
 0x2d6   :  { %12792 = vst [vmem:[#allocation375_spill] sm:$0xff] %v7317_v38  ;;  %v12801_v38 = vld [vmem:[#allocation90_spill] sm:$0xff] }
 0x2d9   :  { %1374 = vrot.lane.b32.xlu0 %v12793_v46, %s5227_s23 }
 0x2da   :  { %1376 = vrot.lane.b32.xlu1 %v12794_v53, %s5227_s23  ;;  %1378 = vrot.lane.b32.xlu2 %v12795_v58, %s5227_s23  ;;  %v500_v53 = vrot.slane %v6432_v11, 1  ;;  %v501_v58 = vrot.slane %v6461_v21, 1 }
 0x2db   :  { %v7325_v28 = vpop.permute.xlu0 %1224 }
 0x2dc   :  { %12796 = vst [vmem:[#allocation376_spill] sm:$0xff] %v7325_v28  ;;  %v7327_v42 = vpop.permute.xlu1 %1226  ;;  %v7329_v59 = vpop.permute.xlu2 %1246 }
 0x2dd   :  { %12797 = vst [vmem:[#allocation377_spill] sm:$0xff] %v7327_v42 }
 0x2de   :  { %12798 = vst [vmem:[#allocation378_spill] sm:$0xff] %v7329_v59  ;;  %v7346_v59 = vsel %vm331_vm0, %v500_v53, %v501_v58  ;;  %v12811_v53 = vld [vmem:[#allocation92_spill] sm:$0xff] }
 0x2df   :  { %12805 = vst [vmem:[#allocation382_spill] sm:$0xff] %v7346_v59 }
 0x2e1   :  { %1380 = vrot.lane.b32.xlu0 %v12799_v62, %s5227_s23  ;;  %v7349_v62 = vsel %vm331_vm0, %v501_v58, 0.0  ;;  %v12812_v58 = vld [vmem:[#allocation96_spill] sm:$0xff] }
 0x2e2   :  { %1382 = vrot.lane.b32.xlu1 %v12800_v0, %s5227_s23  ;;  %1384 = vrot.lane.b32.xlu2 %v12801_v38, %s5227_s23  ;;  %12806 = vst [vmem:[#allocation383_spill] sm:$0xff] %v7349_v62  ;;  %v12807_v0 = vld [vmem:[#allocation91_spill] sm:$0xff]  ;;  %v12825_v38 = vld [vmem:[#allocation109_spill] sm:$0xff] }
 0x2e3   :  { %v7337_v46 = vpop.permute.xlu0 %1230 }
 0x2e4   :  { %12802 = vst [vmem:[#allocation379_spill] sm:$0xff] %v7337_v46  ;;  %v7341_v28 = vpop.permute.xlu1 %1232  ;;  %v7343_v42 = vpop.permute.xlu2 %1252 }
 0x2e5   :  { %12803 = vst [vmem:[#allocation380_spill] sm:$0xff] %v7341_v28  ;;  %v12813_v28 = vld [vmem:[#allocation97_spill] sm:$0xff] }
 0x2e6   :  { %12804 = vst [vmem:[#allocation381_spill] sm:$0xff] %v7343_v42 }
 0x2e9   :  { %1386 = vrot.lane.b32.xlu0 %v12807_v0, %s5227_s23 }
 0x2ea   :  { %1388 = vrot.lane.b32.xlu1 %v7346_v59, %s5227_s23  ;;  %1390 = vrot.lane.b32.xlu2 %v7349_v62, %s5227_s23 }
 0x2eb   :  { %v7357_v11 = vpop.permute.xlu0 %1236 }
 0x2ec   :  { %12808 = vst [vmem:[#allocation384_spill] sm:$0xff] %v7357_v11  ;;  %v7359_v21 = vpop.permute.xlu1 %1238  ;;  %v7361_v42 = vpop.permute.xlu2 %1258  ;;  %v12817_v11 = vld [vmem:[#allocation98_spill] sm:$0xff] }
 0x2ed   :  { %12809 = vst [vmem:[#allocation385_spill] sm:$0xff] %v7359_v21 }
 0x2ee   :  { %12810 = vst [vmem:[#allocation386_spill] sm:$0xff] %v7361_v42  ;;  %v12818_v42 = vld [vmem:[#allocation102_spill] sm:$0xff] }
 0x2f1   :  { %1392 = vrot.lane.b32.xlu0 %v12811_v53, %s5227_s23  ;;  %v12819_v53 = vld [vmem:[#allocation103_spill] sm:$0xff] }
 0x2f2   :  { %1394 = vrot.lane.b32.xlu1 %v12812_v58, %s5227_s23  ;;  %1396 = vrot.lane.b32.xlu2 %v12813_v28, %s5227_s23 }
 0x2f3   :  { %v7369_v46 = vpop.permute.xlu0 %1242 }
 0x2f4   :  { %12814 = vst [vmem:[#allocation92_spill] sm:$0xff] %v7369_v46  ;;  %v7371_v59 = vpop.permute.xlu1 %1244  ;;  %v7373_v62 = vpop.permute.xlu2 %1330  ;;  %v12823_v46 = vld [vmem:[#allocation104_spill] sm:$0xff] }
 0x2f5   :  { %12815 = vst [vmem:[#allocation96_spill] sm:$0xff] %v7371_v59  ;;  %v12824_v59 = vld [vmem:[#allocation108_spill] sm:$0xff] }
 0x2f6   :  { %12816 = vst [vmem:[#allocation97_spill] sm:$0xff] %v7373_v62 }
 0x2f9   :  { %1398 = vrot.lane.b32.xlu0 %v12817_v11, %s5227_s23 }
 0x2fa   :  { %1400 = vrot.lane.b32.xlu1 %v12818_v42, %s5227_s23  ;;  %1402 = vrot.lane.b32.xlu2 %v12819_v53, %s5227_s23 }
 0x2fb   :  { %v7381_v21 = vpop.permute.xlu0 %1248 }
 0x2fc   :  { %12820 = vst [vmem:[#allocation98_spill] sm:$0xff] %v7381_v21  ;;  %v7383_v58 = vpop.permute.xlu1 %1250  ;;  %v7385_v0 = vpop.permute.xlu2 %1336  ;;  %v12829_v21 = vld [vmem:[#allocation110_spill] sm:$0xff] }
 0x2fd   :  { %12821 = vst [vmem:[#allocation387_spill] sm:$0xff] %v7383_v58  ;;  %v12830_v58 = vld [vmem:[#allocation114_spill] sm:$0xff] }
 0x2fe   :  { %12822 = vst [vmem:[#allocation388_spill] sm:$0xff] %v7385_v0  ;;  %v12831_v0 = vld [vmem:[#allocation115_spill] sm:$0xff] }
 0x301   :  { %1404 = vrot.lane.b32.xlu0 %v12823_v46, %s5227_s23 }
 0x302   :  { %1406 = vrot.lane.b32.xlu1 %v12824_v59, %s5227_s23  ;;  %1408 = vrot.lane.b32.xlu2 %v12825_v38, %s5227_s23 }
 0x303   :  { %v7393_v62 = vpop.permute.xlu0 %1254 }
 0x304   :  { %12826 = vst [vmem:[#allocation389_spill] sm:$0xff] %v7393_v62  ;;  %v7395_v42 = vpop.permute.xlu1 %1256  ;;  %v7397_v53 = vpop.permute.xlu2 %1342  ;;  %v12835_v62 = vld [vmem:[#allocation116_spill] sm:$0xff] }
 0x305   :  { %12827 = vst [vmem:[#allocation390_spill] sm:$0xff] %v7395_v42  ;;  %v12836_v42 = vld [vmem:[#allocation120_spill] sm:$0xff] }
 0x306   :  { %12828 = vst [vmem:[#allocation391_spill] sm:$0xff] %v7397_v53 }
 0x309   :  { %1410 = vrot.lane.b32.xlu0 %v12829_v21, %s5227_s23  ;;  %v12837_v21 = vld [vmem:[#allocation121_spill] sm:$0xff] }
 0x30a   :  { %1412 = vrot.lane.b32.xlu1 %v12830_v58, %s5227_s23  ;;  %1414 = vrot.lane.b32.xlu2 %v12831_v0, %s5227_s23 }
 0x30b   :  { %v7405_v46 = vpop.permute.xlu0 %1260 }
 0x30c   :  { %12832 = vst [vmem:[#allocation392_spill] sm:$0xff] %v7405_v46  ;;  %v7407_v59 = vpop.permute.xlu1 %1328  ;;  %v7409_v38 = vpop.permute.xlu2 %1348  ;;  %v12841_v46 = vld [vmem:[#allocation122_spill] sm:$0xff] }
 0x30d   :  { %12833 = vst [vmem:[#allocation393_spill] sm:$0xff] %v7407_v59 }
 0x30e   :  { %12834 = vst [vmem:[#allocation394_spill] sm:$0xff] %v7409_v38  ;;  %v12842_v38 = vld [vmem:[#allocation126_spill] sm:$0xff] }
 0x311   :  { %1416 = vrot.lane.b32.xlu0 %v12835_v62, %s5227_s23  ;;  %v12843_v62 = vld [vmem:[#allocation127_spill] sm:$0xff] }
 0x312   :  { %1418 = vrot.lane.b32.xlu1 %v12836_v42, %s5227_s23  ;;  %1420 = vrot.lane.b32.xlu2 %v12837_v21, %s5227_s23 }
 0x313   :  { %v7417_v53 = vpop.permute.xlu0 %1332 }
 0x314   :  { %12838 = vst [vmem:[#allocation395_spill] sm:$0xff] %v7417_v53  ;;  %v7419_v58 = vpop.permute.xlu1 %1334  ;;  %v7421_v0 = vpop.permute.xlu2 %1354  ;;  %v12847_v53 = vld [vmem:[#allocation128_spill] sm:$0xff] }
 0x315   :  { %12839 = vst [vmem:[#allocation396_spill] sm:$0xff] %v7419_v58 }
 0x316   :  { %12840 = vst [vmem:[#allocation397_spill] sm:$0xff] %v7421_v0  ;;  %v12848_v0 = vld [vmem:[#allocation132_spill] sm:$0xff] }
 0x319   :  { %1422 = vrot.lane.b32.xlu0 %v12841_v46, %s5227_s23  ;;  %v12849_v46 = vld [vmem:[#allocation133_spill] sm:$0xff] }
 0x31a   :  { %1424 = vrot.lane.b32.xlu1 %v12842_v38, %s5227_s23  ;;  %1426 = vrot.lane.b32.xlu2 %v12843_v62, %s5227_s23 }
 0x31b   :  { %v7429_v59 = vpop.permute.xlu0 %1338 }
 0x31c   :  { %12844 = vst [vmem:[#allocation398_spill] sm:$0xff] %v7429_v59  ;;  %v7431_v42 = vpop.permute.xlu1 %1340  ;;  %v7433_v21 = vpop.permute.xlu2 %1360  ;;  %v12853_v59 = vld [vmem:[#allocation134_spill] sm:$0xff] }
 0x31d   :  { %12845 = vst [vmem:[#allocation399_spill] sm:$0xff] %v7431_v42  ;;  %v12854_v42 = vld [vmem:[#allocation138_spill] sm:$0xff] }
 0x31e   :  { %12846 = vst [vmem:[#allocation400_spill] sm:$0xff] %v7433_v21  ;;  %v12855_v21 = vld [vmem:[#allocation139_spill] sm:$0xff] }
 0x321   :  { %1428 = vrot.lane.b32.xlu0 %v12847_v53, %s5227_s23 }
 0x322   :  { %1430 = vrot.lane.b32.xlu1 %v12848_v0, %s5227_s23  ;;  %1432 = vrot.lane.b32.xlu2 %v12849_v46, %s5227_s23 }
 0x323   :  { %v7441_v58 = vpop.permute.xlu0 %1344 }
 0x324   :  { %12850 = vst [vmem:[#allocation401_spill] sm:$0xff] %v7441_v58  ;;  %v7443_v38 = vpop.permute.xlu1 %1346  ;;  %v7445_v62 = vpop.permute.xlu2 %1366  ;;  %v12859_v58 = vld [vmem:[#allocation140_spill] sm:$0xff] }
 0x325   :  { %12851 = vst [vmem:[#allocation402_spill] sm:$0xff] %v7443_v38  ;;  %v12860_v38 = vld [vmem:[#allocation144_spill] sm:$0xff] }
 0x326   :  { %12852 = vst [vmem:[#allocation403_spill] sm:$0xff] %v7445_v62 }
 0x329   :  { %1434 = vrot.lane.b32.xlu0 %v12853_v59, %s5227_s23  ;;  %v12861_v59 = vld [vmem:[#allocation145_spill] sm:$0xff] }
 0x32a   :  { %1436 = vrot.lane.b32.xlu1 %v12854_v42, %s5227_s23  ;;  %1438 = vrot.lane.b32.xlu2 %v12855_v21, %s5227_s23 }
 0x32b   :  { %v7453_v53 = vpop.permute.xlu0 %1350 }
 0x32c   :  { %12856 = vst [vmem:[#allocation404_spill] sm:$0xff] %v7453_v53  ;;  %v7455_v0 = vpop.permute.xlu1 %1352  ;;  %v7457_v46 = vpop.permute.xlu2 %1372  ;;  %v12865_v53 = vld [vmem:[#allocation146_spill] sm:$0xff] }
 0x32d   :  { %12857 = vst [vmem:[#allocation405_spill] sm:$0xff] %v7455_v0  ;;  %v12866_v0 = vld [vmem:[#allocation3_spill] sm:$0xff] }
 0x32e   :  { %12858 = vst [vmem:[#allocation406_spill] sm:$0xff] %v7457_v46  ;;  %v504_v46 = vrot.slane %v6711_v36, 1 }
 0x331   :  { %1440 = vrot.lane.b32.xlu0 %v12859_v58, %s5227_s23  ;;  %v12867_v58 = vld [vmem:[#allocation149_spill] sm:$0xff] }
 0x332   :  { %1442 = vrot.lane.b32.xlu1 %v12860_v38, %s5227_s23  ;;  %1444 = vrot.lane.b32.xlu2 %v12861_v59, %s5227_s23  ;;  %v503_v38 = vrot.slane %v6706_v60, 1 }
 0x333   :  { %v7465_v62 = vpop.permute.xlu0 %1356 }
 0x334   :  { %12862 = vst [vmem:[#allocation407_spill] sm:$0xff] %v7465_v62  ;;  %v7467_v42 = vpop.permute.xlu1 %1358  ;;  %v7469_v21 = vpop.permute.xlu2 %1378 }
 0x335   :  { %12863 = vst [vmem:[#allocation408_spill] sm:$0xff] %v7467_v42 }
 0x336   :  { %12864 = vst [vmem:[#allocation409_spill] sm:$0xff] %v7469_v21  ;;  %v7486_v21 = vsel %vm331_vm0, %v503_v38, %v504_v46 }
 0x337   :  { %12869 = vst [vmem:[#allocation411_spill] sm:$0xff] %v7486_v21 }
 0x339   :  { %1446 = vrot.lane.b32.xlu0 %v12865_v53, %s5227_s23  ;;  %v7489_v53 = vsel %vm331_vm0, %v504_v46, 0.0  ;;  %vm12314_vm0 = vcmask 1042434  }
 0x33a   :  { %1448 = vrot.lane.b32.xlu1 %v12866_v0, %s5227_s23  ;;  %1450 = vrot.lane.b32.xlu2 %v12867_v58, %s5227_s23  ;;  %12870 = vst [vmem:[#allocation412_spill] sm:$0xff] %v7489_v53 }
 0x33b   :  { %v7479_v59 = vpop.permute.xlu0 %1362 }
 0x33c   :  { %v7481_v62 = vpop.permute.xlu1 %1364  ;;  %v7483_v42 = vpop.permute.xlu2 %1384 }
 0x33d   :  { %12868 = vst [vmem:[#allocation410_spill] sm:$0xff] %v7483_v42 }
 0x341   :  { %1452 = vrot.lane.b32.xlu0 %v7486_v21, %s5227_s23 }
 0x342   :  { %1454 = vrot.lane.b32.xlu1 %v7489_v53, %s5227_s23  ;;  %1521 = vrot.lane.b32.xlu2 %v6241_v57, %s5228_s24 }
 0x343   :  { %v7497_v60 = vpop.permute.xlu0 %1368 }
 0x344   :  { %v7499_v36 = vpop.permute.xlu1 %1370  ;;  %v7501_v42 = vpop.permute.xlu2 %1390 }
 0x345   :  { %12871 = vst [vmem:[#allocation413_spill] sm:$0xff] %v7501_v42 }
 0x349   :  { %1523 = vrot.lane.b32.xlu0 %v6238_v3, %s5228_s24 }
 0x34a   :  { %1525 = vrot.lane.b32.xlu1 %v6259_v48, %s5228_s24  ;;  %1527 = vrot.lane.b32.xlu2 %v6262_v54, %s5228_s24 }
 0x34b   :  { %v7509_v46 = vpop.permute.xlu0 %1374 }
 0x34c   :  { %12872 = vst [vmem:[#allocation414_spill] sm:$0xff] %v7509_v46  ;;  %v7511_v38 = vpop.permute.xlu1 %1376  ;;  %v7513_v53 = vpop.permute.xlu2 %1396 }
 0x34d   :  { %12873 = vst [vmem:[#allocation415_spill] sm:$0xff] %v7511_v38 }
 0x351   :  { %1529 = vrot.lane.b32.xlu0 %v6265_v56, %s5228_s24 }
 0x352   :  { %1531 = vrot.lane.b32.xlu1 %v6283_v63, %s5228_s24  ;;  %1533 = vrot.lane.b32.xlu2 %v6286_v5, %s5228_s24 }
 0x353   :  { %v7521_v42 = vpop.permute.xlu0 %1380 }
 0x354   :  { %12874 = vst [vmem:[#allocation416_spill] sm:$0xff] %v7521_v42  ;;  %v7523_v21 = vpop.permute.xlu1 %1382  ;;  %v7525_v58 = vpop.permute.xlu2 %1402 }
 0x355   :  { %12875 = vst [vmem:[#allocation417_spill] sm:$0xff] %v7523_v21 }
 0x356   :  { %12876 = vst [vmem:[#allocation418_spill] sm:$0xff] %v7525_v58 }
 0x359   :  { %1535 = vrot.lane.b32.xlu0 %v6289_v61, %s5228_s24  ;;  %v13010_v61 = vld [vmem:[#allocation7_spill] sm:$0xff] }
 0x35a   :  { %1537 = vrot.lane.b32.xlu1 %v6307_v44, %s5228_s24  ;;  %1539 = vrot.lane.b32.xlu2 %v6310_v8, %s5228_s24  ;;  %v13007_v44 = vld [vmem:[#allocation118_spill] sm:$0xff] }
 0x35b   :  { %v7533_v0 = vpop.permute.xlu0 %1386 }
 0x35c   :  { %12877 = vst [vmem:[#allocation419_spill] sm:$0xff] %v7533_v0  ;;  %v7535_v38 = vpop.permute.xlu1 %1388  ;;  %v7537_v46 = vpop.permute.xlu2 %1408 }
 0x35d   :  { %12878 = vst [vmem:[#allocation420_spill] sm:$0xff] %v7535_v38 }
 0x35e   :  { %12879 = vst [vmem:[#allocation421_spill] sm:$0xff] %v7537_v46 }
 0x361   :  { %1541 = vrot.lane.b32.xlu0 %v6313_v1, %s5228_s24 }
 0x362   :  { %1543 = vrot.lane.b32.xlu1 %v6331_v40, %s5228_s24  ;;  %1545 = vrot.lane.b32.xlu2 %v6334_v7, %s5228_s24 }
 0x363   :  { %v7545_v21 = vpop.permute.xlu0 %1392 }
 0x364   :  { %v7547_v42 = vpop.permute.xlu1 %1394  ;;  %v7549_v8 = vpop.permute.xlu2 %1414 }
 0x365   :  { %12880 = vst [vmem:[#allocation422_spill] sm:$0xff] %v7549_v8 }
 0x369   :  { %1547 = vrot.lane.b32.xlu0 %v6337_v4, %s5228_s24 }
 0x36a   :  { %1549 = vrot.lane.b32.xlu1 %v6355_v6, %s5228_s24  ;;  %1551 = vrot.lane.b32.xlu2 %v6358_v14, %s5228_s24 }
 0x36b   :  { %v7557_v38 = vpop.permute.xlu0 %1398 }
 0x36c   :  { %12881 = vst [vmem:[#allocation423_spill] sm:$0xff] %v7557_v38  ;;  %v7559_v0 = vpop.permute.xlu1 %1400  ;;  %v7561_v46 = vpop.permute.xlu2 %1420  ;;  %v13011_v38 = vld [vmem:[#allocation204_spill] sm:$0xff] }
 0x36d   :  { %12882 = vst [vmem:[#allocation424_spill] sm:$0xff] %v7559_v0 }
 0x36e   :  { %12883 = vst [vmem:[#allocation425_spill] sm:$0xff] %v7561_v46 }
 0x371   :  { %1553 = vrot.lane.b32.xlu0 %v6361_v9, %s5228_s24 }
 0x372   :  { %1555 = vrot.lane.b32.xlu1 %v6379_v10, %s5228_s24  ;;  %1557 = vrot.lane.b32.xlu2 %v6382_v17, %s5228_s24 }
 0x373   :  { %v7569_v8 = vpop.permute.xlu0 %1404 }
 0x374   :  { %12884 = vst [vmem:[#allocation426_spill] sm:$0xff] %v7569_v8  ;;  %v7571_v40 = vpop.permute.xlu1 %1406  ;;  %v7573_v1 = vpop.permute.xlu2 %1426 }
 0x375   :  { %12885 = vst [vmem:[#allocation427_spill] sm:$0xff] %v7571_v40 }
 0x376   :  { %12886 = vst [vmem:[#allocation428_spill] sm:$0xff] %v7573_v1 }
 0x379   :  { %1559 = vrot.lane.b32.xlu0 %v6385_v13, %s5228_s24 }
 0x37a   :  { %1561 = vrot.lane.b32.xlu1 %v6403_v12, %s5228_s24  ;;  %1563 = vrot.lane.b32.xlu2 %v6406_v20, %s5228_s24 }
 0x37b   :  { %v7581_v46 = vpop.permute.xlu0 %1410 }
 0x37c   :  { %12887 = vst [vmem:[#allocation429_spill] sm:$0xff] %v7581_v46  ;;  %v7583_v58 = vpop.permute.xlu1 %1412  ;;  %v7585_v0 = vpop.permute.xlu2 %1432  ;;  %v12893_v46 = vmov 0.0  }
 0x37d   :  { %12888 = vst [vmem:[#allocation430_spill] sm:$0xff] %v7583_v58  ;;  %v7600_v1 = vrot.slane %v12893_v46, 7  ;;  %v12894_v58 = vld [vmem:[#allocation196_spill] sm:$0xff] }
 0x37e   :  { %12889 = vst [vmem:[#allocation431_spill] sm:$0xff] %v7585_v0  ;;  %v12957_v46 = vld [vmem:[#allocation288_spill] sm:$0xff] }
 0x381   :  { %1565 = vrot.lane.b32.xlu0 %v6409_v16, %s5228_s24  ;;  %v12926_v16 = vld [vmem:[#allocation263_spill] sm:$0xff] }
 0x382   :  { %1567 = vrot.lane.b32.xlu1 %v6427_v19, %s5228_s24  ;;  %1569 = vrot.lane.b32.xlu2 %v6435_v22, %s5228_s24 }
 0x383   :  { %v7593_v40 = vpop.permute.xlu0 %1416 }
 0x384   :  { %12890 = vst [vmem:[#allocation432_spill] sm:$0xff] %v7593_v40  ;;  %v7595_v8 = vpop.permute.xlu1 %1418  ;;  %v7597_v20 = vpop.permute.xlu2 %1438 }
 0x385   :  { %12891 = vst [vmem:[#allocation433_spill] sm:$0xff] %v7595_v8  ;;  %v7616_v8 = vsel %vm145_vm1, 0.0, %v7600_v1  ;;  %vm12304_vm1 = vcmask 1043459  }
 0x386   :  { %12892 = vst [vmem:[#allocation434_spill] sm:$0xff] %v7597_v20  ;;  %v5121_v20 = vpack.i.bf16 %v7600_v1, %v7616_v8 }
 0x389   :  { %1571 = vrot.lane.b32.xlu0 %v6438_v25, %s5228_s24  ;;  %v12898_v25 = vld [vmem:[#allocation194_spill] sm:$0xff] }
 0x38a   :  { %1573 = vrot.lane.b32.xlu1 %v6464_v27, %s5228_s24  ;;  %1575 = vrot.lane.b32.xlu2 %v12894_v58, %s5228_s24 }
 0x38b   :  { %v7608_v0 = vpop.permute.xlu0 %1422 }
 0x38c   :  { %12895 = vst [vmem:[#allocation435_spill] sm:$0xff] %v7608_v0  ;;  %v7610_v22 = vpop.permute.xlu1 %1424  ;;  %v7612_v40 = vpop.permute.xlu2 %1444 }
 0x38d   :  { %12896 = vst [vmem:[#allocation436_spill] sm:$0xff] %v7610_v22 }
 0x38e   :  { %12897 = vst [vmem:[#allocation437_spill] sm:$0xff] %v7612_v40 }
 0x391   :  { %1577 = vrot.lane.b32.xlu0 %v12898_v25, %s5228_s24 }
 0x392   :  { %1579 = vrot.lane.b32.xlu1 %v6485_v2, %s5228_s24  ;;  %5122 = vrot.lane.b32.xlu2 %v5121_v20, %s5228_s24 }
 0x393   :  { %v7625_v0 = vpop.permute.xlu0 %1428 }
 0x394   :  { %12899 = vst [vmem:[#allocation194_spill] sm:$0xff] %v7625_v0  ;;  %v7627_v58 = vpop.permute.xlu1 %1430  ;;  %v7629_v40 = vpop.permute.xlu2 %1450 }
 0x395   :  { %12900 = vst [vmem:[#allocation438_spill] sm:$0xff] %v7627_v58  ;;  %v12918_v58 = vld [vmem:[#allocation251_spill] sm:$0xff] }
 0x396   :  { %12901 = vst [vmem:[#allocation439_spill] sm:$0xff] %v7629_v40 }
 0x399   :  { %1585 = vrot.lane.b32.xlu0 %v6509_v24, %s5228_s24  ;;  %v13003_v24 = vld [vmem:[#allocation80_spill] sm:$0xff] }
 0x39a   :  { %1587 = vrot.lane.b32.xlu1 %v6515_v30, %s5228_s24  ;;  %1589 = vrot.lane.b32.xlu2 %v6512_v26, %s5228_s24  ;;  %v12941_v30 = vld [vmem:[#allocation37_spill] sm:$0xff] }
 0x39b   :  { %v7637_v25 = vpop.permute.xlu0 %1434 }
 0x39c   :  { %12902 = vst [vmem:[#allocation440_spill] sm:$0xff] %v7637_v25  ;;  %v7639_v2 = vpop.permute.xlu1 %1436  ;;  %v7641_v20 = vpop.permute.xlu2 %1521 }
 0x39d   :  { %12903 = vst [vmem:[#allocation441_spill] sm:$0xff] %v7639_v2 }
 0x3a1   :  { %1591 = vrot.lane.b32.xlu0 %v6533_v31, %s5228_s24 }
 0x3a2   :  { %1593 = vrot.lane.b32.xlu1 %v6539_v18, %s5228_s24  ;;  %1595 = vrot.lane.b32.xlu2 %v6536_v15, %s5228_s24  ;;  %v12914_v18 = vld [vmem:[#allocation247_spill] sm:$0xff] }
 0x3a3   :  { %v7649_v40 = vpop.permute.xlu0 %1440 }
 0x3a4   :  { %12904 = vst [vmem:[#allocation442_spill] sm:$0xff] %v7649_v40  ;;  %v7651_v27 = vpop.permute.xlu1 %1442  ;;  %v7653_v19 = vpop.permute.xlu2 %1527 }
 0x3a5   :  { %12905 = vst [vmem:[#allocation443_spill] sm:$0xff] %v7651_v27 }
 0x3a9   :  { %1597 = vrot.lane.b32.xlu0 %v6557_v23, %s5228_s24 }
 0x3aa   :  { %1599 = vrot.lane.b32.xlu1 %v6563_v33, %s5228_s24  ;;  %1601 = vrot.lane.b32.xlu2 %v6560_v35, %s5228_s24  ;;  %v12912_v33 = vld [vmem:[#allocation241_spill] sm:$0xff] }
 0x3ab   :  { %v7661_v2 = vpop.permute.xlu0 %1446 }
 0x3ac   :  { %12906 = vst [vmem:[#allocation444_spill] sm:$0xff] %v7661_v2  ;;  %v7663_v25 = vpop.permute.xlu1 %1448  ;;  %v7665_v15 = vpop.permute.xlu2 %1533 }
 0x3ad   :  { %12907 = vst [vmem:[#allocation445_spill] sm:$0xff] %v7663_v25 }
 0x3b1   :  { %1603 = vrot.lane.b32.xlu0 %v6581_v37, %s5228_s24 }
 0x3b2   :  { %1605 = vrot.lane.b32.xlu1 %v6587_v29, %s5228_s24  ;;  %1607 = vrot.lane.b32.xlu2 %v6584_v50, %s5228_s24 }
 0x3b3   :  { %v7673_v27 = vpop.permute.xlu0 %1452 }
 0x3b4   :  { %12908 = vst [vmem:[#allocation446_spill] sm:$0xff] %v7673_v27  ;;  %v7675_v40 = vpop.permute.xlu1 %1454  ;;  %v7677_v35 = vpop.permute.xlu2 %1539 }
 0x3b5   :  { %12909 = vst [vmem:[#allocation447_spill] sm:$0xff] %v7675_v40 }
 0x3b9   :  { %1609 = vrot.lane.b32.xlu0 %v6605_v32, %s5228_s24  ;;  %v12963_v32 = vld [vmem:[#allocation68_spill] sm:$0xff] }
 0x3ba   :  { %1611 = vrot.lane.b32.xlu1 %v6611_v41, %s5228_s24  ;;  %1613 = vrot.lane.b32.xlu2 %v6608_v43, %s5228_s24  ;;  %v12929_v43 = vld [vmem:[#allocation265_spill] sm:$0xff] }
 0x3bb   :  { %v7685_v25 = vpop.permute.xlu0 %1523 }
 0x3bc   :  { %v7687_v2 = vpop.permute.xlu1 %1525  ;;  %v7689_v50 = vpop.permute.xlu2 %1545 }
 0x3bd   :  { %12910 = vst [vmem:[#allocation448_spill] sm:$0xff] %v7689_v50 }
 0x3c1   :  { %1615 = vrot.lane.b32.xlu0 %v6629_v39, %s5228_s24 }
 0x3c2   :  { %1617 = vrot.lane.b32.xlu1 %v6635_v45, %s5228_s24  ;;  %1619 = vrot.lane.b32.xlu2 %v6632_v47, %s5228_s24  ;;  %v12913_v45 = vld [vmem:[#allocation21_spill] sm:$0xff] }
 0x3c3   :  { %v7697_v29 = vpop.permute.xlu0 %1529 }
 0x3c4   :  { %v7699_v37 = vpop.permute.xlu1 %1531  ;;  %v7701_v40 = vpop.permute.xlu2 %1551 }
 0x3c5   :  { %12911 = vst [vmem:[#allocation449_spill] sm:$0xff] %v7701_v40 }
 0x3c9   :  { %1621 = vrot.lane.b32.xlu0 %v6653_v34, %s5228_s24  ;;  %v12915_v34 = vld [vmem:[#allocation246_spill] sm:$0xff] }
 0x3ca   :  { %1623 = vrot.lane.b32.xlu1 %v6659_v51, %s5228_s24  ;;  %1625 = vrot.lane.b32.xlu2 %v12912_v33, %s5228_s24 }
 0x3cb   :  { %v7709_v27 = vpop.permute.xlu0 %1535 }
 0x3cc   :  { %v7711_v23 = vpop.permute.xlu1 %1537  ;;  %v7713_v47 = vpop.permute.xlu2 %1557 }
 0x3d1   :  { %1627 = vrot.lane.b32.xlu0 %v12913_v45, %s5228_s24  ;;  %v12919_v45 = vld [vmem:[#allocation250_spill] sm:$0xff] }
 0x3d2   :  { %1629 = vrot.lane.b32.xlu1 %v12914_v18, %s5228_s24  ;;  %1631 = vrot.lane.b32.xlu2 %v12915_v34, %s5228_s24 }
 0x3d3   :  { %v7721_v40 = vpop.permute.xlu0 %1541 }
 0x3d4   :  { %12916 = vst [vmem:[#allocation450_spill] sm:$0xff] %v7721_v40  ;;  %v7723_v51 = vpop.permute.xlu1 %1543  ;;  %v7725_v33 = vpop.permute.xlu2 %1563 }
 0x3d5   :  { %12917 = vst [vmem:[#allocation451_spill] sm:$0xff] %v7723_v51 }
 0x3d9   :  { %1633 = vrot.lane.b32.xlu0 %v6701_v49, %s5228_s24  ;;  %v12923_v49 = vld [vmem:[#allocation254_spill] sm:$0xff] }
 0x3da   :  { %1635 = vrot.lane.b32.xlu1 %v12918_v58, %s5228_s24  ;;  %1637 = vrot.lane.b32.xlu2 %v12919_v45, %s5228_s24 }
 0x3db   :  { %v7733_v39 = vpop.permute.xlu0 %1547 }
 0x3dc   :  { %12920 = vst [vmem:[#allocation452_spill] sm:$0xff] %v7733_v39  ;;  %v7735_v18 = vpop.permute.xlu1 %1549  ;;  %v7737_v34 = vpop.permute.xlu2 %1569  ;;  %v12935_v39 = vld [vmem:[#allocation271_spill] sm:$0xff] }
 0x3dd   :  { %12921 = vst [vmem:[#allocation453_spill] sm:$0xff] %v7735_v18  ;;  %v12925_v18 = vld [vmem:[#allocation259_spill] sm:$0xff] }
 0x3de   :  { %12922 = vst [vmem:[#allocation454_spill] sm:$0xff] %v7737_v34  ;;  %v12942_v34 = vld [vmem:[#allocation277_spill] sm:$0xff] }
 0x3e1   :  { %1639 = vrot.lane.b32.xlu0 %v6741_v55, %s5228_s24  ;;  %v12927_v55 = vld [vmem:[#allocation264_spill] sm:$0xff] }
 0x3e2   :  { %1641 = vrot.lane.b32.xlu1 %v6735_v52, %s5228_s24  ;;  %1643 = vrot.lane.b32.xlu2 %v12923_v49, %s5228_s24 }
 0x3e3   :  { %v7745_v31 = vpop.permute.xlu0 %1553 }
 0x3e4   :  { %v7747_v58 = vpop.permute.xlu1 %1555  ;;  %v7749_v45 = vpop.permute.xlu2 %1575 }
 0x3e5   :  { %12924 = vst [vmem:[#allocation254_spill] sm:$0xff] %v7749_v45  ;;  %v12930_v45 = vld [vmem:[#allocation269_spill] sm:$0xff] }
 0x3e9   :  { %1707 = vrot.lane.b32.xlu0 %v12925_v18, %s5229_s25  ;;  %v12931_v18 = vld [vmem:[#allocation270_spill] sm:$0xff] }
 0x3ea   :  { %1709 = vrot.lane.b32.xlu1 %v12926_v16, %s5229_s25  ;;  %1711 = vrot.lane.b32.xlu2 %v12927_v55, %s5229_s25 }
 0x3eb   :  { %v7757_v52 = vpop.permute.xlu0 %1559 }
 0x3ec   :  { %v7759_v0 = vpop.permute.xlu1 %1561  ;;  %v7761_v49 = vpop.permute.xlu2 %5122 }
 0x3ed   :  { %12928 = vst [vmem:[#allocation259_spill] sm:$0xff] %v7761_v49  ;;  %v12936_v49 = vld [vmem:[#allocation275_spill] sm:$0xff] }
 0x3f1   :  { %1713 = vrot.lane.b32.xlu0 %v12929_v43, %s5229_s25  ;;  %v12937_v43 = vld [vmem:[#allocation276_spill] sm:$0xff] }
 0x3f2   :  { %1715 = vrot.lane.b32.xlu1 %v12930_v45, %s5229_s25  ;;  %1717 = vrot.lane.b32.xlu2 %v12931_v18, %s5229_s25 }
 0x3f3   :  { %v7769_v26 = vpop.permute.xlu0 %1565 }
 0x3f4   :  { %12932 = vst [vmem:[#allocation263_spill] sm:$0xff] %v7769_v26  ;;  %v7771_v16 = vpop.permute.xlu1 %1567  ;;  %v7773_v55 = vpop.permute.xlu2 %1589  ;;  %v13012_v26 = vld [vmem:[#allocation331_spill] sm:$0xff] }
 0x3f5   :  { %12933 = vst [vmem:[#allocation264_spill] sm:$0xff] %v7771_v16  ;;  %v5119_v16 = vunpack.i.l.bf16 %v13007_v44 }
 0x3f6   :  { %12934 = vst [vmem:[#allocation265_spill] sm:$0xff] %v7773_v55  ;;  %v13013_v55 = vld [vmem:[#allocation393_spill] sm:$0xff] }
 0x3f9   :  { %1719 = vrot.lane.b32.xlu0 %v12935_v39, %s5229_s25  ;;  %v12943_v39 = vld [vmem:[#allocation38_spill] sm:$0xff] }
 0x3fa   :  { %1721 = vrot.lane.b32.xlu1 %v12936_v49, %s5229_s25  ;;  %1723 = vrot.lane.b32.xlu2 %v12937_v43, %s5229_s25 }
 0x3fb   :  { %v7781_v41 = vpop.permute.xlu0 %1571 }
 0x3fc   :  { %12938 = vst [vmem:[#allocation269_spill] sm:$0xff] %v7781_v41  ;;  %v7783_v45 = vpop.permute.xlu1 %1573  ;;  %v7785_v18 = vpop.permute.xlu2 %1595  ;;  %v12948_v41 = vld [vmem:[#allocation282_spill] sm:$0xff] }
 0x3fd   :  { %12939 = vst [vmem:[#allocation270_spill] sm:$0xff] %v7783_v45  ;;  %v12947_v45 = vld [vmem:[#allocation281_spill] sm:$0xff] }
 0x3fe   :  { %12940 = vst [vmem:[#allocation271_spill] sm:$0xff] %v7785_v18 }
 0x401   :  { %1890 = vrot.lane.b32.xlu0 %v12941_v30, %s5230_s26  ;;  %v12949_v30 = vld [vmem:[#allocation42_spill] sm:$0xff] }
 0x402   :  { %1725 = vrot.lane.b32.xlu1 %v12942_v34, %s5229_s25  ;;  %1892 = vrot.lane.b32.xlu2 %v12943_v39, %s5230_s26 }
 0x403   :  { %v7793_v49 = vpop.permute.xlu0 %1577 }
 0x404   :  { %12944 = vst [vmem:[#allocation275_spill] sm:$0xff] %v7793_v49  ;;  %v7795_v12 = vpop.permute.xlu1 %1579  ;;  %v7797_v43 = vpop.permute.xlu2 %1601  ;;  %v12951_v49 = vld [vmem:[#allocation283_spill] sm:$0xff] }
 0x405   :  { %12945 = vst [vmem:[#allocation276_spill] sm:$0xff] %v7795_v12  ;;  %v12952_v12 = vld [vmem:[#allocation287_spill] sm:$0xff] }
 0x406   :  { %12946 = vst [vmem:[#allocation37_spill] sm:$0xff] %v7797_v43 }
 0x409   :  { %1727 = vrot.lane.b32.xlu0 %v12947_v45, %s5229_s25  ;;  %v12953_v45 = vld [vmem:[#allocation43_spill] sm:$0xff] }
 0x40a   :  { %1729 = vrot.lane.b32.xlu1 %v12948_v41, %s5229_s25  ;;  %1894 = vrot.lane.b32.xlu2 %v12949_v30, %s5230_s26 }
 0x40b   :  { %v7805_v18 = vpop.permute.xlu0 %1585 }
 0x40c   :  { %v7807_v34 = vpop.permute.xlu1 %1587  ;;  %v7809_v39 = vpop.permute.xlu2 %1607 }
 0x40d   :  { %12950 = vst [vmem:[#allocation277_spill] sm:$0xff] %v7809_v39  ;;  %v12958_v39 = vld [vmem:[#allocation292_spill] sm:$0xff] }
 0x411   :  { %1731 = vrot.lane.b32.xlu0 %v12951_v49, %s5229_s25  ;;  %v12959_v49 = vld [vmem:[#allocation44_spill] sm:$0xff] }
 0x412   :  { %1733 = vrot.lane.b32.xlu1 %v12952_v12, %s5229_s25  ;;  %1896 = vrot.lane.b32.xlu2 %v12953_v45, %s5230_s26 }
 0x413   :  { %v7817_v43 = vpop.permute.xlu0 %1591 }
 0x414   :  { %12954 = vst [vmem:[#allocation38_spill] sm:$0xff] %v7817_v43  ;;  %v7819_v41 = vpop.permute.xlu1 %1593  ;;  %v7821_v30 = vpop.permute.xlu2 %1613 }
 0x415   :  { %12955 = vst [vmem:[#allocation281_spill] sm:$0xff] %v7819_v41 }
 0x416   :  { %12956 = vst [vmem:[#allocation282_spill] sm:$0xff] %v7821_v30  ;;  %v12964_v30 = vld [vmem:[#allocation293_spill] sm:$0xff] }
 0x419   :  { %1735 = vrot.lane.b32.xlu0 %v12957_v46, %s5229_s25  ;;  %v12965_v46 = vld [vmem:[#allocation48_spill] sm:$0xff] }
 0x41a   :  { %1739 = vrot.lane.b32.xlu1 %v12958_v39, %s5229_s25  ;;  %1898 = vrot.lane.b32.xlu2 %v12959_v49, %s5230_s26 }
 0x41b   :  { %v7829_v22 = vpop.permute.xlu0 %1597 }
 0x41c   :  { %12960 = vst [vmem:[#allocation42_spill] sm:$0xff] %v7829_v22  ;;  %v7831_v12 = vpop.permute.xlu1 %1599  ;;  %v7833_v45 = vpop.permute.xlu2 %1619  ;;  %v12969_v22 = vld [vmem:[#allocation72_spill] sm:$0xff] }
 0x41d   :  { %12961 = vst [vmem:[#allocation283_spill] sm:$0xff] %v7831_v12  ;;  %v12970_v12 = vld [vmem:[#allocation294_spill] sm:$0xff] }
 0x41e   :  { %12962 = vst [vmem:[#allocation287_spill] sm:$0xff] %v7833_v45 }
 0x421   :  { %1922 = vrot.lane.b32.xlu0 %v12963_v32, %s5230_s26  ;;  %v12971_v32 = vld [vmem:[#allocation49_spill] sm:$0xff] }
 0x422   :  { %1741 = vrot.lane.b32.xlu1 %v12964_v30, %s5229_s25  ;;  %1900 = vrot.lane.b32.xlu2 %v12965_v46, %s5230_s26 }
 0x423   :  { %v7841_v41 = vpop.permute.xlu0 %1603 }
 0x424   :  { %12966 = vst [vmem:[#allocation43_spill] sm:$0xff] %v7841_v41  ;;  %v7843_v39 = vpop.permute.xlu1 %1605  ;;  %v7845_v49 = vpop.permute.xlu2 %1625  ;;  %v12975_v41 = vld [vmem:[#allocation73_spill] sm:$0xff] }
 0x425   :  { %12967 = vst [vmem:[#allocation288_spill] sm:$0xff] %v7843_v39  ;;  %v12976_v39 = vld [vmem:[#allocation298_spill] sm:$0xff] }
 0x426   :  { %12968 = vst [vmem:[#allocation292_spill] sm:$0xff] %v7845_v49 }
 0x429   :  { %1924 = vrot.lane.b32.xlu0 %v12969_v22, %s5230_s26  ;;  %v12977_v22 = vld [vmem:[#allocation50_spill] sm:$0xff] }
 0x42a   :  { %1743 = vrot.lane.b32.xlu1 %v12970_v12, %s5229_s25  ;;  %1902 = vrot.lane.b32.xlu2 %v12971_v32, %s5230_s26 }
 0x42b   :  { %v7853_v45 = vpop.permute.xlu0 %1609 }
 0x42c   :  { %12972 = vst [vmem:[#allocation44_spill] sm:$0xff] %v7853_v45  ;;  %v7855_v30 = vpop.permute.xlu1 %1611  ;;  %v7857_v46 = vpop.permute.xlu2 %1631  ;;  %v12981_v45 = vld [vmem:[#allocation74_spill] sm:$0xff] }
 0x42d   :  { %12973 = vst [vmem:[#allocation68_spill] sm:$0xff] %v7855_v30  ;;  %v12982_v30 = vld [vmem:[#allocation316_spill] sm:$0xff] }
 0x42e   :  { %12974 = vst [vmem:[#allocation293_spill] sm:$0xff] %v7857_v46 }
 0x431   :  { %1926 = vrot.lane.b32.xlu0 %v12975_v41, %s5230_s26 }
 0x432   :  { %1745 = vrot.lane.b32.xlu1 %v12976_v39, %s5229_s25  ;;  %1904 = vrot.lane.b32.xlu2 %v12977_v22, %s5230_s26 }
 0x433   :  { %v7865_v49 = vpop.permute.xlu0 %1615 }
 0x434   :  { %12978 = vst [vmem:[#allocation48_spill] sm:$0xff] %v7865_v49  ;;  %v7867_v12 = vpop.permute.xlu1 %1617  ;;  %v7869_v32 = vpop.permute.xlu2 %1637  ;;  %v12986_v49 = vld [vmem:[#allocation299_spill] sm:$0xff] }
 0x435   :  { %12979 = vst [vmem:[#allocation72_spill] sm:$0xff] %v7867_v12 }
 0x436   :  { %12980 = vst [vmem:[#allocation294_spill] sm:$0xff] %v7869_v32  ;;  %v12987_v32 = vld [vmem:[#allocation54_spill] sm:$0xff] }
 0x439   :  { %1928 = vrot.lane.b32.xlu0 %v12981_v45, %s5230_s26  ;;  %v12988_v45 = vld [vmem:[#allocation78_spill] sm:$0xff] }
 0x43a   :  { %1769 = vrot.lane.b32.xlu1 %v12982_v30, %s5229_s25  ;;  %1954 = vrot.lane.b32.xlu2 %v12813_v28, %s5230_s26 }
 0x43b   :  { %v7877_v41 = vpop.permute.xlu0 %1621 }
 0x43c   :  { %12983 = vst [vmem:[#allocation49_spill] sm:$0xff] %v7877_v41  ;;  %v7879_v39 = vpop.permute.xlu1 %1623  ;;  %v7881_v22 = vpop.permute.xlu2 %1643  ;;  %v12991_v41 = vld [vmem:[#allocation317_spill] sm:$0xff] }
 0x43d   :  { %12984 = vst [vmem:[#allocation73_spill] sm:$0xff] %v7879_v39 }
 0x43e   :  { %12985 = vst [vmem:[#allocation298_spill] sm:$0xff] %v7881_v22 }
 0x441   :  { %1747 = vrot.lane.b32.xlu0 %v12986_v49, %s5229_s25  ;;  %v12992_v49 = vld [vmem:[#allocation300_spill] sm:$0xff] }
 0x442   :  { %1906 = vrot.lane.b32.xlu1 %v12987_v32, %s5230_s26  ;;  %1930 = vrot.lane.b32.xlu2 %v12988_v45, %s5230_s26  ;;  %v2596_v32 = vld [vmem:[%s12009_s1 + $0x20] sm:$0xf] }
 0x443   :  { %v7889_v46 = vpop.permute.xlu0 %1627  ;;  %5019 = vmatpush.msk.msra.mxu0 %vm12264_vm2, %v2596_v32  ;;  %5084 = vmatpush.msk.msra.mxu1 %vm12264_vm2, %v2596_v32 }
 0x444   :  { %12989 = vst [vmem:[#allocation50_spill] sm:$0xff] %v7889_v46  ;;  %v7891_v30 = vpop.permute.xlu1 %1629  ;;  %v7893_v28 = vpop.permute.xlu2 %1711  ;;  %5085 = vmatpush.msk.msra.mxu2 %vm12264_vm2, %v2596_v32  ;;  %5086 = vmatpush.msk.msra.mxu3 %vm12264_vm2, %v2596_v32  ;;  %v12997_v46 = vld [vmem:[#allocation321_spill] sm:$0xff] }
 0x445   :  { %12990 = vst [vmem:[#allocation74_spill] sm:$0xff] %v7891_v30 }
 0x449   :  { %1771 = vrot.lane.b32.xlu0 %v12991_v41, %s5229_s25  ;;  %v2594_v41 = vld [vmem:[%s12009_s1 + $0x10] sm:$0xff] }
 0x44a   :  { %1956 = vrot.lane.b32.xlu1 %v12817_v11, %s5230_s26  ;;  %1749 = vrot.lane.b32.xlu2 %v12992_v49, %s5229_s25  ;;  %v2595_v11 = vld [vmem:[%s12009_s1 + $0x18] sm:$0xff]  ;;  %v12995_v49 = vld [vmem:[#allocation55_spill] sm:$0xff] }
 0x44b   :  { %v7901_v22 = vpop.permute.xlu0 %1633  ;;  %2810 = vmatpush.msra.mxu0 %v2595_v11  ;;  %5087 = vmatpush.msra.mxu1 %v2595_v11 }
 0x44c   :  { %12993 = vst [vmem:[#allocation316_spill] sm:$0xff] %v7901_v22  ;;  %v7906_v45 = vpop.permute.xlu1 %1635  ;;  %v7908_v30 = vpop.permute.xlu2 %1717  ;;  %5088 = vmatpush.msra.mxu2 %v2595_v11  ;;  %5089 = vmatpush.msra.mxu3 %v2595_v11  ;;  %v12996_v22 = vld [vmem:[#allocation79_spill] sm:$0xff]  ;;  %v2592_v11 = vld [vmem:[%s12009_s1] sm:$0xff] }
 0x44d   :  { %12994 = vst [vmem:[#allocation299_spill] sm:$0xff] %v7906_v45  ;;  %2811 = vmatpush.msra.mxu0 %v2594_v41  ;;  %5090 = vmatpush.msra.mxu1 %v2594_v41  ;;  %v2593_v45 = vld [vmem:[%s12009_s1 + $0x8] sm:$0xff] }
 0x44e   :  { %5091 = vmatpush.msra.mxu2 %v2594_v41  ;;  %5092 = vmatpush.msra.mxu3 %v2594_v41  ;;  %v13004_v41 = vld [vmem:[#allocation322_spill] sm:$0xff] }
 0x44f   :  { %2812 = vmatpush.msra.mxu0 %v2593_v45  ;;  %5093 = vmatpush.msra.mxu1 %v2593_v45 }
 0x450   :  { %5094 = vmatpush.msra.mxu2 %v2593_v45  ;;  %5095 = vmatpush.msra.mxu3 %v2593_v45  ;;  %v13005_v45 = vld [vmem:[#allocation103_spill] sm:$0xff] }
 0x451   :  { %1908 = vrot.lane.b32.xlu0 %v12995_v49, %s5230_s26  ;;  %2813 = vmatpush.msra.mxu0 %v2592_v11 }
 0x452   :  { %1932 = vrot.lane.b32.xlu1 %v12996_v22, %s5230_s26  ;;  %1773 = vrot.lane.b32.xlu2 %v12997_v46, %s5229_s25  ;;  %v13000_v46 = vld [vmem:[#allocation102_spill] sm:$0xff]  ;;  %v13001_v22 = vld [vmem:[#allocation304_spill] sm:$0xff] }
 0x453   :  { %v7929_v32 = vpop.permute.xlu0 %1639  ;;  %5096 = vmatpush.msra.mxu1 %v2592_v11  ;;  %5097 = vmatpush.msra.mxu2 %v2592_v11 }
 0x454   :  { %12998 = vst [vmem:[#allocation54_spill] sm:$0xff] %v7929_v32  ;;  %v7934_v49 = vpop.permute.xlu1 %1641  ;;  %v7936_v39 = vpop.permute.xlu2 %1723  ;;  %5098 = vmatpush.msra.mxu3 %v2592_v11  ;;  %v13002_v32 = vld [vmem:[#allocation56_spill] sm:$0xff] }
 0x455   :  { %12999 = vst [vmem:[#allocation78_spill] sm:$0xff] %v7934_v49 }
 0x459   :  { %1958 = vrot.lane.b32.xlu0 %v13000_v46, %s5230_s26 }
 0x45a   :  { %1751 = vrot.lane.b32.xlu1 %v13001_v22, %s5229_s25  ;;  %1910 = vrot.lane.b32.xlu2 %v13002_v32, %s5230_s26  ;;  %v13006_v32 = vld [vmem:[#allocation305_spill] sm:$0xff] }
 0x45b   :  { %v1708_v12 = vpop.permute.xlu0 %1707 }
 0x45c   :  { %v1710_v49 = vpop.permute.xlu1 %1709  ;;  %v1893_v50 = vpop.permute.xlu2 %1892 }
 0x461   :  { %1934 = vrot.lane.b32.xlu0 %v13003_v24, %s5230_s26  ;;  %v13008_v24 = vld [vmem:[#allocation60_spill] sm:$0xff] }
 0x462   :  { %1775 = vrot.lane.b32.xlu1 %v13004_v41, %s5229_s25  ;;  %1960 = vrot.lane.b32.xlu2 %v13005_v45, %s5230_s26  ;;  %v13009_v41 = vld [vmem:[#allocation84_spill] sm:$0xff] }
 0x463   :  { %v7950_v11 = vpop.permute.xlu0 %1713 }
 0x464   :  { %v7952_v46 = vpop.permute.xlu1 %1715  ;;  %v7954_v22 = vpop.permute.xlu2 %1894 }
 0x469   :  { %1753 = vrot.lane.b32.xlu0 %v13006_v32, %s5229_s25  ;;  %v2077_v32 = vsel %vm12298_vm3, %v7616_v8, %v13010_v61  ;;  %v13014_v8 = vld [vmem:[#allocation323_spill] sm:$0xff] }
 0x46a   :  { %1912 = vrot.lane.b32.xlu1 %v13008_v24, %s5230_s26  ;;  %1936 = vrot.lane.b32.xlu2 %v13009_v41, %s5230_s26  ;;  %v7973_v43 = vsel %vm12273_vm5, %v2077_v32, %v5119_v16  ;;  %v5120_v41 = vunpack.i.h.bf16 %v13007_v44  ;;  %v13016_v32 = vld [vmem:[#allocation104_spill] sm:$0xff]  ;;  %v2078_v44 = vsel %vm12298_vm3, %v7600_v1, %v13010_v61 }
 0x46b   :  { %v7963_v51 = vpop.permute.xlu0 %1719  ;;  %v2203_v24 = vsel %vm12271_vm4, %v7973_v43, %v13011_v38  ;;  %v13015_v38 = vld [vmem:[#allocation337_spill] sm:$0xff]  ;;  %v13018_v61 = vld [vmem:[#allocation332_spill] sm:$0xff] }
 0x46c   :  { %v7965_v45 = vpop.permute.xlu1 %1721  ;;  %v7967_v13 = vpop.permute.xlu2 %1896  ;;  %v2268_v17 = vsel %vm12270_vm6, %v2203_v24, %v13012_v26 }
 0x46d   :  { %v2333_v40 = vsel %vm12269_vm8, %v2268_v17, %v13013_v55  ;;  %v7996_v55 = vsel %vm12273_vm5, %v2078_v44, %v5120_v41  ;;  %v13020_v44 = vld [vmem:[#allocation128_spill] sm:$0xff] }
 0x46e   :  { %v2398_v16 = vsel %vm12268_vm7, %v2333_v40, %v7641_v20 }
 0x46f   :  { %v2463_v17 = vsel %vm12267_vm9, %v2398_v16, %v1708_v12  ;;  %v13019_v12 = vld [vmem:[#allocation97_spill] sm:$0xff] }
 0x471   :  { %1777 = vrot.lane.b32.xlu0 %v13014_v8, %s5229_s25  ;;  %v13017_v8 = vld [vmem:[#allocation226_spill] sm:$0xff] }
 0x472   :  { %1801 = vrot.lane.b32.xlu1 %v13015_v38, %s5229_s25  ;;  %1962 = vrot.lane.b32.xlu2 %v13016_v32, %s5230_s26  ;;  %v2204_v38 = vsel %vm12271_vm4, %v7996_v55, %v13017_v8 }
 0x473   :  { %v1891_v26 = vpop.permute.xlu0 %1890  ;;  %v2269_v1 = vsel %vm12270_vm6, %v2204_v38, %v13018_v61 }
 0x474   :  { %v7998_v40 = vpop.permute.xlu1 %1725  ;;  %v8000_v20 = vpop.permute.xlu2 %1898  ;;  %v2528_v24 = vsel %vm12266_vm11, %v2463_v17, %v1891_v26  ;;  %v2334_v16 = vsel %vm12269_vm8, %v2269_v1, %v13019_v12  ;;  %v13021_v17 = vld [vmem:[#allocation306_spill] sm:$0xff]  ;;  %v13022_v26 = vld [vmem:[#allocation61_spill] sm:$0xff] }
 0x475   :  { %5020 = vmatmul.msk.f32.vlgmr.msra.gmra.mxu0 %vm12265_vm10, %v2528_v24  ;;  %v2399_v41 = vsel %vm12268_vm7, %v2334_v16, %v7685_v25  ;;  %v13025_v25 = vld [vmem:[#allocation10_spill] sm:$0xff]  ;;  %v13027_v12 = vld [vmem:[#allocation101_spill] sm:$0xff] }
 0x476   :  { %v2464_v32 = vsel %vm12267_vm9, %v2399_v41, %v1710_v49  ;;  %v13026_v1 = vld [vmem:[#allocation150_spill] sm:$0xff]  ;;  %v13028_v41 = vld [vmem:[#allocation227_spill] sm:$0xff] }
 0x477   :  { %v2529_v61 = vsel %vm12266_vm11, %v2464_v32, %v1893_v50  ;;  %v2079_v49 = vsel %vm12298_vm3, %v13026_v1, %v13025_v25  ;;  %v13031_v50 = vld [vmem:[#allocation85_spill] sm:$0xff] }
 0x478   :  { %v2142_v16 = vsel %vm12273_vm5, %v2079_v49, %v13027_v12  ;;  %v13033_v25 = vld [vmem:[#allocation341_spill] sm:$0xff] }
 0x479   :  { %1986 = vrot.lane.b32.xlu0 %v13020_v44, %s5230_s26  ;;  %v2205_v44 = vsel %vm12271_vm4, %v2142_v16, %v13028_v41  ;;  %v13034_v41 = vld [vmem:[#allocation9_spill] sm:$0xff] }
 0x47a   :  { %1755 = vrot.lane.b32.xlu1 %v13021_v17, %s5229_s25  ;;  %1914 = vrot.lane.b32.xlu2 %v13022_v26, %s5230_s26  ;;  %v13029_v17 = vld [vmem:[#allocation320_spill] sm:$0xff] }
 0x47b   :  { %v8020_v24 = vpop.permute.xlu0 %1727  ;;  %v2270_v26 = vsel %vm12270_vm6, %v2205_v44, %v13029_v17  ;;  %v13036_v44 = vld [vmem:[#allocation123_spill] sm:$0xff] }
 0x47c   :  { %13023 = vst [vmem:[#allocation317_spill] sm:$0xff] %v8020_v24  ;;  %v8022_v8 = vpop.permute.xlu1 %1729  ;;  %v8024_v38 = vpop.permute.xlu2 %1900 }
 0x47d   :  { %13024 = vst [vmem:[#allocation300_spill] sm:$0xff] %v8022_v8  ;;  %5021 = vmatmul.msk.f32.gmra.mxu0 %vm12265_vm10, %v2529_v61  ;;  %v13030_v8 = vld [vmem:[#allocation395_spill] sm:$0xff] }
 0x47e   :  { %v2335_v24 = vsel %vm12269_vm8, %v2270_v26, %v13030_v8  ;;  %v13032_v61 = vld [vmem:[#allocation327_spill] sm:$0xff]  ;;  %v13037_v26 = vld [vmem:[#allocation210_spill] sm:$0xff] }
 0x47f   :  { %v2400_v32 = vsel %vm12268_vm7, %v2335_v24, %v7687_v2  ;;  %v13035_v2 = vld [vmem:[#allocation153_spill] sm:$0xff] }
 0x480   :  { %v2465_v1 = vsel %vm12267_vm9, %v2400_v32, %v7893_v28  ;;  %v2080_v24 = vsel %vm12298_vm3, %v13035_v2, %v13034_v41  ;;  %v5194_v41 = vld [vmem:[%s12008_s0 + $0xd8] sm:$0xff] }
 0x481   :  { %1938 = vrot.lane.b32.xlu0 %v13031_v50, %s5230_s26  ;;  %v2530_v16 = vsel %vm12266_vm11, %v2465_v1, %v7954_v22  ;;  %v2143_v17 = vsel %vm12273_vm5, %v2080_v24, %v13036_v44  ;;  %v13038_v50 = vld [vmem:[#allocation334_spill] sm:$0xff]  ;;  %v13040_v22 = vld [vmem:[#allocation108_spill] sm:$0xff] }
 0x482   :  { %1779 = vrot.lane.b32.xlu1 %v13032_v61, %s5229_s25  ;;  %1803 = vrot.lane.b32.xlu2 %v13033_v25, %s5229_s25  ;;  %v2206_v28 = vsel %vm12271_vm4, %v2143_v17, %v13037_v26  ;;  %v13039_v61 = vld [vmem:[#allocation396_spill] sm:$0xff] }
 0x483   :  { %v8049_v49 = vpop.permute.xlu0 %1731  ;;  %v2271_v32 = vsel %vm12270_vm6, %v2206_v28, %v13038_v50  ;;  %v13043_v26 = vld [vmem:[#allocation12_spill] sm:$0xff] }
 0x484   :  { %v8051_v12 = vpop.permute.xlu1 %1733  ;;  %v8053_v8 = vpop.permute.xlu2 %1902  ;;  %v2336_v25 = vsel %vm12269_vm8, %v2271_v32, %v13039_v61  ;;  %v2081_v28 = vsel %vm12298_vm3, %v6241_v57, %v13043_v26  ;;  %v13044_v50 = vld [vmem:[#allocation28_spill] sm:$0xff]  ;;  %v13050_v26 = vld [vmem:[#allocation349_spill] sm:$0xff] }
 0x485   :  { %5022 = vmatmul.msk.f32.gmra.mxu0 %vm12265_vm10, %v2530_v16  ;;  %v2401_v1 = vsel %vm12268_vm7, %v2336_v25, %v7653_v19  ;;  %v13041_v16 = vld [vmem:[#allocation132_spill] sm:$0xff]  ;;  %v2093_v32 = vsel %vm12298_vm3, %v6334_v7, %v13044_v50  ;;  %v13046_v25 = vld [vmem:[#allocation147_spill] sm:$0xff] }
 0x486   :  { %v2466_v2 = vsel %vm12267_vm9, %v2401_v1, %v7950_v11  ;;  %v13045_v61 = vld [vmem:[#allocation124_spill] sm:$0xff] }
 0x487   :  { %v2531_v19 = vsel %vm12266_vm11, %v2466_v2, %v7967_v13  ;;  %v2144_v11 = vsel %vm12273_vm5, %v2081_v28, %v13045_v61  ;;  %v13047_v1 = vld [vmem:[#allocation232_spill] sm:$0xff]  ;;  %v13049_v2 = vld [vmem:[#allocation335_spill] sm:$0xff] }
 0x488   :  { %v13048_v13 = vld [vmem:[#allocation252_spill] sm:$0xff] }
 0x489   :  { %1964 = vrot.lane.b32.xlu0 %v13040_v22, %s5230_s26  ;;  %v2156_v22 = vsel %vm12273_vm5, %v2093_v32, %v13046_v25  ;;  %v13051_v50 = vld [vmem:[#allocation388_spill] sm:$0xff]  ;;  %v13053_v32 = vld [vmem:[#allocation62_spill] sm:$0xff] }
 0x48a   :  { %1988 = vrot.lane.b32.xlu1 %v13041_v16, %s5230_s26  ;;  %1757 = vrot.lane.b32.xlu2 %v5194_v41, %s5229_s25  ;;  %v2207_v16 = vsel %vm12271_vm4, %v2144_v11, %v13047_v1  ;;  %v2219_v41 = vsel %vm12271_vm4, %v2156_v22, %v13048_v13  ;;  %v13054_v25 = vld [vmem:[#allocation86_spill] sm:$0xff] }
 0x48b   :  { %v8081_v24 = vpop.permute.xlu0 %1735  ;;  %v2272_v57 = vsel %vm12270_vm6, %v2207_v16, %v13049_v2  ;;  %v2284_v7 = vsel %vm12270_vm6, %v2219_v41, %v13050_v26  ;;  %v5195_v22 = vld [vmem:[%s12008_s0 + $0x140] sm:$0xff]  ;;  %v13055_v2 = vld [vmem:[#allocation4_spill] sm:$0xff] }
 0x48c   :  { %13042 = vst [vmem:[#allocation55_spill] sm:$0xff] %v8081_v24  ;;  %v1740_v44 = vpop.permute.xlu1 %1739  ;;  %v8083_v17 = vpop.permute.xlu2 %1904  ;;  %v13052_v24 = vld [vmem:[#allocation400_spill] sm:$0xff]  ;;  %v13056_v26 = vld [vmem:[#allocation30_spill] sm:$0xff] }
 0x48d   :  { %5023 = vmatmul.msk.f32.gmra.mxu0 %vm12265_vm10, %v2531_v19  ;;  %v2337_v19 = vsel %vm12269_vm8, %v2272_v57, %v13051_v50  ;;  %v2349_v28 = vsel %vm12269_vm8, %v2284_v7, %v13052_v24  ;;  %v2082_v57 = vsel %vm12298_vm3, %v6238_v3, %v13055_v2  ;;  %v2094_v7 = vsel %vm12298_vm3, %v6337_v4, %v13056_v26  ;;  %v13058_v50 = vld [vmem:[#allocation131_spill] sm:$0xff]  ;;  %v13062_v4 = vld [vmem:[#allocation340_spill] sm:$0xff]  ;;  %v13064_v2 = vld [vmem:[#allocation109_spill] sm:$0xff] }
 0x48e   :  { %v2402_v61 = vsel %vm12268_vm7, %v2337_v19, %v7697_v29  ;;  %v2414_v11 = vsel %vm12268_vm7, %v2349_v28, %v7745_v31  ;;  %v13059_v19 = vld [vmem:[#allocation233_spill] sm:$0xff] }
 0x48f   :  { %v2467_v24 = vsel %vm12267_vm9, %v2402_v61, %v7952_v46  ;;  %v2479_v1 = vsel %vm12267_vm9, %v2414_v11, %v1740_v44  ;;  %v13057_v46 = vld [vmem:[#allocation107_spill] sm:$0xff]  ;;  %v13061_v61 = vld [vmem:[#allocation326_spill] sm:$0xff] }
 0x490   :  { %v2532_v31 = vsel %vm12266_vm11, %v2467_v24, %v8000_v20  ;;  %v2145_v44 = vsel %vm12273_vm5, %v2082_v57, %v13057_v46  ;;  %v2157_v20 = vsel %vm12273_vm5, %v2094_v7, %v13058_v50  ;;  %v13065_v57 = vld [vmem:[#allocation133_spill] sm:$0xff] }
 0x491   :  { %1916 = vrot.lane.b32.xlu0 %v13053_v32, %s5230_s26  ;;  %v2208_v28 = vsel %vm12271_vm4, %v2145_v44, %v13059_v19  ;;  %v13060_v32 = vld [vmem:[#allocation31_spill] sm:$0xff]  ;;  %v13066_v50 = vld [vmem:[#allocation5_spill] sm:$0xff] }
 0x492   :  { %1940 = vrot.lane.b32.xlu1 %v13054_v25, %s5230_s26  ;;  %1781 = vrot.lane.b32.xlu2 %v5195_v22, %s5229_s25  ;;  %v2220_v3 = vsel %vm12271_vm4, %v2157_v20, %v13060_v32  ;;  %v2273_v11 = vsel %vm12270_vm6, %v2208_v28, %v13061_v61  ;;  %v13063_v22 = vld [vmem:[#allocation398_spill] sm:$0xff]  ;;  %v2083_v20 = vsel %vm12298_vm3, %v6259_v48, %v13066_v50  ;;  %v13067_v19 = vld [vmem:[#allocation15_spill] sm:$0xff] }
 0x493   :  { %v1923_v16 = vpop.permute.xlu0 %1922  ;;  %v2285_v25 = vsel %vm12270_vm6, %v2220_v3, %v13062_v4  ;;  %v2338_v24 = vsel %vm12269_vm8, %v2273_v11, %v13063_v22  ;;  %v2095_v28 = vsel %vm12298_vm3, %v6355_v6, %v13067_v19  ;;  %v13069_v32 = vld [vmem:[#allocation151_spill] sm:$0xff]  ;;  %v13070_v3 = vld [vmem:[#allocation216_spill] sm:$0xff]  ;;  %v13072_v4 = vld [vmem:[#allocation338_spill] sm:$0xff] }
 0x494   :  { %v1742_v13 = vpop.permute.xlu1 %1741  ;;  %v8125_v29 = vpop.permute.xlu2 %1954  ;;  %v2544_v41 = vsel %vm12266_vm11, %v2479_v1, %v1923_v16  ;;  %v2350_v1 = vsel %vm12269_vm8, %v2285_v25, %v7479_v59  ;;  %v5196_v16 = vld [vmem:[%s12008_s0 + $0x1a0] sm:$0xff]  ;;  %v13071_v11 = vld [vmem:[#allocation240_spill] sm:$0xff]  ;;  %v13073_v6 = vld [vmem:[#allocation351_spill] sm:$0xff] }
 0x495   :  { %5024 = vmatmul.msk.f32.gmra.mxu0 %vm12265_vm10, %v2532_v31  ;;  %5036 = vmatmul.msk.f32.vlgmr.msra.gmra.mxu1 %vm12265_vm10, %v2544_v41  ;;  %v2403_v31 = vsel %vm12268_vm7, %v2338_v24, %v7699_v37  ;;  %v2415_v41 = vsel %vm12268_vm7, %v2350_v1, %v7747_v58  ;;  %v13074_v24 = vld [vmem:[#allocation399_spill] sm:$0xff]  ;;  %v13077_v50 = vld [vmem:[#allocation14_spill] sm:$0xff]  ;;  %v13078_v19 = vld [vmem:[#allocation33_spill] sm:$0xff] }
 0x496   :  { %v2468_v59 = vsel %vm12267_vm9, %v2403_v31, %v7908_v30  ;;  %v2480_v26 = vsel %vm12267_vm9, %v2415_v41, %v1742_v13  ;;  %v13068_v30 = vld [vmem:[#allocation129_spill] sm:$0xff]  ;;  %v5197_v31 = vld [vmem:[%s12008_s0 + $0xe0] sm:$0xff] }
 0x497   :  { %v2533_v37 = vsel %vm12266_vm11, %v2468_v59, %v8024_v38  ;;  %v2146_v13 = vsel %vm12273_vm5, %v2083_v20, %v13068_v30  ;;  %v2158_v38 = vsel %vm12273_vm5, %v2095_v28, %v13069_v32  ;;  %v13076_v59 = vld [vmem:[#allocation90_spill] sm:$0xff]  ;;  %v2084_v20 = vsel %vm12298_vm3, %v6262_v54, %v13077_v50 }
 0x498   :  { %v2209_v61 = vsel %vm12271_vm4, %v2146_v13, %v13070_v3  ;;  %v2221_v48 = vsel %vm12271_vm4, %v2158_v38, %v13071_v11  ;;  %v2096_v28 = vsel %vm12298_vm3, %v6358_v14, %v13078_v19  ;;  %v13080_v30 = vld [vmem:[#allocation2_spill] sm:$0xff]  ;;  %v13082_v38 = vld [vmem:[#allocation256_spill] sm:$0xff]  ;;  %v13083_v3 = vld [vmem:[#allocation339_spill] sm:$0xff] }
 0x499   :  { %1805 = vrot.lane.b32.xlu0 %v5196_v16, %s5229_s25  ;;  %v2274_v25 = vsel %vm12270_vm6, %v2209_v61, %v13072_v4  ;;  %v2286_v22 = vsel %vm12270_vm6, %v2221_v48, %v13073_v6  ;;  %v13081_v13 = vld [vmem:[#allocation238_spill] sm:$0xff]  ;;  %v13084_v14 = vld [vmem:[#allocation352_spill] sm:$0xff]  ;;  %v13085_v48 = vld [vmem:[#allocation279_spill] sm:$0xff] }
 0x49a   :  { %1966 = vrot.lane.b32.xlu1 %v13064_v2, %s5230_s26  ;;  %1990 = vrot.lane.b32.xlu2 %v13065_v57, %s5230_s26  ;;  %v2339_v1 = vsel %vm12269_vm8, %v2274_v25, %v13074_v24  ;;  %v2351_v16 = vsel %vm12269_vm8, %v2286_v22, %v7481_v62  ;;  %v13075_v57 = vld [vmem:[#allocation66_spill] sm:$0xff]  ;;  %v2235_v4 = vsel %vm12271_vm4, %v7973_v43, %v13085_v48  ;;  %v13086_v25 = vld [vmem:[#allocation391_spill] sm:$0xff] }
 0x49b   :  { %v1925_v7 = vpop.permute.xlu0 %1924  ;;  %v2404_v41 = vsel %vm12268_vm7, %v2339_v1, %v7665_v15  ;;  %v2416_v2 = vsel %vm12268_vm7, %v2351_v16, %v7713_v47  ;;  %v13087_v22 = vld [vmem:[#allocation403_spill] sm:$0xff]  ;;  %v13088_v16 = vld [vmem:[#allocation354_spill] sm:$0xff] }
 0x49c   :  { %v1744_v46 = vpop.permute.xlu1 %1743  ;;  %v8169_v44 = vpop.permute.xlu2 %1930  ;;  %v2545_v58 = vsel %vm12266_vm11, %v2480_v26, %v1925_v7  ;;  %v2469_v62 = vsel %vm12267_vm9, %v2404_v41, %v7963_v51  ;;  %v13079_v51 = vld [vmem:[#allocation130_spill] sm:$0xff]  ;;  %v5198_v1 = vld [vmem:[%s12008_s0 + $0x148] sm:$0xff] }
 0x49d   :  { %5025 = vmatmul.msk.f32.gmra.mxu0 %vm12265_vm10, %v2533_v37  ;;  %5037 = vmatmul.msk.f32.gmra.mxu1 %vm12265_vm10, %v2545_v58  ;;  %v2481_v26 = vsel %vm12267_vm9, %v2416_v2, %v1744_v46  ;;  %v2534_v15 = vsel %vm12266_vm11, %v2469_v62, %v8053_v8  ;;  %v2147_v46 = vsel %vm12273_vm5, %v2084_v20, %v13079_v51  ;;  %v5199_v2 = vld [vmem:[%s12008_s0 + $0x1a8] sm:$0xff]  ;;  %v13093_v51 = vld [vmem:[#allocation137_spill] sm:$0xff] }
 0x49e   :  { %v2159_v8 = vsel %vm12273_vm5, %v2096_v28, %v13080_v30  ;;  %v2210_v32 = vsel %vm12271_vm4, %v2147_v46, %v13081_v13  ;;  %v13094_v30 = vld [vmem:[#allocation239_spill] sm:$0xff]  ;;  %v13095_v13 = vld [vmem:[#allocation257_spill] sm:$0xff] }
 0x49f   :  { %v2222_v54 = vsel %vm12271_vm4, %v2159_v8, %v13082_v38  ;;  %v2275_v61 = vsel %vm12270_vm6, %v2210_v32, %v13083_v3  ;;  %v13096_v32 = vld [vmem:[#allocation330_spill] sm:$0xff]  ;;  %v13097_v38 = vld [vmem:[#allocation344_spill] sm:$0xff]  ;;  %v13099_v3 = vld [vmem:[#allocation401_spill] sm:$0xff] }
 0x4a0   :  { %v2287_v11 = vsel %vm12270_vm6, %v2222_v54, %v13084_v14  ;;  %v2340_v6 = vsel %vm12269_vm8, %v2275_v61, %v13086_v25  ;;  %v13098_v54 = vld [vmem:[#allocation134_spill] sm:$0xff]  ;;  %v5201_v48 = vld [vmem:[%s12008_s0 + $0xe8] sm:$0xff] }
 0x4a1   :  { %1759 = vrot.lane.b32.xlu0 %v5197_v31, %s5229_s25  ;;  %v2352_v24 = vsel %vm12269_vm8, %v2287_v11, %v13087_v22  ;;  %v2300_v31 = vsel %vm12270_vm6, %v2235_v4, %v13088_v16  ;;  %v2405_v41 = vsel %vm12268_vm7, %v2340_v6, %v7709_v27  ;;  %v5200_v11 = vld [vmem:[%s12008_s0 + $0x88] sm:$0xff] }
 0x4a2   :  { %1918 = vrot.lane.b32.xlu1 %v13075_v57, %s5230_s26  ;;  %1942 = vrot.lane.b32.xlu2 %v13076_v59, %s5230_s26  ;;  %v2417_v43 = vsel %vm12268_vm7, %v2352_v24, %v7757_v52  ;;  %v13089_v57 = vld [vmem:[#allocation110_spill] sm:$0xff]  ;;  %v2365_v59 = vsel %vm12269_vm8, %v2300_v31, %v7545_v21  ;;  %v2470_v62 = vsel %vm12267_vm9, %v2405_v41, %v7965_v45  ;;  %v13090_v21 = vld [vmem:[#allocation16_spill] sm:$0xff] }
 0x4a3   :  { %v1927_v7 = vpop.permute.xlu0 %1926  ;;  %v2430_v52 = vsel %vm12268_vm7, %v2365_v59, %v7805_v18  ;;  %v2085_v45 = vsel %vm12298_vm3, %v6265_v56, %v13090_v21  ;;  %v13101_v41 = vld [vmem:[#allocation364_spill] sm:$0xff] }
 0x4a4   :  { %v1746_v37 = vpop.permute.xlu1 %1745  ;;  %v8213_v58 = vpop.permute.xlu2 %1749  ;;  %v2546_v47 = vsel %vm12266_vm11, %v2481_v26, %v1927_v7 }
 0x4a5   :  { %5026 = vmatmul.msk.f32.gmra.mxu0 %vm12265_vm10, %v2534_v15  ;;  %5038 = vmatmul.msk.f32.gmra.mxu1 %vm12265_vm10, %v2546_v47  ;;  %v2482_v27 = vsel %vm12267_vm9, %v2417_v43, %v1746_v37  ;;  %v2535_v47 = vsel %vm12266_vm11, %v2470_v62, %v8083_v17  ;;  %v13091_v37 = vld [vmem:[#allocation35_spill] sm:$0xff]  ;;  %v13092_v17 = vld [vmem:[#allocation113_spill] sm:$0xff] }
 0x4a6   :  { %v2097_v18 = vsel %vm12298_vm3, %v6361_v9, %v13091_v37  ;;  %v2148_v28 = vsel %vm12273_vm5, %v2085_v45, %v13092_v17  ;;  %v13102_v43 = vld [vmem:[#allocation67_spill] sm:$0xff]  ;;  %v13108_v37 = vld [vmem:[#allocation222_spill] sm:$0xff] }
 0x4a7   :  { %v2160_v46 = vsel %vm12273_vm5, %v2097_v18, %v13093_v51  ;;  %v2211_v8 = vsel %vm12271_vm4, %v2148_v28, %v13094_v30  ;;  %v13110_v17 = vld [vmem:[#allocation342_spill] sm:$0xff]  ;;  %v13111_v51 = vld [vmem:[#allocation32_spill] sm:$0xff] }
 0x4a8   :  { %v2223_v56 = vsel %vm12271_vm4, %v2160_v46, %v13095_v13  ;;  %v2276_v9 = vsel %vm12270_vm6, %v2211_v8, %v13096_v32  ;;  %v13112_v46 = vld [vmem:[#allocation402_spill] sm:$0xff]  ;;  %v5203_v8 = vld [vmem:[%s12008_s0 + $0x1b0] sm:$0xff] }
 0x4a9   :  { %1783 = vrot.lane.b32.xlu0 %v5198_v1, %s5229_s25  ;;  %v2341_v61 = vsel %vm12269_vm8, %v2276_v9, %v13099_v3  ;;  %v13113_v32 = vld [vmem:[#allocation114_spill] sm:$0xff] }
 0x4aa   :  { %1807 = vrot.lane.b32.xlu1 %v5199_v2, %s5229_s25  ;;  %1968 = vrot.lane.b32.xlu2 %v13089_v57, %s5230_s26  ;;  %v2406_v4 = vsel %vm12268_vm7, %v2341_v61, %v7711_v23  ;;  %v13100_v23 = vld [vmem:[#allocation262_spill] sm:$0xff]  ;;  %v13103_v57 = vld [vmem:[#allocation91_spill] sm:$0xff] }
 0x4ab   :  { %v1929_v26 = vpop.permute.xlu0 %1928  ;;  %v13114_v9 = vld [vmem:[#allocation138_spill] sm:$0xff] }
 0x4ac   :  { %v1770_v7 = vpop.permute.xlu1 %1769  ;;  %v8268_v15 = vpop.permute.xlu2 %1773  ;;  %v2547_v50 = vsel %vm12266_vm11, %v2482_v27, %v1929_v26 }
 0x4ad   :  { %v2495_v20 = vsel %vm12267_vm9, %v2430_v52, %v1770_v7  ;;  %5027 = vmatmul.msk.f32.gmra.mxu0 %vm12265_vm10, %v2535_v47  ;;  %5039 = vmatmul.msk.f32.gmra.mxu1 %vm12265_vm10, %v2547_v50  ;;  %v13104_v52 = vld [vmem:[#allocation6_spill] sm:$0xff]  ;;  %v13105_v47 = vld [vmem:[#allocation19_spill] sm:$0xff] }
 0x4ae   :  { %v2560_v19 = vsel %vm12266_vm11, %v2495_v20, %v8125_v29  ;;  %v2288_v29 = vsel %vm12270_vm6, %v2223_v56, %v13097_v38  ;;  %v2098_v50 = vsel %vm12298_vm3, %v6379_v10, %v13105_v47  ;;  %v13106_v20 = vld [vmem:[#allocation135_spill] sm:$0xff] }
 0x4af   :  { %5052 = vmatmul.msk.f32.vlgmr.msra.gmra.mxu2 %vm12265_vm10, %v2560_v19  ;;  %v2353_v14 = vsel %vm12269_vm8, %v2288_v29, %v7497_v60  ;;  %v2471_v60 = vsel %vm12267_vm9, %v2406_v4, %v7936_v39  ;;  %v13109_v19 = vld [vmem:[#allocation245_spill] sm:$0xff] }
 0x4b0   :  { %v2418_v25 = vsel %vm12268_vm7, %v2353_v14, %v7759_v0  ;;  %v2236_v0 = vsel %vm12271_vm4, %v7996_v55, %v13100_v23  ;;  %v13115_v14 = vld [vmem:[#allocation18_spill] sm:$0xff]  ;;  %v13117_v4 = vld [vmem:[#allocation201_spill] sm:$0xff] }
 0x4b1   :  { %1992 = vrot.lane.b32.xlu0 %v13098_v54, %s5230_s26  ;;  %v2301_v39 = vsel %vm12270_vm6, %v2236_v0, %v13101_v41  ;;  %v13123_v0 = vld [vmem:[#allocation365_spill] sm:$0xff] }
 0x4b2   :  { %1737 = vrot.lane.b32.xlu1 %v5200_v11, %s5229_s25  ;;  %1761 = vrot.lane.b32.xlu2 %v5201_v48, %s5229_s25  ;;  %v2366_v2 = vsel %vm12269_vm8, %v2301_v39, %v7547_v42  ;;  %v2086_v42 = vsel %vm12298_vm3, %v6283_v63, %v13104_v52  ;;  %v2087_v11 = vsel %vm12298_vm3, %v6286_v5, %v13115_v14  ;;  %v13116_v48 = vld [vmem:[#allocation59_spill] sm:$0xff]  ;;  %v13121_v5 = vld [vmem:[#allocation284_spill] sm:$0xff]  ;;  %v13124_v39 = vld [vmem:[#allocation394_spill] sm:$0xff] }
 0x4b3   :  { %v1748_v6 = vpop.permute.xlu0 %1747  ;;  %v2431_v55 = vsel %vm12268_vm7, %v2366_v2, %v7807_v34  ;;  %v2149_v21 = vsel %vm12273_vm5, %v2086_v42, %v13106_v20  ;;  %v13107_v34 = vld [vmem:[#allocation154_spill] sm:$0xff]  ;;  %v5205_v52 = vld [vmem:[%s12008_s0 + $0x158] sm:$0xff]  ;;  %v13142_v14 = vld [vmem:[#allocation139_spill] sm:$0xff] }
 0x4b4   :  { %v2483_v22 = vsel %vm12267_vm9, %v2418_v25, %v1748_v6  ;;  %v1907_v24 = vpop.permute.xlu1 %1906  ;;  %v8318_v1 = vpop.permute.xlu2 %1910  ;;  %v2161_v45 = vsel %vm12273_vm5, %v2098_v50, %v13107_v34  ;;  %v2212_v18 = vsel %vm12271_vm4, %v2149_v21, %v13108_v37  ;;  %v13118_v25 = vld [vmem:[#allocation136_spill] sm:$0xff]  ;;  %v13130_v37 = vld [vmem:[#allocation177_spill] sm:$0xff] }
 0x4b5   :  { %v2536_v16 = vsel %vm12266_vm11, %v2471_v60, %v1907_v24  ;;  %v2548_v31 = vsel %vm12266_vm11, %v2483_v22, %v8169_v44  ;;  %v5202_v44 = vld [vmem:[%s12008_s0 + $0x150] sm:$0xff]  ;;  %v2224_v63 = vsel %vm12271_vm4, %v2161_v45, %v13109_v19  ;;  %v2277_v28 = vsel %vm12270_vm6, %v2212_v18, %v13110_v17  ;;  %v13120_v22 = vld [vmem:[#allocation243_spill] sm:$0xff] }
 0x4b6   :  { %5028 = vmatmul.msk.f32.gmra.mxu0 %vm12265_vm10, %v2536_v16  ;;  %5040 = vmatmul.msk.f32.gmra.mxu1 %vm12265_vm10, %v2548_v31  ;;  %v2289_v10 = vsel %vm12270_vm6, %v2224_v63, %v13111_v51  ;;  %v2342_v30 = vsel %vm12269_vm8, %v2277_v28, %v13112_v46  ;;  %v13119_v6 = vld [vmem:[#allocation156_spill] sm:$0xff]  ;;  %v13122_v31 = vld [vmem:[#allocation343_spill] sm:$0xff] }
 0x4b7   :  { %v2354_v13 = vsel %vm12269_vm8, %v2289_v10, %v7499_v36  ;;  %v2407_v56 = vsel %vm12268_vm7, %v2342_v30, %v7677_v35  ;;  %v13129_v45 = vld [vmem:[#allocation39_spill] sm:$0xff]  ;;  %v13132_v63 = vld [vmem:[#allocation40_spill] sm:$0xff] }
 0x4b8   :  { %v2419_v38 = vsel %vm12268_vm7, %v2354_v13, %v7725_v33  ;;  %v2472_v29 = vsel %vm12267_vm9, %v2407_v56, %v7998_v40  ;;  %v2109_v33 = vsel %vm12298_vm3, %v13117_v4, %v13116_v48  ;;  %v2099_v18 = vsel %vm12298_vm3, %v13130_v37, %v13129_v45  ;;  %v13131_v19 = vld [vmem:[#allocation155_spill] sm:$0xff]  ;;  %v13133_v17 = vld [vmem:[#allocation200_spill] sm:$0xff]  ;;  %v13137_v13 = vld [vmem:[#allocation285_spill] sm:$0xff] }
 0x4b9   :  { %1920 = vrot.lane.b32.xlu0 %v13102_v43, %s5230_s26  ;;  %v2484_v3 = vsel %vm12267_vm9, %v2419_v38, %v8213_v58  ;;  %v2150_v58 = vsel %vm12273_vm5, %v2087_v11, %v13118_v25  ;;  %v2172_v60 = vsel %vm12273_vm5, %v2109_v33, %v13119_v6  ;;  %v2110_v28 = vsel %vm12298_vm3, %v13133_v17, %v13132_v63  ;;  %v13134_v51 = vld [vmem:[#allocation260_spill] sm:$0xff]  ;;  %v13135_v10 = vld [vmem:[#allocation171_spill] sm:$0xff]  ;;  %v5206_v38 = vld [vmem:[%s12008_s0 + $0x1b8] sm:$0xff] }
 0x4ba   :  { %1944 = vrot.lane.b32.xlu1 %v13103_v57, %s5230_s26  ;;  %1785 = vrot.lane.b32.xlu2 %v5202_v44, %s5229_s25  ;;  %v2213_v24 = vsel %vm12271_vm4, %v2150_v58, %v13120_v22  ;;  %v2237_v16 = vsel %vm12271_vm4, %v2172_v60, %v13121_v5  ;;  %v5204_v57 = vld [vmem:[%s12008_s0 + $0xf0] sm:$0xff]  ;;  %v13125_v44 = vld [vmem:[#allocation450_spill] sm:$0xff]  ;;  %v2173_v46 = vsel %vm12273_vm5, %v2110_v28, %v13135_v10  ;;  %v13143_v11 = vld [vmem:[#allocation423_spill] sm:$0xff] }
 0x4bb   :  { %v1772_v59 = vpop.permute.xlu0 %1771  ;;  %v2278_v23 = vsel %vm12270_vm6, %v2213_v24, %v13122_v31  ;;  %v2302_v41 = vsel %vm12270_vm6, %v2237_v16, %v13123_v0  ;;  %v13136_v30 = vld [vmem:[#allocation36_spill] sm:$0xff]  ;;  %v2238_v56 = vsel %vm12271_vm4, %v2173_v46, %v13137_v13  ;;  %v13147_v31 = vld [vmem:[#allocation41_spill] sm:$0xff]  ;;  %v5208_v45 = vld [vmem:[%s12008_s0 + $0x160] sm:$0xff] }
 0x4bc   :  { %v2496_v62 = vsel %vm12267_vm9, %v2431_v55, %v1772_v59  ;;  %v1957_v27 = vpop.permute.xlu1 %1956  ;;  %v8343_v26 = vpop.permute.xlu2 %1960  ;;  %v2343_v43 = vsel %vm12269_vm8, %v2278_v23, %v13124_v39  ;;  %v2367_v2 = vsel %vm12269_vm8, %v2302_v41, %v7513_v53  ;;  %v13126_v59 = vld [vmem:[#allocation265_spill] sm:$0xff]  ;;  %v13145_v24 = vld [vmem:[#allocation20_spill] sm:$0xff]  ;;  %v13148_v23 = vld [vmem:[#allocation178_spill] sm:$0xff] }
 0x4bd   :  { %v2561_v7 = vsel %vm12266_vm11, %v2496_v62, %v1957_v27  ;;  %v2408_v55 = vsel %vm12268_vm7, %v2343_v43, %v13125_v44  ;;  %v2432_v62 = vsel %vm12268_vm7, %v2367_v2, %v13126_v59  ;;  %v13127_v27 = vld [vmem:[#allocation382_spill] sm:$0xff]  ;;  %v13128_v53 = vld [vmem:[#allocation317_spill] sm:$0xff]  ;;  %v13146_v5 = vld [vmem:[#allocation160_spill] sm:$0xff]  ;;  %v2100_v0 = vsel %vm12298_vm3, %v13148_v23, %v13147_v31 }
 0x4be   :  { %5053 = vmatmul.msk.f32.gmra.mxu2 %vm12265_vm10, %v2561_v7  ;;  %v2473_v42 = vsel %vm12267_vm9, %v2408_v55, %v13128_v53  ;;  %v2497_v7 = vsel %vm12267_vm9, %v2432_v62, %v8268_v15  ;;  %v2162_v15 = vsel %vm12273_vm5, %v2099_v18, %v13131_v19  ;;  %v2088_v16 = vsel %vm12298_vm3, %v13146_v5, %v13145_v24  ;;  %v13149_v39 = vld [vmem:[#allocation119_spill] sm:$0xff]  ;;  %v13151_v44 = vld [vmem:[#allocation244_spill] sm:$0xff]  ;;  %v13152_v59 = vld [vmem:[#allocation261_spill] sm:$0xff] }
 0x4bf   :  { %v2538_v21 = vsel %vm12266_vm11, %v2473_v42, %v8318_v1  ;;  %v2225_v1 = vsel %vm12271_vm4, %v2162_v15, %v13134_v51  ;;  %v2151_v43 = vsel %vm12273_vm5, %v2088_v16, %v13149_v39  ;;  %v13150_v2 = vld [vmem:[#allocation143_spill] sm:$0xff]  ;;  %v5207_v42 = vld [vmem:[%s12008_s0 + $0xf8] sm:$0xff]  ;;  %v13159_v19 = vld [vmem:[#allocation264_spill] sm:$0xff] }
 0x4c0   :  { %v2214_v55 = vsel %vm12271_vm4, %v2151_v43, %v13151_v44  ;;  %v13154_v53 = vld [vmem:[#allocation347_spill] sm:$0xff]  ;;  %v13160_v17 = vld [vmem:[#allocation300_spill] sm:$0xff] }
 0x4c1   :  { %1809 = vrot.lane.b32.xlu0 %v5203_v8, %s5229_s25  ;;  %v2290_v8 = vsel %vm12270_vm6, %v2225_v1, %v13136_v30  ;;  %v13158_v37 = vld [vmem:[#allocation451_spill] sm:$0xff]  ;;  %v13162_v13 = vld [vmem:[#allocation164_spill] sm:$0xff] }
 0x4c2   :  { %1970 = vrot.lane.b32.xlu1 %v13113_v32, %s5230_s26  ;;  %1994 = vrot.lane.b32.xlu2 %v13114_v9, %s5230_s26  ;;  %v13138_v32 = vld [vmem:[#allocation406_spill] sm:$0xff]  ;;  %v13173_v5 = vld [vmem:[#allocation116_spill] sm:$0xff] }
 0x4c3   :  { %v1909_v54 = vpop.permute.xlu0 %1908  ;;  %v2355_v9 = vsel %vm12269_vm8, %v2290_v8, %v13138_v32  ;;  %v13161_v8 = vld [vmem:[#allocation8_spill] sm:$0xff]  ;;  %v13163_v32 = vld [vmem:[#allocation63_spill] sm:$0xff] }
 0x4c4   :  { %v1933_v36 = vpop.permute.xlu1 %1932  ;;  %v8385_v61 = vpop.permute.xlu2 %1936  ;;  %v2537_v35 = vsel %vm12266_vm11, %v2472_v29, %v1909_v54  ;;  %v13139_v29 = vld [vmem:[#allocation357_spill] sm:$0xff]  ;;  %v13174_v16 = vld [vmem:[#allocation140_spill] sm:$0xff] }
 0x4c5   :  { %5029 = vmatmul.msk.f32.gmra.mxu0 %vm12265_vm10, %v2537_v35  ;;  %v2549_v40 = vsel %vm12266_vm11, %v2484_v3, %v1933_v36  ;;  %v2303_v54 = vsel %vm12270_vm6, %v2238_v56, %v13139_v29  ;;  %v13140_v3 = vld [vmem:[#allocation263_spill] sm:$0xff]  ;;  %v2089_v56 = vsel %vm12298_vm3, %v13162_v13, %v13161_v8  ;;  %v13165_v29 = vld [vmem:[#allocation141_spill] sm:$0xff]  ;;  %v13175_v31 = vld [vmem:[#allocation448_spill] sm:$0xff] }
 0x4c6   :  { %5041 = vmatmul.msk.f32.gmra.mxu1 %vm12265_vm10, %v2549_v40  ;;  %v2420_v36 = vsel %vm12268_vm7, %v2355_v9, %v13140_v3  ;;  %v13141_v35 = vld [vmem:[#allocation115_spill] sm:$0xff]  ;;  %v2368_v48 = vsel %vm12269_vm8, %v2303_v54, %v13143_v11  ;;  %v13144_v40 = vld [vmem:[#allocation38_spill] sm:$0xff]  ;;  %v13164_v9 = vld [vmem:[#allocation205_spill] sm:$0xff]  ;;  %v2152_v54 = vsel %vm12273_vm5, %v2089_v56, %v13165_v29 }
 0x4c7   :  { %v2433_v25 = vsel %vm12268_vm7, %v2368_v48, %v13144_v40  ;;  %v13166_v3 = vld [vmem:[#allocation172_spill] sm:$0xff]  ;;  %v13169_v48 = vld [vmem:[#allocation345_spill] sm:$0xff]  ;;  %v13190_v56 = vld [vmem:[#allocation355_spill] sm:$0xff] }
 0x4c8   :  { %v13189_v8 = vld [vmem:[#allocation249_spill] sm:$0xff]  ;;  %v5211_v29 = vld [vmem:[%s12008_s0 + $0x1c8] sm:$0xff] }
 0x4c9   :  { %1763 = vrot.lane.b32.xlu0 %v5204_v57, %s5229_s25  ;;  %v2163_v57 = vsel %vm12273_vm5, %v2100_v0, %v13150_v2  ;;  %v13176_v0 = vld [vmem:[#allocation281_spill] sm:$0xff] }
 0x4ca   :  { %1946 = vrot.lane.b32.xlu1 %v13127_v27, %s5230_s26  ;;  %1787 = vrot.lane.b32.xlu2 %v5205_v52, %s5229_s25  ;;  %v2226_v62 = vsel %vm12271_vm4, %v2163_v57, %v13152_v59  ;;  %v13153_v27 = vld [vmem:[#allocation333_spill] sm:$0xff] }
 0x4cb   :  { %v1959_v47 = vpop.permute.xlu0 %1958  ;;  %v2279_v52 = vsel %vm12270_vm6, %v2214_v55, %v13153_v27  ;;  %v13177_v55 = vld [vmem:[#allocation87_spill] sm:$0xff]  ;;  %v13178_v59 = vld [vmem:[#allocation229_spill] sm:$0xff] }
 0x4cc   :  { %v1752_v50 = vpop.permute.xlu1 %1751  ;;  %v8431_v20 = vpop.permute.xlu2 %1962  ;;  %v2562_v34 = vsel %vm12266_vm11, %v2497_v7, %v1959_v47  ;;  %v13155_v7 = vld [vmem:[#allocation404_spill] sm:$0xff] }
 0x4cd   :  { %5030 = vmatmul.msk.f32.gmra.mxu0 %vm12265_vm10, %v2538_v21  ;;  %5054 = vmatmul.msk.f32.gmra.mxu2 %vm12265_vm10, %v2562_v34  ;;  %v2485_v4 = vsel %vm12267_vm9, %v2420_v36, %v1752_v50  ;;  %v2344_v47 = vsel %vm12269_vm8, %v2279_v52, %v13155_v7  ;;  %v13156_v50 = vld [vmem:[#allocation414_spill] sm:$0xff]  ;;  %v13157_v34 = vld [vmem:[#allocation383_spill] sm:$0xff] }
 0x4ce   :  { %v2409_v18 = vsel %vm12268_vm7, %v2344_v47, %v13158_v37  ;;  %v13181_v7 = vld [vmem:[#allocation379_spill] sm:$0xff] }
 0x4cf   :  { %v2474_v28 = vsel %vm12267_vm9, %v2409_v18, %v13160_v17  ;;  %v5210_v37 = vld [vmem:[%s12008_s0 + $0x168] sm:$0xff] }
 0x4d1   :  { %1811 = vrot.lane.b32.xlu0 %v5206_v38, %s5229_s25  ;;  %v2111_v38 = vsel %vm12298_vm3, %v13164_v9, %v13163_v32  ;;  %v13191_v9 = vld [vmem:[#allocation415_spill] sm:$0xff] }
 0x4d2   :  { %1972 = vrot.lane.b32.xlu1 %v13141_v35, %s5230_s26  ;;  %1996 = vrot.lane.b32.xlu2 %v13142_v14, %s5230_s26  ;;  %v2174_v36 = vsel %vm12273_vm5, %v2111_v38, %v13166_v3  ;;  %v13167_v35 = vld [vmem:[#allocation228_spill] sm:$0xff] }
 0x4d3   :  { %v1935_v33 = vpop.permute.xlu0 %1934  ;;  %v13168_v14 = vld [vmem:[#allocation268_spill] sm:$0xff] }
 0x4d4   :  { %v1776_v58 = vpop.permute.xlu1 %1775  ;;  %v1915_v6 = vpop.permute.xlu2 %1914  ;;  %v2550_v60 = vsel %vm12266_vm11, %v2485_v4, %v1935_v33  ;;  %v2239_v11 = vsel %vm12271_vm4, %v2174_v36, %v13168_v14  ;;  %v13170_v33 = vld [vmem:[#allocation367_spill] sm:$0xff]  ;;  %v13193_v36 = vld [vmem:[#allocation120_spill] sm:$0xff] }
 0x4d5   :  { %v2498_v22 = vsel %vm12267_vm9, %v2433_v25, %v1776_v58  ;;  %5042 = vmatmul.msk.f32.gmra.mxu1 %vm12265_vm10, %v2550_v60  ;;  %v2304_v40 = vsel %vm12270_vm6, %v2239_v11, %v13170_v33  ;;  %v5209_v25 = vld [vmem:[%s12008_s0 + $0x1c0] sm:$0xff]  ;;  %v13171_v58 = vld [vmem:[#allocation405_spill] sm:$0xff] }
 0x4d6   :  { %v2563_v41 = vsel %vm12266_vm11, %v2498_v22, %v8343_v26  ;;  %v2291_v26 = vsel %vm12270_vm6, %v2226_v62, %v13154_v53  ;;  %v13172_v22 = vld [vmem:[#allocation424_spill] sm:$0xff]  ;;  %v2123_v62 = vsel %vm12298_vm3, %v13178_v59, %v13177_v55  ;;  %v13195_v33 = vld [vmem:[#allocation65_spill] sm:$0xff]  ;;  %v13205_v59 = vld [vmem:[#allocation418_spill] sm:$0xff] }
 0x4d7   :  { %5055 = vmatmul.msk.f32.gmra.mxu2 %vm12265_vm10, %v2563_v41  ;;  %v2356_v21 = vsel %vm12269_vm8, %v2291_v26, %v13156_v50  ;;  %v2369_v24 = vsel %vm12269_vm8, %v2304_v40, %v13172_v22  ;;  %v13179_v53 = vld [vmem:[#allocation192_spill] sm:$0xff]  ;;  %v13196_v40 = vld [vmem:[#allocation207_spill] sm:$0xff] }
 0x4d8   :  { %v2421_v15 = vsel %vm12268_vm7, %v2356_v21, %v13159_v19  ;;  %v2434_v41 = vsel %vm12268_vm7, %v2369_v24, %v13176_v0  ;;  %v2186_v26 = vsel %vm12273_vm5, %v2123_v62, %v13179_v53  ;;  %v13182_v50 = vld [vmem:[#allocation436_spill] sm:$0xff]  ;;  %v13199_v24 = vld [vmem:[#allocation159_spill] sm:$0xff] }
 0x4d9   :  { %1765 = vrot.lane.b32.xlu0 %v5207_v42, %s5229_s25 }
 0x4da   :  { %1948 = vrot.lane.b32.xlu1 %v13157_v34, %s5230_s26  ;;  %1789 = vrot.lane.b32.xlu2 %v5208_v45, %s5229_s25  ;;  %v13185_v45 = vld [vmem:[#allocation13_spill] sm:$0xff] }
 0x4db   :  { %v1754_v63 = vpop.permute.xlu0 %1753 }
 0x4dc   :  { %v2486_v51 = vsel %vm12267_vm9, %v2421_v15, %v1754_v63  ;;  %v1913_v1 = vpop.permute.xlu1 %1912  ;;  %v8518_v10 = vpop.permute.xlu2 %1803 }
 0x4dd   :  { %v2539_v46 = vsel %vm12266_vm11, %v2474_v28, %v1913_v1  ;;  %v2551_v30 = vsel %vm12266_vm11, %v2486_v51, %v8385_v61  ;;  %v2215_v61 = vsel %vm12271_vm4, %v2152_v54, %v13167_v35  ;;  %v13186_v28 = vld [vmem:[#allocation23_spill] sm:$0xff]  ;;  %v13187_v51 = vld [vmem:[#allocation182_spill] sm:$0xff]  ;;  %v13194_v35 = vld [vmem:[#allocation144_spill] sm:$0xff] }
 0x4de   :  { %5031 = vmatmul.msk.f32.gmra.mxu0 %vm12265_vm10, %v2539_v46  ;;  %5043 = vmatmul.msk.f32.gmra.mxu1 %vm12265_vm10, %v2551_v30  ;;  %v2280_v4 = vsel %vm12270_vm6, %v2215_v61, %v13169_v48  ;;  %v2101_v1 = vsel %vm12298_vm3, %v13187_v51, %v13186_v28  ;;  %v13188_v46 = vld [vmem:[#allocation157_spill] sm:$0xff]  ;;  %v13192_v54 = vld [vmem:[#allocation454_spill] sm:$0xff]  ;;  %v13213_v51 = vld [vmem:[#allocation183_spill] sm:$0xff] }
 0x4df   :  { %v2345_v60 = vsel %vm12269_vm8, %v2280_v4, %v13171_v58  ;;  %v2164_v30 = vsel %vm12273_vm5, %v2101_v1, %v13188_v46  ;;  %v13197_v58 = vld [vmem:[#allocation89_spill] sm:$0xff]  ;;  %v13214_v46 = vld [vmem:[#allocation142_spill] sm:$0xff] }
 0x4e0   :  { %v2410_v23 = vsel %vm12268_vm7, %v2345_v60, %v13175_v31  ;;  %v2227_v13 = vsel %vm12271_vm4, %v2164_v30, %v13189_v8  ;;  %v13198_v60 = vld [vmem:[#allocation231_spill] sm:$0xff]  ;;  %v13212_v28 = vld [vmem:[#allocation45_spill] sm:$0xff]  ;;  %v13215_v30 = vld [vmem:[#allocation158_spill] sm:$0xff] }
 0x4e1   :  { %1813 = vrot.lane.b32.xlu0 %v5209_v25, %s5229_s25  ;;  %v2475_v43 = vsel %vm12267_vm9, %v2410_v23, %v8049_v49  ;;  %v13180_v49 = vld [vmem:[#allocation291_spill] sm:$0xff]  ;;  %v2292_v32 = vsel %vm12270_vm6, %v2227_v13, %v13190_v56  ;;  %v2112_v25 = vsel %vm12298_vm3, %v13196_v40, %v13195_v33  ;;  %v2124_v22 = vsel %vm12298_vm3, %v13198_v60, %v13197_v58  ;;  %v13201_v23 = vld [vmem:[#allocation289_spill] sm:$0xff]  ;;  %v13216_v13 = vld [vmem:[#allocation248_spill] sm:$0xff] }
 0x4e2   :  { %1974 = vrot.lane.b32.xlu1 %v13173_v5, %s5230_s26  ;;  %1998 = vrot.lane.b32.xlu2 %v13174_v16, %s5230_s26  ;;  %v2540_v27 = vsel %vm12266_vm11, %v2475_v43, %v1915_v6  ;;  %v2251_v42 = vsel %vm12271_vm4, %v2186_v26, %v13180_v49  ;;  %v13183_v6 = vmov 0.0   ;;  %v2357_v38 = vsel %vm12269_vm8, %v2292_v32, %v13191_v9  ;;  %v13200_v16 = vld [vmem:[#allocation176_spill] sm:$0xff]  ;;  %v13207_v26 = vld [vmem:[#allocation271_spill] sm:$0xff]  ;;  %v13217_v32 = vld [vmem:[#allocation266_spill] sm:$0xff] }
 0x4e3   :  { %v1778_v39 = vpop.permute.xlu0 %1777  ;;  %v2316_v47 = vsel %vm12270_vm6, %v2251_v42, %v13181_v7  ;;  %v2422_v3 = vsel %vm12268_vm7, %v2357_v38, %v13192_v54  ;;  %v2175_v5 = vsel %vm12273_vm5, %v2112_v25, %v13199_v24  ;;  %v2187_v31 = vsel %vm12273_vm5, %v2124_v22, %v13200_v16  ;;  %v13203_v43 = vld [vmem:[#allocation368_spill] sm:$0xff]  ;;  %v13208_v7 = vld [vmem:[#allocation121_spill] sm:$0xff]  ;;  %v13218_v38 = vld [vmem:[#allocation346_spill] sm:$0xff] }
 0x4e4   :  { %v2499_v2 = vsel %vm12267_vm9, %v2434_v41, %v1778_v39  ;;  %v1802_v57 = vpop.permute.xlu1 %1801  ;;  %v8562_v44 = vpop.permute.xlu2 %1757  ;;  %v2381_v21 = vsel %vm12269_vm8, %v2316_v47, %v13182_v50  ;;  %v2240_v0 = vsel %vm12271_vm4, %v2175_v5, %v13201_v23  ;;  %v13202_v41 = vld [vmem:[#allocation310_spill] sm:$0xff]  ;;  %v5213_v42 = vld [vmem:[%s12008_s0 + $0x1d0] sm:$0xff]  ;;  %v13209_v47 = vld [vmem:[#allocation287_spill] sm:$0xff]  ;;  %v2102_v1 = vsel %vm12298_vm3, %v13213_v51, %v13212_v28 }
 0x4e5   :  { %v2564_v52 = vsel %vm12266_vm11, %v2499_v2, %v8431_v20  ;;  %v13184_v20 = vld [vmem:[#allocation72_spill] sm:$0xff]  ;;  %v2252_v39 = vsel %vm12271_vm4, %v2187_v31, %v13202_v41  ;;  %v2305_v2 = vsel %vm12270_vm6, %v2240_v0, %v13203_v43  ;;  %v2165_v8 = vsel %vm12273_vm5, %v2102_v1, %v13215_v30  ;;  %v5214_v40 = vld [vmem:[%s12008_s0 + $0x178] sm:$0xff]  ;;  %v13225_v41 = vld [vmem:[#allocation46_spill] sm:$0xff] }
 0x4e6   :  { %5032 = vmatmul.msk.f32.gmra.mxu0 %vm12265_vm10, %v2540_v27  ;;  %5056 = vmatmul.msk.f32.gmra.mxu2 %vm12265_vm10, %v2564_v52  ;;  %v2446_v34 = vsel %vm12268_vm7, %v2381_v21, %v13184_v20  ;;  %v2370_v62 = vsel %vm12269_vm8, %v2305_v2, %v13205_v59  ;;  %v5212_v27 = vld [vmem:[%s12008_s0 + $0x170] sm:$0xff]  ;;  %v2228_v9 = vsel %vm12271_vm4, %v2165_v8, %v13217_v32  ;;  %v5215_v25 = vld [vmem:[%s12008_s0 + $0x1d8] sm:$0xff]  ;;  %v13227_v2 = vld [vmem:[#allocation70_spill] sm:$0xff] }
 0x4e7   :  { %v2511_v18 = vsel %vm12267_vm9, %v2446_v34, %v1802_v57  ;;  %v13204_v57 = vld [vmem:[#allocation380_spill] sm:$0xff]  ;;  %v2435_v49 = vsel %vm12268_vm7, %v2370_v62, %v13207_v26  ;;  %v13224_v58 = vld [vmem:[#allocation269_spill] sm:$0xff] }
 0x4e8   :  { %v2317_v55 = vsel %vm12270_vm6, %v2252_v39, %v13204_v57  ;;  %v13206_v52 = vld [vmem:[#allocation428_spill] sm:$0xff]  ;;  %v13226_v39 = vld [vmem:[#allocation206_spill] sm:$0xff]  ;;  %v13230_v59 = vld [vmem:[#allocation197_spill] sm:$0xff] }
 0x4e9   :  { %1767 = vrot.lane.b32.xlu0 %v13183_v6, %s5229_s25  ;;  %v2382_v53 = vsel %vm12269_vm8, %v2317_v55, %v13206_v52  ;;  %v13219_v54 = vld [vmem:[#allocation356_spill] sm:$0xff]  ;;  %v2113_v43 = vsel %vm12298_vm3, %v13226_v39, %v13225_v41  ;;  %v13228_v57 = vld [vmem:[#allocation230_spill] sm:$0xff] }
 0x4ea   :  { %5127 = vrot.lane.b32.xlu1 %v13185_v45, %s5230_s26  ;;  %1791 = vrot.lane.b32.xlu2 %v5210_v37, %s5229_s25  ;;  %v2447_v50 = vsel %vm12268_vm7, %v2382_v53, %v13209_v47  ;;  %v13232_v53 = vld [vmem:[#allocation311_spill] sm:$0xff] }
 0x4eb   :  { %v1987_v19 = vpop.permute.xlu0 %1986  ;;  %v2512_v20 = vsel %vm12267_vm9, %v2447_v50, %v8518_v10  ;;  %v13235_v50 = vld [vmem:[#allocation122_spill] sm:$0xff] }
 0x4ec   :  { %v1756_v15 = vpop.permute.xlu1 %1755  ;;  %v8591_v63 = vpop.permute.xlu2 %1781  ;;  %v2576_v17 = vsel %vm12266_vm11, %v2511_v18, %v1987_v19  ;;  %v13210_v18 = vld [vmem:[#allocation22_spill] sm:$0xff]  ;;  %v13211_v19 = vld [vmem:[#allocation165_spill] sm:$0xff] }
 0x4ed   :  { %5068 = vmatmul.msk.f32.vlgmr.msra.gmra.mxu3 %vm12265_vm10, %v2576_v17  ;;  %v2487_v61 = vsel %vm12267_vm9, %v2422_v3, %v1756_v15  ;;  %v2090_v15 = vsel %vm12298_vm3, %v13211_v19, %v13210_v18  ;;  %v2293_v3 = vsel %vm12270_vm6, %v2228_v9, %v13219_v54  ;;  %v5216_v18 = vld [vmem:[%s12008_s0 + $0x180] sm:$0xff]  ;;  %v13245_v54 = vld [vmem:[#allocation148_spill] sm:$0xff] }
 0x4ee   :  { %v2153_v10 = vsel %vm12273_vm5, %v2090_v15, %v13214_v46  ;;  %v13239_v19 = vld [vmem:[#allocation42_spill] sm:$0xff] }
 0x4ef   :  { %v2216_v56 = vsel %vm12271_vm4, %v2153_v10, %v13216_v13  ;;  %v13241_v13 = vld [vmem:[#allocation47_spill] sm:$0xff] }
 0x4f1   :  { %1815 = vrot.lane.b32.xlu0 %v5211_v29, %s5229_s25  ;;  %v2281_v29 = vsel %vm12270_vm6, %v2216_v56, %v13218_v38  ;;  %v13242_v56 = vld [vmem:[#allocation184_spill] sm:$0xff] }
 0x4f2   :  { %1976 = vrot.lane.b32.xlu1 %v13193_v36, %s5230_s26  ;;  %2000 = vrot.lane.b32.xlu2 %v13194_v35, %s5230_s26  ;;  %v13220_v36 = vld [vmem:[#allocation397_spill] sm:$0xff]  ;;  %v2103_v32 = vsel %vm12298_vm3, %v13242_v56, %v13241_v13  ;;  %v13243_v38 = vld [vmem:[#allocation24_spill] sm:$0xff] }
 0x4f3   :  { %v1939_v14 = vpop.permute.xlu0 %1938  ;;  %v2346_v35 = vsel %vm12269_vm8, %v2281_v29, %v13220_v36  ;;  %v13244_v29 = vld [vmem:[#allocation166_spill] sm:$0xff]  ;;  %v13246_v36 = vld [vmem:[#allocation125_spill] sm:$0xff] }
 0x4f4   :  { %v1780_v11 = vpop.permute.xlu1 %1779  ;;  %v8617_v48 = vpop.permute.xlu2 %1990  ;;  %v2552_v4 = vsel %vm12266_vm11, %v2487_v61, %v1939_v14  ;;  %v13221_v61 = vld [vmem:[#allocation145_spill] sm:$0xff] }
 0x4f5   :  { %5044 = vmatmul.msk.f32.gmra.mxu1 %vm12265_vm10, %v2552_v4  ;;  %v2500_v21 = vsel %vm12267_vm9, %v2435_v49, %v1780_v11  ;;  %v13222_v14 = vld [vmem:[#allocation409_spill] sm:$0xff]  ;;  %v13223_v4 = vld [vmem:[#allocation452_spill] sm:$0xff] }
 0x4f6   :  { %v2358_v11 = vsel %vm12269_vm8, %v2293_v3, %v13222_v14  ;;  %v2411_v33 = vsel %vm12268_vm7, %v2346_v35, %v13223_v4  ;;  %v13233_v49 = vld [vmem:[#allocation360_spill] sm:$0xff]  ;;  %v2166_v3 = vsel %vm12273_vm5, %v2103_v32, %v13245_v54  ;;  %v13271_v54 = vld [vmem:[#allocation438_spill] sm:$0xff] }
 0x4f7   :  { %v2423_v60 = vsel %vm12268_vm7, %v2358_v11, %v13224_v58  ;;  %v2476_v22 = vsel %vm12267_vm9, %v2411_v33, %v8051_v12  ;;  %v2125_v12 = vsel %vm12298_vm3, %v13228_v57, %v13227_v2  ;;  %v13248_v11 = vld [vmem:[#allocation25_spill] sm:$0xff]  ;;  %v13249_v33 = vld [vmem:[#allocation350_spill] sm:$0xff] }
 0x4f8   :  { %v2488_v5 = vsel %vm12267_vm9, %v2423_v60, %v8562_v44  ;;  %v13229_v44 = vld [vmem:[#allocation174_spill] sm:$0xff]  ;;  %v2188_v62 = vsel %vm12273_vm5, %v2125_v12, %v13230_v59  ;;  %v13251_v60 = vld [vmem:[#allocation416_spill] sm:$0xff] }
 0x4f9   :  { %1793 = vrot.lane.b32.xlu0 %v5212_v27, %s5229_s25  ;;  %v2176_v55 = vsel %vm12273_vm5, %v2113_v43, %v13229_v44  ;;  %v13231_v27 = vld [vmem:[#allocation290_spill] sm:$0xff]  ;;  %v2253_v26 = vsel %vm12271_vm4, %v2188_v62, %v13232_v53  ;;  %v13256_v43 = vld [vmem:[#allocation453_spill] sm:$0xff] }
 0x4fa   :  { %1817 = vrot.lane.b32.xlu1 %v5213_v42, %s5229_s25  ;;  %1978 = vrot.lane.b32.xlu2 %v13208_v7, %s5230_s26  ;;  %v2241_v52 = vsel %vm12271_vm4, %v2176_v55, %v13231_v27  ;;  %v13234_v7 = vld [vmem:[#allocation372_spill] sm:$0xff]  ;;  %v13257_v55 = vld [vmem:[#allocation55_spill] sm:$0xff]  ;;  %v13258_v62 = vld [vmem:[#allocation69_spill] sm:$0xff] }
 0x4fb   :  { %v1965_v6 = vpop.permute.xlu0 %1964  ;;  %v2306_v42 = vsel %vm12270_vm6, %v2241_v52, %v13233_v49  ;;  %v2318_v47 = vsel %vm12270_vm6, %v2253_v26, %v13234_v7  ;;  %v13259_v27 = vld [vmem:[#allocation211_spill] sm:$0xff]  ;;  %v13261_v7 = vld [vmem:[#allocation274_spill] sm:$0xff] }
 0x4fc   :  { %v1989_v34 = vpop.permute.xlu1 %1988  ;;  %v8660_v45 = vpop.permute.xlu2 %1942  ;;  %v2565_v37 = vsel %vm12266_vm11, %v2500_v21, %v1965_v6  ;;  %v13236_v21 = vld [vmem:[#allocation426_spill] sm:$0xff]  ;;  %v2114_v52 = vsel %vm12298_vm3, %v13259_v27, %v13258_v62  ;;  %v13260_v49 = vld [vmem:[#allocation175_spill] sm:$0xff]  ;;  %v13284_v62 = vld [vmem:[#allocation408_spill] sm:$0xff] }
 0x4fd   :  { %5057 = vmatmul.msk.f32.gmra.mxu2 %vm12265_vm10, %v2565_v37  ;;  %v2577_v17 = vsel %vm12266_vm11, %v2512_v20, %v1989_v34  ;;  %v2371_v6 = vsel %vm12269_vm8, %v2306_v42, %v13236_v21  ;;  %v13237_v20 = vld [vmem:[#allocation194_spill] sm:$0xff]  ;;  %v2177_v42 = vsel %vm12273_vm5, %v2114_v52, %v13260_v49  ;;  %v5221_v52 = vld [vmem:[%s12008_s0 + $0x1f8] sm:$0xff] }
 0x4fe   :  { %5069 = vmatmul.msk.f32.gmra.mxu3 %vm12265_vm10, %v2577_v17  ;;  %v2383_v34 = vsel %vm12269_vm8, %v2318_v47, %v13237_v20  ;;  %v13238_v37 = vld [vmem:[#allocation146_spill] sm:$0xff]  ;;  %v2436_v15 = vsel %vm12268_vm7, %v2371_v6, %v13239_v19  ;;  %v13240_v17 = vld [vmem:[#allocation49_spill] sm:$0xff]  ;;  %v2242_v47 = vsel %vm12271_vm4, %v2177_v42, %v13261_v7  ;;  %v5218_v6 = vld [vmem:[%s12008_s0 + $0x188] sm:$0xff] }
 0x4ff   :  { %v2448_v28 = vsel %vm12268_vm7, %v2383_v34, %v13240_v17  ;;  %v2501_v1 = vsel %vm12267_vm9, %v2436_v15, %v8591_v63  ;;  %v2091_v63 = vsel %vm12298_vm3, %v13244_v29, %v13243_v38  ;;  %v5219_v34 = vld [vmem:[%s12008_s0 + $0x1e8] sm:$0xff]  ;;  %v13270_v29 = vld [vmem:[#allocation384_spill] sm:$0xff]  ;;  %v13286_v49 = vld [vmem:[#allocation449_spill] sm:$0xff] }
 0x500   :  { %v2154_v35 = vsel %vm12273_vm5, %v2091_v63, %v13246_v36  ;;  %v13272_v36 = vld [vmem:[#allocation149_spill] sm:$0xff]  ;;  %v13287_v7 = vld [vmem:[#allocation412_spill] sm:$0xff] }
 0x501   :  { %2002 = vrot.lane.b32.xlu0 %v13221_v61, %s5230_s26  ;;  %v13247_v61 = vld [vmem:[#allocation267_spill] sm:$0xff]  ;;  %v2217_v4 = vsel %vm12271_vm4, %v2154_v35, %v13248_v11  ;;  %v13273_v35 = vld [vmem:[#allocation73_spill] sm:$0xff] }
 0x502   :  { %1795 = vrot.lane.b32.xlu1 %v5214_v40, %s5229_s25  ;;  %1819 = vrot.lane.b32.xlu2 %v5215_v25, %s5229_s25  ;;  %v2229_v14 = vsel %vm12271_vm4, %v2166_v3, %v13247_v61  ;;  %v5217_v40 = vld [vmem:[%s12008_s0 + $0x1e0] sm:$0xff]  ;;  %v13250_v25 = vld [vmem:[#allocation336_spill] sm:$0xff] }
 0x503   :  { %v1917_v24 = vpop.permute.xlu0 %1916  ;;  %v2282_v58 = vsel %vm12270_vm6, %v2217_v4, %v13250_v25  ;;  %v13276_v25 = vld [vmem:[#allocation170_spill] sm:$0xff] }
 0x504   :  { %v1941_v16 = vpop.permute.xlu1 %1940  ;;  %v8706_v31 = vpop.permute.xlu2 %1968  ;;  %v2541_v23 = vsel %vm12266_vm11, %v2476_v22, %v1917_v24  ;;  %v13252_v24 = vld [vmem:[#allocation126_spill] sm:$0xff] }
 0x505   :  { %5033 = vmatmul.msk.f32.gmra.mxu0 %vm12265_vm10, %v2541_v23  ;;  %v2553_v0 = vsel %vm12266_vm11, %v2488_v5, %v1941_v16  ;;  %v13253_v5 = vld [vmem:[#allocation3_spill] sm:$0xff] }
 0x506   :  { %5045 = vmatmul.msk.f32.gmra.mxu1 %vm12265_vm10, %v2553_v0  ;;  %v13254_v16 = vld [vmem:[#allocation407_spill] sm:$0xff]  ;;  %v13255_v0 = vld [vmem:[#allocation270_spill] sm:$0xff] }
 0x507   :  { %v2347_v23 = vsel %vm12269_vm8, %v2282_v58, %v13254_v16 }
 0x508   :  { %v2412_v2 = vsel %vm12268_vm7, %v2347_v23, %v13256_v43  ;;  %v13280_v23 = vld [vmem:[#allocation234_spill] sm:$0xff] }
 0x509   :  { %1980 = vrot.lane.b32.xlu0 %v13235_v50, %s5230_s26  ;;  %v2477_v59 = vsel %vm12267_vm9, %v2412_v2, %v13257_v55  ;;  %v13262_v50 = vld [vmem:[#allocation370_spill] sm:$0xff]  ;;  %v13282_v2 = vld [vmem:[#allocation348_spill] sm:$0xff]  ;;  %v13283_v55 = vld [vmem:[#allocation253_spill] sm:$0xff] }
 0x50a   :  { %2004 = vrot.lane.b32.xlu1 %v13238_v37, %s5230_s26  ;;  %1797 = vrot.lane.b32.xlu2 %v5216_v18, %s5229_s25  ;;  %v2307_v21 = vsel %vm12270_vm6, %v2242_v47, %v13262_v50  ;;  %v13264_v37 = vld [vmem:[#allocation127_spill] sm:$0xff]  ;;  %v13288_v47 = vld [vmem:[#allocation417_spill] sm:$0xff] }
 0x50b   :  { %v1806_v51 = vpop.permute.xlu0 %1805  ;;  %v13265_v18 = vld [vmem:[#allocation283_spill] sm:$0xff] }
 0x50c   :  { %v2513_v46 = vsel %vm12267_vm9, %v2448_v28, %v1806_v51  ;;  %v1967_v10 = vpop.permute.xlu1 %1966  ;;  %v8749_v30 = vpop.permute.xlu2 %1761  ;;  %v13266_v51 = vld [vmem:[#allocation93_spill] sm:$0xff] }
 0x50d   :  { %v2566_v8 = vsel %vm12266_vm11, %v2501_v1, %v1967_v10  ;;  %v2578_v9 = vsel %vm12266_vm11, %v2513_v46, %v8617_v48  ;;  %v2294_v48 = vsel %vm12270_vm6, %v2229_v14, %v13249_v33  ;;  %v13267_v1 = vld [vmem:[#allocation235_spill] sm:$0xff]  ;;  %v8827_v10 = vpop.f32.mrf.mxu0 }
 0x50e   :  { %5058 = vmatmul.msk.f32.gmra.mxu2 %vm12265_vm10, %v2566_v8  ;;  %5070 = vmatmul.msk.f32.gmra.mxu3 %vm12265_vm10, %v2578_v9  ;;  %v2359_v22 = vsel %vm12269_vm8, %v2294_v48, %v13251_v60  ;;  %v2126_v46 = vsel %vm12298_vm3, %v13267_v1, %v13266_v51  ;;  %v13268_v8 = vld [vmem:[#allocation198_spill] sm:$0xff]  ;;  %v13269_v9 = vld [vmem:[#allocation297_spill] sm:$0xff]  ;;  %v13274_v14 = vld [vmem:[#allocation411_spill] sm:$0xff] }
 0x50f   :  { %v2424_v41 = vsel %vm12268_vm7, %v2359_v22, %v13255_v0  ;;  %v2189_v13 = vsel %vm12273_vm5, %v2126_v46, %v13268_v8  ;;  %v13277_v60 = vld [vmem:[#allocation26_spill] sm:$0xff]  ;;  %v13293_v51 = vld [vmem:[#allocation237_spill] sm:$0xff]  ;;  %v13294_v8 = vld [vmem:[#allocation163_spill] sm:$0xff] }
 0x510   :  { %v2254_v38 = vsel %vm12271_vm4, %v2189_v13, %v13269_v9 }
 0x511   :  { %1821 = vrot.lane.b32.xlu0 %v5217_v40, %s5229_s25  ;;  %v2319_v63 = vsel %vm12270_vm6, %v2254_v38, %v13270_v29  ;;  %v13275_v40 = vld [vmem:[#allocation11_spill] sm:$0xff]  ;;  %v13297_v29 = vld [vmem:[#allocation313_spill] sm:$0xff] }
 0x512   :  { %1982 = vrot.lane.b32.xlu1 %v13252_v24, %s5230_s26  ;;  %2006 = vrot.lane.b32.xlu2 %v13253_v5, %s5230_s26  ;;  %v2384_v3 = vsel %vm12269_vm8, %v2319_v63, %v13271_v54  ;;  %v2092_v58 = vsel %vm12298_vm3, %v13276_v25, %v13275_v40  ;;  %v13278_v24 = vld [vmem:[#allocation29_spill] sm:$0xff]  ;;  %v13279_v5 = vld [vmem:[#allocation188_spill] sm:$0xff]  ;;  %v13298_v54 = vld [vmem:[#allocation371_spill] sm:$0xff] }
 0x513   :  { %v1760_v39 = vpop.permute.xlu0 %1759  ;;  %v2449_v61 = vsel %vm12268_vm7, %v2384_v3, %v13273_v35  ;;  %v2155_v22 = vsel %vm12273_vm5, %v2092_v58, %v13277_v60  ;;  %v2104_v16 = vsel %vm12298_vm3, %v13279_v5, %v13278_v24  ;;  %v13303_v25 = vld [vmem:[#allocation292_spill] sm:$0xff] }
 0x514   :  { %v2489_v57 = vsel %vm12267_vm9, %v2424_v41, %v1760_v39  ;;  %v1919_v12 = vpop.permute.xlu1 %1918  ;;  %v8791_v44 = vpop.permute.xlu2 %1785  ;;  %v2218_v0 = vsel %vm12271_vm4, %v2155_v22, %v13280_v23  ;;  %v13281_v39 = vld [vmem:[#allocation161_spill] sm:$0xff]  ;;  %v13304_v23 = vld [vmem:[#allocation51_spill] sm:$0xff] }
 0x515   :  { %v2542_v53 = vsel %vm12266_vm11, %v2477_v59, %v1919_v12  ;;  %v2554_v26 = vsel %vm12266_vm11, %v2489_v57, %v8660_v45  ;;  %v13263_v45 = vld [vmem:[#allocation427_spill] sm:$0xff]  ;;  %v8865_v41 = vpop.f32.mrf.mxu0  ;;  %v2167_v43 = vsel %vm12273_vm5, %v2104_v16, %v13281_v39  ;;  %v2283_v57 = vsel %vm12270_vm6, %v2218_v0, %v13282_v2  ;;  %v13305_v0 = vld [vmem:[#allocation189_spill] sm:$0xff]  ;;  %v13306_v2 = vld [vmem:[#allocation162_spill] sm:$0xff] }
 0x516   :  { %5034 = vmatmul.msk.f32.gmra.mxu0 %vm12265_vm10, %v2542_v53  ;;  %5046 = vmatmul.msk.f32.gmra.mxu1 %vm12265_vm10, %v2554_v26  ;;  %v2372_v20 = vsel %vm12269_vm8, %v2307_v21, %v13263_v45  ;;  %v2230_v59 = vsel %vm12271_vm4, %v2167_v43, %v13283_v55  ;;  %v2348_v27 = vsel %vm12269_vm8, %v2283_v57, %v13284_v62  ;;  %v13285_v53 = vld [vmem:[#allocation358_spill] sm:$0xff] }
 0x517   :  { %v2437_v19 = vsel %vm12268_vm7, %v2372_v20, %v13265_v18  ;;  %v2295_v26 = vsel %vm12270_vm6, %v2230_v59, %v13285_v53  ;;  %v2413_v42 = vsel %vm12268_vm7, %v2348_v27, %v13286_v49  ;;  %v13289_v45 = vld [vmem:[#allocation254_spill] sm:$0xff]  ;;  %v2105_v39 = vsel %vm12298_vm3, %v13305_v0, %v13304_v23  ;;  %v13308_v59 = vld [vmem:[#allocation359_spill] sm:$0xff]  ;;  %v13329_v0 = vld [vmem:[#allocation353_spill] sm:$0xff] }
 0x518   :  { %v2360_v50 = vsel %vm12269_vm8, %v2295_v26, %v13288_v47  ;;  %v2168_v57 = vsel %vm12273_vm5, %v2105_v39, %v13306_v2  ;;  %v13309_v27 = vld [vmem:[#allocation410_spill] sm:$0xff]  ;;  %v13310_v53 = vld [vmem:[#allocation275_spill] sm:$0xff]  ;;  %v13331_v2 = vld [vmem:[#allocation276_spill] sm:$0xff] }
 0x519   :  { %1799 = vrot.lane.b32.xlu0 %v5218_v6, %s5229_s25  ;;  %v2425_v20 = vsel %vm12268_vm7, %v2360_v50, %v13289_v45 }
 0x51a   :  { %1823 = vrot.lane.b32.xlu1 %v5219_v34, %s5229_s25  ;;  %1984 = vrot.lane.b32.xlu2 %v13264_v37, %s5230_s26  ;;  %v2490_v18 = vsel %vm12267_vm9, %v2425_v20, %v8749_v30  ;;  %v13296_v30 = vld [vmem:[#allocation295_spill] sm:$0xff]  ;;  %v13313_v20 = vld [vmem:[#allocation76_spill] sm:$0xff] }
 0x51b   :  { %v1784_v15 = vpop.permute.xlu0 %1783 }
 0x51c   :  { %v2502_v17 = vsel %vm12267_vm9, %v2437_v19, %v1784_v15  ;;  %v1808_v28 = vpop.permute.xlu1 %1807  ;;  %v8831_v56 = vpop.permute.xlu2 %1994  ;;  %v13290_v19 = vld [vmem:[#allocation71_spill] sm:$0xff]  ;;  %v13291_v15 = vld [vmem:[#allocation213_spill] sm:$0xff] }
 0x51d   :  { %v2567_v32 = vsel %vm12266_vm11, %v2502_v17, %v8706_v31  ;;  %v5220_v31 = vld [vmem:[%s12008_s0 + $0x1f0] sm:$0xff]  ;;  %v2514_v11 = vsel %vm12267_vm9, %v2449_v61, %v1808_v28  ;;  %v2115_v17 = vsel %vm12298_vm3, %v13291_v15, %v13290_v19  ;;  %v13292_v28 = vld [vmem:[#allocation95_spill] sm:$0xff]  ;;  %v8916_v61 = vpop.f32.mrf.mxu0  ;;  %v13316_v15 = vld [vmem:[#allocation202_spill] sm:$0xff] }
 0x51e   :  { %5059 = vmatmul.msk.f32.gmra.mxu2 %vm12265_vm10, %v2567_v32  ;;  %v2127_v1 = vsel %vm12298_vm3, %v13293_v51, %v13292_v28  ;;  %v2178_v13 = vsel %vm12273_vm5, %v2115_v17, %v13294_v8  ;;  %v13295_v32 = vld [vmem:[#allocation181_spill] sm:$0xff]  ;;  %v13317_v28 = vld [vmem:[#allocation296_spill] sm:$0xff]  ;;  %v13319_v8 = vld [vmem:[#allocation363_spill] sm:$0xff] }
 0x51f   :  { %v2190_v9 = vsel %vm12273_vm5, %v2127_v1, %v13295_v32  ;;  %v2243_v38 = vsel %vm12271_vm4, %v2178_v13, %v13296_v30  ;;  %v13318_v1 = vld [vmem:[#allocation314_spill] sm:$0xff]  ;;  %v13320_v32 = vld [vmem:[#allocation375_spill] sm:$0xff]  ;;  %v13321_v30 = vld [vmem:[#allocation429_spill] sm:$0xff] }
 0x520   :  { %v2255_v63 = vsel %vm12271_vm4, %v2190_v9, %v13297_v29  ;;  %v2308_v3 = vsel %vm12270_vm6, %v2243_v38, %v13298_v54  ;;  %v13322_v29 = vld [vmem:[#allocation440_spill] sm:$0xff]  ;;  %v13323_v54 = vld [vmem:[#allocation43_spill] sm:$0xff] }
 0x521   :  { %2008 = vrot.lane.b32.xlu0 %v13272_v36, %s5230_s26  ;;  %v13299_v36 = vld [vmem:[#allocation385_spill] sm:$0xff] }
 0x522   :  { %1825 = vrot.lane.b32.xlu1 %v5220_v31, %s5229_s25  ;;  %2010 = vrot.lane.b32.xlu2 %v13274_v14, %s5230_s26  ;;  %v2320_v35 = vsel %vm12270_vm6, %v2255_v63, %v13299_v36  ;;  %v13300_v31 = vld [vmem:[#allocation421_spill] sm:$0xff]  ;;  %v13324_v36 = vld [vmem:[#allocation50_spill] sm:$0xff] }
 0x523   :  { %v1993_v4 = vpop.permute.xlu0 %1992  ;;  %v2373_v14 = vsel %vm12269_vm8, %v2308_v3, %v13300_v31 }
 0x524   :  { %v1738_v33 = vpop.permute.xlu1 %1737  ;;  %v2579_v48 = vsel %vm12266_vm11, %v2514_v11, %v1993_v4  ;;  %v8871_v12 = vpop.permute.xlu2 %1787  ;;  %v13301_v11 = vld [vmem:[#allocation431_spill] sm:$0xff] }
 0x525   :  { %5071 = vmatmul.msk.f32.gmra.mxu3 %vm12265_vm10, %v2579_v48  ;;  %v2478_v21 = vsel %vm12267_vm9, %v2413_v42, %v1738_v33  ;;  %v2385_v4 = vsel %vm12269_vm8, %v2320_v35, %v13301_v11  ;;  %v13302_v48 = vld [vmem:[#allocation37_spill] sm:$0xff]  ;;  %v8947_v49 = vpop.f32.mrf.mxu0 }
 0x526   :  { %v2438_v40 = vsel %vm12268_vm7, %v2373_v14, %v13302_v48  ;;  %v2450_v58 = vsel %vm12268_vm7, %v2385_v4, %v13303_v25 }
 0x527   :  { %v2503_v22 = vsel %vm12267_vm9, %v2438_v40, %v8791_v44  ;;  %v13307_v44 = vld [vmem:[#allocation272_spill] sm:$0xff] }
 0x528   :  { %v2231_v55 = vsel %vm12271_vm4, %v2168_v57, %v13307_v44 }
 0x529   :  { %1827 = vrot.lane.b32.xlu0 %v5221_v52, %s5229_s25  ;;  %v2296_v62 = vsel %vm12270_vm6, %v2231_v55, %v13308_v59 }
 0x52a   :  { %2012 = vrot.lane.b32.xlu1 %v13287_v7, %s5230_s26  ;;  %v2361_v52 = vsel %vm12269_vm8, %v2296_v62, %v13309_v27  ;;  %v13332_v27 = vld [vmem:[#allocation75_spill] sm:$0xff] }
 0x52b   :  { %v1921_v6 = vpop.permute.xlu0 %1920  ;;  %v2426_v26 = vsel %vm12268_vm7, %v2361_v52, %v13310_v53  ;;  %v13333_v52 = vld [vmem:[#allocation217_spill] sm:$0xff] }
 0x52c   :  { %v1945_v34 = vpop.permute.xlu1 %1944  ;;  %v2543_v37 = vsel %vm12266_vm11, %v2478_v21, %v1921_v6  ;;  %v1997_v33 = vpop.permute.xlu2 %1996  ;;  %v13311_v21 = vld [vmem:[#allocation52_spill] sm:$0xff]  ;;  %v2117_v53 = vsel %vm12298_vm3, %v13333_v52, %v13332_v27  ;;  %v13360_v52 = vld [vmem:[#allocation258_spill] sm:$0xff] }
 0x52d   :  { %5035 = vmatmul.msk.f32.gmra.mxu0 %vm12265_vm10, %v2543_v37  ;;  %v2555_v46 = vsel %vm12266_vm11, %v2490_v18, %v1945_v34  ;;  %v13312_v6 = vld [vmem:[#allocation212_spill] sm:$0xff]  ;;  %v13315_v18 = vld [vmem:[#allocation179_spill] sm:$0xff]  ;;  %v8981_v48 = vpop.f32.mrf.mxu0 }
 0x52e   :  { %5047 = vmatmul.msk.f32.gmra.mxu1 %vm12265_vm10, %v2555_v46  ;;  %v2116_v45 = vsel %vm12298_vm3, %v13312_v6, %v13311_v21  ;;  %v13314_v34 = vld [vmem:[#allocation236_spill] sm:$0xff]  ;;  %v13337_v21 = vld [vmem:[#allocation203_spill] sm:$0xff] }
 0x52f   :  { %v2128_v37 = vsel %vm12298_vm3, %v13314_v34, %v13313_v20  ;;  %v2179_v19 = vsel %vm12273_vm5, %v2116_v45, %v13315_v18  ;;  %v13338_v20 = vld [vmem:[#allocation280_spill] sm:$0xff] }
 0x530   :  { %v2191_v17 = vsel %vm12273_vm5, %v2128_v37, %v13316_v15  ;;  %v2244_v51 = vsel %vm12271_vm4, %v2179_v19, %v13317_v28  ;;  %v13339_v37 = vld [vmem:[#allocation303_spill] sm:$0xff]  ;;  %v13340_v15 = vld [vmem:[#allocation373_spill] sm:$0xff]  ;;  %v13341_v28 = vld [vmem:[#allocation92_spill] sm:$0xff] }
 0x531   :  { %v2256_v46 = vsel %vm12271_vm4, %v2191_v17, %v13318_v1  ;;  %v2309_v13 = vsel %vm12270_vm6, %v2244_v51, %v13319_v8  ;;  %v13342_v1 = vld [vmem:[#allocation430_spill] sm:$0xff]  ;;  %v13343_v8 = vld [vmem:[#allocation441_spill] sm:$0xff] }
 0x532   :  { %v2321_v9 = vsel %vm12270_vm6, %v2256_v46, %v13320_v32  ;;  %v2374_v38 = vsel %vm12269_vm8, %v2309_v13, %v13321_v30  ;;  %v13344_v32 = vld [vmem:[#allocation288_spill] sm:$0xff]  ;;  %v13345_v30 = vld [vmem:[#allocation74_spill] sm:$0xff] }
 0x533   :  { %v1810_v60 = vpop.permute.xlu0 %1809  ;;  %v2386_v63 = vsel %vm12269_vm8, %v2321_v9, %v13322_v29  ;;  %v2439_v3 = vsel %vm12268_vm7, %v2374_v38, %v13323_v54 }
 0x534   :  { %v2515_v24 = vsel %vm12267_vm9, %v2450_v58, %v1810_v60  ;;  %v1971_v5 = vpop.permute.xlu1 %1970  ;;  %v1790_v42 = vpop.permute.xlu2 %1789  ;;  %v2451_v35 = vsel %vm12268_vm7, %v2386_v63, %v13324_v36  ;;  %v2504_v14 = vsel %vm12267_vm9, %v2439_v3, %v8871_v12  ;;  %v13325_v58 = vld [vmem:[#allocation53_spill] sm:$0xff]  ;;  %v13326_v60 = vld [vmem:[#allocation190_spill] sm:$0xff] }
 0x535   :  { %v2568_v16 = vsel %vm12266_vm11, %v2503_v22, %v1971_v5  ;;  %v2580_v43 = vsel %vm12266_vm11, %v2515_v24, %v8831_v56  ;;  %v2106_v22 = vsel %vm12298_vm3, %v13326_v60, %v13325_v58  ;;  %v13327_v5 = vld [vmem:[#allocation152_spill] sm:$0xff]  ;;  %v9013_v45 = vpop.f32.mrf.mxu0 }
 0x536   :  { %5060 = vmatmul.msk.f32.gmra.mxu2 %vm12265_vm10, %v2568_v16  ;;  %5072 = vmatmul.msk.f32.gmra.mxu3 %vm12265_vm10, %v2580_v43  ;;  %v2169_v12 = vsel %vm12273_vm5, %v2106_v22, %v13327_v5  ;;  %v13328_v16 = vld [vmem:[#allocation273_spill] sm:$0xff]  ;;  %v13330_v43 = vld [vmem:[#allocation419_spill] sm:$0xff]  ;;  %v13351_v22 = vld [vmem:[#allocation34_spill] sm:$0xff] }
 0x537   :  { %v2232_v23 = vsel %vm12271_vm4, %v2169_v12, %v13328_v16  ;;  %v13352_v5 = vld [vmem:[#allocation195_spill] sm:$0xff]  ;;  %v13353_v16 = vld [vmem:[#allocation386_spill] sm:$0xff] }
 0x538   :  { %v2297_v39 = vsel %vm12270_vm6, %v2232_v23, %v13329_v0  ;;  %v2107_v12 = vsel %vm12298_vm3, %v13352_v5, %v13351_v22  ;;  %v13375_v22 = vld [vmem:[#allocation374_spill] sm:$0xff] }
 0x53b   :  { %v1764_v56 = vpop.permute.xlu0 %1763 }
 0x53c   :  { %v2491_v7 = vsel %vm12267_vm9, %v2426_v26, %v1764_v56  ;;  %v1947_v47 = vpop.permute.xlu1 %1946  ;;  %v1999_v24 = vpop.permute.xlu2 %1998  ;;  %v13334_v26 = vld [vmem:[#allocation99_spill] sm:$0xff]  ;;  %v13335_v56 = vld [vmem:[#allocation17_spill] sm:$0xff] }
 0x53d   :  { %v2556_v50 = vsel %vm12266_vm11, %v2491_v7, %v1947_v47  ;;  %v2129_v7 = vsel %vm12298_vm3, %v13335_v56, %v13334_v26  ;;  %v13336_v47 = vld [vmem:[#allocation180_spill] sm:$0xff]  ;;  %v9052_v0 = vpop.f32.mrf.mxu0 }
 0x53e   :  { %5048 = vmatmul.msk.f32.gmra.mxu1 %vm12265_vm10, %v2556_v50  ;;  %v2180_v50 = vsel %vm12273_vm5, %v2117_v53, %v13336_v47  ;;  %v2192_v6 = vsel %vm12273_vm5, %v2129_v7, %v13337_v21  ;;  %v13361_v7 = vld [vmem:[#allocation221_spill] sm:$0xff] }
 0x53f   :  { %v2245_v34 = vsel %vm12271_vm4, %v2180_v50, %v13338_v20  ;;  %v2257_v18 = vsel %vm12271_vm4, %v2192_v6, %v13339_v37  ;;  %v13362_v50 = vld [vmem:[#allocation361_spill] sm:$0xff]  ;;  %v13363_v37 = vld [vmem:[#allocation100_spill] sm:$0xff] }
 0x540   :  { %v2310_v17 = vsel %vm12270_vm6, %v2245_v34, %v13340_v15  ;;  %v2322_v51 = vsel %vm12270_vm6, %v2257_v18, %v13341_v28  ;;  %v13364_v18 = vld [vmem:[#allocation242_spill] sm:$0xff] }
 0x541   :  { %v2375_v46 = vsel %vm12269_vm8, %v2310_v17, %v13342_v1  ;;  %v2387_v13 = vsel %vm12269_vm8, %v2322_v51, %v13343_v8  ;;  %v2130_v15 = vsel %vm12298_vm3, %v13364_v18, %v13363_v37  ;;  %v13365_v17 = vld [vmem:[#allocation169_spill] sm:$0xff]  ;;  %v13366_v51 = vld [vmem:[#allocation315_spill] sm:$0xff] }
 0x542   :  { %v2440_v9 = vsel %vm12268_vm7, %v2375_v46, %v13344_v32  ;;  %v2452_v38 = vsel %vm12268_vm7, %v2387_v13, %v13345_v30  ;;  %v13367_v46 = vld [vmem:[#allocation420_spill] sm:$0xff] }
 0x543   :  { %v1812_v31 = vpop.permute.xlu0 %1811  ;;  %v2505_v63 = vsel %vm12267_vm9, %v2440_v9, %v1790_v42  ;;  %v13350_v42 = vld [vmem:[#allocation329_spill] sm:$0xff]  ;;  %v13368_v13 = vld [vmem:[#allocation392_spill] sm:$0xff] }
 0x544   :  { %v2516_v11 = vsel %vm12267_vm9, %v2451_v35, %v1812_v31  ;;  %v1973_v4 = vpop.permute.xlu1 %1972  ;;  %v9019_v19 = vpop.permute.xlu2 %1791  ;;  %v13346_v35 = vld [vmem:[#allocation94_spill] sm:$0xff] }
 0x545   :  { %v2569_v40 = vsel %vm12266_vm11, %v2504_v14, %v1973_v4  ;;  %v2581_v25 = vsel %vm12266_vm11, %v2516_v11, %v1997_v33  ;;  %v2362_v33 = vsel %vm12269_vm8, %v2297_v39, %v13330_v43  ;;  %v13347_v31 = vld [vmem:[#allocation250_spill] sm:$0xff]  ;;  %v13348_v4 = vld [vmem:[#allocation220_spill] sm:$0xff] }
 0x546   :  { %5061 = vmatmul.msk.f32.gmra.mxu2 %vm12265_vm10, %v2569_v40  ;;  %5073 = vmatmul.msk.f32.gmra.mxu3 %vm12265_vm10, %v2581_v25  ;;  %v2427_v57 = vsel %vm12268_vm7, %v2362_v33, %v13331_v2  ;;  %v2137_v14 = vsel %vm12298_vm3, %v13347_v31, %v13346_v35  ;;  %v13349_v25 = vld [vmem:[#allocation259_spill] sm:$0xff]  ;;  %v13355_v43 = vld [vmem:[#allocation446_spill] sm:$0xff] }
 0x547   :  { %v2200_v40 = vsel %vm12273_vm5, %v2137_v14, %v13348_v4  ;;  %v5124_v58 = vunpack.i.l.bf16 %v13349_v25  ;;  %v5125_v6 = vunpack.i.h.bf16 %v13349_v25  ;;  %v13372_v14 = vld [vmem:[#allocation318_spill] sm:$0xff] }
 0x548   :  { %v2265_v60 = vsel %vm12271_vm4, %v2200_v40, %v13350_v42  ;;  %v13374_v42 = vld [vmem:[#allocation196_spill] sm:$0xff] }
 0x549   :  { %v2330_v23 = vsel %vm12270_vm6, %v2265_v60, %v13353_v16 }
 0x54a   :  { %v2395_v33 = vsel %vm12269_vm8, %v2330_v23, %v13355_v43  ;;  %v13378_v43 = vld [vmem:[#allocation422_spill] sm:$0xff] }
 0x54b   :  { %v1766_v44 = vpop.permute.xlu0 %1765  ;;  %v2460_v56 = vsel %vm12268_vm7, %v2395_v33, %v5124_v58 }
 0x54c   :  { %v2492_v55 = vsel %vm12267_vm9, %v2427_v57, %v1766_v44  ;;  %v1949_v59 = vpop.permute.xlu1 %1948  ;;  %v2001_v2 = vpop.permute.xlu2 %2000  ;;  %v13356_v57 = vld [vmem:[#allocation77_spill] sm:$0xff]  ;;  %v13357_v44 = vld [vmem:[#allocation219_spill] sm:$0xff] }
 0x54d   :  { %v2557_v62 = vsel %vm12266_vm11, %v2492_v55, %v1949_v59  ;;  %v2118_v55 = vsel %vm12298_vm3, %v13357_v44, %v13356_v57  ;;  %v13358_v59 = vld [vmem:[#allocation117_spill] sm:$0xff]  ;;  %v13379_v57 = vld [vmem:[#allocation434_spill] sm:$0xff] }
 0x54e   :  { %5049 = vmatmul.msk.f32.gmra.mxu1 %vm12265_vm10, %v2557_v62  ;;  %v13359_v62 = vld [vmem:[#allocation255_spill] sm:$0xff]  ;;  %v2181_v28 = vsel %vm12273_vm5, %v2118_v55, %v13365_v17  ;;  %v9114_v55 = vpop.f32.mrf.mxu1  ;;  %v13384_v17 = vld [vmem:[#allocation413_spill] sm:$0xff] }
 0x54f   :  { %v2138_v27 = vsel %vm12298_vm3, %v13359_v62, %v13358_v59  ;;  %v13380_v62 = vld [vmem:[#allocation278_spill] sm:$0xff] }
 0x550   :  { %v2201_v47 = vsel %vm12273_vm5, %v2138_v27, %v13361_v7 }
 0x551   :  { %v2266_v1 = vsel %vm12271_vm4, %v2201_v47, %v13366_v51  ;;  %v9125_v47 = vpop.f32.mrf.mxu0 }
 0x552   :  { %v2331_v32 = vsel %vm12270_vm6, %v2266_v1, %v13368_v13 }
 0x553   :  { %v1814_v29 = vpop.permute.xlu0 %1813 }
 0x554   :  { %v2517_v54 = vsel %vm12267_vm9, %v2452_v38, %v1814_v29  ;;  %v1975_v3 = vpop.permute.xlu1 %1974  ;;  %v13369_v29 = vld [vmem:[#allocation187_spill] sm:$0xff]  ;;  %v1979_v37 = vpop.permute.xlu2 %1978 }
 0x555   :  { %v2570_v36 = vsel %vm12266_vm11, %v2505_v63, %v1975_v3  ;;  %v2582_v11 = vsel %vm12266_vm11, %v2517_v54, %v1999_v24  ;;  %v13354_v24 = vld [vmem:[#allocation167_spill] sm:$0xff]  ;;  %v2193_v63 = vsel %vm12273_vm5, %v2130_v15, %v13369_v29  ;;  %v13370_v54 = vld [vmem:[#allocation301_spill] sm:$0xff]  ;;  %v13388_v29 = vld [vmem:[#allocation302_spill] sm:$0xff] }
 0x556   :  { %5062 = vmatmul.msk.f32.gmra.mxu2 %vm12265_vm10, %v2570_v36  ;;  %5074 = vmatmul.msk.f32.gmra.mxu3 %vm12265_vm10, %v2582_v11  ;;  %v2170_v39 = vsel %vm12273_vm5, %v2107_v12, %v13354_v24  ;;  %v2246_v3 = vsel %vm12271_vm4, %v2181_v28, %v13370_v54  ;;  %v13371_v36 = vld [vmem:[#allocation447_spill] sm:$0xff]  ;;  %v2258_v11 = vsel %vm12271_vm4, %v2193_v63, %v13372_v14  ;;  %v13376_v12 = vld [vmem:[#allocation96_spill] sm:$0xff]  ;;  %v13389_v54 = vld [vmem:[#allocation366_spill] sm:$0xff] }
 0x557   :  { %v2233_v53 = vsel %vm12271_vm4, %v2170_v39, %v13360_v52  ;;  %v2396_v35 = vsel %vm12269_vm8, %v2331_v32, %v13371_v36  ;;  %v2311_v5 = vsel %vm12270_vm6, %v2246_v3, %v13375_v22  ;;  %v2323_v16 = vsel %vm12270_vm6, %v2258_v11, %v13376_v12  ;;  %v13377_v24 = vld [vmem:[#allocation168_spill] sm:$0xff]  ;;  %v13381_v52 = vld [vmem:[#allocation277_spill] sm:$0xff] }
 0x558   :  { %v2298_v21 = vsel %vm12270_vm6, %v2233_v53, %v13362_v50  ;;  %v2461_v25 = vsel %vm12268_vm7, %v2396_v35, %v5125_v6  ;;  %v2376_v33 = vsel %vm12269_vm8, %v2311_v5, %v13378_v43  ;;  %v2388_v44 = vsel %vm12269_vm8, %v2323_v16, %v13379_v57  ;;  %v13387_v32 = vld [vmem:[#allocation185_spill] sm:$0xff]  ;;  %v13390_v36 = vld [vmem:[#allocation432_spill] sm:$0xff]  ;;  %v13395_v16 = vld [vmem:[#allocation319_spill] sm:$0xff] }
 0x559   :  { %v2363_v8 = vsel %vm12269_vm8, %v2298_v21, %v13367_v46  ;;  %v2441_v53 = vsel %vm12268_vm7, %v2376_v33, %v13381_v52  ;;  %v13383_v21 = vld [vmem:[#allocation362_spill] sm:$0xff]  ;;  %v9164_v5 = vpop.f32.mrf.mxu0  ;;  %v13398_v57 = vld [vmem:[#allocation316_spill] sm:$0xff] }
 0x55a   :  { %v2428_v38 = vsel %vm12268_vm7, %v2363_v8, %v5124_v58  ;;  %v13373_v58 = vld [vmem:[#allocation57_spill] sm:$0xff]  ;;  %v13385_v46 = vld [vmem:[#allocation58_spill] sm:$0xff] }
 0x55b   :  { %v1768_v26 = vpop.permute.xlu0 %1767  ;;  %v2108_v60 = vsel %vm12298_vm3, %v13374_v42, %v13373_v58  ;;  %v13386_v8 = vld [vmem:[#allocation218_spill] sm:$0xff] }
 0x55c   :  { %v5128_v20 = vpop.permute.xlu1 %5127  ;;  %v2525_v34 = vsel %vm12267_vm9, %v2460_v56, %v1768_v26  ;;  %v2493_v31 = vsel %vm12267_vm9, %v2428_v38, %v1768_v26  ;;  %v2526_v23 = vsel %vm12267_vm9, %v2461_v25, %v1768_v26  ;;  %v2171_v39 = vsel %vm12273_vm5, %v2108_v60, %v13377_v24  ;;  %v13382_v56 = vld [vmem:[#allocation293_spill] sm:$0xff]  ;;  %v13394_v60 = vld [vmem:[#allocation208_spill] sm:$0xff]  ;;  %v1820_v12 = vpop.permute.xlu2 %1819  ;;  %v13396_v24 = vld [vmem:[#allocation378_spill] sm:$0xff] }
 0x55d   :  { %v5130_v9 = vunpack.i.h.bf16 %v5128_v20  ;;  %v5129_v30 = vunpack.i.l.bf16 %v5128_v20  ;;  %v2234_v27 = vsel %vm12271_vm4, %v2171_v39, %v13380_v62  ;;  %v2453_v7 = vsel %vm12268_vm7, %v2388_v44, %v13382_v56  ;;  %v13393_v25 = vld [vmem:[#allocation241_spill] sm:$0xff]  ;;  %v13397_v43 = vld [vmem:[#allocation442_spill] sm:$0xff] }
 0x55e   :  { %v2299_v20 = vsel %vm12270_vm6, %v2234_v27, %v13383_v21  ;;  %v2119_v13 = vsel %vm12298_vm3, %v13386_v8, %v13385_v46  ;;  %v13399_v56 = vld [vmem:[#allocation81_spill] sm:$0xff] }
 0x55f   :  { %v2558_v4 = vsel %vm12266_vm11, %v2493_v31, %v5129_v30  ;;  %v9096_v40 = vsel %vm12266_vm11, %v2525_v34, %v5129_v30  ;;  %v9117_v59 = vsel %vm12266_vm11, %v2526_v23, %v5130_v9  ;;  %v2506_v34 = vsel %vm12267_vm9, %v2441_v53, %v9019_v19  ;;  %v13391_v31 = vld [vmem:[#allocation44_spill] sm:$0xff]  ;;  %v13401_v21 = vld [vmem:[#allocation105_spill] sm:$0xff] }
 0x560   :  { %5050 = vmatmul.msk.f32.gmra.mxu1 %vm12265_vm10, %v2558_v4  ;;  %v2364_v28 = vsel %vm12269_vm8, %v2299_v20, %v13384_v17  ;;  %v2182_v30 = vsel %vm12273_vm5, %v2119_v13, %v13387_v32  ;;  %v13392_v4 = vld [vmem:[#allocation82_spill] sm:$0xff]  ;;  %v13402_v20 = vld [vmem:[#allocation21_spill] sm:$0xff]  ;;  %v13407_v13 = vld [vmem:[#allocation376_spill] sm:$0xff] }
 0x561   :  { %v2429_v19 = vsel %vm12268_vm7, %v2364_v28, %v5125_v6  ;;  %v2247_v63 = vsel %vm12271_vm4, %v2182_v30, %v13388_v29  ;;  %v2131_v58 = vsel %vm12298_vm3, %v13393_v25, %v13392_v4  ;;  %v13404_v17 = vld [vmem:[#allocation209_spill] sm:$0xff] }
 0x562   :  { %v2494_v38 = vsel %vm12267_vm9, %v2429_v19, %v1768_v26  ;;  %v2312_v3 = vsel %vm12270_vm6, %v2247_v63, %v13389_v54  ;;  %v2194_v22 = vsel %vm12273_vm5, %v2131_v58, %v13394_v60  ;;  %v13406_v46 = vld [vmem:[#allocation309_spill] sm:$0xff]  ;;  %v13410_v54 = vld [vmem:[#allocation443_spill] sm:$0xff] }
 0x563   :  { %v1816_v50 = vpop.permute.xlu0 %1815  ;;  %v2377_v35 = vsel %vm12269_vm8, %v2312_v3, %v13390_v36  ;;  %v2259_v23 = vsel %vm12271_vm4, %v2194_v22, %v13395_v16  ;;  %v13409_v63 = vld [vmem:[#allocation433_spill] sm:$0xff]  ;;  %v13411_v36 = vld [vmem:[#allocation68_spill] sm:$0xff]  ;;  %v13415_v16 = vld [vmem:[#allocation106_spill] sm:$0xff] }
 0x564   :  { %v2518_v18 = vsel %vm12267_vm9, %v2453_v7, %v1816_v50  ;;  %v1977_v15 = vpop.permute.xlu1 %1976  ;;  %v2442_v6 = vsel %vm12268_vm7, %v2377_v35, %v13391_v31  ;;  %v2324_v39 = vsel %vm12270_vm6, %v2259_v23, %v13396_v24  ;;  %v13400_v7 = vld [vmem:[#allocation223_spill] sm:$0xff]  ;;  %v1798_v30 = vpop.permute.xlu2 %1797  ;;  %v13414_v60 = vld [vmem:[#allocation225_spill] sm:$0xff] }
 0x565   :  { %v2571_v51 = vsel %vm12266_vm11, %v2506_v34, %v1977_v15  ;;  %v2583_v1 = vsel %vm12266_vm11, %v2518_v18, %v2001_v2  ;;  %v2559_v2 = vsel %vm12266_vm11, %v2494_v38, %v5130_v9  ;;  %v9159_v9 = vpop.f32.mrf.mxu1  ;;  %v2389_v33 = vsel %vm12269_vm8, %v2324_v39, %v13397_v43  ;;  %v9186_v15 = vpop.f32.mrf.mxu0  ;;  %v13408_v38 = vld [vmem:[#allocation98_spill] sm:$0xff]  ;;  %v13412_v31 = vld [vmem:[#allocation299_spill] sm:$0xff]  ;;  %v13417_v39 = vld [vmem:[#allocation173_spill] sm:$0xff] }
 0x566   :  { %5063 = vmatmul.msk.f32.gmra.mxu2 %vm12265_vm10, %v2571_v51  ;;  %5075 = vmatmul.msk.f32.gmra.mxu3 %vm12265_vm10, %v2583_v1  ;;  %v2454_v44 = vsel %vm12268_vm7, %v2389_v33, %v13398_v57  ;;  %v2120_v50 = vsel %vm12298_vm3, %v13400_v7, %v13399_v56  ;;  %v2132_v34 = vsel %vm12298_vm3, %v13402_v20, %v13401_v21  ;;  %v13405_v51 = vld [vmem:[#allocation286_spill] sm:$0xff]  ;;  %v13416_v23 = vld [vmem:[#allocation247_spill] sm:$0xff]  ;;  %v13418_v43 = vld [vmem:[#allocation193_spill] sm:$0xff] }
 0x567   :  { %v2195_v28 = vsel %vm12273_vm5, %v2132_v34, %v13404_v17  ;;  %v2133_v24 = vsel %vm12298_vm3, %v13416_v23, %v13415_v16  ;;  %v13419_v57 = vld [vmem:[#allocation307_spill] sm:$0xff]  ;;  %v13421_v56 = vld [vmem:[#allocation377_spill] sm:$0xff] }
 0x568   :  { %5051 = vmatmul.msk.f32.gmra.mxu1 %vm12265_vm10, %v2559_v2  ;;  %v2260_v8 = vsel %vm12271_vm4, %v2195_v28, %v13406_v46  ;;  %v2196_v33 = vsel %vm12273_vm5, %v2133_v24, %v13418_v43  ;;  %v13423_v20 = vld [vmem:[#allocation425_spill] sm:$0xff]  ;;  %v13425_v28 = vld [vmem:[#allocation282_spill] sm:$0xff]  ;;  %v13435_v43 = vld [vmem:[#allocation88_spill] sm:$0xff] }
 0x569   :  { %v2325_v29 = vsel %vm12270_vm6, %v2260_v8, %v13408_v38 }
 0x56a   :  { %v2390_v3 = vsel %vm12269_vm8, %v2325_v29, %v13410_v54 }
 0x56b   :  { %v1794_v14 = vpop.permute.xlu0 %1793 }
 0x56c   :  { %v2507_v11 = vsel %vm12267_vm9, %v2442_v6, %v1794_v14  ;;  %v1818_v26 = vpop.permute.xlu1 %1817  ;;  %v2455_v6 = vsel %vm12268_vm7, %v2390_v3, %v13412_v31  ;;  %v13429_v3 = vld [vmem:[#allocation191_spill] sm:$0xff]  ;;  %v13430_v31 = vld [vmem:[#allocation308_spill] sm:$0xff] }
 0x56d   :  { %v2572_v42 = vsel %vm12266_vm11, %v2507_v11, %v1979_v37  ;;  %v2519_v62 = vsel %vm12267_vm9, %v2454_v44, %v1818_v26  ;;  %v13403_v37 = vld [vmem:[#allocation186_spill] sm:$0xff]  ;;  %v9196_v32 = vpop.f32.mrf.mxu1  ;;  %v2520_v26 = vsel %vm12267_vm9, %v2455_v6, %v1820_v12 }
 0x56e   :  { %5064 = vmatmul.msk.f32.gmra.mxu2 %vm12265_vm10, %v2572_v42  ;;  %v2183_v18 = vsel %vm12273_vm5, %v2120_v50, %v13403_v37  ;;  %v13413_v42 = vld [vmem:[#allocation83_spill] sm:$0xff]  ;;  %v13424_v37 = vld [vmem:[#allocation437_spill] sm:$0xff] }
 0x56f   :  { %v2248_v1 = vsel %vm12271_vm4, %v2183_v18, %v13405_v51  ;;  %v2121_v22 = vsel %vm12298_vm3, %v13414_v60, %v13413_v42  ;;  %v13422_v50 = vld [vmem:[#allocation387_spill] sm:$0xff]  ;;  %v13433_v60 = vld [vmem:[#allocation48_spill] sm:$0xff] }
 0x570   :  { %v2313_v19 = vsel %vm12270_vm6, %v2248_v1, %v13407_v13  ;;  %v2184_v12 = vsel %vm12273_vm5, %v2121_v22, %v13417_v39  ;;  %v13426_v1 = vld [vmem:[#allocation294_spill] sm:$0xff] }
 0x571   :  { %v2378_v2 = vsel %vm12269_vm8, %v2313_v19, %v13409_v63  ;;  %v2249_v44 = vsel %vm12271_vm4, %v2184_v12, %v13419_v57  ;;  %v13427_v63 = vld [vmem:[#allocation64_spill] sm:$0xff] }
 0x572   :  { %v2443_v35 = vsel %vm12268_vm7, %v2378_v2, %v13411_v36  ;;  %v2314_v7 = vsel %vm12270_vm6, %v2249_v44, %v13421_v56  ;;  %v13428_v2 = vld [vmem:[#allocation224_spill] sm:$0xff]  ;;  %v13440_v56 = vld [vmem:[#allocation27_spill] sm:$0xff] }
 0x573   :  { %v2003_v27 = vpop.permute.xlu0 %2002  ;;  %v2379_v34 = vsel %vm12269_vm8, %v2314_v7, %v13423_v20  ;;  %v2122_v54 = vsel %vm12298_vm3, %v13428_v2, %v13427_v63  ;;  %v13442_v20 = vld [vmem:[#allocation112_spill] sm:$0xff]  ;;  %v13449_v2 = vld [vmem:[#allocation54_spill] sm:$0xff] }
 0x574   :  { %v1796_v52 = vpop.permute.xlu1 %1795  ;;  %v2584_v53 = vsel %vm12266_vm11, %v2519_v62, %v2003_v27  ;;  %v13420_v62 = vld [vmem:[#allocation324_spill] sm:$0xff]  ;;  %v2444_v51 = vsel %vm12268_vm7, %v2379_v34, %v13425_v28  ;;  %v2185_v36 = vsel %vm12273_vm5, %v2122_v54, %v13429_v3  ;;  %v13443_v34 = vld [vmem:[#allocation251_spill] sm:$0xff] }
 0x575   :  { %5076 = vmatmul.msk.f32.gmra.mxu3 %vm12265_vm10, %v2584_v53  ;;  %v2508_v14 = vsel %vm12267_vm9, %v2443_v35, %v1796_v52  ;;  %v2261_v27 = vsel %vm12271_vm4, %v2196_v33, %v13420_v62  ;;  %v9228_v52 = vpop.f32.mrf.mxu0  ;;  %v2007_v53 = vpop.permute.xlu2 %2006  ;;  %v2509_v13 = vsel %vm12267_vm9, %v2444_v51, %v1798_v30  ;;  %v2250_v6 = vsel %vm12271_vm4, %v2185_v36, %v13430_v31  ;;  %v9259_v30 = vld [vmem:[%s12010_s2] ss:$0 sm:$0xff]  ;;  %v13445_v51 = vld [vmem:[#allocation381_spill] sm:$0xff] }
 0x576   :  { %v2326_v21 = vsel %vm12270_vm6, %v2261_v27, %v13422_v50  ;;  %v9238_v17 = vpop.f32.mrf.mxu1  ;;  %v9276_v23 = vadd.f32 %v9259_v30, %v8827_v10  ;;  %v13436_v33 = vld [vmem:[#allocation246_spill] sm:$0xff]  ;;  %v13441_v50 = vld [vmem:[#allocation325_spill] sm:$0xff] }
 0x577   :  { %v2391_v18 = vsel %vm12269_vm8, %v2326_v21, %v13424_v37  ;;  %v2134_v57 = vsel %vm12298_vm3, %v13436_v33, %v13435_v43  ;;  %v13438_v62 = vld [vmem:[#allocation214_spill] sm:$0xff]  ;;  %v2136_v37 = vsel %vm12298_vm3, %v13443_v34, %v13442_v20  ;;  %v13452_v33 = vld [vmem:[#allocation199_spill] sm:$0xff] }
 0x578   :  { %v2456_v46 = vsel %vm12268_vm7, %v2391_v18, %v13426_v1  ;;  %13434 = vst [vmem:[#allocation79_spill] sm:$0xff] %v9276_v23  ;;  %v2197_v27 = vsel %vm12273_vm5, %v2134_v57, %v13438_v62  ;;  %v13444_v18 = vld [vmem:[#allocation215_spill] sm:$0xff]  ;;  %v3007_v3 = vsel %vm12298_vm3, %v9276_v23, 0.0  ;;  %v2199_v57 = vsel %vm12273_vm5, %v2136_v37, %v13452_v33  ;;  %v13454_v20 = vld [vmem:[#allocation78_spill] sm:$0xff] }
 0x579   :  { %v2262_v21 = vsel %vm12271_vm4, %v2197_v27, %v13441_v50 }
 0x57a   :  { %v2327_v1 = vsel %vm12270_vm6, %v2262_v21, %v13445_v51  ;;  %v9369_v21 = vadd.f32 %v9259_v30, %v9125_v47 }
 0x57b   :  { %v1981_v11 = vpop.permute.xlu0 %1980 }
 0x57c   :  { %v2005_v4 = vpop.permute.xlu1 %2004  ;;  %v2573_v25 = vsel %vm12266_vm11, %v2508_v14, %v1981_v11  ;;  %v13431_v11 = vld [vmem:[#allocation369_spill] sm:$0xff] }
 0x57d   :  { %5065 = vmatmul.msk.f32.gmra.mxu2 %vm12265_vm10, %v2573_v25  ;;  %v2585_v58 = vsel %vm12266_vm11, %v2520_v26, %v2005_v4  ;;  %v9261_v14 = vpop.f32.mrf.mxu0  ;;  %v2315_v26 = vsel %vm12270_vm6, %v2250_v6, %v13431_v11  ;;  %v13432_v4 = vld [vmem:[#allocation435_spill] sm:$0xff]  ;;  %v1985_v42 = vpop.permute.xlu2 %1984  ;;  %v9337_v6 = vadd.f32 %v9259_v30, %v9013_v45 }
 0x57e   :  { %5077 = vmatmul.msk.f32.gmra.mxu3 %vm12265_vm10, %v2585_v58  ;;  %v2380_v25 = vsel %vm12269_vm8, %v2315_v26, %v13432_v4  ;;  %v9270_v58 = vadd.f32 %v9259_v30, %v8865_v41  ;;  %v9278_v24 = vpop.f32.mrf.mxu1  ;;  %v9286_v41 = vadd.f32 %v9259_v30, %v8916_v61  ;;  %v9301_v61 = vadd.f32 %v9259_v30, %v8947_v49  ;;  %v13450_v4 = vld [vmem:[#allocation389_spill] sm:$0xff] }
 0x57f   :  { %v2445_v22 = vsel %vm12268_vm7, %v2380_v25, %v13433_v60 }
 0x580   :  { %13437 = vst [vmem:[#allocation321_spill] sm:$0xff] %v9286_v41  ;;  %v3141_v10 = vmul.f32 %v9270_v58, %v9270_v58  ;;  %v3008_v49 = vsel %vm12298_vm3, %v9270_v58, 0.0  ;;  %v3010_v31 = vsel %vm12298_vm3, %v9286_v41, 0.0  ;;  %v3012_v43 = vsel %vm12298_vm3, %v9301_v61, 0.0 }
 0x581   :  { %v3009_v60 = vadd.f32 %v3008_v49, %v3007_v3  ;;  %v9392_v3 = vadd.f32 %v9259_v30, %v9186_v15  ;;  %v9406_v15 = vadd.f32 %v9259_v30, %v9228_v52  ;;  %v9420_v52 = vadd.f32 %v9259_v30, %v9261_v14 }
 0x582   :  { %v3205_v36 = vsel %vm12298_vm3, %v3141_v10, 0.0 }
 0x583   :  { %v1822_v8 = vpop.permute.xlu0 %1821  ;;  %v3011_v10 = vadd.f32 %v3010_v31, %v3009_v60  ;;  %v3020_v60 = vsel %vm12298_vm3, %v9369_v21, 0.0  ;;  %13458 = vst [vmem:[#allocation80_spill] sm:$0xff] %v9406_v15 }
 0x584   :  { %v2521_v19 = vsel %vm12267_vm9, %v2456_v46, %v1822_v8  ;;  %v1983_v38 = vpop.permute.xlu1 %1982  ;;  %v3140_v46 = vmul.f32 %v9276_v23, %v9276_v23  ;;  %v13446_v8 = vld [vmem:[#allocation444_spill] sm:$0xff] }
 0x585   :  { %v2574_v29 = vsel %vm12266_vm11, %v2509_v13, %v1983_v38  ;;  %v2586_v35 = vsel %vm12266_vm11, %v2521_v19, %v2007_v53  ;;  %v13439_v53 = vld [vmem:[#allocation111_spill] sm:$0xff]  ;;  %v2392_v13 = vsel %vm12269_vm8, %v2327_v1, %v13446_v8  ;;  %v3142_v19 = vmul.f32 %v9286_v41, %v9286_v41  ;;  %v2011_v8 = vpop.permute.xlu2 %2010 }
 0x586   :  { %5066 = vmatmul.msk.f32.gmra.mxu2 %vm12265_vm10, %v2574_v29  ;;  %5078 = vmatmul.msk.f32.gmra.mxu3 %vm12265_vm10, %v2586_v35  ;;  %v2135_v7 = vsel %vm12298_vm3, %v13440_v56, %v13439_v53  ;;  %v9320_v38 = vadd.f32 %v9259_v30, %v8981_v48  ;;  %v13448_v29 = vld [vmem:[#allocation312_spill] sm:$0xff]  ;;  %v2457_v54 = vsel %vm12268_vm7, %v2392_v13, %v13449_v2  ;;  %v9329_v35 = vpop.f32.mrf.mxu0  ;;  %v9360_v53 = vpop.f32.mrf.mxu2  ;;  %v3016_v1 = vsel %vm12298_vm3, %v9337_v6, 0.0 }
 0x587   :  { %v2198_v28 = vsel %vm12273_vm5, %v2135_v7, %v13444_v18  ;;  %v3143_v48 = vmul.f32 %v9301_v61, %v9301_v61  ;;  %v3013_v18 = vadd.f32 %v3012_v43, %v3011_v10  ;;  %v13456_v13 = vld [vmem:[#allocation328_spill] sm:$0xff]  ;;  %v13460_v10 = vld [vmem:[#allocation298_spill] sm:$0xff] }
 0x588   :  { %13447 = vst [vmem:[#allocation102_spill] sm:$0xff] %v9320_v38  ;;  %v2263_v63 = vsel %vm12271_vm4, %v2198_v28, %v13448_v29  ;;  %v3144_v45 = vmul.f32 %v9320_v38, %v9320_v38  ;;  %v3014_v50 = vsel %vm12298_vm3, %v9320_v38, 0.0  ;;  %v9375_v28 = vadd.f32 %v9259_v30, %v9164_v5 }
 0x589   :  { %v2328_v25 = vsel %vm12270_vm6, %v2263_v63, %v13450_v4  ;;  %v3209_v7 = vsel %vm12298_vm3, %v3143_v48, 0.0  ;;  %v2264_v49 = vsel %vm12271_vm4, %v2199_v57, %v13456_v13  ;;  %v3015_v29 = vadd.f32 %v3014_v50, %v3013_v18  ;;  %v13457_v4 = vld [vmem:[#allocation390_spill] sm:$0xff] }
 0x58a   :  { %13455 = vst [vmem:[#allocation56_spill] sm:$0xff] %v9375_v28  ;;  %v3211_v51 = vsel %vm12298_vm3, %v3144_v45, 0.0  ;;  %v3148_v48 = vmul.f32 %v9375_v28, %v9375_v28  ;;  %v3151_v13 = vmul.f32 %v9420_v52, %v9420_v52 }
 0x58b   :  { %v1800_v16 = vpop.permute.xlu0 %1799  ;;  %v3017_v31 = vadd.f32 %v3016_v1, %v3015_v29 }
 0x58c   :  { %v2510_v39 = vsel %vm12267_vm9, %v2445_v22, %v1800_v16  ;;  %v1824_v12 = vpop.permute.xlu1 %1823  ;;  %v9343_v22 = vpop.f32.mrf.mxu1 }
 0x58d   :  { %v2575_v44 = vsel %vm12266_vm11, %v2510_v39, %v1985_v42  ;;  %v2522_v11 = vsel %vm12267_vm9, %v2457_v54, %v1824_v12  ;;  %v3204_v42 = vsel %vm12298_vm3, %v3140_v46, 0.0  ;;  %v3207_v39 = vsel %vm12298_vm3, %v3142_v19, 0.0 }
 0x58e   :  { %5067 = vmatmul.msk.f32.gmra.mxu2 %vm12265_vm10, %v2575_v44  ;;  %v9353_v12 = vadd.f32 %v9259_v30, %v9052_v0  ;;  %v13453_v44 = vld [vmem:[#allocation445_spill] sm:$0xff]  ;;  %v3206_v27 = vadd.f32 %v3205_v36, %v3204_v42  ;;  %v3145_v0 = vmul.f32 %v9337_v6, %v9337_v6  ;;  %v2854_v63 = vpop.f32.mrf.mxu0  ;;  %v3147_v54 = vmul.f32 %v9369_v21, %v9369_v21  ;;  %v9411_v33 = vpop.f32.mrf.mxu2 }
 0x58f   :  { %v2393_v62 = vsel %vm12269_vm8, %v2328_v25, %v13453_v44  ;;  %v2329_v25 = vsel %vm12270_vm6, %v2264_v49, %v13457_v4  ;;  %v9440_v49 = vadd.f32 %v9259_v30, %v2854_v63  ;;  %v3225_v4 = vsel %vm12298_vm3, %v3151_v13, 0.0 }
 0x590   :  { %13451 = vst [vmem:[#allocation304_spill] sm:$0xff] %v9353_v12  ;;  %v2458_v34 = vsel %vm12268_vm7, %v2393_v62, %v13454_v20  ;;  %v3208_v37 = vadd.f32 %v3207_v39, %v3206_v27  ;;  %v3146_v46 = vmul.f32 %v9353_v12, %v9353_v12  ;;  %v3213_v5 = vsel %vm12298_vm3, %v3145_v0, 0.0 }
 0x591   :  { %v3018_v2 = vsel %vm12298_vm3, %v9353_v12, 0.0  ;;  %v3217_v44 = vsel %vm12298_vm3, %v3147_v54, 0.0  ;;  %v3022_v62 = vsel %vm12298_vm3, %v9375_v28, 0.0  ;;  %v3149_v27 = vmul.f32 %v9392_v3, %v9392_v3 }
 0x592   :  { %v3210_v19 = vadd.f32 %v3209_v7, %v3208_v37  ;;  %v3215_v42 = vsel %vm12298_vm3, %v3146_v46, 0.0  ;;  %v3019_v45 = vadd.f32 %v3018_v2, %v3017_v31  ;;  %v3219_v0 = vsel %vm12298_vm3, %v3148_v48, 0.0 }
 0x593   :  { %v2009_v26 = vpop.permute.xlu0 %2008  ;;  %v3024_v20 = vsel %vm12298_vm3, %v9392_v3, 0.0  ;;  %v9431_v37 = vadd.f32 %v9259_v30, %v9329_v35  ;;  %v3028_v2 = vsel %vm12298_vm3, %v9420_v52, 0.0 }
 0x594   :  { %v2587_v16 = vsel %vm12266_vm11, %v2522_v11, %v2009_v26  ;;  %v1826_v56 = vpop.permute.xlu1 %1825  ;;  %v3212_v36 = vadd.f32 %v3211_v51, %v3210_v19  ;;  %v9396_v11 = vpop.f32.mrf.mxu1  ;;  %v3021_v50 = vadd.f32 %v3020_v60, %v3019_v45 }
 0x595   :  { %5079 = vmatmul.msk.f32.gmra.mxu3 %vm12265_vm10, %v2587_v16  ;;  %v2523_v47 = vsel %vm12267_vm9, %v2458_v34, %v1826_v56  ;;  %v13459_v16 = vld [vmem:[#allocation439_spill] sm:$0xff]  ;;  %v3150_v34 = vmul.f32 %v9406_v15, %v9406_v15  ;;  %13461 = vst [vmem:[#allocation322_spill] sm:$0xff] %v9431_v37  ;;  %v3152_v54 = vmul.f32 %v9431_v37, %v9431_v37 }
 0x596   :  { %v2588_v26 = vsel %vm12266_vm11, %v2523_v47, %v2011_v8  ;;  %v2394_v39 = vsel %vm12269_vm8, %v2329_v25, %v13459_v16  ;;  %v3214_v43 = vadd.f32 %v3213_v5, %v3212_v36  ;;  %v3023_v1 = vadd.f32 %v3022_v62, %v3021_v50  ;;  %v2857_v46 = vpop.f32.mrf.mxu0  ;;  %v9452_v48 = vpop.f32.mrf.mxu2 }
 0x597   :  { %v2459_v56 = vsel %vm12268_vm7, %v2394_v39, %v13460_v10  ;;  %v3221_v47 = vsel %vm12298_vm3, %v3149_v27, 0.0  ;;  %v3026_v8 = vsel %vm12298_vm3, %v9406_v15, 0.0  ;;  %v3223_v5 = vsel %vm12298_vm3, %v3150_v34, 0.0 }
 0x598   :  { %v3216_v7 = vadd.f32 %v3215_v42, %v3214_v43  ;;  %v3025_v35 = vadd.f32 %v3024_v20, %v3023_v1  ;;  %v9449_v36 = vadd.f32 %v9259_v30, %v2857_v46  ;;  %v3030_v25 = vsel %vm12298_vm3, %v9431_v37, 0.0 }
 0x599   :  { %v3153_v42 = vmul.f32 %v9440_v49, %v9440_v49  ;;  %v3227_v39 = vsel %vm12298_vm3, %v3152_v54, 0.0  ;;  %v3032_v43 = vsel %vm12298_vm3, %v9440_v49, 0.0  ;;  %v9499_v54 = vadd.f32 %v9259_v30, %v9196_v32 }
 0x59a   :  { %v3218_v51 = vadd.f32 %v3217_v44, %v3216_v7  ;;  %13462 = vst [vmem:[#allocation103_spill] sm:$0xff] %v9449_v36  ;;  %v3027_v63 = vadd.f32 %v3026_v8, %v3025_v35  ;;  %v3154_v45 = vmul.f32 %v9449_v36, %v9449_v36  ;;  %v3034_v10 = vsel %vm12298_vm3, %v9449_v36, 0.0 }
 0x59b   :  { %v1828_v57 = vpop.permute.xlu0 %1827  ;;  %v3229_v27 = vsel %vm12298_vm3, %v3153_v42, 0.0  ;;  %v9512_v32 = vadd.f32 %v9259_v30, %v9238_v17  ;;  %vm12300_vm7 = vcmask 1046534   ;;  %vm12299_vm8 = vcmask 1047559  }
 0x59c   :  { %v2524_v14 = vsel %vm12267_vm9, %v2459_v56, %v1828_v57  ;;  %v2013_v18 = vpop.permute.xlu1 %2012  ;;  %v3220_v19 = vadd.f32 %v3219_v0, %v3218_v51  ;;  %v3029_v16 = vadd.f32 %v3028_v2, %v3027_v63  ;;  %v9474_v0 = vadd.f32 %v9259_v30, %v9114_v55 }
 0x59d   :  { %5080 = vmatmul.msk.f32.gmra.mxu3 %vm12265_vm10, %v2588_v26  ;;  %v2589_v29 = vsel %vm12266_vm11, %v2524_v14, %v2013_v18  ;;  %v9454_v26 = vpop.f32.mrf.mxu1  ;;  %v3231_v20 = vsel %vm12298_vm3, %v3154_v45, 0.0 }
 0x59e   :  { %v3222_v31 = vadd.f32 %v3221_v47, %v3220_v19  ;;  %v3031_v44 = vadd.f32 %v3030_v25, %v3029_v16  ;;  %v9483_v18 = vpop.f32.mrf.mxu2  ;;  %v3156_v13 = vmul.f32 %v9474_v0, %v9474_v0  ;;  %v9490_v19 = vadd.f32 %v9259_v30, %v9159_v9 }
 0x5a0   :  { %v3224_v60 = vadd.f32 %v3223_v5, %v3222_v31  ;;  %v3033_v50 = vadd.f32 %v3032_v43, %v3031_v44  ;;  %v3235_v5 = vsel %vm12298_vm3, %v3156_v13, 0.0  ;;  %v3157_v2 = vmul.f32 %v9490_v19, %v9490_v19 }
 0x5a1   :  { %v9523_v44 = vadd.f32 %v9259_v30, %v9278_v24 }
 0x5a2   :  { %v3226_v57 = vadd.f32 %v3225_v4, %v3224_v60  ;;  %v3035_v46 = vadd.f32 %v3034_v10, %v3033_v50  ;;  %v3040_v4 = vsel %vm12298_vm3, %v9490_v19, 0.0  ;;  %v3237_v42 = vsel %vm12298_vm3, %v3157_v2, 0.0 }
 0x5a3   :  { %v3158_v60 = vmul.f32 %v9499_v54, %v9499_v54  ;;  %v3044_v10 = vsel %vm12298_vm3, %v9512_v32, 0.0  ;;  %v3046_v24 = vsel %vm12298_vm3, %v9523_v44, 0.0 }
 0x5a4   :  { %v3228_v7 = vadd.f32 %v3227_v39, %v3226_v57  ;;  %v9516_v39 = vpop.f32.mrf.mxu3  ;;  %v3159_v57 = vmul.f32 %v9512_v32, %v9512_v32 }
 0x5a5   :  { %5081 = vmatmul.msk.f32.gmra.mxu3 %vm12265_vm10, %v2589_v29  ;;  %v2887_v51 = vpop.f32.mrf.mxu1  ;;  %v3239_v45 = vsel %vm12298_vm3, %v3158_v60, 0.0 }
 0x5a6   :  { %v3230_v1 = vadd.f32 %v3229_v27, %v3228_v7  ;;  %v9503_v31 = vpop.f32.mrf.mxu2  ;;  %v3241_v50 = vsel %vm12298_vm3, %v3159_v57, 0.0 }
 0x5a8   :  { %v3232_v55 = vadd.f32 %v3231_v20, %v3230_v1  ;;  %v3160_v20 = vmul.f32 %v9523_v44, %v9523_v44 }
 0x5aa   :  { %v2860_v62 = vpop.f32.mrf.mxu0 }
 0x5ab   :  { %v9470_v56 = vadd.f32 %v9259_v30, %v2860_v62 }
 0x5ac   :  { %v9538_v1 = vpop.f32.mrf.mxu3 }
 0x5ad   :  { %v3036_v34 = vsel %vm12298_vm3, %v9470_v56, 0.0  ;;  %v3155_v14 = vmul.f32 %v9470_v56, %v9470_v56  ;;  %5082 = vmatmul.msk.f32.gmra.mxu3 %vm12265_vm10, %v9096_v40  ;;  %v3038_v40 = vsel %vm12298_vm3, %v9474_v0, 0.0  ;;  %v2890_v9 = vpop.f32.mrf.mxu1 }
 0x5ae   :  { %v3037_v8 = vadd.f32 %v3036_v34, %v3035_v46  ;;  %v9525_v62 = vpop.f32.mrf.mxu2  ;;  %v9534_v34 = vadd.f32 %v9259_v30, %v9343_v22 }
 0x5af   :  { %v3233_v47 = vsel %vm12298_vm3, %v3155_v14, 0.0 }
 0x5b0   :  { %v3234_v35 = vadd.f32 %v3233_v47, %v3232_v55  ;;  %v3039_v29 = vadd.f32 %v3038_v40, %v3037_v8  ;;  %v3243_v47 = vsel %vm12298_vm3, %v3160_v20, 0.0  ;;  %v3161_v55 = vmul.f32 %v9534_v34, %v9534_v34 }
 0x5b1   :  { %v9545_v8 = vadd.f32 %v9259_v30, %v9396_v11  ;;  %v3048_v40 = vsel %vm12298_vm3, %v9534_v34, 0.0 }
 0x5b2   :  { %v3236_v63 = vadd.f32 %v3235_v5, %v3234_v35  ;;  %v3041_v25 = vadd.f32 %v3040_v4, %v3039_v29  ;;  %v3245_v5 = vsel %vm12298_vm3, %v3161_v55, 0.0 }
 0x5b3   :  { %v3162_v2 = vmul.f32 %v9545_v8, %v9545_v8  ;;  %v3050_v11 = vsel %vm12298_vm3, %v9545_v8, 0.0 }
 0x5b4   :  { %v3238_v16 = vadd.f32 %v3237_v42, %v3236_v63  ;;  %v9556_v63 = vadd.f32 %v9259_v30, %v9454_v26 }
 0x5b5   :  { %5083 = vmatmul.msk.f32.gmra.mxu3 %vm12265_vm10, %v9117_v59  ;;  %v3042_v59 = vsel %vm12298_vm3, %v9499_v54, 0.0  ;;  %v2893_v17 = vpop.f32.mrf.mxu1  ;;  %v3247_v60 = vsel %vm12298_vm3, %v3162_v2, 0.0  ;;  %vm12301_vm10 = vcmask 1045509  }
 0x5b6   :  { %v3043_v43 = vadd.f32 %v3042_v59, %v3041_v25  ;;  %v3240_v27 = vadd.f32 %v3239_v45, %v3238_v16  ;;  %v9547_v13 = vpop.f32.mrf.mxu2  ;;  %v9560_v25 = vpop.f32.mrf.mxu3  ;;  %v3163_v16 = vmul.f32 %v9556_v63, %v9556_v63  ;;  %v9566_v59 = vadd.f32 %v9259_v30, %v2887_v51 }
 0x5b7   :  { %v3052_v57 = vsel %vm12298_vm3, %v9556_v63, 0.0  ;;  %v9586_v55 = vadd.f32 %v9259_v30, %v2893_v17 }
 0x5b8   :  { %v3045_v7 = vadd.f32 %v3044_v10, %v3043_v43  ;;  %v3242_v14 = vadd.f32 %v3241_v50, %v3240_v27  ;;  %v3249_v10 = vsel %vm12298_vm3, %v3163_v16, 0.0  ;;  %v9576_v50 = vadd.f32 %v9259_v30, %v2890_v9 }
 0x5b9   :  { %v3054_v51 = vsel %vm12298_vm3, %v9566_v59, 0.0  ;;  %v3058_v17 = vsel %vm12298_vm3, %v9586_v55, 0.0 }
 0x5ba   :  { %v3047_v46 = vadd.f32 %v3046_v24, %v3045_v7  ;;  %v3244_v22 = vadd.f32 %v3243_v47, %v3242_v14  ;;  %v3164_v7 = vmul.f32 %v9566_v59, %v9566_v59  ;;  %v3165_v47 = vmul.f32 %v9576_v50, %v9576_v50 }
 0x5bc   :  { %v3049_v29 = vadd.f32 %v3048_v40, %v3047_v46  ;;  %v3246_v4 = vadd.f32 %v3245_v5, %v3244_v22  ;;  %v3251_v46 = vsel %vm12298_vm3, %v3164_v7, 0.0  ;;  %v3253_v2 = vsel %vm12298_vm3, %v3165_v47, 0.0 }
 0x5bd   :  { %v2896_v35 = vpop.f32.mrf.mxu1 }
 0x5be   :  { %v3051_v42 = vadd.f32 %v3050_v11, %v3049_v29  ;;  %v9568_v43 = vpop.f32.mrf.mxu2  ;;  %v3248_v45 = vadd.f32 %v3247_v60, %v3246_v4  ;;  %v9580_v14 = vpop.f32.mrf.mxu3  ;;  %v3056_v29 = vsel %vm12298_vm3, %v9576_v50, 0.0  ;;  %v3166_v4 = vmul.f32 %v9586_v55, %v9586_v55 }
 0x5bf   :  { %v9596_v11 = vadd.f32 %v9259_v30, %v2896_v35 }
 0x5c0   :  { %v3053_v27 = vadd.f32 %v3052_v57, %v3051_v42  ;;  %v3250_v20 = vadd.f32 %v3249_v10, %v3248_v45  ;;  %v3255_v45 = vsel %vm12298_vm3, %v3166_v4, 0.0 }
 0x5c1   :  { %v3167_v57 = vmul.f32 %v9596_v11, %v9596_v11 }
 0x5c2   :  { %v3055_v24 = vadd.f32 %v3054_v51, %v3053_v27  ;;  %v3252_v22 = vadd.f32 %v3251_v46, %v3250_v20  ;;  %v3060_v51 = vsel %vm12298_vm3, %v9596_v11, 0.0 }
 0x5c3   :  { %v3257_v47 = vsel %vm12298_vm3, %v3167_v57, 0.0 }
 0x5c4   :  { %v3057_v5 = vadd.f32 %v3056_v29, %v3055_v24  ;;  %v3254_v42 = vadd.f32 %v3253_v2, %v3252_v22 }
 0x5c5   :  { %v2899_v26 = vpop.f32.mrf.mxu1 }
 0x5c6   :  { %v9588_v40 = vpop.f32.mrf.mxu2  ;;  %v3059_v60 = vadd.f32 %v3058_v17, %v3057_v5  ;;  %v9600_v16 = vpop.f32.mrf.mxu3  ;;  %v9606_v27 = vadd.f32 %v9259_v30, %v2899_v26  ;;  %v3256_v35 = vadd.f32 %v3255_v45, %v3254_v42  ;;  %v9633_v17 = vadd.f32 %v9259_v30, %v9360_v53 }
 0x5c8   :  { %v3061_v46 = vadd.f32 %v3060_v51, %v3059_v60  ;;  %v3168_v26 = vmul.f32 %v9606_v27, %v9606_v27  ;;  %v3062_v29 = vsel %vm12298_vm3, %v9606_v27, 0.0 }
 0x5ca   :  { %v3063_v4 = vadd.f32 %v3062_v29, %v3061_v46  ;;  %v3259_v60 = vsel %vm12298_vm3, %v3168_v26, 0.0  ;;  %v9643_v46 = vadd.f32 %v9259_v30, %v9411_v33 }
 0x5cd   :  { %v2902_v9 = vpop.f32.mrf.mxu1 }
 0x5ce   :  { %v9609_v10 = vadd.f32 %v9259_v30, %v2902_v9  ;;  %v9611_v7 = vpop.f32.mrf.mxu2  ;;  %v3258_v9 = vadd.f32 %v3257_v47, %v3256_v35  ;;  %v9629_v42 = vpop.f32.mrf.mxu3 }
 0x5d0   :  { %v3169_v22 = vmul.f32 %v9609_v10, %v9609_v10  ;;  %v3064_v5 = vsel %vm12298_vm3, %v9609_v10, 0.0  ;;  %v3260_v35 = vadd.f32 %v3259_v60, %v3258_v9  ;;  %v9653_v9 = vadd.f32 %v9259_v30, %v9452_v48 }
 0x5d1   :  { %v3070_v60 = vsel %vm12298_vm3, %v9633_v17, 0.0 }
 0x5d2   :  { %v3261_v45 = vsel %vm12298_vm3, %v3169_v22, 0.0  ;;  %v3172_v22 = vmul.f32 %v9633_v17, %v9633_v17 }
 0x5d3   :  { %v3262_v26 = vadd.f32 %v3261_v45, %v3260_v35  ;;  %v3173_v45 = vmul.f32 %v9643_v46, %v9643_v46 }
 0x5d4   :  { %v3267_v37 = vsel %vm12298_vm3, %v3172_v22, 0.0 }
 0x5d9   :  { %v9639_v51 = vpop.f32.mrf.mxu2  ;;  %v9668_v35 = vpop.f32.mrf.mxu3 }
 0x5dd   :  { %v2905_v20 = vpop.f32.mrf.mxu1 }
 0x5de   :  { %v9616_v24 = vadd.f32 %v9259_v30, %v2905_v20  ;;  %v3065_v20 = vadd.f32 %v3064_v5, %v3063_v4 }
 0x5e0   :  { %v3170_v2 = vmul.f32 %v9616_v24, %v9616_v24  ;;  %v3066_v57 = vsel %vm12298_vm3, %v9616_v24, 0.0 }
 0x5e1   :  { %v3067_v36 = vadd.f32 %v3066_v57, %v3065_v20  ;;  %v9665_v57 = vadd.f32 %v9259_v30, %v9483_v18 }
 0x5e2   :  { %v3263_v29 = vsel %vm12298_vm3, %v3170_v2, 0.0 }
 0x5e3   :  { %v3264_v4 = vadd.f32 %v3263_v29, %v3262_v26  ;;  %v3174_v29 = vmul.f32 %v9653_v9, %v9653_v9  ;;  %v9677_v26 = vadd.f32 %v9259_v30, %v9503_v31  ;;  %v3175_v22 = vmul.f32 %v9665_v57, %v9665_v57 }
 0x5e5   :  { %v2908_v47 = vpop.f32.mrf.mxu1  ;;  %v3271_v31 = vsel %vm12298_vm3, %v3174_v29, 0.0  ;;  %v3273_v28 = vsel %vm12298_vm3, %v3175_v22, 0.0 }
 0x5e6   :  { %v9647_v53 = vadd.f32 %v9259_v30, %v2908_v47 }
 0x5e8   :  { %v3068_v5 = vsel %vm12298_vm3, %v9647_v53, 0.0  ;;  %v3171_v33 = vmul.f32 %v9647_v53, %v9647_v53 }
 0x5e9   :  { %v3069_v2 = vadd.f32 %v3068_v5, %v3067_v36  ;;  %v3072_v36 = vsel %vm12298_vm3, %v9643_v46, 0.0  ;;  %v2944_v15 = vpop.f32.mrf.mxu2 }
 0x5ea   :  { %v3265_v48 = vsel %vm12298_vm3, %v3171_v33, 0.0  ;;  %v3269_v33 = vsel %vm12298_vm3, %v3173_v45, 0.0  ;;  %v3176_v45 = vmul.f32 %v9677_v26, %v9677_v26 }
 0x5eb   :  { %v3071_v20 = vadd.f32 %v3070_v60, %v3069_v2  ;;  %v3266_v47 = vadd.f32 %v3265_v48, %v3264_v4  ;;  %v3074_v4 = vsel %vm12298_vm3, %v9653_v9, 0.0  ;;  %v9686_v2 = vadd.f32 %v9259_v30, %v9525_v62 }
 0x5ec   :  { %v3078_v62 = vsel %vm12298_vm3, %v9677_v26, 0.0 }
 0x5ed   :  { %v3073_v18 = vadd.f32 %v3072_v36, %v3071_v20  ;;  %v3268_v5 = vadd.f32 %v3267_v37, %v3266_v47  ;;  %v3076_v37 = vsel %vm12298_vm3, %v9665_v57, 0.0  ;;  %v9695_v20 = vadd.f32 %v9259_v30, %v9547_v13 }
 0x5ee   :  { %v3177_v29 = vmul.f32 %v9686_v2, %v9686_v2  ;;  %v3275_v13 = vsel %vm12298_vm3, %v3176_v45, 0.0 }
 0x5ef   :  { %v3075_v60 = vadd.f32 %v3074_v4, %v3073_v18  ;;  %v3270_v48 = vadd.f32 %v3269_v33, %v3268_v5  ;;  %v9704_v18 = vadd.f32 %v9259_v30, %v9568_v43  ;;  %v9706_v4 = vpop.f32.mrf.mxu3  ;;  %v3178_v22 = vmul.f32 %v9695_v20, %v9695_v20 }
 0x5f0   :  { %v3277_v43 = vsel %vm12298_vm3, %v3177_v29, 0.0  ;;  %v9729_v29 = vadd.f32 %v9259_v30, %v9611_v7  ;;  %v9741_v7 = vadd.f32 %v9259_v30, %v9639_v51 }
 0x5f1   :  { %v3077_v47 = vadd.f32 %v3076_v37, %v3075_v60  ;;  %v3272_v36 = vadd.f32 %v3271_v31, %v3270_v48  ;;  %v3080_v60 = vsel %vm12298_vm3, %v9686_v2, 0.0  ;;  %v9715_v48 = vadd.f32 %v9259_v30, %v9588_v40 }
 0x5f2   :  { %v3179_v45 = vmul.f32 %v9704_v18, %v9704_v18  ;;  %v3279_v12 = vsel %vm12298_vm3, %v3178_v22, 0.0  ;;  %v3084_v38 = vsel %vm12298_vm3, %v9704_v18, 0.0 }
 0x5f3   :  { %v3079_v5 = vadd.f32 %v3078_v62, %v3077_v47  ;;  %v3274_v33 = vadd.f32 %v3273_v28, %v3272_v36  ;;  %v3082_v28 = vsel %vm12298_vm3, %v9695_v20, 0.0  ;;  %v2947_v62 = vpop.f32.mrf.mxu2  ;;  %v3180_v40 = vmul.f32 %v9715_v48, %v9715_v48 }
 0x5f5   :  { %v3276_v31 = vadd.f32 %v3275_v13, %v3274_v33  ;;  %v3081_v37 = vadd.f32 %v3080_v60, %v3079_v5  ;;  %v3281_v13 = vsel %vm12298_vm3, %v3179_v45, 0.0  ;;  %v3086_v60 = vsel %vm12298_vm3, %v9715_v48, 0.0 }
 0x5f7   :  { %v3083_v47 = vadd.f32 %v3082_v28, %v3081_v37  ;;  %v3278_v36 = vadd.f32 %v3277_v43, %v3276_v31  ;;  %v3283_v43 = vsel %vm12298_vm3, %v3180_v40, 0.0  ;;  %v3181_v28 = vmul.f32 %v9729_v29, %v9729_v29 }
 0x5f8   :  { %v9734_v37 = vpop.f32.mrf.mxu3  ;;  %v9749_v40 = vadd.f32 %v9259_v30, %v2944_v15 }
 0x5f9   :  { %v3085_v5 = vadd.f32 %v3084_v38, %v3083_v47  ;;  %v3280_v33 = vadd.f32 %v3279_v12, %v3278_v36  ;;  %v3088_v12 = vsel %vm12298_vm3, %v9729_v29, 0.0  ;;  %v3285_v36 = vsel %vm12298_vm3, %v3181_v28, 0.0 }
 0x5fa   :  { %v3092_v15 = vsel %vm12298_vm3, %v9749_v40, 0.0 }
 0x5fb   :  { %v3282_v31 = vadd.f32 %v3281_v13, %v3280_v33  ;;  %v3087_v22 = vadd.f32 %v3086_v60, %v3085_v5  ;;  %v3182_v5 = vmul.f32 %v9741_v7, %v9741_v7  ;;  %v3090_v13 = vsel %vm12298_vm3, %v9741_v7, 0.0 }
 0x5fd   :  { %v3284_v38 = vadd.f32 %v3283_v43, %v3282_v31  ;;  %v3089_v47 = vadd.f32 %v3088_v12, %v3087_v22  ;;  %v3287_v60 = vsel %vm12298_vm3, %v3182_v5, 0.0  ;;  %v3183_v31 = vmul.f32 %v9749_v40, %v9749_v40 }
 0x5fe   :  { %v9757_v22 = vadd.f32 %v9259_v30, %v2947_v62 }
 0x5ff   :  { %v3286_v33 = vadd.f32 %v3285_v36, %v3284_v38  ;;  %v3091_v51 = vadd.f32 %v3090_v13, %v3089_v47  ;;  %v3289_v47 = vsel %vm12298_vm3, %v3183_v31, 0.0 }
 0x600   :  { %v2950_v45 = vpop.f32.mrf.mxu2  ;;  %13463 = vst [vmem:[#allocation305_spill] sm:$0xff] %v9757_v22  ;;  %v3184_v5 = vmul.f32 %v9757_v22, %v9757_v22 }
 0x601   :  { %v9759_v43 = vpop.f32.mrf.mxu3  ;;  %v3288_v28 = vadd.f32 %v3287_v60, %v3286_v33  ;;  %v9764_v38 = vadd.f32 %v9259_v30, %v2950_v45  ;;  %v3093_v12 = vadd.f32 %v3092_v15, %v3091_v51  ;;  %v3094_v33 = vsel %vm12298_vm3, %v9757_v22, 0.0 }
 0x602   :  { %v3291_v45 = vsel %vm12298_vm3, %v3184_v5, 0.0  ;;  %v9790_v5 = vadd.f32 %v9259_v30, %v9538_v1 }
 0x603   :  { %13464 = vst [vmem:[#allocation118_spill] sm:$0xff] %v9764_v38  ;;  %v3290_v62 = vadd.f32 %v3289_v47, %v3288_v28  ;;  %v3185_v60 = vmul.f32 %v9764_v38, %v9764_v38  ;;  %v3095_v41 = vadd.f32 %v3094_v33, %v3093_v12  ;;  %v3096_v51 = vsel %vm12298_vm3, %v9764_v38, 0.0 }
 0x605   :  { %v3292_v15 = vadd.f32 %v3291_v45, %v3290_v62  ;;  %v3293_v28 = vsel %vm12298_vm3, %v3185_v60, 0.0  ;;  %v3097_v12 = vadd.f32 %v3096_v51, %v3095_v41 }
 0x607   :  { %v3294_v45 = vadd.f32 %v3293_v28, %v3292_v15  ;;  %v3189_v15 = vmul.f32 %v9790_v5, %v9790_v5  ;;  %v9812_v28 = vadd.f32 %v9259_v30, %v9580_v14 }
 0x609   :  { %v2953_v36 = vpop.f32.mrf.mxu2  ;;  %v2989_v23 = vpop.f32.mrf.mxu3 }
 0x60a   :  { %v9770_v13 = vadd.f32 %v9259_v30, %v2953_v36  ;;  %v9783_v36 = vadd.f32 %v9259_v30, %v9516_v39 }
 0x60c   :  { %13465 = vst [vmem:[#allocation60_spill] sm:$0xff] %v9770_v13  ;;  %v3186_v31 = vmul.f32 %v9770_v13, %v9770_v13  ;;  %v3098_v47 = vsel %vm12298_vm3, %v9770_v13, 0.0  ;;  %v3188_v60 = vmul.f32 %v9783_v36, %v9783_v36  ;;  %v9800_v13 = vadd.f32 %v9259_v30, %v9560_v25 }
 0x60d   :  { %13466 = vst [vmem:[#allocation84_spill] sm:$0xff] %v9783_v36  ;;  %v3099_v39 = vadd.f32 %v3098_v47, %v3097_v12 }
 0x60e   :  { %v3295_v38 = vsel %vm12298_vm3, %v3186_v31, 0.0  ;;  %v3299_v22 = vsel %vm12298_vm3, %v3188_v60, 0.0  ;;  %v3191_v60 = vmul.f32 %v9812_v28, %v9812_v28 }
 0x60f   :  { %v3296_v51 = vadd.f32 %v3295_v38, %v3294_v45  ;;  %v3104_v38 = vsel %vm12298_vm3, %v9790_v5, 0.0  ;;  %v3190_v45 = vmul.f32 %v9800_v13, %v9800_v13 }
 0x611   :  { %v2956_v33 = vpop.f32.mrf.mxu2 }
 0x612   :  { %v9794_v62 = vadd.f32 %v9259_v30, %v2956_v33  ;;  %v3102_v33 = vsel %vm12298_vm3, %v9783_v36, 0.0 }
 0x614   :  { %13467 = vst [vmem:[#allocation7_spill] sm:$0xff] %v9794_v62  ;;  %v3100_v41 = vsel %vm12298_vm3, %v9794_v62, 0.0  ;;  %v3187_v1 = vmul.f32 %v9794_v62, %v9794_v62  ;;  %v3301_v62 = vsel %vm12298_vm3, %v3189_v15, 0.0  ;;  %v9840_v15 = vadd.f32 %v9259_v30, %v9668_v35 }
 0x615   :  { %v3101_v31 = vadd.f32 %v3100_v41, %v3099_v39  ;;  %v9822_v39 = vadd.f32 %v9259_v30, %v9600_v16  ;;  %v3303_v16 = vsel %vm12298_vm3, %v3190_v45, 0.0 }
 0x616   :  { %v3297_v25 = vsel %vm12298_vm3, %v3187_v1, 0.0  ;;  %v3106_v1 = vsel %vm12298_vm3, %v9800_v13, 0.0  ;;  %13470 = vst [vmem:[#allocation393_spill] sm:$0xff] %v9840_v15 }
 0x617   :  { %v3103_v47 = vadd.f32 %v3102_v33, %v3101_v31  ;;  %v3298_v12 = vadd.f32 %v3297_v25, %v3296_v51  ;;  %13468 = vst [vmem:[#allocation204_spill] sm:$0xff] %v9822_v39  ;;  %v9831_v51 = vadd.f32 %v9259_v30, %v9629_v42  ;;  %v3108_v25 = vsel %vm12298_vm3, %v9812_v28, 0.0 }
 0x618   :  { %v2992_v41 = vpop.f32.mrf.mxu3  ;;  %v3110_v42 = vsel %vm12298_vm3, %v9822_v39, 0.0 }
 0x619   :  { %v3105_v36 = vadd.f32 %v3104_v38, %v3103_v47  ;;  %v3300_v14 = vadd.f32 %v3299_v22, %v3298_v12  ;;  %13469 = vst [vmem:[#allocation331_spill] sm:$0xff] %v9831_v51  ;;  %v3192_v22 = vmul.f32 %v9822_v39, %v9822_v39  ;;  %v3305_v38 = vsel %vm12298_vm3, %v3191_v60, 0.0 }
 0x61a   :  { %v3112_v35 = vsel %vm12298_vm3, %v9831_v51, 0.0  ;;  %v3194_v60 = vmul.f32 %v9840_v15, %v9840_v15 }
 0x61b   :  { %v3107_v31 = vadd.f32 %v3106_v1, %v3105_v36  ;;  %v3302_v33 = vadd.f32 %v3301_v62, %v3300_v14  ;;  %v3193_v36 = vmul.f32 %v9831_v51, %v9831_v51  ;;  %v9849_v62 = vadd.f32 %v9259_v30, %v9706_v4 }
 0x61c   :  { %v3307_v1 = vsel %vm12298_vm3, %v3192_v22, 0.0 }
 0x61d   :  { %v3109_v47 = vadd.f32 %v3108_v25, %v3107_v31  ;;  %v3304_v12 = vadd.f32 %v3303_v16, %v3302_v33  ;;  %13471 = vst [vmem:[#allocation323_spill] sm:$0xff] %v9849_v62  ;;  %v9858_v31 = vadd.f32 %v9259_v30, %v9734_v37  ;;  %v3309_v4 = vsel %vm12298_vm3, %v3193_v36, 0.0 }
 0x61e   :  { %v3195_v22 = vmul.f32 %v9849_v62, %v9849_v62  ;;  %v3311_v37 = vsel %vm12298_vm3, %v3194_v60, 0.0  ;;  %v9883_v60 = vadd.f32 %v9259_v30, %v2992_v41 }
 0x61f   :  { %v3111_v45 = vadd.f32 %v3110_v42, %v3109_v47  ;;  %v3306_v14 = vadd.f32 %v3305_v38, %v3304_v12  ;;  %13472 = vst [vmem:[#allocation337_spill] sm:$0xff] %v9858_v31  ;;  %v3114_v47 = vsel %vm12298_vm3, %v9840_v15, 0.0  ;;  %v9867_v12 = vadd.f32 %v9259_v30, %v9759_v43 }
 0x620   :  { %v2995_v33 = vpop.f32.mrf.mxu3  ;;  %v3196_v36 = vmul.f32 %v9858_v31, %v9858_v31  ;;  %v3313_v15 = vsel %vm12298_vm3, %v3195_v22, 0.0  ;;  %v3118_v43 = vsel %vm12298_vm3, %v9858_v31, 0.0  ;;  %13475 = vst [vmem:[#allocation332_spill] sm:$0xff] %v9883_v60 }
 0x621   :  { %v3308_v16 = vadd.f32 %v3307_v1, %v3306_v14  ;;  %v3113_v25 = vadd.f32 %v3112_v35, %v3111_v45  ;;  %13473 = vst [vmem:[#allocation104_spill] sm:$0xff] %v9867_v12  ;;  %v3116_v14 = vsel %vm12298_vm3, %v9849_v62, 0.0  ;;  %v9875_v45 = vadd.f32 %v9259_v30, %v2989_v23 }
 0x622   :  { %v3120_v23 = vsel %vm12298_vm3, %v9867_v12, 0.0 }
 0x623   :  { %v3115_v38 = vadd.f32 %v3114_v47, %v3113_v25  ;;  %v3310_v42 = vadd.f32 %v3309_v4, %v3308_v16  ;;  %13474 = vst [vmem:[#allocation226_spill] sm:$0xff] %v9875_v45  ;;  %v3197_v16 = vmul.f32 %v9867_v12, %v9867_v12  ;;  %v3315_v47 = vsel %vm12298_vm3, %v3196_v36, 0.0 }
 0x624   :  { %v3122_v31 = vsel %vm12298_vm3, %v9875_v45, 0.0  ;;  %v9896_v36 = vadd.f32 %v9259_v30, %v2995_v33 }
 0x625   :  { %v3117_v1 = vadd.f32 %v3116_v14, %v3115_v38  ;;  %v3312_v35 = vadd.f32 %v3311_v37, %v3310_v42  ;;  %v3198_v38 = vmul.f32 %v9875_v45, %v9875_v45  ;;  %v3317_v14 = vsel %vm12298_vm3, %v3197_v16, 0.0 }
 0x626   :  { %13476 = vst [vmem:[#allocation97_spill] sm:$0xff] %v9896_v36  ;;  %v3126_v33 = vsel %vm12298_vm3, %v9896_v36, 0.0 }
 0x627   :  { %v3119_v25 = vadd.f32 %v3118_v43, %v3117_v1  ;;  %v3314_v4 = vadd.f32 %v3313_v15, %v3312_v35  ;;  %v3199_v15 = vmul.f32 %v9883_v60, %v9883_v60  ;;  %v3319_v35 = vsel %vm12298_vm3, %v3198_v38, 0.0 }
 0x628   :  { %v2998_v22 = vpop.f32.mrf.mxu3  ;;  %v3124_v43 = vsel %vm12298_vm3, %v9883_v60, 0.0 }
 0x629   :  { %v3121_v42 = vadd.f32 %v3120_v23, %v3119_v25  ;;  %v3316_v37 = vadd.f32 %v3315_v47, %v3314_v4  ;;  %v3321_v16 = vsel %vm12298_vm3, %v3199_v15, 0.0  ;;  %v3200_v47 = vmul.f32 %v9896_v36, %v9896_v36 }
 0x62b   :  { %v3123_v41 = vadd.f32 %v3122_v31, %v3121_v42  ;;  %v3318_v1 = vadd.f32 %v3317_v14, %v3316_v37  ;;  %v9905_v31 = vadd.f32 %v9259_v30, %v2998_v22  ;;  %v3323_v14 = vsel %vm12298_vm3, %v3200_v47, 0.0 }
 0x62d   :  { %v3320_v25 = vadd.f32 %v3319_v35, %v3318_v1  ;;  %v3125_v4 = vadd.f32 %v3124_v43, %v3123_v41  ;;  %13477 = vst [vmem:[#allocation128_spill] sm:$0xff] %v9905_v31  ;;  %v3201_v41 = vmul.f32 %v9905_v31, %v9905_v31  ;;  %v3128_v1 = vsel %vm12298_vm3, %v9905_v31, 0.0 }
 0x62f   :  { %v3322_v23 = vadd.f32 %v3321_v16, %v3320_v25  ;;  %v3127_v37 = vadd.f32 %v3126_v33, %v3125_v4  ;;  %v3325_v43 = vsel %vm12298_vm3, %v3201_v41, 0.0 }
 0x630   :  { %v3001_v42 = vpop.f32.mrf.mxu3 }
 0x631   :  { %v9910_v38 = vadd.f32 %v9259_v30, %v3001_v42  ;;  %v3324_v15 = vadd.f32 %v3323_v14, %v3322_v23  ;;  %v3129_v35 = vadd.f32 %v3128_v1, %v3127_v37 }
 0x633   :  { %13478 = vst [vmem:[#allocation306_spill] sm:$0xff] %v9910_v38  ;;  %v3202_v22 = vmul.f32 %v9910_v38, %v9910_v38  ;;  %v3130_v25 = vsel %vm12298_vm3, %v9910_v38, 0.0  ;;  %v3326_v16 = vadd.f32 %v3325_v43, %v3324_v15 }
 0x634   :  { %v3131_v33 = vadd.f32 %v3130_v25, %v3129_v35 }
 0x635   :  { %v3327_v47 = vsel %vm12298_vm3, %v3202_v22, 0.0 }
 0x636   :  { %v3328_v31 = vadd.f32 %v3327_v47, %v3326_v16 }
 0x638   :  { %v3004_v4 = vpop.f32.mrf.mxu3 }
 0x639   :  { %v3005_v42 = vadd.f32 %v9259_v30, %v3004_v4 }
 0x63b   :  { %v3132_v23 = vsel %vm12298_vm3, %v3005_v42, 0.0  ;;  %v3203_v14 = vmul.f32 %v3005_v42, %v3005_v42 }
 0x63c   :  { %v3133_v36 = vadd.f32 %v3132_v23, %v3131_v33 }
 0x63d   :  { %v3329_v60 = vsel %vm12298_vm3, %v3203_v14, 0.0 }
 0x63e   :  { %v3134_v37 = vrot.slane %v3133_v36, 4  ;;  %v3330_v1 = vadd.f32 %v3329_v60, %v3328_v31 }
 0x640   :  { %v3135_v41 = vadd.f32 %v3134_v37, %v3133_v36  ;;  %v3331_v45 = vrot.slane %v3330_v1, 4 }
 0x642   :  { %v3136_v12 = vrot.slane %v3135_v41, 2  ;;  %v3332_v38 = vadd.f32 %v3331_v45, %v3330_v1 }
 0x644   :  { %v3137_v15 = vadd.f32 %v3136_v12, %v3135_v41  ;;  %v3333_v43 = vrot.slane %v3332_v38, 2  ;;  %v3341_v12 = vld [vmem:[%s12011_s3] sm:$0x1]  ;;  %s5231_s3 = smov 36  }
 0x646   :  { %v3138_v62 = vrot.slane %v3137_v15, 1  ;;  %v3334_v22 = vadd.f32 %v3333_v43, %v3332_v38 }
 0x648   :  { %v3139_v51 = vadd.f32 %v3138_v62, %v3137_v15  ;;  %v3335_v30 = vrot.slane %v3334_v22, 1 }
 0x64a   :  { %v3336_v35 = vadd.f32 %v3335_v30, %v3334_v22  ;;  %v3337_v25 = vmul.f32 0.001953125, %v3139_v51 }
 0x64c   :  { %v3338_v4 = vmul.f32 0.001953125, %v3336_v35  ;;  %v3339_v39 = vmul.f32 %v3337_v25, %v3337_v25 }
 0x64e   :  { %v3340_v16 = vsub.f32 %v3338_v4, %v3339_v39  ;;  %v3354_v39 = vld [vmem:[%s12012_s4] sm:$0x1]  ;;  %v13482_v4 = vld [vmem:[#allocation305_spill] sm:$0xff]  ;;  %s5232_s4 = smov 40  }
 0x650   :  { %v3342_v47 = vadd.f32 1e-05, %v3340_v16  ;;  %v13483_v16 = vld [vmem:[#allocation118_spill] sm:$0xff] }
 0x652   :  { %5132 = vrsqrt.f32 %v3342_v47  ;;  %vm3349_vm13 = vweird.f32 %v3342_v47 }
 0x658   :  { %v5133_v33 = vpop.eup %5132 }
 0x659   :  { %v3344_v23 = vmul.f32 %v5133_v33, %v3342_v47  ;;  %vm3350_vm12 = vweird.f32 %v5133_v33  ;;  %v13484_v47 = vld [vmem:[#allocation60_spill] sm:$0xff] }
 0x65a   :  { %vm3351_vm14 = vmor %vm3349_vm13, %vm3350_vm12  ;;  %vm12302_vm12 = vcmask 1044484  }
 0x65b   :  { %v3345_v60 = vmul.f32 %v5133_v33, %v3344_v23  ;;  %v13486_v23 = vld [vmem:[#allocation84_spill] sm:$0xff] }
 0x65d   :  { %v3346_v36 = vmul.f32 0.5, %v3345_v60 }
 0x65f   :  { %v3347_v31 = vsub.f32 1.5, %v3346_v36 }
 0x661   :  { %v3348_v45 = vmul.f32 %v5133_v33, %v3347_v31  ;;  %v13487_v31 = vld [vmem:[#allocation204_spill] sm:$0xff] }
 0x663   :  { %v3352_v62 = vsel %vm3351_vm14, %v5133_v33, %v3348_v45  ;;  %v13485_v33 = vld [vmem:[#allocation7_spill] sm:$0xff] }
 0x664   :  { %v3353_v51 = vmul.f32 %v3352_v62, %v3341_v12 }
 0x666   :  { %v3355_v38 = vmul.f32 %v3353_v51, %v3337_v25  ;;  %v9932_v14 = vperm.slane %v3353_v51, 0 }
 0x668   :  { %v3356_v37 = vsub.f32 %v3354_v39, %v3355_v38  ;;  %v3423_v1 = vmul.f32 %v9932_v14, %v3005_v42  ;;  %v9942_v43 = vmul.f32 %v9932_v14, %v9270_v58  ;;  %v9946_v22 = vmul.f32 %v9932_v14, %v9301_v61  ;;  %v13489_v38 = vld [vmem:[#allocation393_spill] sm:$0xff] }
 0x669   :  { %v9950_v30 = vmul.f32 %v9932_v14, %v9337_v6  ;;  %v9954_v42 = vmul.f32 %v9932_v14, %v9369_v21  ;;  %v9958_v35 = vmul.f32 %v9932_v14, %v9392_v3  ;;  %v9962_v58 = vmul.f32 %v9932_v14, %v9420_v52 }
 0x66a   :  { %v9935_v41 = vperm.slane %v3356_v37, 0  ;;  %v9966_v61 = vmul.f32 %v9932_v14, %v9440_v49  ;;  %v9970_v6 = vmul.f32 %v9932_v14, %v9470_v56  ;;  %v9974_v21 = vmul.f32 %v9932_v14, %v9474_v0 }
 0x66b   :  { %v9978_v3 = vmul.f32 %v9932_v14, %v9490_v19  ;;  %v9982_v52 = vmul.f32 %v9932_v14, %v9499_v54  ;;  %v9986_v49 = vmul.f32 %v9932_v14, %v9512_v32  ;;  %v9990_v56 = vmul.f32 %v9932_v14, %v9523_v44 }
 0x66c   :  { %v9938_v15 = vadd.f32 %v9935_v41, %v3423_v1  ;;  %v9994_v0 = vmul.f32 %v9932_v14, %v9534_v34  ;;  %v9998_v19 = vmul.f32 %v9932_v14, %v9545_v8  ;;  %v10002_v54 = vmul.f32 %v9932_v14, %v9556_v63  ;;  %v13490_v1 = vld [vmem:[#allocation323_spill] sm:$0xff] }
 0x66d   :  { %v10006_v32 = vmul.f32 %v9932_v14, %v9566_v59  ;;  %v10010_v44 = vmul.f32 %v9932_v14, %v9576_v50  ;;  %v10014_v34 = vmul.f32 %v9932_v14, %v9586_v55  ;;  %v10018_v8 = vmul.f32 %v9932_v14, %v9596_v11 }
 0x66e   :  { %13479 = vst [vmem:[#allocation61_spill] sm:$0xff] %v9938_v15  ;;  %v10022_v63 = vmul.f32 %v9932_v14, %v9606_v27  ;;  %v10026_v59 = vmul.f32 %v9932_v14, %v9609_v10  ;;  %v10030_v50 = vmul.f32 %v9932_v14, %v9616_v24  ;;  %v10034_v55 = vmul.f32 %v9932_v14, %v9647_v53 }
 0x66f   :  { %v3392_v11 = vmul.f32 %v9932_v14, %v9633_v17  ;;  %v10040_v25 = vmul.f32 %v9932_v14, %v9643_v46  ;;  %v3394_v27 = vmul.f32 %v9932_v14, %v9653_v9  ;;  %v10046_v10 = vmul.f32 %v9932_v14, %v9665_v57 }
 0x670   :  { %13480 = vst [vmem:[#allocation10_spill] sm:$0xff] %v10022_v63  ;;  %v3396_v24 = vmul.f32 %v9932_v14, %v9677_v26  ;;  %v10052_v53 = vmul.f32 %v9932_v14, %v9686_v2  ;;  %v3398_v17 = vmul.f32 %v9932_v14, %v9695_v20  ;;  %v10058_v46 = vmul.f32 %v9932_v14, %v9704_v18 }
 0x671   :  { %13481 = vst [vmem:[#allocation150_spill] sm:$0xff] %v10030_v50  ;;  %v3400_v9 = vmul.f32 %v9932_v14, %v9715_v48  ;;  %v10064_v57 = vmul.f32 %v9932_v14, %v9729_v29  ;;  %v3402_v26 = vmul.f32 %v9932_v14, %v9741_v7  ;;  %v10070_v2 = vmul.f32 %v9932_v14, %v9749_v40 }
 0x672   :  { %v3404_v20 = vmul.f32 %v9932_v14, %v13482_v4  ;;  %v10076_v18 = vmul.f32 %v9932_v14, %v13483_v16  ;;  %v3406_v48 = vmul.f32 %v9932_v14, %v13484_v47  ;;  %v10082_v29 = vmul.f32 %v9932_v14, %v13485_v33  ;;  %v13491_v16 = vld [vmem:[#allocation337_spill] sm:$0xff] }
 0x673   :  { %v10086_v7 = vmul.f32 %v9932_v14, %v13486_v23  ;;  %v10090_v40 = vmul.f32 %v9932_v14, %v9790_v5  ;;  %v10094_v60 = vmul.f32 %v9932_v14, %v9800_v13  ;;  %v10098_v36 = vmul.f32 %v9932_v14, %v9812_v28  ;;  %v13488_v5 = vld [vmem:[#allocation331_spill] sm:$0xff] }
 0x674   :  { %v10102_v12 = vmul.f32 %v9932_v14, %v13487_v31  ;;  %v3459_v45 = vadd.f32 %v9935_v41, %v3392_v11  ;;  %v3461_v62 = vadd.f32 %v9935_v41, %v3394_v27  ;;  %v10108_v51 = vmul.f32 %v9932_v14, %v13488_v5 }
 0x675   :  { %v3463_v13 = vadd.f32 %v9935_v41, %v3396_v24  ;;  %v3465_v39 = vadd.f32 %v9935_v41, %v3398_v17  ;;  %v3467_v28 = vadd.f32 %v9935_v41, %v3400_v9  ;;  %v10115_v37 = vmul.f32 %v9932_v14, %v13489_v38 }
 0x676   :  { %v10119_v11 = vmul.f32 %v9932_v14, %v13490_v1  ;;  %v3469_v27 = vadd.f32 %v9935_v41, %v3402_v26  ;;  %v3471_v4 = vadd.f32 %v9935_v41, %v3404_v20  ;;  %v3473_v24 = vadd.f32 %v9935_v41, %v3406_v48 }
 0x677   :  { %vm3523_vm13 = vcmp.ge.f32.partialorder %v3459_v45, 0.0  ;;  %vm3525_vm14 = vcmp.ge.f32.partialorder %v3461_v62, 0.0  ;;  %vm3527_vm2 = vcmp.ge.f32.partialorder %v3463_v13, 0.0  ;;  %vm3529_vm11 = vcmp.ge.f32.partialorder %v3465_v39, 0.0 }
 0x678   :  { %vm3531_vm9 = vcmp.ge.f32.partialorder %v3467_v28, 0.0  ;;  %v3587_v17 = vmul.f32 0.01, %v3459_v45  ;;  %v3589_v9 = vmul.f32 0.01, %v3461_v62  ;;  %v10126_v47 = vmul.f32 %v9932_v14, %v13491_v16  ;;  %v13495_v16 = vld [vmem:[#allocation104_spill] sm:$0xff] }
 0x679   :  { %v3591_v33 = vmul.f32 0.01, %v3463_v13  ;;  %v3593_v26 = vmul.f32 0.01, %v3465_v39  ;;  %v3595_v23 = vmul.f32 0.01, %v3467_v28  ;;  %v10139_v15 = vmul.f32 %v9932_v14, %v13495_v16 }
 0x67a   :  { %vm3533_vm6 = vcmp.ge.f32.partialorder %v3469_v27, 0.0  ;;  %v3597_v20 = vmul.f32 0.01, %v3469_v27  ;;  %v3599_v48 = vmul.f32 0.01, %v3471_v4  ;;  %v10129_v31 = vsel %vm3523_vm13, %v3459_v45, %v3587_v17  ;;  %v13497_v45 = vld [vmem:[#allocation226_spill] sm:$0xff] }
 0x67b   :  { %13492 = vst [vmem:[#allocation101_spill] sm:$0xff] %v10129_v31  ;;  %vm3535_vm4 = vcmp.ge.f32.partialorder %v3471_v4, 0.0  ;;  %v3601_v5 = vmul.f32 0.01, %v3473_v24  ;;  %v10132_v38 = vsel %vm3527_vm2, %v3463_v13, %v3591_v33  ;;  %v10135_v1 = vsel %vm3529_vm11, %v3465_v39, %v3593_v26 }
 0x67c   :  { %13493 = vst [vmem:[#allocation227_spill] sm:$0xff] %v10132_v38  ;;  %vm3537_vm5 = vcmp.ge.f32.partialorder %v3473_v24, 0.0  ;;  %v10142_v50 = vsel %vm3531_vm9, %v3467_v28, %v3595_v23  ;;  %v3810_v63 = vrot.slane %v10129_v31, 1  ;;  %v10147_v17 = vmul.f32 %v9932_v14, %v13497_v45 }
 0x67d   :  { %13494 = vst [vmem:[#allocation320_spill] sm:$0xff] %v10135_v1  ;;  %v10150_v13 = vsel %vm3525_vm14, %v3461_v62, %v3589_v9  ;;  %v10152_v33 = vsel %vm3533_vm6, %v3469_v27, %v3597_v20  ;;  %v3812_v39 = vrot.slane %v10132_v38, 7  ;;  %v10155_v26 = vsel %vm3535_vm4, %v3471_v4, %v3599_v48 }
 0x67e   :  { %13496 = vst [vmem:[#allocation395_spill] sm:$0xff] %v10142_v50  ;;  %v3811_v16 = vsel %vm12339_vm15, %v10150_v13, %v3810_v63  ;;  %v3814_v28 = vrot.slane %v10135_v1, 6  ;;  %v10162_v23 = vadd.f32 %v9935_v41, %v9942_v43  ;;  %v10164_v45 = vsel %vm3537_vm5, %v3473_v24, %v3601_v5  ;;  %v13502_v24 = vld [vmem:[#allocation332_spill] sm:$0xff] }
 0x67f   :  { %13498 = vst [vmem:[#allocation85_spill] sm:$0xff] %v10150_v13  ;;  %v3813_v62 = vsel %vm12314_vm0, %v3812_v39, %v3811_v16  ;;  %v3816_v27 = vrot.slane %v10142_v50, 5  ;;  %v10170_v9 = vadd.f32 %v9935_v41, %v9946_v22  ;;  %v3818_v63 = vrot.slane %v10152_v33, 4 }
 0x680   :  { %13499 = vst [vmem:[#allocation327_spill] sm:$0xff] %v10152_v33  ;;  %v3815_v4 = vsel %vm12304_vm1, %v3814_v28, %v3813_v62  ;;  %v10176_v20 = vadd.f32 %v9935_v41, %v9950_v30  ;;  %v10180_v43 = vadd.f32 %v9935_v41, %v9954_v42  ;;  %v3419_v48 = vmul.f32 %v9932_v14, %v13502_v24  ;;  %v13503_v62 = vld [vmem:[#allocation97_spill] sm:$0xff] }
 0x681   :  { %13500 = vst [vmem:[#allocation341_spill] sm:$0xff] %v10155_v26  ;;  %v3817_v5 = vsel %vm12302_vm12, %v3816_v27, %v3815_v4  ;;  %v3820_v22 = vrot.slane %v10155_v26, 3  ;;  %v10188_v39 = vadd.f32 %v9935_v41, %v9958_v35  ;;  %v3822_v30 = vrot.slane %v10164_v45, 2  ;;  %v13504_v4 = vld [vmem:[#allocation128_spill] sm:$0xff] }
 0x682   :  { %13501 = vst [vmem:[#allocation9_spill] sm:$0xff] %v10164_v45  ;;  %v3819_v16 = vsel %vm12301_vm10, %v3818_v63, %v3817_v5  ;;  %v10194_v28 = vadd.f32 %v9935_v41, %v9962_v58  ;;  %v10198_v42 = vadd.f32 %v9935_v41, %v9966_v61  ;;  %v3420_v27 = vmul.f32 %v9932_v14, %v13503_v62  ;;  %v13505_v5 = vld [vmem:[#allocation306_spill] sm:$0xff] }
 0x683   :  { %v3421_v24 = vmul.f32 %v9932_v14, %v13504_v4  ;;  %v3821_v35 = vsel %vm12300_vm7, %v3820_v22, %v3819_v16  ;;  %v10207_v63 = vadd.f32 %v9935_v41, %v9970_v6  ;;  %v3422_v58 = vmul.f32 %v9932_v14, %v13505_v5 }
 0x684   :  { %v3823_v45 = vsel %vm12299_vm8, %v3822_v30, %v3821_v35  ;;  %v10214_v61 = vadd.f32 %v9935_v41, %v9978_v3  ;;  %v10218_v62 = vadd.f32 %v9935_v41, %v9986_v49  ;;  %v3443_v22 = vadd.f32 %v9935_v41, %v9974_v21 }
 0x685   :  { %3842 = vrot.lane.b32.xlu1 %v3823_v45, %s5223_s18  ;;  %v3445_v6 = vadd.f32 %v9935_v41, %v9982_v52  ;;  %v10227_v16 = vadd.f32 %v9935_v41, %v9994_v0  ;;  %v10231_v3 = vadd.f32 %v9935_v41, %v10002_v54  ;;  %v3447_v49 = vadd.f32 %v9935_v41, %v9990_v56 }
 0x686   :  { %v3449_v45 = vadd.f32 %v9935_v41, %v9998_v19  ;;  %v10239_v21 = vadd.f32 %v9935_v41, %v10010_v44  ;;  %v10243_v52 = vadd.f32 %v9935_v41, %v10018_v8  ;;  %v3451_v0 = vadd.f32 %v9935_v41, %v10006_v32 }
 0x687   :  { %v3453_v54 = vadd.f32 %v9935_v41, %v10014_v34  ;;  %v10251_v56 = vadd.f32 %v9935_v41, %v10026_v59  ;;  %v10255_v19 = vadd.f32 %v9935_v41, %v10034_v55  ;;  %v10259_v44 = vadd.f32 %v9935_v41, %v10040_v25 }
 0x688   :  { %v10263_v8 = vadd.f32 %v9935_v41, %v10046_v10  ;;  %v10267_v32 = vadd.f32 %v9935_v41, %v10052_v53  ;;  %v10271_v34 = vadd.f32 %v9935_v41, %v10058_v46  ;;  %v10275_v59 = vadd.f32 %v9935_v41, %v10064_v57 }
 0x689   :  { %v10279_v55 = vadd.f32 %v9935_v41, %v10070_v2  ;;  %v10283_v25 = vadd.f32 %v9935_v41, %v10076_v18  ;;  %v10287_v10 = vadd.f32 %v9935_v41, %v10082_v29  ;;  %v10291_v53 = vadd.f32 %v9935_v41, %v10086_v7 }
 0x68a   :  { %v10295_v46 = vadd.f32 %v9935_v41, %v10090_v40  ;;  %v10299_v57 = vadd.f32 %v9935_v41, %v10094_v60  ;;  %v10303_v2 = vadd.f32 %v9935_v41, %v10098_v36  ;;  %v10307_v18 = vadd.f32 %v9935_v41, %v10102_v12 }
 0x68b   :  { %v10311_v29 = vadd.f32 %v9935_v41, %v10108_v51  ;;  %v10315_v7 = vadd.f32 %v9935_v41, %v10115_v37  ;;  %v10319_v40 = vadd.f32 %v9935_v41, %v10119_v11  ;;  %v10323_v60 = vadd.f32 %v9935_v41, %v10126_v47  ;;  %v13511_v37 = vld [vmem:[#allocation10_spill] sm:$0xff] }
 0x68c   :  { %v10327_v36 = vadd.f32 %v9935_v41, %v10139_v15  ;;  %v10331_v12 = vadd.f32 %v9935_v41, %v10147_v17  ;;  %v10334_v51 = vadd.f32 %v9935_v41, %v3419_v48  ;;  %v3455_v30 = vadd.f32 %v9935_v41, %v13511_v37  ;;  %v13513_v15 = vld [vmem:[#allocation150_spill] sm:$0xff] }
 0x68d   :  { %13506 = vst [vmem:[#allocation153_spill] sm:$0xff] %v10319_v40  ;;  %v10339_v11 = vadd.f32 %v9935_v41, %v3420_v27  ;;  %v10342_v47 = vadd.f32 %v9935_v41, %v3421_v24  ;;  %v10345_v4 = vadd.f32 %v9935_v41, %v3422_v58  ;;  %v3457_v35 = vadd.f32 %v9935_v41, %v13513_v15 }
 0x68e   :  { %13507 = vst [vmem:[#allocation123_spill] sm:$0xff] %v10323_v60  ;;  %vm3507_vm2 = vcmp.ge.f32.partialorder %v3443_v22, 0.0  ;;  %vm3509_vm4 = vcmp.ge.f32.partialorder %v3445_v6, 0.0  ;;  %vm3511_vm5 = vcmp.ge.f32.partialorder %v3447_v49, 0.0  ;;  %vm3513_vm6 = vcmp.ge.f32.partialorder %v3449_v45, 0.0 }
 0x68f   :  { %13508 = vst [vmem:[#allocation210_spill] sm:$0xff] %v10327_v36  ;;  %vm3515_vm9 = vcmp.ge.f32.partialorder %v3451_v0, 0.0  ;;  %vm3517_vm11 = vcmp.ge.f32.partialorder %v3453_v54, 0.0  ;;  %v3571_v17 = vmul.f32 0.01, %v3443_v22  ;;  %vm3519_vm13 = vcmp.ge.f32.partialorder %v3455_v30, 0.0 }
 0x690   :  { %13509 = vst [vmem:[#allocation334_spill] sm:$0xff] %v10331_v12  ;;  %v3573_v48 = vmul.f32 0.01, %v3445_v6  ;;  %v3575_v5 = vmul.f32 0.01, %v3447_v49  ;;  %vm3521_vm14 = vcmp.ge.f32.partialorder %v3457_v35, 0.0 }
 0x691   :  { %13510 = vst [vmem:[#allocation396_spill] sm:$0xff] %v10334_v51  ;;  %v3577_v27 = vmul.f32 0.01, %v3449_v45  ;;  %v3579_v37 = vmul.f32 0.01, %v3451_v0  ;;  %v10349_v26 = vsel %vm3507_vm2, %v3443_v22, %v3571_v17 }
 0x692   :  { %13512 = vst [vmem:[#allocation108_spill] sm:$0xff] %v10345_v4  ;;  %v3581_v38 = vmul.f32 0.01, %v3453_v54  ;;  %v3583_v24 = vmul.f32 0.01, %v3455_v30  ;;  %v10351_v33 = vsel %vm3511_vm5, %v3447_v49, %v3575_v5  ;;  %v3796_v1 = vrot.slane %v10349_v26, 1 }
 0x693   :  { %13514 = vst [vmem:[#allocation132_spill] sm:$0xff] %v10349_v26  ;;  %v3585_v58 = vmul.f32 0.01, %v3457_v35  ;;  %v10353_v15 = vsel %vm3513_vm6, %v3449_v45, %v3577_v27  ;;  %v10355_v50 = vsel %vm3515_vm9, %v3451_v0, %v3579_v37  ;;  %v10359_v13 = vsel %vm3509_vm4, %v3445_v6, %v3573_v48 }
 0x694   :  { %13515 = vst [vmem:[#allocation12_spill] sm:$0xff] %v10351_v33  ;;  %v10362_v31 = vsel %vm3517_vm11, %v3453_v54, %v3581_v38  ;;  %v3798_v22 = vrot.slane %v10351_v33, 7  ;;  %v10365_v17 = vsel %vm3519_vm13, %v3455_v30, %v3583_v24  ;;  %v3797_v49 = vsel %vm12339_vm15, %v10359_v13, %v3796_v1  ;;  %v13526_v33 = vld [vmem:[#allocation56_spill] sm:$0xff] }
 0x695   :  { %13516 = vst [vmem:[#allocation28_spill] sm:$0xff] %v10353_v15  ;;  %v3800_v45 = vrot.slane %v10353_v15, 6  ;;  %v10370_v5 = vsel %vm3521_vm14, %v3457_v35, %v3585_v58  ;;  %v3802_v27 = vrot.slane %v10355_v50, 5  ;;  %v3804_v38 = vrot.slane %v10362_v31, 4  ;;  %v13522_v35 = vld [vmem:[#allocation79_spill] sm:$0xff]  ;;  %v13523_v58 = vld [vmem:[#allocation321_spill] sm:$0xff] }
 0x696   :  { %13517 = vst [vmem:[#allocation124_spill] sm:$0xff] %v10355_v50  ;;  %v3799_v0 = vsel %vm12314_vm0, %v3798_v22, %v3797_v49  ;;  %v3806_v30 = vrot.slane %v10365_v17, 3  ;;  %v3808_v1 = vrot.slane %v10370_v5, 2  ;;  %v3360_v24 = vmul.f32 %v9932_v14, %v13522_v35  ;;  %v13524_v49 = vld [vmem:[#allocation102_spill] sm:$0xff] }
 0x697   :  { %13518 = vst [vmem:[#allocation147_spill] sm:$0xff] %v10359_v13  ;;  %v3801_v6 = vsel %vm12304_vm1, %v3800_v45, %v3799_v0  ;;  %v3362_v22 = vmul.f32 %v9932_v14, %v13523_v58  ;;  %v3364_v45 = vmul.f32 %v9932_v14, %v13524_v49  ;;  %v13529_v58 = vld [vmem:[#allocation103_spill] sm:$0xff]  ;;  %vm3492_vm9 = vcmp.ge.f32.partialorder %v10162_v23, 0.0 }
 0x698   :  { %13519 = vst [vmem:[#allocation232_spill] sm:$0xff] %v10362_v31  ;;  %v3803_v54 = vsel %vm12302_vm12, %v3802_v27, %v3801_v6  ;;  %v13525_v27 = vld [vmem:[#allocation304_spill] sm:$0xff]  ;;  %v3427_v49 = vadd.f32 %v9935_v41, %v3360_v24  ;;  %vm3498_vm12 = vcmp.ge.f32.partialorder %v10180_v43, 0.0  ;;  %vm3502_vm1 = vcmp.ge.f32.partialorder %v10194_v28, 0.0 }
 0x699   :  { %13520 = vst [vmem:[#allocation252_spill] sm:$0xff] %v10365_v17  ;;  %v3805_v48 = vsel %vm12301_vm10, %v3804_v38, %v3803_v54  ;;  %v3366_v6 = vmul.f32 %v9932_v14, %v13525_v27  ;;  %v3368_v38 = vmul.f32 %v9932_v14, %v13526_v33  ;;  %v13527_v54 = vld [vmem:[#allocation80_spill] sm:$0xff]  ;;  %vm3496_vm10 = vcmp.ge.f32.partialorder %v10176_v20, 0.0 }
 0x69a   :  { %13521 = vst [vmem:[#allocation335_spill] sm:$0xff] %v10370_v5  ;;  %v3807_v37 = vsel %vm12300_vm7, %v3806_v30, %v3805_v48  ;;  %v3370_v30 = vmul.f32 %v9932_v14, %v13527_v54  ;;  %v13528_v48 = vld [vmem:[#allocation322_spill] sm:$0xff]  ;;  %v3374_v5 = vmul.f32 %v9932_v14, %v13529_v58  ;;  %vm3491_vm4 = vcmp.ge.f32.partialorder %v3427_v49, 0.0 }
 0x69b   :  { %v3809_v0 = vsel %vm12299_vm8, %v3808_v1, %v3807_v37  ;;  %v3372_v35 = vmul.f32 %v9932_v14, %v13528_v48  ;;  %v3429_v1 = vadd.f32 %v9935_v41, %v3362_v22  ;;  %v3431_v37 = vadd.f32 %v9935_v41, %v3364_v45 }
 0x69c   :  { %3840 = vrot.lane.b32.xlu0 %v3809_v0, %s5223_s18  ;;  %v3433_v27 = vadd.f32 %v9935_v41, %v3366_v6  ;;  %v3435_v33 = vadd.f32 %v9935_v41, %v3368_v38  ;;  %v3437_v54 = vadd.f32 %v9935_v41, %v3370_v30  ;;  %v10407_v48 = vadd.f32 %v9935_v41, %v3374_v5  ;;  %v13530_v0 = vld [vmem:[#allocation61_spill] sm:$0xff] }
 0x69d   :  { %v3439_v17 = vadd.f32 %v9935_v41, %v3372_v35  ;;  %v3618_v31 = vmul.f32 0.01, %v13530_v0  ;;  %vm3554_vm2 = vcmp.ge.f32.partialorder %v13530_v0, 0.0  ;;  %vm3493_vm5 = vcmp.ge.f32.partialorder %v3429_v1, 0.0 }
 0x69e   :  { %vm3495_vm6 = vcmp.ge.f32.partialorder %v3431_v37, 0.0  ;;  %vm3497_vm11 = vcmp.ge.f32.partialorder %v3433_v27, 0.0  ;;  %vm3499_vm13 = vcmp.ge.f32.partialorder %v3435_v33, 0.0  ;;  %vm3501_vm14 = vcmp.ge.f32.partialorder %v3437_v54, 0.0 }
 0x69f   :  { %vm3503_vm3 = vcmp.ge.f32.partialorder %v3439_v17, 0.0  ;;  %vm3494_vm8 = vcmp.ge.f32.partialorder %v10170_v9, 0.0  ;;  %vm3505_vm7 = vcmp.ge.f32.partialorder %v10407_v48, 0.0  ;;  %v3555_v14 = vmul.f32 0.01, %v3427_v49 }
 0x6a0   :  { %v3556_v41 = vmul.f32 0.01, %v10162_v23  ;;  %v10417_v24 = vsel %vm3554_vm2, %v13530_v0, %v3618_v31  ;;  %v3557_v22 = vmul.f32 0.01, %v3429_v1  ;;  %v3558_v45 = vmul.f32 0.01, %v10170_v9 }
 0x6a1   :  { %13531 = vst [vmem:[#allocation349_spill] sm:$0xff] %v10417_v24  ;;  %v3559_v6 = vmul.f32 0.01, %v3431_v37  ;;  %v10423_v38 = vmul.f32 0.01, %v10176_v20  ;;  %v10429_v58 = vsel %vm3491_vm4, %v3427_v49, %v3555_v14  ;;  %vm3500_vm2 = vcmp.ge.f32.partialorder %v10188_v39, 0.0 }
 0x6a2   :  { %v3561_v30 = vmul.f32 0.01, %v3433_v27  ;;  %v10426_v35 = vmul.f32 0.01, %v10180_v43  ;;  %13532 = vst [vmem:[#allocation388_spill] sm:$0xff] %v10429_v58  ;;  %v10436_v24 = vsel %vm3493_vm5, %v3429_v1, %v3557_v22  ;;  %vm3504_vm4 = vcmp.ge.f32.partialorder %v10198_v42, 0.0 }
 0x6a3   :  { %v3563_v31 = vmul.f32 0.01, %v3435_v33  ;;  %v10433_v0 = vmul.f32 0.01, %v10188_v39  ;;  %v3565_v5 = vmul.f32 0.01, %v3437_v54  ;;  %v10446_v49 = vsel %vm3495_vm6, %v3431_v37, %v3559_v6 }
 0x6a4   :  { %13533 = vst [vmem:[#allocation400_spill] sm:$0xff] %v10436_v24  ;;  %v10440_v26 = vmul.f32 0.01, %v10194_v28  ;;  %v3567_v50 = vmul.f32 0.01, %v3439_v17  ;;  %v10456_v22 = vsel %vm3497_vm11, %v3433_v27, %v3561_v30  ;;  %vm3506_vm5 = vcmp.ge.f32.partialorder %v10207_v63, 0.0 }
 0x6a5   :  { %v10443_v15 = vmul.f32 0.01, %v10198_v42  ;;  %13535 = vst [vmem:[#allocation86_spill] sm:$0xff] %v10446_v49  ;;  %v3569_v14 = vmul.f32 0.01, %v10407_v48  ;;  %v10469_v6 = vsel %vm3499_vm13, %v3435_v33, %v3563_v31  ;;  %vm3510_vm11 = vcmp.ge.f32.partialorder %v10218_v62, 0.0 }
 0x6a6   :  { %v10450_v13 = vmul.f32 0.01, %v10207_v63  ;;  %v10453_v1 = vmul.f32 0.01, %v10214_v61  ;;  %v10460_v24 = vmul.f32 0.01, %v10218_v62 }
 0x6a7   :  { %13534 = vst [vmem:[#allocation62_spill] sm:$0xff] %v10443_v15  ;;  %v10463_v15 = vmul.f32 0.01, %v10227_v16  ;;  %v10466_v37 = vmul.f32 0.01, %v10231_v3  ;;  %vm3516_vm6 = vcmp.ge.f32.partialorder %v10239_v21, 0.0 }
 0x6a8   :  { %v10475_v27 = vmul.f32 0.01, %v10239_v21  ;;  %v10478_v30 = vmul.f32 0.01, %v10243_v52  ;;  %v10490_v33 = vmul.f32 0.01, %v10255_v19 }
 0x6a9   :  { %13536 = vst [vmem:[#allocation4_spill] sm:$0xff] %v10463_v15  ;;  %v10481_v15 = vmul.f32 0.01, %v10251_v56  ;;  %v10493_v31 = vmul.f32 0.01, %v10259_v44  ;;  %vm3552_vm13 = vcmp.ge.f32.partialorder %v10342_v47, 0.0 }
 0x6aa   :  { %13537 = vst [vmem:[#allocation30_spill] sm:$0xff] %v10466_v37  ;;  %v10484_v37 = vsel %vm3501_vm14, %v3437_v54, %v3565_v5  ;;  %vm3518_vm14 = vcmp.ge.f32.partialorder %v10243_v52, 0.0  ;;  %v10505_v54 = vmul.f32 0.01, %v10267_v32  ;;  %v10508_v5 = vmul.f32 0.01, %v10271_v34 }
 0x6ab   :  { %13538 = vst [vmem:[#allocation107_spill] sm:$0xff] %v10478_v30  ;;  %v10496_v30 = vmul.f32 0.01, %v10263_v8  ;;  %vm3553_vm0 = vcmp.ge.f32.partialorder %v10345_v4, 0.0 }
 0x6ac   :  { %13539 = vst [vmem:[#allocation131_spill] sm:$0xff] %v10481_v15  ;;  %v10499_v15 = vsel %vm3503_vm3, %v3439_v17, %v3567_v50  ;;  %v10516_v50 = vsel %vm3505_vm7, %v10407_v48, %v3569_v14  ;;  %vm3524_vm3 = vcmp.ge.f32.partialorder %v10259_v44, 0.0  ;;  %v10522_v17 = vmul.f32 0.01, %v10279_v55 }
 0x6ad   :  { %13540 = vst [vmem:[#allocation233_spill] sm:$0xff] %v10493_v31  ;;  %v10511_v31 = vmul.f32 0.01, %v10275_v59  ;;  %v10533_v48 = vsel %vm3492_vm9, %v10162_v23, %v3556_v41  ;;  %vm3530_vm7 = vcmp.ge.f32.partialorder %v10271_v34, 0.0  ;;  %v10539_v14 = vmul.f32 0.01, %v10291_v53 }
 0x6ae   :  { %13541 = vst [vmem:[#allocation31_spill] sm:$0xff] %v10505_v54  ;;  %v10525_v54 = vmul.f32 0.01, %v10283_v25  ;;  %v10550_v23 = vsel %vm3494_vm8, %v10170_v9, %v3558_v45  ;;  %vm3536_vm9 = vcmp.ge.f32.partialorder %v10283_v25, 0.0  ;;  %v10556_v41 = vmul.f32 0.01, %v10303_v2 }
 0x6af   :  { %13542 = vst [vmem:[#allocation326_spill] sm:$0xff] %v10508_v5  ;;  %v10528_v5 = vmul.f32 0.01, %v10287_v10  ;;  %v10568_v9 = vsel %vm3496_vm10, %v10176_v20, %v10423_v38  ;;  %v10574_v45 = vmul.f32 0.01, %v10315_v7  ;;  %v10586_v20 = vsel %vm3498_vm12, %v10180_v43, %v10426_v35 }
 0x6b0   :  { %13543 = vst [vmem:[#allocation340_spill] sm:$0xff] %v10516_v50  ;;  %vm3543_vm10 = vcmp.ge.f32.partialorder %v10307_v18, 0.0  ;;  %v3612_v38 = vmul.f32 0.01, %v10327_v36  ;;  %v10599_v43 = vsel %vm3500_vm2, %v10188_v39, %v10433_v0  ;;  %vm3547_vm12 = vcmp.ge.f32.partialorder %v10323_v60, 0.0 }
 0x6b1   :  { %13544 = vst [vmem:[#allocation398_spill] sm:$0xff] %v10522_v17  ;;  %v10542_v17 = vmul.f32 0.01, %v10295_v46  ;;  %vm3550_vm8 = vcmp.ge.f32.partialorder %v10334_v51, 0.0  ;;  %v3615_v35 = vmul.f32 0.01, %v10339_v11  ;;  %v10612_v39 = vsel %vm3502_vm1, %v10194_v28, %v10440_v26 }
 0x6b2   :  { %13545 = vst [vmem:[#allocation109_spill] sm:$0xff] %v10525_v54  ;;  %v10545_v54 = vmul.f32 0.01, %v10299_v57  ;;  %vm3551_vm2 = vcmp.ge.f32.partialorder %v10339_v11, 0.0  ;;  %v3782_v0 = vrot.slane %v10429_v58, 1  ;;  %v3790_v36 = vrot.slane %v10484_v37, 4 }
 0x6b3   :  { %13546 = vst [vmem:[#allocation133_spill] sm:$0xff] %v10533_v48  ;;  %v10559_v48 = vmul.f32 0.01, %v10307_v18  ;;  %v3794_v26 = vrot.slane %v10516_v50, 2  ;;  %v13555_v28 = vld [vmem:[#allocation62_spill] sm:$0xff]  ;;  %vm13557_vm1 = vcmp.ge.f32.partialorder %v10214_v61, 0.0 }
 0x6b4   :  { %13547 = vst [vmem:[#allocation5_spill] sm:$0xff] %v10542_v17  ;;  %v10562_v17 = vmul.f32 0.01, %v10311_v29  ;;  %v10642_v50 = vsel %vm13557_vm1, %v10214_v61, %v10453_v1  ;;  %v13565_v1 = vld [vmem:[#allocation131_spill] sm:$0xff]  ;;  %vm13567_vm1 = vcmp.ge.f32.partialorder %v10255_v19, 0.0 }
 0x6b5   :  { %13548 = vst [vmem:[#allocation15_spill] sm:$0xff] %v10550_v23  ;;  %v10577_v23 = vmul.f32 0.01, %v10319_v40  ;;  %v3617_v40 = vmul.f32 0.01, %v10345_v4  ;;  %v13556_v4 = vld [vmem:[#allocation400_spill] sm:$0xff] }
 0x6b6   :  { %13549 = vst [vmem:[#allocation129_spill] sm:$0xff] %v10562_v17  ;;  %v10580_v17 = vmul.f32 0.01, %v10323_v60  ;;  %v3792_v60 = vrot.slane %v10499_v15, 3  ;;  %v3783_v58 = vsel %vm12339_vm15, %v13556_v4, %v3782_v0  ;;  %vm13560_vm15 = vcmp.ge.f32.partialorder %v10227_v16, 0.0 }
 0x6b7   :  { %13550 = vst [vmem:[#allocation151_spill] sm:$0xff] %v10568_v9  ;;  %v3613_v9 = vmul.f32 0.01, %v10331_v12  ;;  %v3788_v12 = vrot.slane %v10469_v6, 5 }
 0x6b8   :  { %13551 = vst [vmem:[#allocation216_spill] sm:$0xff] %v10580_v17  ;;  %v3614_v17 = vmul.f32 0.01, %v10334_v51  ;;  %v3786_v51 = vrot.slane %v10456_v22, 6 }
 0x6b9   :  { %13552 = vst [vmem:[#allocation240_spill] sm:$0xff] %v10586_v20  ;;  %v3616_v20 = vmul.f32 0.01, %v10342_v47 }
 0x6ba   :  { %13553 = vst [vmem:[#allocation338_spill] sm:$0xff] %v10599_v43  ;;  %v3784_v43 = vrot.slane %v10446_v49, 7  ;;  %v10636_v49 = vsel %vm3506_vm5, %v10207_v63, %v10450_v13  ;;  %v13561_v63 = vld [vmem:[#allocation30_spill] sm:$0xff]  ;;  %vm13562_vm5 = vcmp.ge.f32.partialorder %v10231_v3, 0.0 }
 0x6bb   :  { %13554 = vst [vmem:[#allocation351_spill] sm:$0xff] %v10612_v39  ;;  %v10628_v39 = vsel %vm3504_vm4, %v10198_v42, %v13555_v28  ;;  %v10648_v42 = vsel %vm3510_vm11, %v10218_v62, %v10460_v24  ;;  %vm13558_vm4 = vcmask 1042434   ;;  %v13559_v28 = vld [vmem:[#allocation4_spill] sm:$0xff]  ;;  %v10661_v61 = vsel %vm13562_vm5, %v10231_v3, %v13561_v63 }
 0x6bc   :  { %v3785_v0 = vsel %vm13558_vm4, %v3784_v43, %v3783_v58  ;;  %v10655_v13 = vsel %vm13560_vm15, %v10227_v16, %v13559_v28  ;;  %v10667_v62 = vsel %vm3516_vm6, %v10239_v21, %v10475_v27  ;;  %vm13563_vm11 = vcmask 1043459   ;;  %v13564_v58 = vld [vmem:[#allocation107_spill] sm:$0xff]  ;;  %v13569_v27 = vld [vmem:[#allocation233_spill] sm:$0xff]  ;;  %v13608_v28 = vld [vmem:[#allocation334_spill] sm:$0xff] }
 0x6bd   :  { %v3787_v24 = vsel %vm13563_vm11, %v3786_v51, %v3785_v0  ;;  %v10674_v16 = vsel %vm3518_vm14, %v10243_v52, %v13564_v58  ;;  %vm13566_vm15 = vcmp.ge.f32.partialorder %v10251_v56, 0.0  ;;  %v10686_v21 = vsel %vm13567_vm1, %v10255_v19, %v10490_v33  ;;  %v13573_v43 = vld [vmem:[#allocation31_spill] sm:$0xff]  ;;  %v13577_v33 = vld [vmem:[#allocation326_spill] sm:$0xff]  ;;  %v13585_v0 = vld [vmem:[#allocation109_spill] sm:$0xff] }
 0x6be   :  { %v10680_v3 = vsel %vm13566_vm15, %v10251_v56, %v13565_v1  ;;  %vm13568_vm6 = vcmask 1044484   ;;  %v10693_v52 = vsel %vm3524_vm3, %v10259_v44, %v13569_v27  ;;  %vm13571_vm14 = vcmp.ge.f32.partialorder %v10263_v8, 0.0  ;;  %v13615_v58 = vld [vmem:[#allocation147_spill] sm:$0xff]  ;;  %v13617_v27 = vld [vmem:[#allocation124_spill] sm:$0xff] }
 0x6bf   :  { %v3789_v51 = vsel %vm13568_vm6, %v3788_v12, %v3787_v24  ;;  %13570 = vst [vmem:[#allocation399_spill] sm:$0xff] %v10693_v52  ;;  %v10699_v56 = vsel %vm13571_vm14, %v10263_v8, %v10496_v30  ;;  %vm13574_vm4 = vcmp.ge.f32.partialorder %v10267_v32, 0.0  ;;  %vm13576_vm5 = vcmask 1045509   ;;  %v13581_v30 = vld [vmem:[#allocation398_spill] sm:$0xff]  ;;  %v13613_v24 = vld [vmem:[#allocation108_spill] sm:$0xff] }
 0x6c0   :  { %13572 = vst [vmem:[#allocation66_spill] sm:$0xff] %v10699_v56  ;;  %v10705_v19 = vsel %vm13574_vm4, %v10267_v32, %v13573_v43  ;;  %v3791_v12 = vsel %vm13576_vm5, %v3790_v36, %v3789_v51  ;;  %v10712_v44 = vsel %vm3530_vm7, %v10271_v34, %v13577_v33  ;;  %vm13579_vm3 = vcmp.ge.f32.partialorder %v10275_v59, 0.0  ;;  %v13616_v51 = vld [vmem:[#allocation28_spill] sm:$0xff] }
 0x6c1   :  { %13575 = vst [vmem:[#allocation90_spill] sm:$0xff] %v10705_v19  ;;  %v10718_v8 = vsel %vm13579_vm3, %v10275_v59, %v10511_v31  ;;  %vm13582_vm11 = vcmp.ge.f32.partialorder %v10279_v55, 0.0  ;;  %vm13584_vm15 = vcmask 1046534   ;;  %v10731_v34 = vsel %vm3536_vm9, %v10283_v25, %v13585_v0  ;;  %v13591_v31 = vld [vmem:[#allocation5_spill] sm:$0xff] }
 0x6c2   :  { %13578 = vst [vmem:[#allocation14_spill] sm:$0xff] %v10712_v44  ;;  %v10724_v32 = vsel %vm13582_vm11, %v10279_v55, %v13581_v30  ;;  %v3793_v36 = vsel %vm13584_vm15, %v3792_v60, %v3791_v12  ;;  %vm13587_vm7 = vcmp.ge.f32.partialorder %v10287_v10, 0.0  ;;  %vm13589_vm1 = vcmp.ge.f32.partialorder %v10291_v53, 0.0  ;;  %v13618_v12 = vld [vmem:[#allocation232_spill] sm:$0xff] }
 0x6c3   :  { %13580 = vst [vmem:[#allocation33_spill] sm:$0xff] %v10718_v8  ;;  %v10737_v59 = vsel %vm13587_vm7, %v10287_v10, %v10528_v5  ;;  %v10743_v55 = vsel %vm13589_vm1, %v10291_v53, %v10539_v14  ;;  %vm13590_vm6 = vcmask 1047559   ;;  %vm13592_vm14 = vcmp.ge.f32.partialorder %v10295_v46, 0.0  ;;  %v13596_v5 = vld [vmem:[#allocation129_spill] sm:$0xff]  ;;  %v13620_v30 = vld [vmem:[#allocation132_spill] sm:$0xff] }
 0x6c4   :  { %13583 = vst [vmem:[#allocation130_spill] sm:$0xff] %v10724_v32  ;;  %v3795_v60 = vsel %vm13590_vm6, %v3794_v26, %v3793_v36  ;;  %v10750_v25 = vsel %vm13592_vm14, %v10295_v46, %v13591_v31  ;;  %vm13594_vm9 = vcmp.ge.f32.partialorder %v10299_v57, 0.0  ;;  %vm13595_vm4 = vcmp.ge.f32.partialorder %v10303_v2, 0.0 }
 0x6c5   :  { %13586 = vst [vmem:[#allocation2_spill] sm:$0xff] %v10731_v34  ;;  %v10756_v10 = vsel %vm13594_vm9, %v10299_v57, %v10545_v54  ;;  %v10762_v53 = vsel %vm13595_vm4, %v10303_v2, %v10556_v41  ;;  %3838 = vrot.lane.b32.xlu2 %v3795_v60, %s5223_s18  ;;  %v10769_v46 = vsel %vm3543_vm10, %v10307_v18, %v10559_v48  ;;  %vm13597_vm5 = vcmp.ge.f32.partialorder %v10311_v29, 0.0  ;;  %v13600_v54 = vld [vmem:[#allocation153_spill] sm:$0xff]  ;;  %v13603_v18 = vld [vmem:[#allocation216_spill] sm:$0xff]  ;;  %v13604_v48 = vld [vmem:[#allocation123_spill] sm:$0xff] }
 0x6c6   :  { %13588 = vst [vmem:[#allocation238_spill] sm:$0xff] %v10737_v59  ;;  %v10775_v57 = vsel %vm13597_vm5, %v10311_v29, %v13596_v5  ;;  %vm13599_vm3 = vcmp.ge.f32.partialorder %v10315_v7, 0.0  ;;  %vm13601_vm11 = vcmp.ge.f32.partialorder %v13600_v54, 0.0  ;;  %v10793_v41 = vsel %vm3547_vm12, %v13604_v48, %v13603_v18  ;;  %v13605_v29 = vld [vmem:[#allocation210_spill] sm:$0xff]  ;;  %v13624_v60 = vld [vmem:[#allocation388_spill] sm:$0xff] }
 0x6c7   :  { %13593 = vst [vmem:[#allocation256_spill] sm:$0xff] %v10750_v25  ;;  %v10781_v2 = vsel %vm13599_vm3, %v10315_v7, %v10574_v45  ;;  %v10787_v14 = vsel %vm13601_vm11, %v13600_v54, %v10577_v23  ;;  %vm13606_vm10 = vcmp.ge.f32.partialorder %v13605_v29, 0.0  ;;  %vm13609_vm15 = vcmp.ge.f32.partialorder %v13608_v28, 0.0  ;;  %v13610_v45 = vld [vmem:[#allocation396_spill] sm:$0xff]  ;;  %v13631_v34 = vld [vmem:[#allocation86_spill] sm:$0xff] }
 0x6c8   :  { %13598 = vst [vmem:[#allocation339_spill] sm:$0xff] %v10775_v57  ;;  %v10798_v26 = vsel %vm13606_vm10, %v13605_v29, %v3612_v38  ;;  %v10803_v7 = vsel %vm13609_vm15, %v13608_v28, %v3613_v9  ;;  %v10808_v23 = vsel %vm3550_vm8, %v13610_v45, %v3614_v17  ;;  %v10813_v63 = vsel %vm3551_vm2, %v10339_v11, %v3615_v35  ;;  %v13619_v11 = vld [vmem:[#allocation252_spill] sm:$0xff] }
 0x6c9   :  { %13602 = vst [vmem:[#allocation352_spill] sm:$0xff] %v10787_v14  ;;  %v10818_v38 = vsel %vm3552_vm13, %v10342_v47, %v3616_v20  ;;  %v10823_v9 = vsel %vm3553_vm0, %v13613_v24, %v3617_v40  ;;  %v3865_v1 = vrot.slane %v13615_v58, 1  ;;  %v3868_v17 = vrot.slane %v13616_v51, 7  ;;  %v13623_v20 = vld [vmem:[#allocation335_spill] sm:$0xff]  ;;  %v13625_v5 = vld [vmem:[#allocation12_spill] sm:$0xff] }
 0x6ca   :  { %13607 = vst [vmem:[#allocation279_spill] sm:$0xff] %v10798_v26  ;;  %v3870_v43 = vrot.slane %v13617_v27, 6  ;;  %v3872_v33 = vrot.slane %v13618_v12, 5  ;;  %v3874_v35 = vrot.slane %v13619_v11, 4  ;;  %v13621_v36 = vrot.slane %v13620_v30, 2  ;;  %v13666_v14 = vld [vmem:[#allocation227_spill] sm:$0xff] }
 0x6cb   :  { %13611 = vst [vmem:[#allocation391_spill] sm:$0xff] %v10808_v23  ;;  %vm13622_vm8 = vcmask 1041409   ;;  %v3876_v0 = vrot.slane %v13623_v20, 3  ;;  %v3850_v31 = vrot.slane %v13624_v60, 2  ;;  %v3851_v40 = vrot.slane %v13556_v4, 1 }
 0x6cc   :  { %13612 = vst [vmem:[#allocation403_spill] sm:$0xff] %v10818_v38  ;;  %v3866_v47 = vsel %vm13622_vm8, %v3865_v1, %v13621_v36  ;;  %vm13626_vm0 = vcmask 1042434   ;;  %v3854_v18 = vrot.slane %v10456_v22, 7  ;;  %v3856_v48 = vrot.slane %v10469_v6, 6  ;;  %vm13628_vm12 = vmmov %vm13622_vm8  ;;  %v13629_v1 = vld [vmem:[#allocation340_spill] sm:$0xff] }
 0x6cd   :  { %13614 = vst [vmem:[#allocation354_spill] sm:$0xff] %v10823_v9  ;;  %v3867_v54 = vsel %vm13626_vm0, %v13625_v5, %v3866_v47  ;;  %v3858_v29 = vrot.slane %v10484_v37, 5  ;;  %vm13627_vm13 = vcmask 1043459   ;;  %v3852_v45 = vsel %vm13628_vm12, %v3851_v40, %v3850_v31  ;;  %vm13632_vm7 = vmmov %vm13626_vm0 }
 0x6ce   :  { %v3869_v28 = vsel %vm13627_vm13, %v3868_v17, %v3867_v54  ;;  %v3860_v24 = vrot.slane %v10499_v15, 4  ;;  %v3862_v36 = vrot.slane %v13629_v1, 3  ;;  %vm13630_vm2 = vcmask 1044484   ;;  %vm13634_vm6 = vmmov %vm13627_vm13 }
 0x6cf   :  { %v3871_v59 = vsel %vm13630_vm2, %v3870_v43, %v3869_v28  ;;  %v3853_v32 = vsel %vm13632_vm7, %v13631_v34, %v3852_v45  ;;  %v3824_v47 = vrot.slane %v10743_v55, 1  ;;  %v3826_v8 = vrot.slane %v10769_v46, 7  ;;  %vm13636_vm9 = vmmov %vm13630_vm2 }
 0x6d0   :  { %vm13633_vm1 = vcmask 1045509   ;;  %v3855_v44 = vsel %vm13634_vm6, %v3854_v18, %v3853_v32  ;;  %v3828_v17 = vrot.slane %v10781_v2, 6  ;;  %v3830_v31 = vrot.slane %v10793_v41, 5  ;;  %vm13637_vm4 = vmmov %vm13622_vm8 }
 0x6d1   :  { %v3873_v52 = vsel %vm13633_vm1, %v3872_v33, %v3871_v59  ;;  %vm13635_vm14 = vcmask 1046534   ;;  %v3857_v54 = vsel %vm13636_vm9, %v3856_v48, %v3855_v44  ;;  %v3825_v43 = vsel %vm13637_vm4, %v10756_v10, %v3824_v47  ;;  %vm13639_vm3 = vmmov %vm13633_vm1 }
 0x6d2   :  { %v3875_v40 = vsel %vm13635_vm14, %v3874_v35, %v3873_v52  ;;  %v3832_v28 = vrot.slane %v10803_v7, 4  ;;  %vm13638_vm5 = vcmask 1047559   ;;  %v3859_v19 = vsel %vm13639_vm3, %v3858_v29, %v3857_v54  ;;  %vm13640_vm11 = vmmov %vm13626_vm0 }
 0x6d3   :  { %v3877_v45 = vsel %vm13638_vm5, %v3876_v0, %v3875_v40  ;;  %v3827_v59 = vsel %vm13640_vm11, %v3826_v8, %v3825_v43  ;;  %v3834_v32 = vrot.slane %v10813_v63, 3  ;;  %vm13641_vm10 = vmmov %vm13635_vm14  ;;  %v3836_v44 = vrot.slane %v10823_v9, 2 }
 0x6d4   :  { %3908 = vrot.lane.b32.xlu1 %v3877_v45, %s5224_s19  ;;  %v3861_v33 = vsel %vm13641_vm10, %v3860_v24, %v3859_v19  ;;  %vm13642_vm15 = vmmov %vm13634_vm6  ;;  %v3918_v35 = vrot.slane %v13624_v60, 3  ;;  %v3919_v48 = vrot.slane %v13556_v4, 2  ;;  %v3921_v8 = vrot.slane %v13631_v34, 1 }
 0x6d5   :  { %v3829_v52 = vsel %vm13642_vm15, %v3828_v17, %v3827_v59  ;;  %vm13643_vm8 = vmmov %vm13638_vm5  ;;  %v3924_v19 = vrot.slane %v10469_v6, 7  ;;  %v3926_v24 = vrot.slane %v10484_v37, 6  ;;  %v3928_v47 = vrot.slane %v10499_v15, 5 }
 0x6d6   :  { %v3863_v18 = vsel %vm13643_vm8, %v3862_v36, %v3861_v33  ;;  %vm13644_vm0 = vmmov %vm13630_vm2  ;;  %v3892_v40 = vrot.slane %v10743_v55, 2  ;;  %v3896_v45 = vrot.slane %v10781_v2, 7  ;;  %v3900_v33 = vrot.slane %v10803_v7, 5 }
 0x6d7   :  { %v3831_v0 = vsel %vm13644_vm0, %v3830_v31, %v3829_v52  ;;  %3906 = vrot.lane.b32.xlu0 %v3863_v18, %s5224_s19  ;;  %vm13645_vm13 = vmmov %vm13633_vm1  ;;  %v3930_v31 = vrot.slane %v13629_v1, 4  ;;  %v3902_v52 = vrot.slane %v10813_v63, 4  ;;  %v3904_v18 = vrot.slane %v10823_v9, 3 }
 0x6d8   :  { %v3833_v29 = vsel %vm13645_vm13, %v3832_v28, %v3831_v0  ;;  %vm13646_vm12 = vmmov %vm13641_vm10  ;;  %v3893_v28 = vrot.slane %v10756_v10, 1  ;;  %v13652_v0 = vld [vmem:[#allocation101_spill] sm:$0xff] }
 0x6d9   :  { %v3835_v17 = vsel %vm13646_vm12, %v3834_v32, %v3833_v29  ;;  %vm13647_vm2 = vmmov %vm13637_vm4  ;;  %v3898_v32 = vrot.slane %v10793_v41, 6 }
 0x6da   :  { %v3920_v36 = vsel %vm13647_vm2, %v3919_v48, %v3918_v35  ;;  %vm13648_vm7 = vmmov %vm13638_vm5  ;;  %v3878_v48 = vrot.slane %v13652_v0, 2 }
 0x6db   :  { %v3837_v54 = vsel %vm13648_vm7, %v3836_v44, %v3835_v17  ;;  %vm13649_vm1 = vmmov %vm13640_vm11  ;;  %v13655_v17 = vld [vmem:[#allocation85_spill] sm:$0xff] }
 0x6dc   :  { %v3922_v43 = vsel %vm13649_vm1, %v3921_v8, %v3920_v36  ;;  %3844 = vrot.lane.b32.xlu2 %v3837_v54, %s5223_s18  ;;  %vm13650_vm14 = vmmov %vm13644_vm0  ;;  %v3879_v36 = vrot.slane %v13655_v17, 1  ;;  %v13656_v54 = vld [vmem:[#allocation320_spill] sm:$0xff]  ;;  %s5233_s18 = smov 44  }
 0x6dd   :  { %v3923_v59 = vsel %vm13634_vm6, %v10456_v22, %v3922_v43  ;;  %vm13651_vm9 = vmmov %vm13647_vm2  ;;  %v3882_v43 = vrot.slane %v13656_v54, 7 }
 0x6de   :  { %v3925_v35 = vsel %vm13650_vm14, %v3924_v19, %v3923_v59  ;;  %v3894_v44 = vsel %vm13651_vm9, %v3893_v28, %v3892_v40  ;;  %vm13653_vm4 = vmmov %vm13639_vm3  ;;  %v13659_v19 = vld [vmem:[#allocation395_spill] sm:$0xff] }
 0x6df   :  { %v3927_v8 = vsel %vm13653_vm4, %v3926_v24, %v3925_v35  ;;  %vm13654_vm5 = vmmov %vm13649_vm1  ;;  %v3884_v59 = vrot.slane %v13659_v19, 6  ;;  %v13660_v40 = vld [vmem:[#allocation327_spill] sm:$0xff]  ;;  %v13664_v35 = vld [vmem:[#allocation341_spill] sm:$0xff] }
 0x6e0   :  { %v3895_v29 = vsel %vm13654_vm5, %v10769_v46, %v3894_v44  ;;  %vm13657_vm3 = vmmov %vm13641_vm10  ;;  %v3886_v28 = vrot.slane %v13660_v40, 5  ;;  %v3888_v44 = vrot.slane %v13664_v35, 4 }
 0x6e1   :  { %v3929_v56 = vsel %vm13657_vm3, %v3928_v47, %v3927_v8  ;;  %vm13658_vm11 = vmmov %vm13634_vm6 }
 0x6e2   :  { %v3897_v38 = vsel %vm13658_vm11, %v3896_v45, %v3895_v29  ;;  %vm13661_vm10 = vmmov %vm13648_vm7  ;;  %v13668_v45 = vld [vmem:[#allocation9_spill] sm:$0xff]  ;;  %v3960_v29 = vrot.slane %v10743_v55, 3 }
 0x6e3   :  { %v3931_v23 = vsel %vm13661_vm10, %v3930_v31, %v3929_v56  ;;  %vm13662_vm15 = vmmov %vm13644_vm0  ;;  %v3890_v8 = vrot.slane %v13668_v45, 3  ;;  %v3963_v31 = vrot.slane %v10769_v46, 1 }
 0x6e4   :  { %v3899_v26 = vsel %vm13662_vm15, %v3898_v32, %v3897_v38  ;;  %vm13663_vm8 = vmmov %vm13647_vm2  ;;  %3974 = vrot.lane.b32.xlu1 %v3931_v23, %s5225_s20  ;;  %v3961_v38 = vrot.slane %v10756_v10, 2 }
 0x6e5   :  { %v3880_v24 = vsel %vm13663_vm8, %v3879_v36, %v3878_v48  ;;  %vm13665_vm0 = vmmov %vm13653_vm4  ;;  %v3972_v36 = vrot.slane %v10823_v9, 4 }
 0x6e6   :  { %v3901_v25 = vsel %vm13665_vm0, %v3900_v33, %v3899_v26  ;;  %vm13667_vm13 = vmmov %vm13649_vm1  ;;  %v3966_v26 = vrot.slane %v10793_v41, 7  ;;  %v3968_v33 = vrot.slane %v10803_v7, 6 }
 0x6e7   :  { %v3881_v47 = vsel %vm13667_vm13, %v13666_v14, %v3880_v24  ;;  %vm13669_vm12 = vmmov %vm13657_vm3 }
 0x6e8   :  { %v3903_v57 = vsel %vm13669_vm12, %v3902_v52, %v3901_v25  ;;  %vm13670_vm2 = vmmov %vm13634_vm6  ;;  %v3970_v52 = vrot.slane %v10813_v63, 5 }
 0x6e9   :  { %v3883_v56 = vsel %vm13670_vm2, %v3882_v43, %v3881_v47  ;;  %v3905_v32 = vsel %vm13648_vm7, %v3904_v18, %v3903_v57  ;;  %vm13671_vm1 = vmmov %vm13650_vm14  ;;  %v3946_v18 = vrot.slane %v13652_v0, 3 }
 0x6ea   :  { %v3885_v23 = vsel %vm13671_vm1, %v3884_v59, %v3883_v56  ;;  %3912 = vrot.lane.b32.xlu0 %v3905_v32, %s5224_s19  ;;  %vm13672_vm6 = vmmov %vm13665_vm0  ;;  %v3947_v59 = vrot.slane %v13655_v17, 2 }
 0x6eb   :  { %v3887_v48 = vsel %vm13672_vm6, %v3886_v28, %v3885_v23  ;;  %vm13673_vm14 = vmmov %vm13663_vm8  ;;  %v3949_v28 = vrot.slane %v13666_v14, 1  ;;  %v3958_v23 = vrot.slane %v13668_v45, 4 }
 0x6ec   :  { %v3962_v25 = vsel %vm13673_vm14, %v3961_v38, %v3960_v29  ;;  %vm13674_vm9 = vmmov %vm13657_vm3  ;;  %v3952_v29 = vrot.slane %v13659_v19, 7  ;;  %v3954_v38 = vrot.slane %v13660_v40, 6 }
 0x6ed   :  { %v3889_v43 = vsel %vm13674_vm9, %v3888_v44, %v3887_v48  ;;  %vm13675_vm4 = vmmov %vm13654_vm5  ;;  %v3932_v48 = vrot.slane %v13620_v30, 3 }
 0x6ee   :  { %v3964_v57 = vsel %vm13675_vm4, %v3963_v31, %v3962_v25  ;;  %vm13676_vm5 = vmmov %vm13648_vm7  ;;  %v3956_v31 = vrot.slane %v13664_v35, 5 }
 0x6ef   :  { %v3891_v24 = vsel %vm13676_vm5, %v3890_v8, %v3889_v43  ;;  %vm13677_vm3 = vmmov %vm13670_vm2 }
 0x6f0   :  { %v3965_v47 = vsel %vm13677_vm3, %v10781_v2, %v3964_v57  ;;  %3910 = vrot.lane.b32.xlu2 %v3891_v24, %s5224_s19  ;;  %vm13678_vm11 = vmmov %vm13671_vm1  ;;  %v3935_v57 = vrot.slane %v13625_v5, 1  ;;  %v3940_v24 = vrot.slane %v13618_v12, 6  ;;  %s5234_s19 = smov 48  }
 0x6f1   :  { %v3967_v56 = vsel %vm13678_vm11, %v3966_v26, %v3965_v47  ;;  %vm13679_vm10 = vmmov %vm13663_vm8  ;;  %v3933_v26 = vrot.slane %v13615_v58, 2 }
 0x6f2   :  { %v3948_v44 = vsel %vm13679_vm10, %v3947_v59, %v3946_v18  ;;  %vm13680_vm15 = vmmov %vm13665_vm0 }
 0x6f3   :  { %v3969_v32 = vsel %vm13680_vm15, %v3968_v33, %v3967_v56  ;;  %vm13681_vm8 = vmmov %vm13675_vm4  ;;  %v3938_v33 = vrot.slane %v13617_v27, 7  ;;  %v3944_v56 = vrot.slane %v13623_v20, 4 }
 0x6f4   :  { %v3950_v8 = vsel %vm13681_vm8, %v3949_v28, %v3948_v44  ;;  %vm13682_vm0 = vmmov %vm13674_vm9  ;;  %v3942_v28 = vrot.slane %v13619_v11, 5 }
 0x6f5   :  { %v3971_v25 = vsel %vm13682_vm0, %v3970_v52, %v3969_v32  ;;  %vm13683_vm13 = vmmov %vm13670_vm2  ;;  %v4015_v32 = vrot.slane %v13655_v17, 3 }
 0x6f6   :  { %v3951_v43 = vsel %vm13683_vm13, %v13656_v54, %v3950_v8  ;;  %vm13684_vm12 = vmmov %vm13676_vm5 }
 0x6f7   :  { %v3973_v18 = vsel %vm13684_vm12, %v3972_v36, %v3971_v25  ;;  %vm13685_vm2 = vmmov %vm13671_vm1 }
 0x6f8   :  { %v3953_v59 = vsel %vm13685_vm2, %v3952_v29, %v3951_v43  ;;  %3980 = vrot.lane.b32.xlu1 %v3973_v18, %s5225_s20  ;;  %vm13686_vm7 = vmmov %vm13672_vm6  ;;  %v4014_v29 = vrot.slane %v13652_v0, 4 }
 0x6f9   :  { %v3955_v47 = vsel %vm13686_vm7, %v3954_v38, %v3953_v59  ;;  %vm13687_vm1 = vmmov %vm13679_vm10  ;;  %v4017_v38 = vrot.slane %v13666_v14, 2  ;;  %v4026_v59 = vrot.slane %v13668_v45, 5 }
 0x6fa   :  { %v3934_v52 = vsel %vm13687_vm1, %v3933_v26, %v3932_v48  ;;  %vm13688_vm6 = vmmov %vm13682_vm0  ;;  %v4019_v48 = vrot.slane %v13656_v54, 1  ;;  %v4022_v26 = vrot.slane %v13660_v40, 7 }
 0x6fb   :  { %v3957_v44 = vsel %vm13688_vm6, %v3956_v31, %v3955_v47  ;;  %vm13689_vm14 = vmmov %vm13675_vm4  ;;  %v4000_v47 = vrot.slane %v13620_v30, 4 }
 0x6fc   :  { %v3936_v36 = vsel %vm13689_vm14, %v3935_v57, %v3934_v52  ;;  %vm13690_vm9 = vmmov %vm13676_vm5  ;;  %v4024_v57 = vrot.slane %v13664_v35, 6 }
 0x6fd   :  { %v3959_v8 = vsel %vm13690_vm9, %v3958_v23, %v3957_v44  ;;  %vm13691_vm4 = vmmov %vm13677_vm3 }
 0x6fe   :  { %v3937_v25 = vsel %vm13691_vm4, %v13616_v51, %v3936_v36  ;;  %3978 = vrot.lane.b32.xlu0 %v3959_v8, %s5225_s20  ;;  %vm13692_vm5 = vmmov %vm13685_vm2  ;;  %v4003_v36 = vrot.slane %v13625_v5, 2  ;;  %v4008_v8 = vrot.slane %v13618_v12, 7 }
 0x6ff   :  { %v3939_v43 = vsel %vm13692_vm5, %v3938_v33, %v3937_v25  ;;  %vm13693_vm3 = vmmov %vm13687_vm1  ;;  %v4001_v33 = vrot.slane %v13615_v58, 3 }
 0x700   :  { %v4016_v31 = vsel %vm13693_vm3, %v4015_v32, %v4014_v29  ;;  %vm13694_vm11 = vmmov %vm13686_vm7 }
 0x701   :  { %v3941_v18 = vsel %vm13694_vm11, %v3940_v24, %v3939_v43  ;;  %vm13695_vm10 = vmmov %vm13681_vm8  ;;  %v4005_v24 = vrot.slane %v13616_v51, 1 }
 0x702   :  { %v4018_v23 = vsel %vm13695_vm10, %v4017_v38, %v4016_v31  ;;  %vm13696_vm15 = vmmov %vm13682_vm0  ;;  %v4010_v38 = vrot.slane %v13619_v11, 6  ;;  %v3986_v31 = vrot.slane %v13624_v60, 4 }
 0x703   :  { %v3943_v52 = vsel %vm13696_vm15, %v3942_v28, %v3941_v18  ;;  %vm13697_vm8 = vmmov %vm13691_vm4  ;;  %v3987_v18 = vrot.slane %v13556_v4, 3 }
 0x704   :  { %v4020_v44 = vsel %vm13697_vm8, %v4019_v48, %v4018_v23  ;;  %vm13698_vm0 = vmmov %vm13690_vm9  ;;  %v4012_v48 = vrot.slane %v13623_v20, 5 }
 0x705   :  { %v3945_v29 = vsel %vm13698_vm0, %v3944_v56, %v3943_v52  ;;  %vm13699_vm13 = vmmov %vm13685_vm2 }
 0x706   :  { %v4021_v32 = vsel %vm13699_vm13, %v13659_v19, %v4020_v44  ;;  %3976 = vrot.lane.b32.xlu2 %v3945_v29, %s5225_s20  ;;  %vm13700_vm12 = vmmov %vm13686_vm7  ;;  %s5235_s20 = smov 52  }
 0x707   :  { %v4023_v25 = vsel %vm13700_vm12, %v4022_v26, %v4021_v32  ;;  %vm13701_vm2 = vmmov %vm13687_vm1  ;;  %v3989_v26 = vrot.slane %v13631_v34, 2  ;;  %v3998_v32 = vrot.slane %v13629_v1, 5 }
 0x708   :  { %v4002_v28 = vsel %vm13701_vm2, %v4001_v33, %v4000_v47  ;;  %vm13702_vm7 = vmmov %vm13688_vm6  ;;  %v3991_v47 = vrot.slane %v10456_v22, 1  ;;  %v3994_v33 = vrot.slane %v10484_v37, 7 }
 0x709   :  { %v4025_v43 = vsel %vm13702_vm7, %v4024_v57, %v4023_v25  ;;  %vm13703_vm1 = vmmov %vm13695_vm10 }
 0x70a   :  { %v4004_v56 = vsel %vm13703_vm1, %v4003_v36, %v4002_v28  ;;  %vm13704_vm6 = vmmov %vm13698_vm0  ;;  %v3996_v36 = vrot.slane %v10499_v15, 6 }
 0x70b   :  { %v4027_v23 = vsel %vm13704_vm6, %v4026_v59, %v4025_v43  ;;  %vm13705_vm14 = vmmov %vm13691_vm4  ;;  %v4069_v43 = vrot.slane %v13615_v58, 4 }
 0x70c   :  { %v4006_v52 = vsel %vm13705_vm14, %v4005_v24, %v4004_v56  ;;  %4046 = vrot.lane.b32.xlu1 %v4027_v23, %s5226_s6  ;;  %vm13706_vm9 = vmmov %vm13692_vm5  ;;  %v4068_v24 = vrot.slane %v13620_v30, 5  ;;  %v4071_v56 = vrot.slane %v13625_v5, 3  ;;  %v4075_v23 = vrot.slane %v13617_v27, 1 }
 0x70d   :  { %v4007_v44 = vsel %vm13706_vm9, %v13617_v27, %v4006_v52  ;;  %vm13707_vm4 = vmmov %vm13701_vm2 }
 0x70e   :  { %v3988_v57 = vsel %vm13707_vm4, %v3987_v18, %v3986_v31  ;;  %vm13708_vm5 = vmmov %vm13694_vm11 }
 0x70f   :  { %v4009_v29 = vsel %vm13708_vm5, %v4008_v8, %v4007_v44  ;;  %vm13709_vm3 = vmmov %vm13703_vm1  ;;  %v4073_v8 = vrot.slane %v13616_v51, 2 }
 0x710   :  { %v3990_v59 = vsel %vm13709_vm3, %v3989_v26, %v3988_v57  ;;  %vm13710_vm11 = vmmov %vm13702_vm7  ;;  %v4078_v26 = vrot.slane %v13619_v11, 7  ;;  %v4054_v57 = vrot.slane %v13624_v60, 5 }
 0x711   :  { %v4011_v25 = vsel %vm13710_vm11, %v4010_v38, %v4009_v29  ;;  %vm13711_vm10 = vmmov %vm13697_vm8  ;;  %v4055_v29 = vrot.slane %v13556_v4, 4 }
 0x712   :  { %v3992_v28 = vsel %vm13711_vm10, %v3991_v47, %v3990_v59  ;;  %vm13712_vm15 = vmmov %vm13698_vm0  ;;  %v4080_v47 = vrot.slane %v13623_v20, 6 }
 0x713   :  { %v4013_v31 = vsel %vm13712_vm15, %v4012_v48, %v4011_v25  ;;  %vm13713_vm8 = vmmov %vm13706_vm9 }
 0x714   :  { %v3993_v18 = vsel %vm13713_vm8, %v10469_v6, %v3992_v28  ;;  %4044 = vrot.lane.b32.xlu0 %v4013_v31, %s5226_s6  ;;  %vm13714_vm0 = vmmov %vm13708_vm5 }
 0x715   :  { %v3995_v52 = vsel %vm13714_vm0, %v3994_v33, %v3993_v18  ;;  %vm13715_vm13 = vmmov %vm13701_vm2  ;;  %v4057_v33 = vrot.slane %v13631_v34, 3  ;;  %v4066_v18 = vrot.slane %v13629_v1, 6 }
 0x716   :  { %v4070_v38 = vsel %vm13715_vm13, %v4069_v43, %v4068_v24  ;;  %vm13716_vm12 = vmmov %vm13702_vm7  ;;  %v4059_v24 = vrot.slane %v10456_v22, 2  ;;  %v4061_v43 = vrot.slane %v10469_v6, 1 }
 0x717   :  { %v3997_v44 = vsel %vm13716_vm12, %v3996_v36, %v3995_v52  ;;  %vm13717_vm2 = vmmov %vm13703_vm1 }
 0x718   :  { %v4072_v48 = vsel %vm13717_vm2, %v4071_v56, %v4070_v38  ;;  %vm13718_vm7 = vmmov %vm13704_vm6  ;;  %v4064_v56 = vrot.slane %v10499_v15, 7 }
 0x719   :  { %v3999_v59 = vsel %vm13718_vm7, %v3998_v32, %v3997_v44  ;;  %vm13719_vm1 = vmmov %vm13711_vm10  ;;  %v4031_v44 = vrot.slane %v10769_v46, 2 }
 0x71a   :  { %v4074_v25 = vsel %vm13719_vm1, %v4073_v8, %v4072_v48  ;;  %4042 = vrot.lane.b32.xlu2 %v3999_v59, %s5226_s6  ;;  %vm13720_vm6 = vmmov %vm13713_vm8  ;;  %v4028_v8 = vrot.slane %v10743_v55, 4  ;;  %v4036_v59 = vrot.slane %v10803_v7, 7 }
 0x71b   :  { %v4076_v28 = vsel %vm13720_vm6, %v4075_v23, %v4074_v25  ;;  %vm13721_vm14 = vmmov %vm13707_vm4  ;;  %v4029_v23 = vrot.slane %v10756_v10, 3 }
 0x71c   :  { %v4056_v36 = vsel %vm13721_vm14, %v4055_v29, %v4054_v57  ;;  %vm13722_vm9 = vmmov %vm13714_vm0  ;;  %v4033_v29 = vrot.slane %v10781_v2, 1 }
 0x71d   :  { %v4077_v31 = vsel %vm13722_vm9, %v13618_v12, %v4076_v28  ;;  %vm13723_vm4 = vmmov %vm13717_vm2 }
 0x71e   :  { %v4058_v32 = vsel %vm13723_vm4, %v4057_v33, %v4056_v36  ;;  %vm13724_vm5 = vmmov %vm13710_vm11  ;;  %v4038_v33 = vrot.slane %v10813_v63, 6  ;;  %v4122_v36 = vrot.slane %v13624_v60, 6 }
 0x71f   :  { %v4079_v52 = vsel %vm13724_vm5, %v4078_v26, %v4077_v31  ;;  %vm13725_vm3 = vmmov %vm13719_vm1 }
 0x720   :  { %v4060_v38 = vsel %vm13725_vm3, %v4059_v24, %v4058_v32  ;;  %vm13726_vm11 = vmmov %vm13718_vm7  ;;  %v4040_v24 = vrot.slane %v10823_v9, 5 }
 0x721   :  { %v4081_v48 = vsel %vm13726_vm11, %v4080_v47, %v4079_v52  ;;  %vm13727_vm10 = vmmov %vm13720_vm6  ;;  %v4125_v52 = vrot.slane %v13631_v34, 4 }
 0x722   :  { %v4062_v57 = vsel %vm13727_vm10, %v4061_v43, %v4060_v38  ;;  %4112 = vrot.lane.b32.xlu1 %v4081_v48, %s5227_s23  ;;  %vm13728_vm15 = vmmov %vm13714_vm0  ;;  %v4123_v43 = vrot.slane %v13556_v4, 5 }
 0x723   :  { %v4063_v25 = vsel %vm13728_vm15, %v10484_v37, %v4062_v57  ;;  %vm13729_vm8 = vmmov %vm13715_vm13  ;;  %v4134_v57 = vrot.slane %v13629_v1, 7 }
 0x724   :  { %v4030_v26 = vsel %vm13729_vm8, %v4029_v23, %v4028_v8  ;;  %vm13730_vm0 = vmmov %vm13724_vm5  ;;  %v4127_v8 = vrot.slane %v10456_v22, 3  ;;  %v4129_v23 = vrot.slane %v10469_v6, 2 }
 0x725   :  { %v4065_v28 = vsel %vm13730_vm0, %v4064_v56, %v4063_v25  ;;  %vm13731_vm13 = vmmov %vm13717_vm2 }
 0x726   :  { %v4032_v47 = vsel %vm13731_vm13, %v4031_v44, %v4030_v26  ;;  %vm13732_vm12 = vmmov %vm13718_vm7  ;;  %v4131_v44 = vrot.slane %v10484_v37, 1 }
 0x727   :  { %v4067_v31 = vsel %vm13732_vm12, %v4066_v18, %v4065_v28  ;;  %vm13733_vm2 = vmmov %vm13719_vm1  ;;  %v4097_v28 = vrot.slane %v10756_v10, 4 }
 0x728   :  { %v4034_v32 = vsel %vm13733_vm2, %v4033_v29, %v4032_v47  ;;  %4110 = vrot.lane.b32.xlu0 %v4067_v31, %s5227_s23  ;;  %vm13734_vm7 = vmmov %vm13720_vm6  ;;  %v4096_v29 = vrot.slane %v10743_v55, 5  ;;  %v4099_v47 = vrot.slane %v10769_v46, 3  ;;  %v4103_v31 = vrot.slane %v10793_v41, 1 }
 0x729   :  { %v4035_v38 = vsel %vm13734_vm7, %v10793_v41, %v4034_v32  ;;  %vm13735_vm1 = vmmov %vm13729_vm8 }
 0x72a   :  { %v4124_v56 = vsel %vm13735_vm1, %v4123_v43, %v4122_v36  ;;  %vm13736_vm6 = vmmov %vm13722_vm9 }
 0x72b   :  { %v4037_v48 = vsel %vm13736_vm6, %v4036_v59, %v4035_v38  ;;  %vm13737_vm14 = vmmov %vm13723_vm4  ;;  %v4101_v59 = vrot.slane %v10781_v2, 2 }
 0x72c   :  { %v4126_v18 = vsel %vm13737_vm14, %v4125_v52, %v4124_v56  ;;  %vm13738_vm9 = vmmov %vm13730_vm0  ;;  %v4106_v52 = vrot.slane %v10813_v63, 7  ;;  %v4082_v56 = vrot.slane %v13652_v0, 5 }
 0x72d   :  { %v4039_v25 = vsel %vm13738_vm9, %v4038_v33, %v4037_v48  ;;  %vm13739_vm4 = vmmov %vm13733_vm2 }
 0x72e   :  { %v4128_v26 = vsel %vm13739_vm4, %v4127_v8, %v4126_v18  ;;  %vm13740_vm5 = vmmov %vm13726_vm11  ;;  %v4108_v8 = vrot.slane %v10823_v9, 6 }
 0x72f   :  { %v4041_v36 = vsel %vm13740_vm5, %v4040_v24, %v4039_v25  ;;  %vm13741_vm3 = vmmov %vm13734_vm7 }
 0x730   :  { %v4130_v43 = vsel %vm13741_vm3, %v4129_v23, %v4128_v26  ;;  %4048 = vrot.lane.b32.xlu2 %v4041_v36, %s5226_s6  ;;  %vm13742_vm11 = vmmov %vm13736_vm6  ;;  %v4083_v23 = vrot.slane %v13655_v17, 4  ;;  %s5236_s6 = smov 56  }
 0x731   :  { %v4132_v32 = vsel %vm13742_vm11, %v4131_v44, %v4130_v43  ;;  %vm13743_vm10 = vmmov %vm13735_vm1  ;;  %v4085_v44 = vrot.slane %v13666_v14, 3  ;;  %v4094_v43 = vrot.slane %v13668_v45, 6 }
 0x732   :  { %v4098_v33 = vsel %vm13743_vm10, %v4097_v28, %v4096_v29  ;;  %vm13744_vm15 = vmmov %vm13730_vm0  ;;  %v4087_v29 = vrot.slane %v13656_v54, 2  ;;  %v4089_v28 = vrot.slane %v13659_v19, 1 }
 0x733   :  { %v4133_v38 = vsel %vm13744_vm15, %v10499_v15, %v4132_v32  ;;  %vm13745_vm8 = vmmov %vm13731_vm13 }
 0x734   :  { %v4100_v24 = vsel %vm13745_vm8, %v4099_v47, %v4098_v33  ;;  %vm13746_vm0 = vmmov %vm13740_vm5  ;;  %v4092_v47 = vrot.slane %v13664_v35, 7 }
 0x735   :  { %v4135_v48 = vsel %vm13746_vm0, %v4134_v57, %v4133_v38  ;;  %vm13747_vm13 = vmmov %vm13733_vm2  ;;  %v4167_v38 = vrot.slane %v10769_v46, 4 }
 0x736   :  { %v4102_v18 = vsel %vm13747_vm13, %v4101_v59, %v4100_v24  ;;  %4178 = vrot.lane.b32.xlu1 %v4135_v48, %s5228_s24  ;;  %vm13748_vm12 = vmmov %vm13741_vm3  ;;  %v4164_v59 = vrot.slane %v10743_v55, 6  ;;  %v4171_v48 = vrot.slane %v10793_v41, 2 }
 0x737   :  { %v4104_v25 = vsel %vm13748_vm12, %v4103_v31, %v4102_v18  ;;  %vm13749_vm2 = vmmov %vm13735_vm1  ;;  %v4165_v31 = vrot.slane %v10756_v10, 5 }
 0x738   :  { %v4084_v26 = vsel %vm13749_vm2, %v4083_v23, %v4082_v56  ;;  %vm13750_vm7 = vmmov %vm13736_vm6  ;;  %v4169_v23 = vrot.slane %v10781_v2, 3 }
 0x739   :  { %v4105_v36 = vsel %vm13750_vm7, %v10803_v7, %v4104_v25  ;;  %vm13751_vm1 = vmmov %vm13745_vm8 }
 0x73a   :  { %v4086_v57 = vsel %vm13751_vm1, %v4085_v44, %v4084_v26  ;;  %vm13752_vm6 = vmmov %vm13738_vm9  ;;  %v4173_v44 = vrot.slane %v10803_v7, 1  ;;  %v4150_v26 = vrot.slane %v13652_v0, 6 }
 0x73b   :  { %v4107_v32 = vsel %vm13752_vm6, %v4106_v52, %v4105_v36  ;;  %vm13753_vm14 = vmmov %vm13739_vm4 }
 0x73c   :  { %v4088_v33 = vsel %vm13753_vm14, %v4087_v29, %v4086_v57  ;;  %vm13754_vm9 = vmmov %vm13746_vm0  ;;  %v4176_v29 = vrot.slane %v10823_v9, 7 }
 0x73d   :  { %v4109_v24 = vsel %vm13754_vm9, %v4108_v8, %v4107_v32  ;;  %vm13755_vm4 = vmmov %vm13741_vm3  ;;  %v4153_v32 = vrot.slane %v13666_v14, 4 }
 0x73e   :  { %v4090_v56 = vsel %vm13755_vm4, %v4089_v28, %v4088_v33  ;;  %4116 = vrot.lane.b32.xlu0 %v4109_v24, %s5227_s23  ;;  %vm13756_vm5 = vmmov %vm13750_vm7  ;;  %v4151_v28 = vrot.slane %v13655_v17, 5 }
 0x73f   :  { %v4091_v18 = vsel %vm13756_vm5, %v13660_v40, %v4090_v56  ;;  %vm13757_vm3 = vmmov %vm13749_vm2  ;;  %v4162_v56 = vrot.slane %v13668_v45, 7 }
 0x740   :  { %v4166_v52 = vsel %vm13757_vm3, %v4165_v31, %v4164_v59  ;;  %vm13758_vm11 = vmmov %vm13752_vm6  ;;  %v4155_v59 = vrot.slane %v13656_v54, 3  ;;  %v4157_v31 = vrot.slane %v13659_v19, 2 }
 0x741   :  { %v4093_v25 = vsel %vm13758_vm11, %v4092_v47, %v4091_v18  ;;  %vm13759_vm10 = vmmov %vm13751_vm1 }
 0x742   :  { %v4168_v8 = vsel %vm13759_vm10, %v4167_v38, %v4166_v52  ;;  %vm13760_vm15 = vmmov %vm13746_vm0  ;;  %v4159_v38 = vrot.slane %v13660_v40, 1 }
 0x743   :  { %v4095_v36 = vsel %vm13760_vm15, %v4094_v43, %v4093_v25  ;;  %vm13761_vm8 = vmmov %vm13747_vm13  ;;  %v4139_v25 = vrot.slane %v13625_v5, 4 }
 0x744   :  { %v4170_v57 = vsel %vm13761_vm8, %v4169_v23, %v4168_v8  ;;  %4114 = vrot.lane.b32.xlu2 %v4095_v36, %s5227_s23  ;;  %vm13762_vm0 = vmmov %vm13755_vm4  ;;  %v4136_v23 = vrot.slane %v13620_v30, 6  ;;  %s5237_s23 = smov 60  }
 0x745   :  { %v4172_v33 = vsel %vm13762_vm0, %v4171_v48, %v4170_v57  ;;  %vm13763_vm13 = vmmov %vm13749_vm2  ;;  %v4137_v48 = vrot.slane %v13615_v58, 5 }
 0x746   :  { %v4152_v47 = vsel %vm13763_vm13, %v4151_v28, %v4150_v26  ;;  %vm13764_vm12 = vmmov %vm13756_vm5  ;;  %v4143_v28 = vrot.slane %v13617_v27, 2 }
 0x747   :  { %v4174_v24 = vsel %vm13764_vm12, %v4173_v44, %v4172_v33  ;;  %vm13765_vm2 = vmmov %vm13751_vm1  ;;  %v4141_v44 = vrot.slane %v13616_v51, 3 }
 0x748   :  { %v4154_v43 = vsel %vm13765_vm2, %v4153_v32, %v4152_v47  ;;  %vm13766_vm7 = vmmov %vm13752_vm6  ;;  %v4145_v32 = vrot.slane %v13618_v12, 1  ;;  %v4218_v47 = vrot.slane %v13652_v0, 7 }
 0x749   :  { %v4175_v18 = vsel %vm13766_vm7, %v10813_v63, %v4174_v24  ;;  %vm13767_vm1 = vmmov %vm13761_vm8 }
 0x74a   :  { %v4156_v52 = vsel %vm13767_vm1, %v4155_v59, %v4154_v43  ;;  %vm13768_vm6 = vmmov %vm13754_vm9  ;;  %v4148_v59 = vrot.slane %v13623_v20, 7 }
 0x74b   :  { %v4177_v8 = vsel %vm13768_vm6, %v4176_v29, %v4175_v18  ;;  %vm13769_vm14 = vmmov %vm13762_vm0 }
 0x74c   :  { %v4158_v26 = vsel %vm13769_vm14, %v4157_v31, %v4156_v52  ;;  %4184 = vrot.lane.b32.xlu1 %v4177_v8, %s5228_s24  ;;  %vm13770_vm9 = vmmov %vm13756_vm5  ;;  %v4219_v31 = vrot.slane %v13655_v17, 6 }
 0x74d   :  { %v4160_v36 = vsel %vm13770_vm9, %v4159_v38, %v4158_v26  ;;  %vm13771_vm4 = vmmov %vm13757_vm3  ;;  %v4221_v38 = vrot.slane %v13666_v14, 5  ;;  %v4229_v26 = vrot.slane %v13664_v35, 1  ;;  %v13857_v14 = vld [vmem:[#allocation238_spill] sm:$0xff] }
 0x74e   :  { %v4138_v57 = vsel %vm13771_vm4, %v4137_v48, %v4136_v23  ;;  %vm13772_vm5 = vmmov %vm13766_vm7  ;;  %v4223_v23 = vrot.slane %v13656_v54, 4  ;;  %v4225_v48 = vrot.slane %v13659_v19, 3  ;;  %v13853_v19 = vld [vmem:[#allocation130_spill] sm:$0xff]  ;;  %v4330_v17 = vrot.slane %v13857_v14, 1 }
 0x74f   :  { %v4161_v33 = vsel %vm13772_vm5, %v13664_v35, %v4160_v36  ;;  %vm13773_vm3 = vmmov %vm13765_vm2  ;;  %v4326_v54 = vrot.slane %v13853_v19, 3 }
 0x750   :  { %v4140_v29 = vsel %vm13773_vm3, %v4139_v25, %v4138_v57  ;;  %vm13774_vm11 = vmmov %vm13768_vm6  ;;  %v4227_v25 = vrot.slane %v13660_v40, 2  ;;  %v13847_v40 = vld [vmem:[#allocation90_spill] sm:$0xff] }
 0x751   :  { %v4163_v24 = vsel %vm13774_vm11, %v4162_v56, %v4161_v33  ;;  %vm13775_vm10 = vmmov %vm13767_vm1  ;;  %v4207_v33 = vrot.slane %v13625_v5, 5  ;;  %v13840_v5 = vld [vmem:[#allocation403_spill] sm:$0xff] }
 0x752   :  { %v4142_v43 = vsel %vm13775_vm10, %v4141_v44, %v4140_v29  ;;  %4182 = vrot.lane.b32.xlu0 %v4163_v24, %s5228_s24  ;;  %vm13776_vm15 = vmmov %vm13762_vm0  ;;  %v4204_v44 = vrot.slane %v13620_v30, 7 }
 0x753   :  { %v4144_v18 = vsel %vm13776_vm15, %v4143_v28, %v4142_v43  ;;  %vm13777_vm8 = vmmov %vm13771_vm4  ;;  %v4205_v28 = vrot.slane %v13615_v58, 6  ;;  %v4342_v58 = vrot.slane %v13840_v5, 2 }
 0x754   :  { %v4220_v52 = vsel %vm13777_vm8, %v4219_v31, %v4218_v47  ;;  %vm13778_vm0 = vmmov %vm13770_vm9  ;;  %v4211_v31 = vrot.slane %v13617_v27, 3 }
 0x755   :  { %v4146_v8 = vsel %vm13778_vm0, %v4145_v32, %v4144_v18  ;;  %vm13779_vm13 = vmmov %vm13765_vm2  ;;  %v4209_v32 = vrot.slane %v13616_v51, 4 }
 0x756   :  { %v4222_v56 = vsel %vm13779_vm13, %v4221_v38, %v4220_v52  ;;  %vm13780_vm12 = vmmov %vm13772_vm5  ;;  %v4213_v38 = vrot.slane %v13618_v12, 2  ;;  %v4190_v52 = vrot.slane %v13624_v60, 7 }
 0x757   :  { %v4147_v36 = vsel %vm13780_vm12, %v13619_v11, %v4146_v8  ;;  %vm13781_vm2 = vmmov %vm13767_vm1 }
 0x758   :  { %v4224_v57 = vsel %vm13781_vm2, %v4223_v23, %v4222_v56  ;;  %vm13782_vm7 = vmmov %vm13768_vm6  ;;  %v4215_v23 = vrot.slane %v13619_v11, 1 }
 0x759   :  { %v4149_v29 = vsel %vm13782_vm7, %v4148_v59, %v4147_v36  ;;  %vm13783_vm1 = vmmov %vm13769_vm14 }
 0x75a   :  { %v4226_v47 = vsel %vm13783_vm1, %v4225_v48, %v4224_v57  ;;  %4180 = vrot.lane.b32.xlu2 %v4149_v29, %s5228_s24  ;;  %vm13784_vm6 = vmmov %vm13778_vm0  ;;  %v4191_v48 = vrot.slane %v13556_v4, 6  ;;  %v4197_v57 = vrot.slane %v10469_v6, 3  ;;  %s5238_s24 = smov 64  }
 0x75b   :  { %v4228_v24 = vsel %vm13784_vm6, %v4227_v25, %v4226_v47  ;;  %vm13785_vm14 = vmmov %vm13771_vm4  ;;  %v4193_v25 = vrot.slane %v13631_v34, 5  ;;  %v4201_v47 = vrot.slane %v10499_v15, 1 }
 0x75c   :  { %v4206_v43 = vsel %vm13785_vm14, %v4205_v28, %v4204_v44  ;;  %vm13786_vm9 = vmmov %vm13772_vm5  ;;  %v4195_v44 = vrot.slane %v10456_v22, 4  ;;  %v4199_v28 = vrot.slane %v10484_v37, 2 }
 0x75d   :  { %v4230_v18 = vsel %vm13786_vm9, %v4229_v26, %v4228_v24  ;;  %vm13787_vm4 = vmmov %vm13773_vm3 }
 0x75e   :  { %v4208_v59 = vsel %vm13787_vm4, %v4207_v33, %v4206_v43  ;;  %vm13788_vm5 = vmmov %vm13782_vm7 }
 0x75f   :  { %v4231_v8 = vsel %vm13788_vm5, %v13668_v45, %v4230_v18  ;;  %vm13789_vm3 = vmmov %vm13781_vm2  ;;  %v4308_v18 = vrot.slane %v10661_v61, 5  ;;  %v13844_v45 = vld [vmem:[#allocation66_spill] sm:$0xff] }
 0x760   :  { %v4210_v56 = vsel %vm13789_vm3, %v4209_v32, %v4208_v59  ;;  %4250 = vrot.lane.b32.xlu1 %v4231_v8, %s5229_s25  ;;  %vm13790_vm11 = vmmov %vm13783_vm1  ;;  %v4304_v32 = vrot.slane %v10648_v42, 7 }
 0x761   :  { %v4212_v36 = vsel %vm13790_vm11, %v4211_v31, %v4210_v56  ;;  %vm13791_vm10 = vmmov %vm13777_vm8  ;;  %v4306_v31 = vrot.slane %v10655_v13, 6  ;;  %v4312_v56 = vrot.slane %v10674_v16, 3 }
 0x762   :  { %v4192_v26 = vsel %vm13791_vm10, %v4191_v48, %v4190_v52  ;;  %vm13792_vm15 = vmmov %vm13778_vm0  ;;  %v4310_v48 = vrot.slane %v10667_v62, 4 }
 0x763   :  { %v4214_v33 = vsel %vm13792_vm15, %v4213_v38, %v4212_v36  ;;  %vm13793_vm8 = vmmov %vm13787_vm4 }
 0x764   :  { %v4194_v29 = vsel %vm13793_vm8, %v4193_v25, %v4192_v26  ;;  %vm13794_vm0 = vmmov %vm13786_vm9  ;;  %v4314_v25 = vrot.slane %v10680_v3, 2  ;;  %v4316_v26 = vrot.slane %v10686_v21, 1 }
 0x765   :  { %v4216_v24 = vsel %vm13794_vm0, %v4215_v23, %v4214_v33  ;;  %vm13795_vm13 = vmmov %vm13781_vm2 }
 0x766   :  { %v4196_v43 = vsel %vm13795_vm13, %v4195_v44, %v4194_v29  ;;  %vm13796_vm12 = vmmov %vm13788_vm5 }
 0x767   :  { %v4217_v59 = vsel %vm13796_vm12, %v13623_v20, %v4216_v24  ;;  %vm13797_vm2 = vmmov %vm13783_vm1 }
 0x768   :  { %v4198_v52 = vsel %vm13797_vm2, %v4197_v57, %v4196_v43  ;;  %vm13798_vm7 = vmmov %vm13791_vm10  ;;  %4248 = vrot.lane.b32.xlu0 %v4217_v59, %s5229_s25  ;;  %v13803_v57 = vld [vmem:[#allocation15_spill] sm:$0xff]  ;;  %v13807_v43 = vld [vmem:[#allocation240_spill] sm:$0xff] }
 0x769   :  { %v4305_v38 = vsel %vm13798_vm7, %v4304_v32, %v10642_v50  ;;  %vm13799_vm1 = vmmov %vm13784_vm6  ;;  %v4290_v33 = vrot.slane %v13803_v57, 7 }
 0x76a   :  { %v4200_v23 = vsel %vm13799_vm1, %v4199_v28, %v4198_v52  ;;  %vm13800_vm6 = vmmov %vm13787_vm4  ;;  %v13806_v28 = vld [vmem:[#allocation151_spill] sm:$0xff]  ;;  %v13811_v52 = vld [vmem:[#allocation338_spill] sm:$0xff] }
 0x76b   :  { %v4307_v8 = vsel %vm13800_vm6, %v4306_v31, %v4305_v38  ;;  %vm13801_vm14 = vmmov %vm13794_vm0  ;;  %v4292_v24 = vrot.slane %v13806_v28, 6  ;;  %v4294_v31 = vrot.slane %v13807_v43, 5  ;;  %v4296_v38 = vrot.slane %v13811_v52, 4 }
 0x76c   :  { %v4202_v44 = vsel %vm13801_vm14, %v4201_v47, %v4200_v23  ;;  %vm13802_vm9 = vmmov %vm13789_vm3  ;;  %v13809_v47 = vld [vmem:[#allocation133_spill] sm:$0xff]  ;;  %v13812_v23 = vld [vmem:[#allocation351_spill] sm:$0xff] }
 0x76d   :  { %v4309_v36 = vsel %vm13802_vm9, %v4308_v18, %v4307_v8  ;;  %vm13804_vm4 = vmmov %vm13788_vm5  ;;  %v4298_v8 = vrot.slane %v13812_v23, 3 }
 0x76e   :  { %v4203_v29 = vsel %vm13804_vm4, %v13629_v1, %v4202_v44  ;;  %vm13805_vm5 = vmmov %vm13797_vm2 }
 0x76f   :  { %v4311_v32 = vsel %vm13805_vm5, %v4310_v48, %v4309_v36  ;;  %4246 = vrot.lane.b32.xlu2 %v4203_v29, %s5229_s25  ;;  %vm13808_vm3 = vmmov %vm13799_vm1  ;;  %v4300_v48 = vrot.slane %v10628_v39, 2  ;;  %v4302_v36 = vrot.slane %v10636_v49, 1 }
 0x770   :  { %v4313_v59 = vsel %vm13808_vm3, %v4312_v56, %v4311_v32  ;;  %vm13810_vm11 = vmmov %vm13798_vm7  ;;  %v4232_v56 = vrot.slane %v10743_v55, 7 }
 0x771   :  { %v4291_v18 = vsel %vm13810_vm11, %v4290_v33, %v13809_v47  ;;  %vm13813_vm10 = vmmov %vm13794_vm0  ;;  %v4233_v33 = vrot.slane %v10756_v10, 6 }
 0x772   :  { %v4315_v30 = vsel %vm13813_vm10, %v4314_v25, %v4313_v59  ;;  %vm13814_vm15 = vmmov %vm13800_vm6  ;;  %v4235_v25 = vrot.slane %v10769_v46, 5  ;;  %v4239_v59 = vrot.slane %v10793_v41, 3 }
 0x773   :  { %v4293_v44 = vsel %vm13814_vm15, %v4292_v24, %v4291_v18  ;;  %vm13815_vm8 = vmmov %vm13804_vm4  ;;  %v4237_v24 = vrot.slane %v10781_v2, 4 }
 0x774   :  { %v4317_v20 = vsel %vm13815_vm8, %v4316_v26, %v4315_v30  ;;  %vm13816_vm0 = vmmov %vm13802_vm9  ;;  %v4241_v26 = vrot.slane %v10803_v7, 2 }
 0x775   :  { %v4295_v29 = vsel %vm13816_vm0, %v4294_v31, %v4293_v44  ;;  %4348 = vrot.lane.b32.xlu1 %v4317_v20, %s5230_s26  ;;  %vm13817_vm13 = vmmov %vm13797_vm2  ;;  %v4243_v31 = vrot.slane %v10813_v63, 1 }
 0x776   :  { %v4297_v32 = vsel %vm13817_vm13, %v4296_v38, %v4295_v29  ;;  %vm13818_vm12 = vmmov %vm13799_vm1  ;;  %v4358_v38 = vrot.slane %v13809_v47, 1  ;;  %v4360_v29 = vrot.slane %v13806_v28, 7 }
 0x777   :  { %v4299_v18 = vsel %vm13818_vm12, %v4298_v8, %v4297_v32  ;;  %vm13819_vm2 = vmmov %vm13798_vm7  ;;  %v4362_v8 = vrot.slane %v13807_v43, 6  ;;  %v4366_v32 = vrot.slane %v13812_v23, 4 }
 0x778   :  { %v4234_v30 = vsel %vm13819_vm2, %v4233_v33, %v4232_v56  ;;  %vm13820_vm7 = vmmov %vm13813_vm10  ;;  %v4364_v56 = vrot.slane %v13811_v52, 5 }
 0x779   :  { %v4301_v44 = vsel %vm13820_vm7, %v4300_v48, %v4299_v18  ;;  %vm13821_vm1 = vmmov %vm13800_vm6 }
 0x77a   :  { %v4236_v20 = vsel %vm13821_vm1, %v4235_v25, %v4234_v30  ;;  %vm13822_vm6 = vmmov %vm13804_vm4  ;;  %v4368_v25 = vrot.slane %v10628_v39, 3  ;;  %v4332_v30 = vrot.slane %v10762_v53, 7 }
 0x77b   :  { %v4303_v11 = vsel %vm13822_vm6, %v4302_v36, %v4301_v44  ;;  %vm13823_vm14 = vmmov %vm13816_vm0 }
 0x77c   :  { %v4238_v12 = vsel %vm13823_vm14, %v4237_v24, %v4236_v20  ;;  %4346 = vrot.lane.b32.xlu0 %v4303_v11, %s5230_s26  ;;  %vm13824_vm9 = vmmov %vm13805_vm5  ;;  %v4370_v24 = vrot.slane %v10636_v49, 2  ;;  %v13831_v20 = vld [vmem:[#allocation352_spill] sm:$0xff] }
 0x77d   :  { %v4240_v33 = vsel %vm13824_vm9, %v4239_v59, %v4238_v12  ;;  %vm13825_vm4 = vmmov %vm13819_vm2  ;;  %v13830_v12 = vld [vmem:[#allocation339_spill] sm:$0xff] }
 0x77e   :  { %v4359_v48 = vsel %vm13825_vm4, %v13803_v57, %v4358_v38  ;;  %vm13826_vm5 = vmmov %vm13808_vm3  ;;  %v4334_v59 = vrot.slane %v13830_v12, 6  ;;  %v4336_v38 = vrot.slane %v13831_v20, 5 }
 0x77f   :  { %v4242_v18 = vsel %vm13826_vm5, %v4241_v26, %v4240_v33  ;;  %vm13827_vm3 = vmmov %vm13821_vm1  ;;  %v13834_v26 = vld [vmem:[#allocation256_spill] sm:$0xff]  ;;  %v13836_v33 = vld [vmem:[#allocation279_spill] sm:$0xff] }
 0x780   :  { %v4361_v36 = vsel %vm13827_vm3, %v4360_v29, %v4359_v48  ;;  %vm13828_vm11 = vmmov %vm13820_vm7  ;;  %v4338_v48 = vrot.slane %v13836_v33, 4 }
 0x781   :  { %v4244_v44 = vsel %vm13828_vm11, %v4243_v31, %v4242_v18  ;;  %vm13829_vm10 = vmmov %vm13816_vm0  ;;  %v13839_v18 = vld [vmem:[#allocation391_spill] sm:$0xff] }
 0x782   :  { %v4363_v11 = vsel %vm13829_vm10, %v4362_v8, %v4361_v36  ;;  %vm13832_vm15 = vmmov %vm13822_vm6  ;;  %v4340_v36 = vrot.slane %v13839_v18, 3 }
 0x783   :  { %v4245_v27 = vsel %vm13832_vm15, %v10823_v9, %v4244_v44  ;;  %vm13833_vm8 = vmmov %vm13824_vm9 }
 0x784   :  { %v4365_v51 = vsel %vm13833_vm8, %v4364_v56, %v4363_v11  ;;  %vm13835_vm0 = vmmov %vm13819_vm2  ;;  %4252 = vrot.lane.b32.xlu2 %v4245_v27, %s5229_s25  ;;  %v13843_v56 = vld [vmem:[#allocation349_spill] sm:$0xff] }
 0x785   :  { %v4333_v29 = vsel %vm13835_vm0, %v4332_v30, %v13834_v26  ;;  %vm13837_vm13 = vmmov %vm13826_vm5  ;;  %v4344_v11 = vrot.slane %v13843_v56, 1  ;;  %v4318_v30 = vrot.slane %v13844_v45, 7 }
 0x786   :  { %v4367_v31 = vsel %vm13837_vm13, %v4366_v32, %v4365_v51  ;;  %vm13838_vm12 = vmmov %vm13821_vm1  ;;  %v4320_v51 = vrot.slane %v13847_v40, 6  ;;  %v13848_v32 = vld [vmem:[#allocation14_spill] sm:$0xff] }
 0x787   :  { %v4335_v8 = vsel %vm13838_vm12, %v4334_v59, %v4333_v29  ;;  %vm13841_vm2 = vmmov %vm13820_vm7  ;;  %v4322_v59 = vrot.slane %v13848_v32, 5 }
 0x788   :  { %v4369_v0 = vsel %vm13841_vm2, %v4368_v25, %v4367_v31  ;;  %vm13842_vm7 = vmmov %vm13829_vm10  ;;  %v13850_v25 = vld [vmem:[#allocation399_spill] sm:$0xff]  ;;  %v13852_v31 = vld [vmem:[#allocation33_spill] sm:$0xff] }
 0x789   :  { %v4337_v44 = vsel %vm13842_vm7, %v4336_v38, %v4335_v8  ;;  %vm13845_vm1 = vmmov %vm13822_vm6  ;;  %v4324_v8 = vrot.slane %v13852_v31, 4 }
 0x78a   :  { %v4371_v35 = vsel %vm13845_vm1, %v4370_v24, %v4369_v0  ;;  %vm13846_vm6 = vmmov %vm13833_vm8 }
 0x78b   :  { %v4339_v27 = vsel %vm13846_vm6, %v4338_v48, %v4337_v44  ;;  %4414 = vrot.lane.b32.xlu1 %v4371_v35, %s5231_s3  ;;  %vm13849_vm14 = vmmov %vm13826_vm5  ;;  %v13856_v48 = vld [vmem:[#allocation2_spill] sm:$0xff] }
 0x78c   :  { %v4341_v29 = vsel %vm13849_vm14, %v4340_v36, %v4339_v27  ;;  %vm13851_vm9 = vmmov %vm13835_vm0  ;;  %v4328_v44 = vrot.slane %v13856_v48, 2  ;;  %v4400_v36 = vrot.slane %v13834_v26, 1 }
 0x78d   :  { %v4319_v38 = vsel %vm13851_vm9, %v4318_v30, %v13850_v25  ;;  %vm13854_vm4 = vmmov %vm13841_vm2  ;;  %v4402_v30 = vrot.slane %v13830_v12, 7 }
 0x78e   :  { %v4343_v0 = vsel %vm13854_vm4, %v4342_v58, %v4341_v29  ;;  %vm13855_vm5 = vmmov %vm13827_vm3  ;;  %v4404_v58 = vrot.slane %v13831_v20, 6  ;;  %v4408_v29 = vrot.slane %v13839_v18, 4 }
 0x78f   :  { %v4321_v24 = vsel %vm13855_vm5, %v4320_v51, %v4319_v38  ;;  %vm13858_vm3 = vmmov %vm13845_vm1  ;;  %v4406_v51 = vrot.slane %v13836_v33, 5 }
 0x790   :  { %v4345_v9 = vsel %vm13858_vm3, %v4344_v11, %v4343_v0  ;;  %vm13859_vm11 = vmmov %vm13842_vm7  ;;  %v4412_v0 = vrot.slane %v13843_v56, 2 }
 0x791   :  { %v4323_v35 = vsel %vm13859_vm11, %v4322_v59, %v4321_v24  ;;  %4352 = vrot.lane.b32.xlu0 %v4345_v9, %s5230_s26  ;;  %vm13860_vm10 = vmmov %vm13846_vm6  ;;  %v4410_v59 = vrot.slane %v13840_v5, 3 }
 0x792   :  { %v4325_v27 = vsel %vm13860_vm10, %v4324_v8, %v4323_v35  ;;  %vm13861_vm15 = vmmov %vm13837_vm13  ;;  %v4386_v8 = vrot.slane %v13850_v25, 1  ;;  %v4388_v35 = vrot.slane %v13847_v40, 7 }
 0x793   :  { %v4327_v38 = vsel %vm13861_vm15, %v4326_v54, %v4325_v27  ;;  %vm13862_vm8 = vmmov %vm13835_vm0  ;;  %v4390_v54 = vrot.slane %v13848_v32, 6 }
 0x794   :  { %v4401_v11 = vsel %vm13862_vm8, %v10762_v53, %v4400_v36  ;;  %vm13863_vm0 = vmmov %vm13841_vm2  ;;  %v4392_v36 = vrot.slane %v13852_v31, 5 }
 0x795   :  { %v4329_v24 = vsel %vm13863_vm0, %v4328_v44, %v4327_v38  ;;  %vm13864_vm13 = vmmov %vm13855_vm5  ;;  %v4396_v38 = vrot.slane %v13856_v48, 3 }
 0x796   :  { %v4403_v9 = vsel %vm13864_vm13, %v4402_v30, %v4401_v11  ;;  %vm13865_vm12 = vmmov %vm13845_vm1  ;;  %v4394_v30 = vrot.slane %v13853_v19, 4 }
 0x797   :  { %v4331_v12 = vsel %vm13865_vm12, %v4330_v17, %v4329_v24  ;;  %vm13866_vm2 = vmmov %vm13842_vm7  ;;  %v4372_v24 = vrot.slane %v10642_v50, 1 }
 0x798   :  { %v4405_v18 = vsel %vm13866_vm2, %v4404_v58, %v4403_v9  ;;  %4350 = vrot.lane.b32.xlu2 %v4331_v12, %s5230_s26  ;;  %vm13867_vm7 = vmmov %vm13846_vm6  ;;  %v4398_v58 = vrot.slane %v13857_v14, 2 }
 0x799   :  { %v4407_v27 = vsel %vm13867_vm7, %v4406_v51, %v4405_v18  ;;  %vm13868_vm1 = vmmov %vm13862_vm8  ;;  %v4374_v18 = vrot.slane %v10655_v13, 7  ;;  %v4376_v51 = vrot.slane %v10661_v61, 6 }
 0x79a   :  { %v4387_v44 = vsel %vm13868_vm1, %v13844_v45, %v4386_v8  ;;  %vm13869_vm6 = vmmov %vm13849_vm14 }
 0x79b   :  { %v4409_v11 = vsel %vm13869_vm6, %v4408_v29, %v4407_v27  ;;  %vm13870_vm14 = vmmov %vm13855_vm5 }
 0x79c   :  { %v4389_v17 = vsel %vm13870_vm14, %v4388_v35, %v4387_v44  ;;  %vm13871_vm9 = vmmov %vm13863_vm0  ;;  %v4378_v35 = vrot.slane %v10667_v62, 5  ;;  %v4382_v44 = vrot.slane %v10680_v3, 3 }
 0x79d   :  { %v4411_v9 = vsel %vm13871_vm9, %v4410_v59, %v4409_v11  ;;  %vm13872_vm4 = vmmov %vm13866_vm2 }
 0x79e   :  { %v4391_v12 = vsel %vm13872_vm4, %v4390_v54, %v4389_v17  ;;  %vm13873_vm5 = vmmov %vm13858_vm3  ;;  %v4380_v54 = vrot.slane %v10674_v16, 4  ;;  %v3715_v17 = vrot.slane %v13556_v4, 7 }
 0x79f   :  { %v4413_v8 = vsel %vm13873_vm5, %v4412_v0, %v4411_v9  ;;  %vm13874_vm3 = vmmov %vm13867_vm7 }
 0x7a0   :  { %v4393_v56 = vsel %vm13874_vm3, %v4392_v36, %v4391_v12  ;;  %vm13875_vm11 = vmmov %vm13868_vm1  ;;  %4420 = vrot.lane.b32.xlu1 %v4413_v8, %s5231_s3  ;;  %v4384_v36 = vrot.slane %v10686_v21, 2  ;;  %v3717_v8 = vsel %vm13868_vm1, %v3715_v17, %v13624_v60  ;;  %v4464_v60 = vrot.slane %v13856_v48, 4 }
 0x7a1   :  { %v4373_v29 = vsel %vm13875_vm11, %v10648_v42, %v4372_v24  ;;  %vm13876_vm10 = vmmov %vm13869_vm6  ;;  %v4441_v17 = vrot.slane %v10648_v42, 1 }
 0x7a2   :  { %v4395_v27 = vsel %vm13876_vm10, %v4394_v30, %v4393_v56  ;;  %vm13877_vm15 = vmmov %vm13864_vm13  ;;  %v3718_v56 = vrot.slane %v13631_v34, 6  ;;  %v3721_v30 = vrot.slane %v10456_v22, 5  ;;  %v4454_v34 = vrot.slane %v13850_v25, 2 }
 0x7a3   :  { %v4375_v59 = vsel %vm13877_vm15, %v4374_v18, %v4373_v29  ;;  %vm13878_vm8 = vmmov %vm13863_vm0  ;;  %v3727_v18 = vrot.slane %v10484_v37, 3  ;;  %v4460_v37 = vrot.slane %v13852_v31, 6 }
 0x7a4   :  { %v4397_v11 = vsel %vm13878_vm8, %v4396_v38, %v4395_v27  ;;  %vm13879_vm0 = vmmov %vm13866_vm2  ;;  %v3724_v38 = vrot.slane %v10469_v6, 4  ;;  %v3720_v29 = vsel %vm13870_vm14, %v3718_v56, %v3717_v8  ;;  %v4458_v6 = vrot.slane %v13848_v32, 7 }
 0x7a5   :  { %v4377_v0 = vsel %vm13879_vm0, %v4376_v51, %v4375_v59  ;;  %vm13880_vm13 = vmmov %vm13873_vm5  ;;  %v3730_v51 = vrot.slane %v10499_v15, 2  ;;  %v4450_v8 = vrot.slane %v10680_v3, 4 }
 0x7a6   :  { %v4399_v24 = vsel %vm13880_vm13, %v4398_v58, %v4397_v11  ;;  %vm13881_vm12 = vmmov %vm13874_vm3  ;;  %v3733_v58 = vrot.slane %v13629_v1, 1  ;;  %v4462_v1 = vrot.slane %v13853_v19, 5  ;;  %v3839_v11 = vpop.permute.xlu2 %3838 }
 0x7a7   :  { %v4379_v9 = vsel %vm13881_vm12, %v4378_v35, %v4377_v0  ;;  %4418 = vrot.lane.b32.xlu0 %v4399_v24, %s5231_s3  ;;  %vm13882_vm2 = vmmov %vm13869_vm6  ;;  %v4455_v35 = vrot.slane %v13844_v45, 1  ;;  %v4444_v24 = vrot.slane %v10661_v61, 7  ;;  %vm13895_vm12 = vcmask 31744  }
 0x7a8   :  { %v4381_v12 = vsel %vm13882_vm2, %v4380_v54, %v4379_v9  ;;  %vm13883_vm7 = vmmov %vm13878_vm8  ;;  %v4466_v54 = vrot.slane %v13857_v14, 3 }
 0x7a9   :  { %v4383_v4 = vsel %vm13883_vm7, %v4382_v44, %v4381_v12  ;;  %vm13884_vm6 = vmmov %vm13873_vm5  ;;  %v4440_v44 = vrot.slane %v10642_v50, 2  ;;  %v4448_v12 = vrot.slane %v10674_v16, 5 }
 0x7aa   :  { %v4385_v22 = vsel %vm13884_vm6, %v4384_v36, %v4383_v4  ;;  %vm13885_vm9 = vmmov %vm13879_vm0 }
 0x7ab   :  { %4416 = vrot.lane.b32.xlu2 %v4385_v22, %s5231_s3  ;;  %v3723_v15 = vsel %vm13885_vm9, %v3721_v30, %v3720_v29  ;;  %vm13886_vm4 = vmmov %vm13874_vm3  ;;  %v4446_v30 = vrot.slane %v10667_v62, 6  ;;  %v4452_v29 = vrot.slane %v10686_v21, 3 }
 0x7ac   :  { %v3726_v27 = vsel %vm13886_vm4, %v3724_v38, %v3723_v15  ;;  %vm13887_vm5 = vmmov %vm13868_vm1  ;;  %v4427_v15 = vrot.slane %v13803_v57, 1 }
 0x7ad   :  { %v4456_v59 = vsel %vm13887_vm5, %v4455_v35, %v4454_v34  ;;  %vm13888_vm3 = vmmov %vm13882_vm2 }
 0x7ae   :  { %v3729_v0 = vsel %vm13888_vm3, %v3727_v18, %v3726_v27  ;;  %vm13889_vm11 = vmmov %vm13870_vm14 }
 0x7af   :  { %v4457_v36 = vsel %vm13889_vm11, %v13847_v40, %v4456_v59  ;;  %vm13890_vm10 = vmmov %vm13883_vm7  ;;  %v4430_v59 = vrot.slane %v13807_v43, 7 }
 0x7b0   :  { %v3732_v9 = vsel %vm13890_vm10, %v3730_v51, %v3729_v0  ;;  %vm13891_vm15 = vmmov %vm13879_vm0  ;;  %v4436_v0 = vrot.slane %v10628_v39, 4 }
 0x7b1   :  { %v4459_v56 = vsel %vm13891_vm15, %v4458_v6, %v4457_v36  ;;  %vm13892_vm8 = vmmov %vm13884_vm6  ;;  %v4426_v6 = vrot.slane %v13809_v47, 2 }
 0x7b2   :  { %v3735_v38 = vsel %vm13892_vm8, %v3733_v58, %v3732_v9  ;;  %vm13893_vm0 = vmmov %vm13886_vm4 }
 0x7b3   :  { %v4461_v4 = vsel %vm13893_vm0, %v4460_v37, %v4459_v56  ;;  %vm13894_vm13 = vmmov %vm13868_vm1  ;;  %v11389_v34 = vsel %vm13895_vm12, %v3735_v38, %v3839_v11  ;;  %v4434_v11 = vrot.slane %v13812_v23, 5 }
 0x7b4   :  { %v4442_v18 = vsel %vm13894_vm13, %v4441_v17, %v4440_v44  ;;  %v4463_v22 = vsel %vm13882_vm2, %v4462_v1, %v4461_v4  ;;  %vm13896_vm7 = vmmov %vm13889_vm11  ;;  %v4432_v1 = vrot.slane %v13811_v52, 6  ;;  %v4438_v17 = vrot.slane %v10636_v49, 3 }
 0x7b5   :  { %v4443_v51 = vsel %vm13896_vm7, %v10655_v13, %v4442_v18  ;;  %vm13897_vm1 = vmmov %vm13890_vm10  ;;  %v3770_v18 = vrot.slane %v10793_v41, 4 }
 0x7b6   :  { %v4465_v35 = vsel %vm13897_vm1, %v4464_v60, %v4463_v22  ;;  %vm13898_vm6 = vmmov %vm13885_vm9  ;;  %v4428_v60 = vsel %vm13887_vm5, %v4427_v15, %v4426_v6  ;;  %v4511_v6 = vrot.slane %v10655_v13, 1  ;;  %v4514_v15 = vrot.slane %v10667_v62, 7 }
 0x7b7   :  { %v4445_v58 = vsel %vm13898_vm6, %v4444_v24, %v4443_v51  ;;  %vm13899_vm14 = vmmov %vm13892_vm8  ;;  %v3764_v24 = vrot.slane %v10756_v10, 7  ;;  %v3774_v51 = vrot.slane %v10813_v63, 2 }
 0x7b8   :  { %v4467_v37 = vsel %vm13899_vm14, %v4466_v54, %v4465_v35  ;;  %vm13900_vm9 = vmmov %vm13893_vm0 }
 0x7b9   :  { %v4447_v27 = vsel %vm13900_vm9, %v4446_v30, %v4445_v58  ;;  %4486 = vrot.lane.b32.xlu1 %v4467_v37, %s5232_s4  ;;  %vm13901_vm4 = vmmov %vm13882_vm2  ;;  %v3766_v30 = vrot.slane %v10769_v46, 6  ;;  %v13910_v46 = vld [vmem:[#allocation354_spill] sm:$0xff]  ;;  %v4508_v58 = vrot.slane %v10642_v50, 3  ;;  %v3845_v37 = vpop.permute.xlu2 %3844 }
 0x7ba   :  { %v4449_v44 = vsel %vm13901_vm4, %v4448_v12, %v4447_v27  ;;  %vm13902_vm3 = vmmov %vm13897_vm1  ;;  %v3768_v12 = vrot.slane %v10781_v2, 5 }
 0x7bb   :  { %v4451_v36 = vsel %vm13902_vm3, %v4450_v8, %v4449_v44  ;;  %vm13903_vm11 = vmmov %vm13896_vm7  ;;  %v3772_v8 = vrot.slane %v10803_v7, 3 }
 0x7bc   :  { %v4429_v54 = vsel %vm13903_vm11, %v13806_v28, %v4428_v60  ;;  %vm13904_vm10 = vmmov %vm13892_vm8 }
 0x7bd   :  { %v4453_v9 = vsel %vm13904_vm10, %v4452_v29, %v4451_v36  ;;  %vm13905_vm15 = vmmov %vm13898_vm6  ;;  %v3776_v29 = vrot.slane %v13910_v46, 1  ;;  %v4469_v46 = vrot.slane %v10762_v53, 1 }
 0x7be   :  { %v4431_v56 = vsel %vm13905_vm15, %v4430_v59, %v4429_v54  ;;  %4484 = vrot.lane.b32.xlu0 %v4453_v9, %s5232_s4  ;;  %vm13906_vm8 = vmmov %vm13893_vm0  ;;  %v4516_v59 = vrot.slane %v10674_v16, 6 }
 0x7bf   :  { %v4433_v38 = vsel %vm13906_vm8, %v4432_v1, %v4431_v56  ;;  %vm13907_vm0 = vmmov %vm13887_vm5  ;;  %v4518_v1 = vrot.slane %v10680_v3, 5 }
 0x7c0   :  { %v3765_v4 = vsel %vm13907_vm0, %v3764_v24, %v10743_v55  ;;  %vm13908_vm13 = vmmov %vm13882_vm2  ;;  %v4509_v55 = vrot.slane %v10648_v42, 2  ;;  %v4497_v24 = vrot.slane %v13806_v28, 1 }
 0x7c1   :  { %v4435_v10 = vsel %vm13908_vm13, %v4434_v11, %v4433_v38  ;;  %vm13909_vm12 = vmmov %vm13896_vm7  ;;  %v4520_v11 = vrot.slane %v10686_v21, 4 }
 0x7c2   :  { %v3767_v22 = vsel %vm13909_vm12, %v3766_v30, %v3765_v4  ;;  %vm13911_vm2 = vmmov %vm13897_vm1  ;;  %v4500_v30 = vrot.slane %v13811_v52, 7 }
 0x7c3   :  { %v4437_v2 = vsel %vm13911_vm2, %v4436_v0, %v4435_v10  ;;  %vm13912_vm7 = vmmov %vm13898_vm6  ;;  %v4494_v0 = vrot.slane %v13809_v47, 3 }
 0x7c4   :  { %v3769_v35 = vsel %vm13912_vm7, %v3768_v12, %v3767_v22  ;;  %vm13913_vm1 = vmmov %vm13904_vm10  ;;  %vm13921_vm10 = vcmask 31744   ;;  %v4502_v12 = vrot.slane %v13812_v23, 6 }
 0x7c5   :  { %v4439_v41 = vsel %vm13913_vm1, %v4438_v17, %v4437_v2  ;;  %vm13914_vm6 = vmmov %vm13906_vm8  ;;  %v4495_v17 = vrot.slane %v13803_v57, 2  ;;  %v11465_v2 = vpop.permute.xlu0 %3840 }
 0x7c6   :  { %v3771_v7 = vsel %vm13914_vm6, %v3770_v18, %v3769_v35  ;;  %4482 = vrot.lane.b32.xlu2 %v4439_v41, %s5232_s4  ;;  %vm13915_vm14 = vmmov %vm13901_vm4  ;;  %v4504_v18 = vrot.slane %v10628_v39, 5  ;;  %v4474_v41 = vrot.slane %v13836_v33, 6 }
 0x7c7   :  { %v3773_v63 = vsel %vm13915_vm14, %v3772_v8, %v3771_v7  ;;  %vm13916_vm9 = vmmov %vm13907_vm0  ;;  %v4496_v4 = vsel %vm13907_vm0, %v4495_v17, %v4494_v0  ;;  %v4506_v8 = vrot.slane %v10636_v49, 4  ;;  %v4565_v17 = vrot.slane %v13806_v28, 2 }
 0x7c8   :  { %v4510_v27 = vsel %vm13916_vm9, %v4509_v55, %v4508_v58  ;;  %vm13917_vm4 = vmmov %vm13911_vm2  ;;  %v4472_v55 = vrot.slane %v13831_v20, 7 }
 0x7c9   :  { %v3775_v44 = vsel %vm13917_vm4, %v3774_v51, %v3773_v63  ;;  %vm13918_vm5 = vmmov %vm13903_vm11  ;;  %v4468_v51 = vrot.slane %v13834_v26, 2 }
 0x7ca   :  { %v4512_v60 = vsel %vm13918_vm5, %v4511_v6, %v4510_v27  ;;  %vm13919_vm3 = vmmov %vm13913_vm1 }
 0x7cb   :  { %v3777_v36 = vsel %vm13919_vm3, %v3776_v29, %v3775_v44  ;;  %vm13920_vm11 = vmmov %vm13912_vm7  ;;  %v11463_v29 = vpop.permute.xlu1 %3842  ;;  %v13933_v44 = vld [vmem:[#allocation349_spill] sm:$0xff] }
 0x7cc   :  { %v4513_v54 = vsel %vm13920_vm11, %v10661_v61, %v4512_v60  ;;  %v11450_v9 = vsel %vm13921_vm10, %v3777_v36, %v3845_v37  ;;  %vm13922_vm15 = vmmov %vm13914_vm6  ;;  %v4478_v37 = vrot.slane %v13840_v5, 4  ;;  %v4480_v60 = vrot.slane %v13933_v44, 3 }
 0x7cd   :  { %v4515_v56 = vsel %vm13922_vm15, %v4514_v15, %v4513_v54  ;;  %vm13923_vm8 = vmmov %vm13908_vm13  ;;  %v13929_v15 = vld [vmem:[#allocation391_spill] sm:$0xff]  ;;  %v4563_v54 = vrot.slane %v13803_v57, 3 }
 0x7ce   :  { %v4517_v38 = vsel %vm13923_vm8, %v4516_v59, %v4515_v56  ;;  %vm13924_vm13 = vmmov %vm13911_vm2  ;;  %v4476_v63 = vrot.slane %v13929_v15, 5  ;;  %v13931_v59 = vld [vmem:[#allocation339_spill] sm:$0xff] }
 0x7cf   :  { %v4519_v10 = vsel %vm13924_vm13, %v4518_v1, %v4517_v38  ;;  %vm13925_vm12 = vmmov %vm13918_vm5 }
 0x7d0   :  { %v4498_v22 = vsel %vm13925_vm12, %v4497_v24, %v4496_v4  ;;  %vm13926_vm2 = vmmov %vm13913_vm1 }
 0x7d1   :  { %v4521_v35 = vsel %vm13926_vm2, %v4520_v11, %v4519_v10  ;;  %v4499_v58 = vsel %vm13912_vm7, %v13807_v43, %v4498_v22  ;;  %vm13927_vm1 = vmmov %vm13914_vm6  ;;  %v4562_v11 = vrot.slane %v13809_v47, 4  ;;  %v4574_v10 = vrot.slane %v10636_v49, 5 }
 0x7d2   :  { %4552 = vrot.lane.b32.xlu1 %v4521_v35, %s5233_s18  ;;  %v4501_v7 = vsel %vm13927_vm1, %v4500_v30, %v4499_v58  ;;  %vm13928_vm6 = vmmov %vm13907_vm0  ;;  %v4567_v30 = vrot.slane %v13807_v43, 1 }
 0x7d3   :  { %v4470_v6 = vsel %vm13928_vm6, %v4469_v46, %v4468_v51  ;;  %vm13930_vm14 = vmmov %vm13923_vm8  ;;  %v4536_v51 = vrot.slane %v13834_v26, 3  ;;  %v4537_v46 = vrot.slane %v10762_v53, 2 }
 0x7d4   :  { %v4503_v27 = vsel %vm13930_vm14, %v4502_v12, %v4501_v7  ;;  %vm13932_vm9 = vmmov %vm13918_vm5  ;;  %v4570_v12 = vrot.slane %v13812_v23, 7  ;;  %v11504_v7 = vpop.permute.xlu2 %3910  ;;  %v13978_v23 = vld [vmem:[#allocation252_spill] sm:$0xff] }
 0x7d5   :  { %v4471_v1 = vsel %vm13932_vm9, %v13931_v59, %v4470_v6  ;;  %v4505_v0 = vsel %vm13917_vm4, %v4504_v18, %v4503_v27  ;;  %vm13934_vm5 = vmmov %vm13912_vm7  ;;  %v4572_v18 = vrot.slane %v10628_v39, 6  ;;  %13943 = vst [vmem:[#allocation110_spill] sm:$0xff] %v11504_v7  ;;  %v4546_v27 = vrot.slane %v13840_v5, 5 }
 0x7d6   :  { %v4473_v36 = vsel %vm13934_vm5, %v4472_v55, %v4471_v1  ;;  %vm13935_vm3 = vmmov %vm13926_vm2  ;;  %v4539_v55 = vrot.slane %v13931_v59, 1 }
 0x7d7   :  { %v4507_v24 = vsel %vm13935_vm3, %v4506_v8, %v4505_v0  ;;  %vm13936_vm11 = vmmov %vm13927_vm1  ;;  %v4522_v0 = vrot.slane %v13850_v25, 3 }
 0x7d8   :  { %v4475_v56 = vsel %vm13936_vm11, %v4474_v41, %v4473_v36  ;;  %4550 = vrot.lane.b32.xlu0 %v4507_v24, %s5233_s18  ;;  %vm13937_vm10 = vmmov %vm13923_vm8  ;;  %v4542_v41 = vrot.slane %v13836_v33, 7  ;;  %v11515_v36 = vpop.permute.xlu1 %3908 }
 0x7d9   :  { %v4477_v38 = vsel %vm13937_vm10, %v4476_v63, %v4475_v56  ;;  %vm13938_vm15 = vmmov %vm13907_vm0  ;;  %v4523_v56 = vrot.slane %v13844_v45, 2 }
 0x7da   :  { %v4564_v4 = vsel %vm13938_vm15, %v4563_v54, %v4562_v11  ;;  %vm13939_vm8 = vmmov %vm13917_vm4  ;;  %v4548_v11 = vrot.slane %v13933_v44, 4  ;;  %v11517_v54 = vpop.permute.xlu0 %3906 }
 0x7db   :  { %v4479_v22 = vsel %vm13939_vm8, %v4478_v37, %v4477_v38  ;;  %vm13940_vm0 = vmmov %vm13932_vm9  ;;  %v4544_v37 = vrot.slane %v13929_v15, 6 }
 0x7dc   :  { %v4566_v8 = vsel %vm13940_vm0, %v4565_v17, %v4564_v4  ;;  %vm13941_vm13 = vmmov %vm13926_vm2  ;;  %v4528_v4 = vrot.slane %v13852_v31, 7 }
 0x7dd   :  { %v4481_v35 = vsel %vm13941_vm13, %v4480_v60, %v4479_v22  ;;  %vm13942_vm12 = vmmov %vm13934_vm5  ;;  %v4530_v22 = vrot.slane %v13853_v19, 6 }
 0x7de   :  { %v4568_v58 = vsel %vm13942_vm12, %v4567_v30, %v4566_v8  ;;  %4488 = vrot.lane.b32.xlu2 %v4481_v35, %s5232_s4  ;;  %vm13944_vm2 = vmmov %vm13927_vm1  ;;  %v4525_v30 = vrot.slane %v13847_v40, 1 }
 0x7df   :  { %v4569_v6 = vsel %vm13944_vm2, %v13811_v52, %v4568_v58  ;;  %vm13945_vm7 = vmmov %vm13928_vm6  ;;  %v13956_v58 = vld [vmem:[#allocation85_spill] sm:$0xff] }
 0x7e0   :  { %v4538_v63 = vsel %vm13945_vm7, %v4537_v46, %v4536_v51  ;;  %vm13946_vm1 = vmmov %vm13937_vm10  ;;  %v4532_v51 = vrot.slane %v13856_v48, 5  ;;  %v4534_v46 = vrot.slane %v13857_v14, 4 }
 0x7e1   :  { %v4571_v1 = vsel %vm13946_vm1, %v4570_v12, %v4569_v6  ;;  %vm13947_vm6 = vmmov %vm13940_vm0 }
 0x7e2   :  { %v4540_v60 = vsel %vm13947_vm6, %v4539_v55, %v4538_v63  ;;  %vm13948_vm14 = vmmov %vm13917_vm4  ;;  %v3750_v55 = vrot.slane %v13956_v58, 7 }
 0x7e3   :  { %v4573_v17 = vsel %vm13948_vm14, %v4572_v18, %v4571_v1  ;;  %vm13949_vm9 = vmmov %vm13934_vm5 }
 0x7e4   :  { %v4541_v24 = vsel %vm13949_vm9, %v13831_v20, %v4540_v60  ;;  %vm13950_vm4 = vmmov %vm13935_vm3 }
 0x7e5   :  { %v4575_v12 = vsel %vm13950_vm4, %v4574_v10, %v4573_v17  ;;  %vm13951_vm5 = vmmov %vm13944_vm2 }
 0x7e6   :  { %v4543_v38 = vsel %vm13951_vm5, %v4542_v41, %v4541_v24  ;;  %4618 = vrot.lane.b32.xlu1 %v4575_v12, %s5234_s19  ;;  %vm13952_vm3 = vmmov %vm13946_vm1  ;;  %v13957_v41 = vld [vmem:[#allocation227_spill] sm:$0xff] }
 0x7e7   :  { %v4545_v18 = vsel %vm13952_vm3, %v4544_v37, %v4543_v38  ;;  %vm13953_vm11 = vmmov %vm13945_vm7  ;;  %v3752_v6 = vrot.slane %v13957_v41, 6  ;;  %v13960_v37 = vld [vmem:[#allocation320_spill] sm:$0xff]  ;;  %v13965_v38 = vld [vmem:[#allocation9_spill] sm:$0xff] }
 0x7e8   :  { %v4524_v8 = vsel %vm13953_vm11, %v4523_v56, %v4522_v0  ;;  %vm13954_vm10 = vmmov %vm13939_vm8  ;;  %v3754_v60 = vrot.slane %v13960_v37, 5  ;;  %v13961_v0 = vld [vmem:[#allocation395_spill] sm:$0xff]  ;;  %v13970_v41 = vld [vmem:[#allocation12_spill] sm:$0xff] }
 0x7e9   :  { %v4547_v35 = vsel %vm13954_vm10, %v4546_v27, %v4545_v18  ;;  %vm13955_vm15 = vmmov %vm13940_vm0  ;;  %v3756_v17 = vrot.slane %v13961_v0, 4  ;;  %v13963_v27 = vld [vmem:[#allocation327_spill] sm:$0xff]  ;;  %v3762_v18 = vrot.slane %v13965_v38, 1  ;;  %v3738_v37 = vrot.slane %v13970_v41, 6 }
 0x7ea   :  { %v4526_v10 = vsel %vm13955_vm15, %v4525_v30, %v4524_v8  ;;  %vm13958_vm8 = vmmov %vm13950_vm4  ;;  %v3758_v56 = vrot.slane %v13963_v27, 3  ;;  %v13964_v30 = vld [vmem:[#allocation341_spill] sm:$0xff]  ;;  %v13974_v27 = vld [vmem:[#allocation124_spill] sm:$0xff]  ;;  %v4604_v41 = vrot.slane %v13834_v26, 4 }
 0x7eb   :  { %v4549_v63 = vsel %vm13958_vm8, %v4548_v11, %v4547_v35  ;;  %vm13959_vm0 = vmmov %vm13949_vm9  ;;  %v3760_v12 = vrot.slane %v13964_v30, 2  ;;  %v13967_v11 = vld [vmem:[#allocation101_spill] sm:$0xff]  ;;  %v3742_v7 = vrot.slane %v13974_v27, 4 }
 0x7ec   :  { %v4527_v1 = vsel %vm13959_vm0, %v13848_v32, %v4526_v10  ;;  %4556 = vrot.lane.b32.xlu0 %v4549_v63, %s5233_s18  ;;  %vm13962_vm13 = vmmov %vm13944_vm2  ;;  %v13969_v10 = vld [vmem:[#allocation147_spill] sm:$0xff] }
 0x7ed   :  { %v4529_v24 = vsel %vm13962_vm13, %v4528_v4, %v4527_v1  ;;  %vm13966_vm12 = vmmov %vm13946_vm1  ;;  %v3736_v58 = vrot.slane %v13969_v10, 7  ;;  %v13973_v4 = vld [vmem:[#allocation28_spill] sm:$0xff]  ;;  %vm13990_vm13 = vcmask 31744  }
 0x7ee   :  { %v4531_v8 = vsel %vm13966_vm12, %v4530_v22, %v4529_v24  ;;  %vm13968_vm2 = vmmov %vm13945_vm7  ;;  %v3740_v1 = vrot.slane %v13973_v4, 5  ;;  %v13977_v22 = vld [vmem:[#allocation232_spill] sm:$0xff]  ;;  %v4607_v4 = vrot.slane %v13931_v59, 2 }
 0x7ef   :  { %v3751_v35 = vsel %vm13968_vm2, %v3750_v55, %v13967_v11  ;;  %vm13971_vm7 = vmmov %vm13954_vm10  ;;  %v3744_v24 = vrot.slane %v13977_v22, 3  ;;  %v3746_v55 = vrot.slane %v13978_v23, 2  ;;  %v11560_v11 = vpop.permute.xlu2 %3976 }
 0x7f0   :  { %v4533_v0 = vsel %vm13971_vm7, %v4532_v51, %v4531_v8  ;;  %vm13972_vm1 = vmmov %vm13947_vm6  ;;  %v13980_v8 = vld [vmem:[#allocation335_spill] sm:$0xff] }
 0x7f1   :  { %v3753_v63 = vsel %vm13972_vm1, %v3752_v6, %v3751_v35  ;;  %vm13975_vm6 = vmmov %vm13950_vm4  ;;  %v3748_v6 = vrot.slane %v13980_v8, 1  ;;  %v13981_v35 = vld [vmem:[#allocation132_spill] sm:$0xff]  ;;  %v4616_v8 = vrot.slane %v13933_v44, 5 }
 0x7f2   :  { %v4535_v30 = vsel %vm13975_vm6, %v4534_v46, %v4533_v0  ;;  %vm13976_vm14 = vmmov %vm13959_vm0  ;;  %v11568_v46 = vpop.permute.xlu1 %3974 }
 0x7f3   :  { %v3755_v38 = vsel %vm13976_vm14, %v3754_v60, %v3753_v63  ;;  %4554 = vrot.lane.b32.xlu2 %v4535_v30, %s5233_s18  ;;  %vm13979_vm9 = vmmov %vm13951_vm5  ;;  %v11570_v60 = vpop.permute.xlu0 %3912  ;;  %v4605_v63 = vrot.slane %v10762_v53, 3  ;;  %v4612_v30 = vrot.slane %v13929_v15, 7 }
 0x7f4   :  { %v3757_v51 = vsel %vm13979_vm9, %v3756_v17, %v3755_v38  ;;  %vm13982_vm4 = vmmov %vm13968_vm2 }
 0x7f5   :  { %v3737_v10 = vsel %vm13982_vm4, %v3736_v58, %v13981_v35  ;;  %vm13983_vm5 = vmmov %vm13952_vm3  ;;  %v4609_v58 = vrot.slane %v13831_v20, 1 }
 0x7f6   :  { %v3759_v0 = vsel %vm13983_vm5, %v3758_v56, %v3757_v51  ;;  %vm13984_vm3 = vmmov %vm13972_vm1 }
 0x7f7   :  { %v3739_v23 = vsel %vm13984_vm3, %v3738_v37, %v3737_v10  ;;  %vm13985_vm11 = vmmov %vm13971_vm7  ;;  %v4614_v37 = vrot.slane %v13840_v5, 6  ;;  %v4591_v10 = vrot.slane %v13844_v45, 3 }
 0x7f8   :  { %v3761_v17 = vsel %vm13985_vm11, %v3760_v12, %v3759_v0  ;;  %vm13986_vm10 = vmmov %vm13959_vm0  ;;  %v4593_v0 = vrot.slane %v13847_v40, 2 }
 0x7f9   :  { %v3741_v27 = vsel %vm13986_vm10, %v3740_v1, %v3739_v23  ;;  %vm13987_vm15 = vmmov %vm13975_vm6 }
 0x7fa   :  { %v3763_v38 = vsel %vm13987_vm15, %v3762_v18, %v3761_v17  ;;  %vm13988_vm8 = vmmov %vm13979_vm9 }
 0x7fb   :  { %v3743_v22 = vsel %vm13988_vm8, %v3742_v7, %v3741_v27  ;;  %vm13989_vm0 = vmmov %vm13968_vm2  ;;  %v11586_v51 = vsel %vm13990_vm13, %v3763_v38, %v11463_v29  ;;  %v4590_v7 = vrot.slane %v13850_v25, 4  ;;  %v4600_v27 = vrot.slane %v13856_v48, 6 }
 0x7fc   :  { %v4606_v56 = vsel %vm13989_vm0, %v4605_v63, %v4604_v41  ;;  %vm13991_vm12 = vmmov %vm13983_vm5 }
 0x7fd   :  { %v3745_v12 = vsel %vm13991_vm12, %v3744_v24, %v3743_v22  ;;  %vm13992_vm2 = vmmov %vm13972_vm1  ;;  %v4595_v24 = vrot.slane %v13848_v32, 1 }
 0x7fe   :  { %v4608_v1 = vsel %vm13992_vm2, %v4607_v4, %v4606_v56  ;;  %v3747_v35 = vsel %vm13971_vm7, %v3746_v55, %v3745_v12  ;;  %vm13993_vm1 = vmmov %vm13986_vm10  ;;  %v4598_v4 = vrot.slane %v13853_v19, 7  ;;  %v11613_v56 = vpop.permute.xlu2 %4042  ;;  %v4579_v12 = vrot.slane %v10655_v13, 2 }
 0x7ff   :  { %v4610_v18 = vsel %vm13993_vm1, %v4609_v58, %v4608_v1  ;;  %v3749_v41 = vsel %vm13975_vm6, %v3748_v6, %v3747_v35  ;;  %vm13994_vm14 = vmmov %vm13988_vm8  ;;  %v4602_v58 = vrot.slane %v13857_v14, 5  ;;  %v4581_v1 = vrot.slane %v10661_v61, 1 }
 0x800   :  { %v4611_v29 = vsel %vm13994_vm14, %v13836_v33, %v4610_v18  ;;  %vm13995_vm9 = vmmov %vm13990_vm13  ;;  %v4584_v35 = vrot.slane %v10674_v16, 7  ;;  %v11623_v18 = vpop.permute.xlu0 %3978 }
 0x801   :  { %v4835_v23 = vsel %vm13995_vm9, %v3749_v41, %v11465_v2  ;;  %vm13996_vm4 = vmmov %vm13983_vm5  ;;  %v4576_v2 = vrot.slane %v10642_v50, 4  ;;  %v4586_v41 = vrot.slane %v10680_v3, 6 }
 0x802   :  { %v4613_v55 = vsel %vm13996_vm4, %v4612_v30, %v4611_v29  ;;  %vm13997_vm5 = vmmov %vm13989_vm0  ;;  %v4577_v30 = vrot.slane %v10648_v42, 3  ;;  %v4588_v29 = vrot.slane %v10686_v21, 5 }
 0x803   :  { %v4592_v63 = vsel %vm13997_vm5, %v4591_v10, %v4590_v7  ;;  %vm13998_vm3 = vmmov %vm13971_vm7  ;;  %vm14005_vm7 = vcmask 64512  }
 0x804   :  { %v4615_v17 = vsel %vm13998_vm3, %v4614_v37, %v4613_v55  ;;  %vm13999_vm11 = vmmov %vm13992_vm2  ;;  %v11633_v55 = vsel %vm14005_vm7, %v4835_v23, %v11515_v36  ;;  %v4661_v36 = vrot.slane %v13847_v40, 3  ;;  %v4663_v23 = vrot.slane %v13848_v32, 2 }
 0x805   :  { %v4594_v6 = vsel %vm13999_vm11, %v4593_v0, %v4592_v63  ;;  %vm14000_vm10 = vmmov %vm13975_vm6 }
 0x806   :  { %v4617_v38 = vsel %vm14000_vm10, %v4616_v8, %v4615_v17  ;;  %vm14001_vm15 = vmmov %vm13993_vm1  ;;  %v11621_v8 = vpop.permute.xlu1 %3980 }
 0x807   :  { %v4596_v22 = vsel %vm14001_vm15, %v4595_v24, %v4594_v6  ;;  %4624 = vrot.lane.b32.xlu1 %v4617_v38, %s5234_s19  ;;  %vm14002_vm0 = vmmov %vm13996_vm4  ;;  %v4658_v6 = vrot.slane %v13850_v25, 5  ;;  %v4659_v38 = vrot.slane %v13844_v45, 4 }
 0x808   :  { %v4597_v37 = vsel %vm13988_vm8, %v13852_v31, %v4596_v22  ;;  %vm14003_vm13 = vmmov %vm13997_vm5  ;;  %v4665_v22 = vrot.slane %v13852_v31, 1 }
 0x809   :  { %v4599_v7 = vsel %vm14002_vm0, %v4598_v4, %v4597_v37  ;;  %v4578_v10 = vsel %vm14003_vm13, %v4577_v30, %v4576_v2  ;;  %vm14004_vm12 = vmmov %vm13998_vm3  ;;  %v4670_v2 = vrot.slane %v13857_v14, 6 }
 0x80a   :  { %v4601_v0 = vsel %vm14004_vm12, %v4600_v27, %v4599_v7  ;;  %v4580_v24 = vsel %vm13992_vm2, %v4579_v12, %v4578_v10  ;;  %vm14006_vm1 = vmmov %vm14005_vm7  ;;  %v4644_v12 = vrot.slane %v10642_v50, 5 }
 0x80b   :  { %v4838_v63 = vsel %vm14006_vm1, %v11389_v34, %v11517_v54  ;;  %v4603_v4 = vsel %vm13975_vm6, %v4602_v58, %v4601_v0  ;;  %vm14007_vm14 = vmmov %vm14001_vm15  ;;  %v4660_v54 = vsel %vm13997_vm5, %v4659_v38, %v4658_v6  ;;  %v4668_v58 = vrot.slane %v13856_v48, 7 }
 0x80c   :  { %v4582_v17 = vsel %vm14007_vm14, %v4581_v1, %v4580_v24  ;;  %4622 = vrot.lane.b32.xlu0 %v4603_v4, %s5234_s19  ;;  %vm14008_vm9 = vmmov %vm13988_vm8  ;;  %v4645_v1 = vrot.slane %v10648_v42, 4  ;;  %v4649_v0 = vrot.slane %v10661_v61, 2  ;;  %v4651_v4 = vrot.slane %v10667_v62, 1 }
 0x80d   :  { %v4583_v27 = vsel %vm14008_vm9, %v10667_v62, %v4582_v17  ;;  %vm14009_vm4 = vmmov %vm14002_vm0  ;;  %v4654_v17 = vrot.slane %v10680_v3, 7  ;;  %v4656_v38 = vrot.slane %v10686_v21, 6 }
 0x80e   :  { %v4585_v34 = vsel %vm14009_vm4, %v4584_v35, %v4583_v27  ;;  %vm14010_vm11 = vmmov %vm13992_vm2  ;;  %v4647_v35 = vrot.slane %v10655_v13, 3  ;;  %v4630_v27 = vrot.slane %v13809_v47, 5 }
 0x80f   :  { %v4587_v30 = vsel %vm13998_vm3, %v4586_v41, %v4585_v34  ;;  %v4662_v37 = vsel %vm14010_vm11, %v4661_v36, %v4660_v54  ;;  %vm14011_vm10 = vmmov %vm13975_vm6  ;;  %v11670_v36 = vpop.permute.xlu2 %4048  ;;  %v4631_v34 = vrot.slane %v13803_v57, 4  ;;  %v4633_v54 = vrot.slane %v13806_v28, 3 }
 0x810   :  { %v4589_v7 = vsel %vm14011_vm10, %v4588_v29, %v4587_v30  ;;  %vm14012_vm15 = vmmov %vm14007_vm14  ;;  %v11676_v30 = vpop.permute.xlu1 %4046 }
 0x811   :  { %v4664_v10 = vsel %vm14012_vm15, %v4663_v23, %v4662_v37  ;;  %4620 = vrot.lane.b32.xlu2 %v4589_v7, %s5234_s19  ;;  %vm14013_vm0 = vmmov %vm13997_vm5  ;;  %v11678_v37 = vpop.permute.xlu0 %4044  ;;  %v4635_v7 = vrot.slane %v13807_v43, 2 }
 0x812   :  { %v4666_v24 = vsel %vm13988_vm8, %v4665_v22, %v4664_v10  ;;  %v4646_v41 = vsel %vm14013_vm0, %v4645_v1, %v4644_v12  ;;  %vm14014_vm13 = vmmov %vm14009_vm4  ;;  %v4637_v10 = vrot.slane %v13811_v52, 1 }
 0x813   :  { %v4667_v6 = vsel %vm14014_vm13, %v13853_v19, %v4666_v24  ;;  %vm14015_vm12 = vmmov %vm13992_vm2  ;;  %v4642_v24 = vrot.slane %v10636_v49, 6 }
 0x814   :  { %v4648_v29 = vsel %vm14015_vm12, %v4647_v35, %v4646_v41  ;;  %vm14016_vm2 = vmmov %vm13998_vm3  ;;  %vm14024_vm3 = vcmask 97280  }
 0x815   :  { %v4669_v23 = vsel %vm14016_vm2, %v4668_v58, %v4667_v6  ;;  %vm14017_vm7 = vmmov %vm14007_vm14 }
 0x816   :  { %v4650_v22 = vsel %vm14017_vm7, %v4649_v0, %v4648_v29  ;;  %vm14018_vm1 = vmmov %vm13975_vm6  ;;  %v4640_v0 = vrot.slane %v10628_v39, 7 }
 0x817   :  { %v4671_v12 = vsel %vm14018_vm1, %v4670_v2, %v4669_v23  ;;  %vm14019_vm6 = vmmov %vm13988_vm8  ;;  %v4712_v23 = vrot.slane %v10642_v50, 6 }
 0x818   :  { %v4652_v1 = vsel %vm14019_vm6, %v4651_v4, %v4650_v22  ;;  %4690 = vrot.lane.b32.xlu1 %v4671_v12, %s5235_s20  ;;  %vm14020_vm14 = vmmov %vm14009_vm4  ;;  %v11694_v4 = vsel %vm14024_vm3, %v4838_v63, %v11568_v46  ;;  %v4713_v22 = vrot.slane %v10648_v42, 5  ;;  %v4717_v46 = vrot.slane %v10661_v61, 3 }
 0x819   :  { %v4653_v58 = vsel %vm14020_vm14, %v10674_v16, %v4652_v1  ;;  %vm14021_vm9 = vmmov %vm14013_vm0  ;;  %v4719_v63 = vrot.slane %v10667_v62, 2  ;;  %v4724_v12 = vrot.slane %v10686_v21, 7 }
 0x81a   :  { %v4632_v35 = vsel %vm14021_vm9, %v4631_v34, %v4630_v27  ;;  %vm14022_vm4 = vmmov %vm14016_vm2  ;;  %v4715_v34 = vrot.slane %v10655_v13, 4 }
 0x81b   :  { %v4655_v2 = vsel %vm14022_vm4, %v4654_v17, %v4653_v58  ;;  %vm14023_vm5 = vmmov %vm14010_vm11  ;;  %vm14025_vm11 = vcmask 64512   ;;  %v4699_v58 = vrot.slane %v13803_v57, 5 }
 0x81c   :  { %v4634_v41 = vsel %vm14023_vm5, %v4633_v54, %v4632_v35  ;;  %v4841_v6 = vsel %vm14025_vm11, %v11450_v9, %v11570_v60  ;;  %vm14026_vm10 = vmmov %vm14018_vm1  ;;  %v14029_v54 = vld [vmem:[#allocation351_spill] sm:$0xff] }
 0x81d   :  { %v4657_v29 = vsel %vm14026_vm10, %v4656_v38, %v4655_v2  ;;  %vm14027_vm15 = vmmov %vm14017_vm7  ;;  %v4721_v38 = vrot.slane %v10674_v16, 1 }
 0x81e   :  { %v4636_v27 = vsel %vm14027_vm15, %v4635_v7, %v4634_v41  ;;  %4688 = vrot.lane.b32.xlu0 %v4657_v29, %s5235_s20  ;;  %vm14028_vm8 = vmmov %vm14019_vm6  ;;  %v4701_v41 = vrot.slane %v13806_v28, 4  ;;  %v4703_v29 = vrot.slane %v13807_v43, 3 }
 0x81f   :  { %v4638_v17 = vsel %vm14028_vm8, %v4637_v10, %v4636_v27  ;;  %vm14030_vm0 = vmmov %vm14014_vm13  ;;  %v4698_v10 = vrot.slane %v13809_v47, 6 }
 0x820   :  { %v4639_v9 = vsel %vm14030_vm0, %v14029_v54, %v4638_v17  ;;  %vm14031_vm13 = vmmov %vm14021_vm9  ;;  %v11726_v17 = vpop.permute.xlu2 %4114 }
 0x821   :  { %v4714_v60 = vsel %vm14031_vm13, %v4713_v22, %v4712_v23  ;;  %vm14032_vm12 = vmmov %vm14016_vm2  ;;  %v4705_v23 = vrot.slane %v13811_v52, 2  ;;  %v4707_v22 = vrot.slane %v14029_v54, 1 }
 0x822   :  { %v4641_v1 = vsel %vm14032_vm12, %v4640_v0, %v4639_v9  ;;  %vm14033_vm2 = vmmov %vm14023_vm5  ;;  %v4672_v9 = vrot.slane %v13834_v26, 5 }
 0x823   :  { %v4716_v7 = vsel %vm14033_vm2, %v4715_v34, %v4714_v60  ;;  %vm14034_vm7 = vmmov %vm14018_vm1  ;;  %v11732_v60 = vpop.permute.xlu1 %4112 }
 0x824   :  { %v4643_v35 = vsel %vm14034_vm7, %v4642_v24, %v4641_v1  ;;  %vm14035_vm1 = vmmov %vm14027_vm15  ;;  %v11734_v1 = vpop.permute.xlu0 %4110 }
 0x825   :  { %v4718_v2 = vsel %vm14035_vm1, %v4717_v46, %v4716_v7  ;;  %4686 = vrot.lane.b32.xlu2 %v4643_v35, %s5235_s20  ;;  %vm14036_vm14 = vmmov %vm14021_vm9  ;;  %v4710_v46 = vrot.slane %v10636_v49, 7 }
 0x826   :  { %v4720_v27 = vsel %vm14019_vm6, %v4719_v63, %v4718_v2  ;;  %v4700_v0 = vsel %vm14036_vm14, %v4699_v58, %v4698_v10  ;;  %vm14037_vm9 = vmmov %vm14030_vm0  ;;  %v4673_v10 = vrot.slane %v10762_v53, 4  ;;  %v4675_v58 = vrot.slane %v13931_v59, 3 }
 0x827   :  { %v4722_v24 = vsel %vm14037_vm9, %v4721_v38, %v4720_v27  ;;  %vm14038_vm4 = vmmov %vm14033_vm2  ;;  %v4677_v2 = vrot.slane %v13831_v20, 2 }
 0x828   :  { %v4702_v34 = vsel %vm14038_vm4, %v4701_v41, %v4700_v0  ;;  %vm14039_vm5 = vmmov %vm14032_vm12  ;;  %v4679_v41 = vrot.slane %v13836_v33, 1  ;;  %vm14047_vm12 = vcmask 97280  }
 0x829   :  { %v4723_v63 = vsel %vm14039_vm5, %v10680_v3, %v4722_v24  ;;  %vm14040_vm3 = vmmov %vm14035_vm1  ;;  %v4684_v24 = vrot.slane %v13933_v44, 6 }
 0x82a   :  { %v4704_v7 = vsel %vm14040_vm3, %v4703_v29, %v4702_v34  ;;  %vm14041_vm11 = vmmov %vm14034_vm7  ;;  %v4682_v29 = vrot.slane %v13840_v5, 7  ;;  %v11755_v34 = vsel %vm14047_vm12, %v4841_v6, %v11621_v8  ;;  %v4767_v8 = vrot.slane %v13803_v57, 6 }
 0x82b   :  { %v4725_v38 = vsel %vm14041_vm11, %v4724_v12, %v4723_v63  ;;  %vm14042_vm10 = vmmov %vm14019_vm6  ;;  %v14048_v63 = vld [vmem:[#allocation110_spill] sm:$0xff]  ;;  %v4769_v6 = vrot.slane %v13806_v28, 5  ;;  %v4741_v57 = vrot.slane %v10762_v53, 5  ;;  %v11779_v28 = vpop.permute.xlu1 %4178 }
 0x82c   :  { %v4706_v35 = vsel %vm14042_vm10, %v4705_v23, %v4704_v7  ;;  %4756 = vrot.lane.b32.xlu1 %v4725_v38, %s5236_s6  ;;  %vm14043_vm15 = vmmov %vm14030_vm0  ;;  %v4766_v38 = vrot.slane %v13809_v47, 7 }
 0x82d   :  { %v4708_v27 = vsel %vm14043_vm15, %v4707_v22, %v4706_v35  ;;  %vm14044_vm8 = vmmov %vm14031_vm13  ;;  %v4771_v35 = vrot.slane %v13807_v43, 4  ;;  %v11781_v43 = vpop.permute.xlu0 %4116 }
 0x82e   :  { %v4674_v0 = vsel %vm14044_vm8, %v4673_v10, %v4672_v9  ;;  %vm14045_vm0 = vmmov %vm14039_vm5 }
 0x82f   :  { %v4709_v12 = vsel %vm14045_vm0, %v10628_v39, %v4708_v27  ;;  %vm14046_vm13 = vmmov %vm14033_vm2  ;;  %vm14049_vm2 = vcmask 64512  }
 0x830   :  { %v4676_v23 = vsel %vm14046_vm13, %v4675_v58, %v4674_v0  ;;  %v4840_v7 = vsel %vm14049_vm2, %v11586_v51, %v14048_v63  ;;  %v4711_v22 = vsel %vm14034_vm7, %v4710_v46, %v4709_v12  ;;  %vm14050_vm6 = vmmov %vm14047_vm12  ;;  %v4773_v46 = vrot.slane %v13811_v52, 3 }
 0x831   :  { %v4678_v9 = vsel %vm14035_vm1, %v4677_v2, %v4676_v23  ;;  %v4844_v10 = vsel %vm14050_vm6, %v4840_v7, %v11623_v18  ;;  %4754 = vrot.lane.b32.xlu0 %v4711_v22, %s5236_s6  ;;  %vm14051_vm14 = vmmov %vm14042_vm10  ;;  %v4775_v2 = vrot.slane %v14029_v54, 2  ;;  %v4777_v18 = vrot.slane %v10628_v39, 1  ;;  %v11792_v7 = vpop.permute.xlu2 %4180 }
 0x832   :  { %v4680_v58 = vsel %vm14051_vm14, %v4679_v41, %v4678_v9  ;;  %vm14052_vm4 = vmmov %vm14045_vm0  ;;  %v4740_v41 = vrot.slane %v13834_v26, 6  ;;  %v4743_v54 = vrot.slane %v13931_v59, 4  ;;  %v4745_v39 = vrot.slane %v13831_v20, 3 }
 0x833   :  { %v4681_v51 = vsel %vm14037_vm9, %v13929_v15, %v4680_v58  ;;  %vm14053_vm5 = vmmov %vm14044_vm8  ;;  %v4747_v23 = vrot.slane %v13836_v33, 2  ;;  %v4749_v63 = vrot.slane %v13929_v15, 1  ;;  %v4752_v9 = vrot.slane %v13933_v44, 7 }
 0x834   :  { %v4683_v47 = vsel %vm14052_vm4, %v4682_v29, %v4681_v51  ;;  %v4768_v27 = vsel %vm14053_vm5, %v4767_v8, %v4766_v38  ;;  %vm14054_vm3 = vmmov %vm14034_vm7  ;;  %v4726_v38 = vrot.slane %v13850_v25, 6 }
 0x835   :  { %v4685_v0 = vsel %vm14054_vm3, %v4684_v24, %v4683_v47  ;;  %vm14055_vm11 = vmmov %vm14046_vm13 }
 0x836   :  { %v4770_v52 = vsel %vm14055_vm11, %v4769_v6, %v4768_v27  ;;  %4692 = vrot.lane.b32.xlu2 %v4685_v0, %s5235_s20  ;;  %vm14056_vm10 = vmmov %vm14035_vm1  ;;  %v4727_v6 = vrot.slane %v13844_v45, 5  ;;  %v4733_v27 = vrot.slane %v13852_v31, 2  ;;  %v4735_v0 = vrot.slane %v13853_v19, 1 }
 0x837   :  { %v4772_v29 = vsel %vm14056_vm10, %v4771_v35, %v4770_v52  ;;  %vm14057_vm15 = vmmov %vm14053_vm5  ;;  %v4729_v35 = vrot.slane %v13847_v40, 4 }
 0x838   :  { %v4742_v12 = vsel %vm14057_vm15, %v4741_v57, %v4740_v41  ;;  %vm14058_vm8 = vmmov %vm14051_vm14 }
 0x839   :  { %v4774_v24 = vsel %vm14058_vm8, %v4773_v46, %v4772_v29  ;;  %vm14059_vm0 = vmmov %vm14055_vm11  ;;  %v4731_v46 = vrot.slane %v13848_v32, 3 }
 0x83a   :  { %v4744_v22 = vsel %vm14059_vm0, %v4743_v54, %v4742_v12  ;;  %vm14060_vm13 = vmmov %vm14037_vm9  ;;  %v4738_v54 = vrot.slane %v13857_v14, 7 }
 0x83b   :  { %v4776_v58 = vsel %vm14060_vm13, %v4775_v2, %v4774_v24  ;;  %vm14061_vm12 = vmmov %vm14035_vm1  ;;  %v11826_v24 = vpop.permute.xlu0 %4182 }
 0x83c   :  { %v4746_v8 = vsel %vm14061_vm12, %v4745_v39, %v4744_v22  ;;  %vm14062_vm2 = vmmov %vm14052_vm4 }
 0x83d   :  { %v4778_v51 = vsel %vm14062_vm2, %v4777_v18, %v4776_v58  ;;  %vm14063_vm7 = vmmov %vm14058_vm8 }
 0x83e   :  { %v4748_v47 = vsel %vm14063_vm7, %v4747_v23, %v4746_v8  ;;  %vm14064_vm1 = vmmov %vm14054_vm3  ;;  %v4808_v23 = vrot.slane %v13834_v26, 7  ;;  %v4815_v26 = vrot.slane %v13836_v33, 3  ;;  %v4247_v33 = vpop.permute.xlu2 %4246 }
 0x83f   :  { %v4779_v41 = vsel %vm14064_vm1, %v10636_v49, %v4778_v51  ;;  %vm14065_vm6 = vmmov %vm14037_vm9  ;;  %v4799_v51 = vrot.slane %v13848_v32, 4  ;;  %v4783_v32 = vrot.slane %v10655_v13, 5 }
 0x840   :  { %v4750_v57 = vsel %vm14065_vm6, %v4749_v63, %v4748_v47  ;;  %vm14066_vm14 = vmmov %vm14053_vm5  ;;  %4822 = vrot.lane.b32.xlu1 %v4779_v41, %s5237_s23  ;;  %vm14069_vm5 = vcmask 130048   ;;  %v4185_v63 = vpop.permute.xlu1 %4184  ;;  %v4801_v47 = vrot.slane %v13852_v31, 3 }
 0x841   :  { %v4728_v2 = vsel %vm14066_vm14, %v4727_v6, %v4726_v38  ;;  %vm14067_vm9 = vmmov %vm14062_vm2  ;;  %v11818_v39 = vsel %vm14069_vm5, %v4844_v10, %v11676_v30  ;;  %v4809_v10 = vrot.slane %v10762_v53, 6  ;;  %v4819_v6 = vrot.slane %v13840_v5, 1 }
 0x842   :  { %v4751_v18 = vsel %vm14067_vm9, %v13840_v5, %v4750_v57  ;;  %vm14068_vm4 = vmmov %vm14059_vm0  ;;  %v4803_v5 = vrot.slane %v13853_v19, 2  ;;  %v4781_v57 = vrot.slane %v10648_v42, 6  ;;  %v4789_v42 = vrot.slane %v10674_v16, 2 }
 0x843   :  { %v4730_v52 = vsel %vm14068_vm4, %v4729_v35, %v4728_v2  ;;  %vm14070_vm3 = vmmov %vm14064_vm1  ;;  %v4795_v35 = vrot.slane %v13844_v45, 6  ;;  %v4780_v45 = vrot.slane %v10642_v50, 7  ;;  %v4785_v2 = vrot.slane %v10661_v61, 4 }
 0x844   :  { %v4753_v49 = vsel %vm14070_vm3, %v4752_v9, %v4751_v18  ;;  %vm14071_vm11 = vmmov %vm14056_vm10  ;;  %vm14072_vm10 = vcmask 97280   ;;  %v4811_v9 = vrot.slane %v13931_v59, 5  ;;  %v4791_v61 = vrot.slane %v10680_v3, 1 }
 0x845   :  { %v4732_v29 = vsel %vm14071_vm11, %v4731_v46, %v4730_v52  ;;  %v4843_v12 = vsel %vm14072_vm10, %v11633_v55, %v11560_v11  ;;  %4760 = vrot.lane.b32.xlu0 %v4753_v49, %s5236_s6  ;;  %vm14073_vm15 = vmmov %vm14063_vm7  ;;  %v4813_v11 = vrot.slane %v13831_v20, 4  ;;  %v4817_v55 = vrot.slane %v13929_v15, 2 }
 0x846   :  { %v4734_v22 = vsel %vm14073_vm15, %v4733_v27, %v4732_v29  ;;  %vm14074_vm8 = vmmov %vm14069_vm5  ;;  %v4797_v20 = vrot.slane %v13847_v40, 5  ;;  %v4805_v27 = vrot.slane %v13856_v48, 1 }
 0x847   :  { %v4847_v30 = vsel %vm14074_vm8, %v4843_v12, %v11678_v37  ;;  %vm14075_vm0 = vmmov %vm14065_vm6  ;;  %v4794_v37 = vrot.slane %v13850_v25, 7 }
 0x848   :  { %v4736_v38 = vsel %vm14075_vm0, %v4735_v0, %v4734_v22  ;;  %vm14076_vm13 = vmmov %vm14062_vm2  ;;  %v4787_v0 = vrot.slane %v10667_v62, 3  ;;  %v4251_v18 = vpop.permute.xlu1 %4250 }
 0x849   :  { %v4737_v58 = vsel %vm14076_vm13, %v13856_v48, %v4736_v38  ;;  %vm14077_vm12 = vmmov %vm14066_vm14  ;;  %v4249_v48 = vpop.permute.xlu0 %4248 }
 0x84a   :  { %v4810_v8 = vsel %vm14077_vm12, %v4809_v10, %v4808_v23  ;;  %vm14078_vm2 = vmmov %vm14064_vm1 }
 0x84b   :  { %v4739_v53 = vsel %vm14078_vm2, %v4738_v54, %v4737_v58  ;;  %vm14079_vm7 = vmmov %vm14068_vm4 }
 0x84c   :  { %v4812_v59 = vsel %vm14079_vm7, %v4811_v9, %v4810_v8  ;;  %4758 = vrot.lane.b32.xlu2 %v4739_v53, %s5236_s6  ;;  %vm14080_vm1 = vmmov %vm14071_vm11  ;;  %vm14094_vm7 = vcmask 130048  }
 0x84d   :  { %v4814_v15 = vsel %vm14080_vm1, %v4813_v11, %v4812_v59  ;;  %vm14081_vm6 = vmmov %vm14073_vm15  ;;  %v4846_v12 = vsel %vm14094_vm7, %v11694_v4, %v11613_v56 }
 0x84e   :  { %v4816_v25 = vsel %vm14081_vm6, %v4815_v26, %v4814_v15  ;;  %vm14082_vm14 = vmmov %vm14077_vm12 }
 0x84f   :  { %v4796_v46 = vsel %vm14082_vm14, %v4795_v35, %v4794_v37  ;;  %vm14083_vm9 = vmmov %vm14075_vm0 }
 0x850   :  { %v4818_v40 = vsel %vm14083_vm9, %v4817_v55, %v4816_v25  ;;  %v4798_v41 = vsel %vm14068_vm4, %v4797_v20, %v4796_v46  ;;  %vm14084_vm5 = vmmov %vm14076_vm13  ;;  %vm14091_vm13 = vcmask 162816  }
 0x851   :  { %v4820_v31 = vsel %vm14084_vm5, %v4819_v6, %v4818_v40  ;;  %vm14085_vm3 = vmmov %vm14080_vm1  ;;  %v4851_v62 = vsel %vm14091_vm13, %v4847_v30, %v11732_v60  ;;  %v4347_v38 = vpop.permute.xlu0 %4346 }
 0x852   :  { %v4800_v19 = vsel %vm14085_vm3, %v4799_v51, %v4798_v41  ;;  %vm14086_vm11 = vmmov %vm14078_vm2  ;;  %vm14101_vm3 = vcmask 195584  }
 0x853   :  { %v4821_v50 = vsel %vm14086_vm11, %v13933_v44, %v4820_v31  ;;  %vm14087_vm10 = vmmov %vm14081_vm6 }
 0x854   :  { %v4802_v52 = vsel %vm14087_vm10, %v4801_v47, %v4800_v19  ;;  %vm14088_vm15 = vmmov %vm14077_vm12  ;;  %4828 = vrot.lane.b32.xlu1 %v4821_v50, %s5237_s23 }
 0x855   :  { %v4782_v54 = vsel %vm14088_vm15, %v4781_v57, %v4780_v45  ;;  %vm14089_vm8 = vmmov %vm14075_vm0 }
 0x856   :  { %v4804_v13 = vsel %vm14089_vm8, %v4803_v5, %v4802_v52  ;;  %vm14090_vm0 = vmmov %vm14068_vm4 }
 0x857   :  { %v4784_v49 = vsel %vm14090_vm0, %v4783_v32, %v4782_v54  ;;  %vm14092_vm12 = vmmov %vm14084_vm5 }
 0x858   :  { %v4806_v29 = vsel %vm14092_vm12, %v4805_v27, %v4804_v13  ;;  %vm14093_vm2 = vmmov %vm14080_vm1 }
 0x859   :  { %v4786_v44 = vsel %vm14093_vm2, %v4785_v2, %v4784_v49  ;;  %vm14095_vm1 = vmmov %vm14094_vm7 }
 0x85a   :  { %v4849_v16 = vsel %vm14095_vm1, %v11755_v34, %v11670_v36  ;;  %vm14096_vm6 = vmmov %vm14086_vm11  ;;  %v4253_v34 = vpop.permute.xlu2 %4252 }
 0x85b   :  { %v4807_v23 = vsel %vm14096_vm6, %v13857_v14, %v4806_v29  ;;  %vm14097_vm14 = vmmov %vm14087_vm10 }
 0x85c   :  { %v4788_v3 = vsel %vm14097_vm14, %v4787_v0, %v4786_v44  ;;  %vm14098_vm9 = vmmov %vm14091_vm13  ;;  %4826 = vrot.lane.b32.xlu0 %v4807_v23, %s5237_s23  ;;  %vm14107_vm13 = vcmask 228352  }
 0x85d   :  { %v4850_v60 = vsel %vm14098_vm9, %v4846_v12, %v11734_v1  ;;  %vm14099_vm4 = vmmov %vm14098_vm9 }
 0x85e   :  { %v4853_v22 = vsel %vm14099_vm4, %v4849_v16, %v11781_v43  ;;  %vm14100_vm5 = vmmov %vm14089_vm8  ;;  %v4854_v56 = vsel %vm14101_vm3, %v4850_v60, %v11779_v28 }
 0x85f   :  { %v4790_v30 = vsel %vm14100_vm5, %v4789_v42, %v4788_v3  ;;  %vm14102_vm11 = vmmov %vm14101_vm3  ;;  %v4858_v10 = vsel %vm14107_vm13, %v4854_v56, %v4247_v33  ;;  %vm4870_vm5 = vcmask 326656  }
 0x860   :  { %v4857_v36 = vsel %vm14102_vm11, %v4853_v22, %v4185_v63  ;;  %vm14103_vm10 = vmmov %vm14099_vm4  ;;  %vm14115_vm4 = vcmask 293888  }
 0x861   :  { %v4852_v14 = vsel %vm14103_vm10, %v11818_v39, %v11726_v17  ;;  %vm14104_vm15 = vmmov %vm14092_vm12  ;;  %v4349_v39 = vpop.permute.xlu1 %4348  ;;  %vm4875_vm10 = vcmask 359424  }
 0x862   :  { %v4792_v4 = vsel %vm14104_vm15, %v4791_v61, %v4790_v30  ;;  %vm14105_vm8 = vmmov %vm14101_vm3  ;;  %v4351_v58 = vpop.permute.xlu2 %4350  ;;  %vm4880_vm15 = vcmask 392192  }
 0x863   :  { %v4856_v1 = vsel %vm14105_vm8, %v4852_v14, %v11826_v24  ;;  %vm14106_vm0 = vmmov %vm14101_vm3  ;;  %vm4885_vm8 = vcmask 424960  }
 0x864   :  { %v4855_v43 = vsel %vm14106_vm0, %v4851_v62, %v11792_v7  ;;  %vm14108_vm12 = vmmov %vm14096_vm6  ;;  %vm14112_vm6 = vcmask 261120   ;;  %v4353_v7 = vpop.permute.xlu0 %4352 }
 0x865   :  { %v4793_v28 = vsel %vm14108_vm12, %v10686_v21, %v4792_v4  ;;  %vm14109_vm2 = vmmov %vm14107_vm13  ;;  %vm4890_vm12 = vcmask 457728  }
 0x866   :  { %v4860_v63 = vsel %vm14109_vm2, %v4856_v1, %v4251_v18  ;;  %vm14110_vm7 = vmmov %vm14109_vm2  ;;  %4824 = vrot.lane.b32.xlu2 %v4793_v28, %s5237_s23 }
 0x867   :  { %v4859_v9 = vsel %vm14110_vm7, %v4855_v43, %v4249_v48  ;;  %vm14111_vm1 = vmmov %vm14109_vm2  ;;  %vm4895_vm2 = vcmask 490496   ;;  %vm14120_vm7 = vcmask 1041409  }
 0x868   :  { %v4861_v17 = vsel %vm14111_vm1, %v4857_v36, %v4253_v34  ;;  %v4863_v24 = vsel %vm14112_vm6, %v4859_v9, %v4349_v39  ;;  %vm14113_vm14 = vmmov %vm14112_vm6 }
 0x869   :  { %v4862_v11 = vsel %vm14113_vm14, %v4858_v10, %v4347_v38  ;;  %vm14114_vm9 = vmmov %vm14112_vm6  ;;  %v4415_v55 = vpop.permute.xlu1 %4414 }
 0x86a   :  { %v4865_v26 = vsel %vm14114_vm9, %v4861_v17, %v4353_v7  ;;  %v4417_v6 = vpop.permute.xlu2 %4416  ;;  %v4866_v31 = vsel %vm14115_vm4, %v4862_v11, %v4415_v55  ;;  %vm14116_vm3 = vmmov %vm14112_vm6 }
 0x86b   :  { %v4864_v19 = vsel %vm14116_vm3, %v4860_v63, %v4351_v58  ;;  %vm14117_vm11 = vmmov %vm14115_vm4 }
 0x86c   :  { %v4419_v21 = vpop.permute.xlu0 %4418  ;;  %vm14118_vm0 = vmmov %vm14115_vm4 }
 0x86d   :  { %v4868_v0 = vsel %vm14117_vm11, %v4864_v19, %v4419_v21  ;;  %vm14119_vm13 = vmmov %vm14118_vm0  ;;  %vm4980_vm11 = vcmask 523264  }
 0x86e   :  { %v4867_v13 = vsel %vm14119_vm13, %v4863_v24, %v4417_v6  ;;  %vm14121_vm1 = vmmov %vm14120_vm7 }
 0x86f   :  { %vm14122_vm6 = vmmov %vm14121_vm1 }
 0x870   :  { %vm14123_vm14 = vmmov %vm14121_vm1 }
 0x871   :  { %v4421_v8 = vpop.permute.xlu1 %4420  ;;  %vm14124_vm9 = vmmov %vm14121_vm1 }
 0x872   :  { %v4483_v59 = vpop.permute.xlu2 %4482  ;;  %v4869_v42 = vsel %vm14118_vm0, %v4865_v26, %v4421_v8  ;;  %vm14125_vm4 = vmmov %vm14121_vm1 }
 0x873   :  { %v4871_v18 = vsel %vm4870_vm5, %v4866_v31, %v4483_v59  ;;  %vm14127_vm3 = vmmov %vm14121_vm1 }
 0x874   :  { %v4485_v37 = vpop.permute.xlu0 %4484  ;;  %vm14130_vm0 = vmmov %vm14121_vm1 }
 0x875   :  { %v4872_v61 = vsel %vm4870_vm5, %v4867_v13, %v4485_v37  ;;  %vm14131_vm13 = vmmov %vm14130_vm0 }
 0x879   :  { %v4487_v53 = vpop.permute.xlu1 %4486 }
 0x87a   :  { %v4489_v33 = vpop.permute.xlu2 %4488  ;;  %v4873_v48 = vsel %vm4870_vm5, %v4868_v0, %v4487_v53 }
 0x87b   :  { %v4874_v3 = vsel %vm4870_vm5, %v4869_v42, %v4489_v33  ;;  %vm14126_vm5 = vmmov %vm14121_vm1 }
 0x87c   :  { %v4551_v35 = vpop.permute.xlu0 %4550 }
 0x87d   :  { %v4876_v50 = vsel %vm4875_vm10, %v4871_v18, %v4551_v35 }
 0x881   :  { %v4553_v20 = vpop.permute.xlu1 %4552 }
 0x882   :  { %v4555_v47 = vpop.permute.xlu2 %4554  ;;  %v4877_v12 = vsel %vm4875_vm10, %v4872_v61, %v4553_v20 }
 0x883   :  { %v4878_v49 = vsel %vm4875_vm10, %v4873_v48, %v4555_v47 }
 0x884   :  { %v4557_v15 = vpop.permute.xlu0 %4556 }
 0x885   :  { %v4879_v22 = vsel %vm4875_vm10, %v4874_v3, %v4557_v15  ;;  %vm14128_vm10 = vmmov %vm14121_vm1 }
 0x889   :  { %v4619_v51 = vpop.permute.xlu1 %4618 }
 0x88a   :  { %v4621_v46 = vpop.permute.xlu2 %4620  ;;  %v4881_v54 = vsel %vm4880_vm15, %v4876_v50, %v4619_v51 }
 0x88b   :  { %v4882_v56 = vsel %vm4880_vm15, %v4877_v12, %v4621_v46 }
 0x88c   :  { %v4623_v5 = vpop.permute.xlu0 %4622 }
 0x88d   :  { %v4883_v62 = vsel %vm4880_vm15, %v4878_v49, %v4623_v5 }
 0x891   :  { %v4625_v25 = vpop.permute.xlu1 %4624 }
 0x892   :  { %v4687_v40 = vpop.permute.xlu2 %4686  ;;  %v4884_v30 = vsel %vm4880_vm15, %v4879_v22, %v4625_v25  ;;  %vm5003_vm15 = vcmask 1041408  }
 0x893   :  { %v4886_v44 = vsel %vm4885_vm8, %v4881_v54, %v4687_v40 }
 0x894   :  { %v4689_v27 = vpop.permute.xlu0 %4688 }
 0x895   :  { %v4887_v4 = vsel %vm4885_vm8, %v4882_v56, %v4689_v27 }
 0x899   :  { %v4691_v45 = vpop.permute.xlu1 %4690 }
 0x89a   :  { %v4693_v32 = vpop.permute.xlu2 %4692  ;;  %v4888_v16 = vsel %vm4885_vm8, %v4883_v62, %v4691_v45 }
 0x89b   :  { %v4889_v38 = vsel %vm4885_vm8, %v4884_v30, %v4693_v32  ;;  %vm14129_vm8 = vmmov %vm14121_vm1 }
 0x8a1   :  { %v4757_v57 = vpop.permute.xlu1 %4756 }
 0x8a2   :  { %v4892_v39 = vsel %vm4890_vm12, %v4887_v4, %v4757_v57 }
 0x8a3   :  { %v4755_v41 = vpop.permute.xlu0 %4754 }
 0x8a4   :  { %v4891_v23 = vsel %vm4890_vm12, %v4886_v44, %v4755_v41 }
 0x8a6   :  { %v4759_v29 = vpop.permute.xlu2 %4758 }
 0x8a7   :  { %v4893_v14 = vsel %vm4890_vm12, %v4888_v16, %v4759_v29 }
 0x8b2   :  { %v4823_v52 = vpop.permute.xlu1 %4822 }
 0x8b3   :  { %v11931_v60 = vsel %vm4895_vm2, %v4891_v23, %v4823_v52 }
 0x8b4   :  { %v4934_v1 = vrot.slane %v11931_v60, 7  ;;  %v4924_v43 = vrot.slane %v11931_v60, 5  ;;  %v4914_v9 = vrot.slane %v11931_v60, 3  ;;  %v4905_v47 = vrot.slane %v11931_v60, 1 }
 0x8b5   :  { %v4910_v40 = vrot.slane %v11931_v60, 2  ;;  %v4920_v0 = vrot.slane %v11931_v60, 4 }
 0x8b7   :  { %v4761_v2 = vpop.permute.xlu0 %4760 }
 0x8b8   :  { %v4894_v24 = vsel %vm4890_vm12, %v4889_v38, %v4761_v2  ;;  %v4930_v2 = vrot.slane %v11931_v60, 6  ;;  %vm5005_vm12 = vcmask 1045508  }
 0x8c0   :  { %v4825_v58 = vpop.permute.xlu2 %4824 }
 0x8c1   :  { %v11952_v21 = vsel %vm4895_vm2, %v4892_v39, %v4825_v58 }
 0x8c2   :  { %v4974_v53 = vrot.slane %v11952_v21, 7  ;;  %v4964_v59 = vrot.slane %v11952_v21, 5  ;;  %v4954_v35 = vrot.slane %v11952_v21, 3  ;;  %v4945_v51 = vrot.slane %v11952_v21, 1 }
 0x8c3   :  { %v4970_v30 = vrot.slane %v11952_v21, 6  ;;  %v4950_v4 = vrot.slane %v11952_v21, 2 }
 0x8c6   :  { %v4829_v10 = vpop.permute.xlu1 %4828 }
 0x8c7   :  { %v11949_v55 = vsel %vm4895_vm2, %v4894_v24, %v4829_v10 }
 0x8c8   :  { %v4975_v8 = vrot.slane %v11949_v55, 6  ;;  %v4965_v6 = vrot.slane %v11949_v55, 4  ;;  %v4955_v37 = vrot.slane %v11949_v55, 2  ;;  %v4946_v5 = vsel %vm14126_vm5, %v11949_v55, %v4945_v51 }
 0x8c9   :  { %v4971_v3 = vrot.slane %v11949_v55, 5  ;;  %v4951_v22 = vrot.slane %v11949_v55, 1 }
 0x8ca   :  { %v4976_v20 = vsel %vm14123_vm14, %v4975_v8, %v4974_v53  ;;  %v4966_v33 = vsel %vm14124_vm9, %v4965_v6, %v4964_v59  ;;  %v4956_v15 = vsel %vm14125_vm4, %v4955_v37, %v4954_v35  ;;  %vm14136_vm14 = vmmov %vm14130_vm0 }
 0x8ce   :  { %v4827_v36 = vpop.permute.xlu0 %4826 }
 0x8cf   :  { %v4898_v34 = vsel %vm4895_vm2, %v4893_v14, %v4827_v36  ;;  %vm14132_vm2 = vcmask 1043456   ;;  %v4960_v36 = vrot.slane %v11952_v21, 4 }
 0x8d0   :  { %v4935_v28 = vrot.slane %v4898_v34, 6  ;;  %v4925_v63 = vrot.slane %v4898_v34, 4  ;;  %v4915_v17 = vrot.slane %v4898_v34, 2  ;;  %v4906_v25 = vsel %vm14127_vm3, %v4898_v34, %v4905_v47  ;;  %vm14137_vm9 = vmmov %vm14132_vm2 }
 0x8d1   :  { %v4911_v45 = vrot.slane %v4898_v34, 1  ;;  %v4902_v41 = vrot.slane %v4898_v34, 7  ;;  %v4931_v57 = vrot.slane %v4898_v34, 5  ;;  %v4921_v32 = vrot.slane %v4898_v34, 3 }
 0x8d2   :  { %v4936_v11 = vsel %vm14120_vm7, %v4935_v28, %v4934_v1  ;;  %v4926_v7 = vsel %vm14121_vm1, %v4925_v63, %v4924_v43  ;;  %v4916_v26 = vsel %vm14122_vm6, %v4915_v17, %v4914_v9  ;;  %vm14133_vm7 = vmmov %vm14130_vm0  ;;  %v4942_v63 = vrot.slane %v11949_v55, 7 }
 0x8d3   :  { %4937 = vrot.lane.b32.xlu1 %v4936_v11, %s5238_s24  ;;  %4927 = vrot.lane.b32.xlu0 %v4926_v7, %s5238_s24  ;;  %v4912_v31 = vsel %vm14128_vm10, %v4911_v45, %v4910_v40  ;;  %v4903_v48 = vsel %vm14129_vm8, %v4902_v41, %v11931_v60  ;;  %v4932_v52 = vsel %vm14130_vm0, %v4931_v57, %v4930_v2  ;;  %v4961_v60 = vrot.slane %v11949_v55, 3  ;;  %vm14134_vm1 = vmmov %vm14130_vm0 }
 0x8d4   :  { %4917 = vrot.lane.b32.xlu2 %v4916_v26, %s5238_s24  ;;  %v4922_v42 = vsel %vm14131_vm13, %v4921_v32, %v4920_v0  ;;  %v4972_v34 = vsel %vm14133_vm7, %v4971_v3, %v4970_v30  ;;  %vm14135_vm6 = vmmov %vm14130_vm0  ;;  %v4943_v24 = vsel %vm14136_vm14, %v4942_v63, %v11952_v21 }
 0x8d5   :  { %v4962_v1 = vsel %vm14134_vm1, %v4961_v60, %v4960_v36  ;;  %v4952_v28 = vsel %vm14135_vm6, %v4951_v22, %v4950_v4 }
 0x8db   :  { %4977 = vrot.lane.b32.xlu1 %v4976_v20, %s5238_s24  ;;  %4967 = vrot.lane.b32.xlu0 %v4966_v33, %s5238_s24 }
 0x8dc   :  { %4957 = vrot.lane.b32.xlu2 %v4956_v15, %s5238_s24 }
 0x8e3   :  { %4947 = vrot.lane.b32.xlu0 %v4946_v5, %s5238_s24 }
 0x8e4   :  { %4907 = vrot.lane.b32.xlu2 %v4906_v25, %s5238_s24 }
 0x92e   :  { %v4918_v46 = vpop.permute.xlu2 %4917 }
 0x92f   :  { %v4982_v18 = vsel %vm4980_vm11, %v4912_v31, %v4918_v46 }
 0x930   :  { %v4997_v62 = vrot.slane %v4982_v18, 6 }
 0x936   :  { %v4958_v27 = vpop.permute.xlu2 %4957 }
 0x937   :  { %v4986_v9 = vsel %vm4980_vm11, %v4952_v28, %v4958_v27 }
 0x938   :  { %v5000_v38 = vrot.slane %v4986_v9, 6 }
 0x93e   :  { %v4908_v19 = vpop.permute.xlu2 %4907 }
 0x93f   :  { %v4981_v13 = vsel %vm4980_vm11, %v4903_v48, %v4908_v19 }
 0x940   :  { %v5004_v12 = vsel %vm5003_vm15, %v4981_v13, %v4997_v62 }
 0x945   :  { %v4938_v50 = vpop.permute.xlu1 %4937  ;;  %v4928_v54 = vpop.permute.xlu0 %4927 }
 0x946   :  { %v4984_v49 = vsel %vm4980_vm11, %v4932_v52, %v4938_v50  ;;  %v4983_v61 = vsel %vm4980_vm11, %v4922_v42, %v4928_v54 }
 0x947   :  { %v4999_v29 = vrot.slane %v4984_v49, 2  ;;  %v4998_v44 = vrot.slane %v4983_v61, 4 }
 0x949   :  { %v5006_v16 = vsel %vm5005_vm12, %v4998_v44, %v4999_v29 }
 0x94a   :  { %v5007_v23 = vsel %vm14132_vm2, %v5004_v12, %v5006_v16 }
 0x94b   :  { %5013 = vst [vmem:[%s12013_s5] sm:$0xff] %v5007_v23 }
 0x94d   :  { %v4978_v56 = vpop.permute.xlu1 %4977  ;;  %v4968_v14 = vpop.permute.xlu0 %4967 }
 0x94e   :  { %v4988_v43 = vsel %vm4980_vm11, %v4972_v34, %v4978_v56  ;;  %v4987_v10 = vsel %vm4980_vm11, %v4962_v1, %v4968_v14 }
 0x94f   :  { %v5002_v17 = vrot.slane %v4988_v43, 2  ;;  %v5001_v39 = vrot.slane %v4987_v10, 4 }
 0x951   :  { %v5009_v26 = vsel %vm5005_vm12, %v5001_v39, %v5002_v17 }
 0x955   :  { %v4948_v11 = vpop.permute.xlu0 %4947 }
 0x956   :  { %v4985_v7 = vsel %vm4980_vm11, %v4943_v24, %v4948_v11 }
 0x957   :  { %v5008_v58 = vsel %vm5003_vm15, %v4985_v7, %v5000_v38 }
 0x958   :  { %v5010_v8 = vsel %vm14137_vm9, %v5008_v58, %v5009_v26 }
 0x959   :  { %5014 = vst [vmem:[%s12013_s5 + $0x8] sm:$0xff] %v5010_v8 }

</bundles_post_ra>
